<compile_context>
chip_gen: v5e
topology: v5e:2x2
jax: 0.10.0
libtpu: 0.0.40
codegen_flags: <defaults>
</compile_context>

<pallas_src>
import functools

import jax
import jax.numpy as jnp
from jax import lax
from jax.experimental import pallas as pl
from jax.experimental.pallas import tpu as pltpu

EPS = 1e-5
_ROW_TARGET = 512                 # target conv-output rows per tile (TM = TH * W)
_VMEM_LIMIT = 48 * 1024 * 1024    # <= v7x physical 64 MiB, generous on v5e/v6e


def _round_up(x, m):
    return (x + m - 1) // m * m


def _compiler_params(n_axes):
    return pltpu.CompilerParams(
        dimension_semantics=("parallel",) * n_axes,
        vmem_limit_bytes=_VMEM_LIMIT,
    )


# ---------------------------------------------------------------------------
# Pass 1: conv built in-kernel from dy-shifted row bands + partial BN stats
# ---------------------------------------------------------------------------
def _conv_stats_kernel(x_ref, w_ref, y_ref, stats_ref, *, img_h, tile_h, img_w, c_in):
    """x_ref    : (3, TH, W+2, Cin) bf16  -- dy-shifted padded row bands
       w_ref    : (9*Cin, Cp)       bf16  -- folded conv taps (tap-major, Cin minor)
       y_ref    : (1, TM, Cp)       bf16  -- pre-BN conv output tile
       stats_ref: (1, 2, Cp)        f32   -- row 0: sum over valid rows, row 1: M2
    """
    tm = tile_h * img_w
    cp = w_ref.shape[1]

    acc = jnp.zeros((tm, cp), jnp.float32)
    for dy in range(3):
        for dx in range(3):
            tap = dy * 3 + dx
            patch = x_ref[dy, :, dx:dx + img_w, :].reshape(tm, c_in)       # bf16
            acc += jnp.dot(patch, w_ref[tap * c_in:(tap + 1) * c_in, :],
                           preferred_element_type=jnp.float32)

    y_ref[...] = acc.reshape(y_ref.shape).astype(y_ref.dtype)

    if img_h % tile_h == 0:                      # every tile is fully valid
        s = jnp.sum(acc, axis=0, keepdims=True)
        mu = s * (1.0 / tm)
        d = acc - mu
        m2 = jnp.sum(d * d, axis=0, keepdims=True)
    else:                                        # mask rows past the image height
        i = pl.program_id(1)
        valid_rows = jnp.minimum(tile_h, img_h - i * tile_h)
        cnt = (valid_rows * img_w).astype(jnp.float32)
        ridx = lax.broadcasted_iota(jnp.int32, (tm, 1), 0) // img_w
        msk = ridx < valid_rows
        s = jnp.sum(jnp.where(msk, acc, 0.0), axis=0, keepdims=True)
        mu = s / cnt
        d = jnp.where(msk, acc - mu, 0.0)
        m2 = jnp.sum(d * d, axis=0, keepdims=True)

    stats_ref[:, 0:1, :] = s.reshape(1, 1, cp)
    stats_ref[:, 1:2, :] = m2.reshape(1, 1, cp)


# ---------------------------------------------------------------------------
# Pass 2: pure elementwise BN-apply + ReLU (no matmul, reads y only)
# ---------------------------------------------------------------------------
def _bn_relu_kernel(y_ref, scale_ref, shift_ref, o_ref):
    y = y_ref[...].astype(jnp.float32)                       # (1, TM, Cp)
    o_ref[...] = jnp.maximum(y * scale_ref[...] + shift_ref[...], 0.0).astype(o_ref.dtype)


# ---------------------------------------------------------------------------
# One (conv -> BN -> ReLU) stage
# ---------------------------------------------------------------------------
def _conv_bn_relu_stage(x_nhwc, w_oihw, gamma, beta, out_dtype):
    N, H, W, Cin = x_nhwc.shape
    Cout = w_oihw.shape[0]
    K = 9 * Cin
    Cp = _round_up(Cout, 128)

    TH = max(1, min(H, _ROW_TARGET // max(W, 1)))
    nH = -(-H // TH)                  # ceil
    H_pad = nH * TH
    TM = TH * W
    T = N * nH

    # conv halo padding (+1 ring) plus zero rows up to H_pad, bf16 once
    xb = x_nhwc.astype(jnp.bfloat16)
    xpad = jnp.pad(xb, ((0, 0), (1, 1 + H_pad - H), (1, 1), (0, 0)))
    # three dy-shifted row views (3x activation instead of a 9x im2col slab)
    xs = jnp.stack([xpad[:, dy:dy + H_pad] for dy in range(3)], axis=1)
    xs = xs.reshape(N * 3, H_pad, W + 2, Cin)

    # folded weights: (Cout,Cin,3,3) -> (dy,dx,Cin,Cout) -> (9*Cin, Cp) bf16
    wf = jnp.transpose(w_oihw, (2, 3, 1, 0)).reshape(K, Cout)
    wf = jnp.pad(wf, ((0, 0), (0, Cp - Cout))).astype(jnp.bfloat16)

    kern = functools.partial(_conv_stats_kernel,
                             img_h=H, tile_h=TH, img_w=W, c_in=Cin)
    y, stats = pl.pallas_call(
        kern,
        out_shape=(jax.ShapeDtypeStruct((T, TM, Cp), jnp.bfloat16),
                   jax.ShapeDtypeStruct((T, 2, Cp), jnp.float32)),
        grid=(N, nH),
        in_specs=[pl.BlockSpec((3, TH, W + 2, Cin), lambda n, i: (n, i, 0, 0)),
                  pl.BlockSpec((K, Cp), lambda n, i: (0, 0))],
        out_specs=(pl.BlockSpec((1, TM, Cp), lambda n, i: (n * nH + i, 0, 0)),
                   pl.BlockSpec((1, 2, Cp), lambda n, i: (n * nH + i, 0, 0))),
        compiler_params=_compiler_params(2),
    )(xs, wf)

    # combine per-tile partial stats (Chan parallel form, true row counts), f32
    rows_per_tile = jnp.minimum(TH, H - jnp.arange(nH) * TH)                # (nH,)
    counts = jnp.tile(rows_per_tile * W, N).astype(jnp.float32)[:, None]    # (T,1)
    total = jnp.float32(N * H * W)
    tile_sum = stats[:, 0, :]                                               # (T,Cp)
    tile_m2 = stats[:, 1, :]
    mean = jnp.sum(tile_sum, axis=0, keepdims=True) / total                 # (1,Cp)
    tile_mean = tile_sum / counts
    m2 = (jnp.sum(tile_m2, axis=0, keepdims=True)
          + jnp.sum(counts * (tile_mean - mean) ** 2, axis=0, keepdims=True))
    var = m2 / total                 # biased variance (matches BatchNorm2d normalization)
    inv_std = lax.rsqrt(var + EPS)

    g = jnp.pad(gamma.astype(jnp.float32), (0, Cp - Cout)).reshape(1, 1, Cp)
    b = jnp.pad(beta.astype(jnp.float32), (0, Cp - Cout)).reshape(1, 1, Cp)
    scale = g * inv_std.reshape(1, 1, Cp)
    shift = b - mean.reshape(1, 1, Cp) * scale

    out = pl.pallas_call(
        _bn_relu_kernel,
        out_shape=jax.ShapeDtypeStruct((T, TM, Cp), out_dtype),
        grid=(T,),
        in_specs=[pl.BlockSpec((1, TM, Cp), lambda t: (t, 0, 0)),
                  pl.BlockSpec((1, 1, Cp), lambda t: (0, 0, 0)),
                  pl.BlockSpec((1, 1, Cp), lambda t: (0, 0, 0))],
        out_specs=pl.BlockSpec((1, TM, Cp), lambda t: (t, 0, 0)),
        compiler_params=_compiler_params(1),
    )(y, scale, shift)

    out = out.reshape(N, H_pad, W, Cp)
    if H_pad != H:
        out = out[:, :H]
    if Cp != Cout:        # no-op (skipped) at UNet widths where Cout % 128 == 0
        out = out[..., :Cout]
    return out


@jax.jit
def double_conv(x_nchw, params):
    """DoubleConv forward. x_nchw: (N, Cin, H, W) f32 -> (N, Cout, H, W) f32."""
    w1, g1, b1, w2, g2, b2 = params
    x = jnp.transpose(x_nchw, (0, 2, 3, 1))                  # NCHW -> NHWC
    h = _conv_bn_relu_stage(x, w1, g1, b1, out_dtype=jnp.bfloat16)   # bf16 inter-stage
    y = _conv_bn_relu_stage(h, w2, g2, b2, out_dtype=jnp.float32)
    return jnp.transpose(y, (0, 3, 1, 2))                    # NHWC -> NCHW


# ---------------------------------------------------------------------------
# Plain-JAX references
# ---------------------------------------------------------------------------
def _bn_relu(y, g, b):
    mean = jnp.mean(y, axis=(0, 2, 3), keepdims=True)
    var = jnp.mean((y - mean) ** 2, axis=(0, 2, 3), keepdims=True)
    y = (y - mean) * lax.rsqrt(var + EPS)
    y = y * g.reshape(1, -1, 1, 1) + b.reshape(1, -1, 1, 1)
    return jnp.maximum(y, 0.0)


def _reference(x, params, matched):
    """Training-mode DoubleConv.  matched=True mirrors the kernel precision policy
    (bf16 conv inputs, f32 accumulation, bf16 pre-BN conv output, bf16 inter-stage)."""
    w1, g1, b1, w2, g2, b2 = params
    cdt = jnp.bfloat16 if matched else jnp.float32

    def conv(x_, w_):
        y = lax.conv_general_dilated(
            x_.astype(cdt), w_.astype(cdt), (1, 1), ((1, 1), (1, 1)),
            dimension_numbers=("NCHW", "OIHW", "NCHW"),
            preferred_element_type=jnp.float32)
        if matched:
            y = y.astype(jnp.bfloat16).astype(jnp.float32)
        return y

    h = _bn_relu(conv(x, w1), g1, b1)
    if matched:
        h = h.astype(jnp.bfloat16)
    return _bn_relu(conv(h, w2), g2, b2)


if __name__ == "__main__":
    key = jax.random.PRNGKey(0)
    N, Cin, H, W = 2, 4, 16, 16
    Cmid = Cout = 8   # mid_channels defaults to out_channels

    k = jax.random.split(key, 7)
    x = jax.random.normal(k[0], (N, Cin, H, W), jnp.float32)
    w1 = jax.random.normal(k[1], (Cmid, Cin, 3, 3), jnp.float32) * 0.1
    g1 = 1.0 + 0.1 * jax.random.normal(k[2], (Cmid,), jnp.float32)
    b1 = 0.1 * jax.random.normal(k[3], (Cmid,), jnp.float32)
    w2 = jax.random.normal(k[4], (Cout, Cmid, 3, 3), jnp.float32) * 0.1
    g2 = 1.0 + 0.1 * jax.random.normal(k[5], (Cout,), jnp.float32)
    b2 = 0.1 * jax.random.normal(k[6], (Cout,), jnp.float32)
    params = (w1, g1, b1, w2, g2, b2)

    out = jax.block_until_ready(double_conv(x, params))
    assert out.shape == (N, Cout, H, W), out.shape

    # Tight check vs a reference using the same precision policy.
    ref_m = jax.block_until_ready(_reference(x, params, matched=True))
    err_m = float(jnp.max(jnp.abs(out - ref_m)))
    assert err_m < 3e-2, f"mismatch vs precision-matched reference: {err_m}"

    # Loose sanity check vs exact f32 PyTorch semantics (bf16 MXU inputs are a
    # deliberate throughput/precision tradeoff).
    ref_f = jax.block_until_ready(_reference(x, params, matched=False))
    err_f = float(jnp.max(jnp.abs(out - ref_f)))
    assert err_f < 1.5e-1, f"mismatch vs f32 reference: {err_f}"

    print("KERNEL_OK")
</pallas_src>

<mosaic_0001>
module attributes {stable_mosaic.version = 11 : i64} {
  func.func @_bn_relu_kernel(%arg0: i32, %arg1: memref<1x256x128xbf16, #tpu.memory_space<vmem>>, %arg2: memref<1x1x128xf32, #tpu.memory_space<vmem>>, %arg3: memref<1x1x128xf32, #tpu.memory_space<vmem>>, %arg4: memref<1x256x128xbf16, #tpu.memory_space<vmem>>) attributes {dimension_semantics = [#tpu.dimension_semantics<parallel>], iteration_bounds = array<i64: 2>, scalar_prefetch = 0 : i64, scratch_operands = 0 : i64, tpu.core_type = #tpu.core_type<tc>, window_params = [{transform_indices = @transform_0, window_bounds = array<i64: 1, 256, 128>}, {pipeline_mode = #tpu.pipeline_mode<synchronous>, transform_indices = @transform_1, window_bounds = array<i64: 1, 1, 128>}, {pipeline_mode = #tpu.pipeline_mode<synchronous>, transform_indices = @transform_2, window_bounds = array<i64: 1, 1, 128>}, {transform_indices = @transform_3, window_bounds = array<i64: 1, 256, 128>}]} {
    %c0 = arith.constant 0 : index
    %c0_0 = arith.constant 0 : index
    %c0_1 = arith.constant 0 : index
    %0 = vector.load %arg1[%c0, %c0_0, %c0_1] : memref<1x256x128xbf16, #tpu.memory_space<vmem>>, vector<1x256x128xbf16>
    %1 = arith.extf %0 : vector<1x256x128xbf16> to vector<1x256x128xf32>
    %c0_2 = arith.constant 0 : index
    %c0_3 = arith.constant 0 : index
    %c0_4 = arith.constant 0 : index
    %2 = vector.load %arg2[%c0_2, %c0_3, %c0_4] : memref<1x1x128xf32, #tpu.memory_space<vmem>>, vector<1x1x128xf32>
    %3 = vector.broadcast %2 : vector<1x1x128xf32> to vector<1x256x128xf32>
    %4 = arith.mulf %1, %3 : vector<1x256x128xf32>
    %c0_5 = arith.constant 0 : index
    %c0_6 = arith.constant 0 : index
    %c0_7 = arith.constant 0 : index
    %5 = vector.load %arg3[%c0_5, %c0_6, %c0_7] : memref<1x1x128xf32, #tpu.memory_space<vmem>>, vector<1x1x128xf32>
    %6 = vector.broadcast %5 : vector<1x1x128xf32> to vector<1x256x128xf32>
    %7 = arith.addf %4, %6 : vector<1x256x128xf32>
    %cst = arith.constant 0.000000e+00 : f32
    %8 = vector.broadcast %cst : f32 to vector<1x256x128xf32>
    %9 = arith.maximumf %7, %8 : vector<1x256x128xf32>
    %10 = arith.truncf %9 : vector<1x256x128xf32> to vector<1x256x128xbf16>
    %c0_8 = arith.constant 0 : index
    %c0_9 = arith.constant 0 : index
    %c0_10 = arith.constant 0 : index
    %11 = vector.load %arg4[%c0_8, %c0_9, %c0_10] : memref<1x256x128xbf16, #tpu.memory_space<vmem>>, vector<1x256x128xbf16>
    tpu.vector_store %arg4[%c0_8, %c0_9, %c0_10], %10 {strides = array<i32>} : memref<1x256x128xbf16, #tpu.memory_space<vmem>>, vector<1x256x128xbf16>,
    return
  }
  func.func @transform_0(%arg0: i32) -> (i32, i32, i32) {
    %c0_i32 = arith.constant 0 : i32
    %c0_i32_0 = arith.constant 0 : i32
    %c0_i32_1 = arith.constant 0 : i32
    return %arg0, %c0_i32, %c0_i32_0 : i32, i32, i32
  }
  func.func @transform_1(%arg0: i32) -> (i32, i32, i32) {
    %c0_i32 = arith.constant 0 : i32
    %c0_i32_0 = arith.constant 0 : i32
    %c0_i32_1 = arith.constant 0 : i32
    %c0_i32_2 = arith.constant 0 : i32
    return %c0_i32, %c0_i32_0, %c0_i32_1 : i32, i32, i32
  }
  func.func @transform_2(%arg0: i32) -> (i32, i32, i32) {
    %c0_i32 = arith.constant 0 : i32
    %c0_i32_0 = arith.constant 0 : i32
    %c0_i32_1 = arith.constant 0 : i32
    %c0_i32_2 = arith.constant 0 : i32
    return %c0_i32, %c0_i32_0, %c0_i32_1 : i32, i32, i32
  }
  func.func @transform_3(%arg0: i32) -> (i32, i32, i32) {
    %c0_i32 = arith.constant 0 : i32
    %c0_i32_0 = arith.constant 0 : i32
    %c0_i32_1 = arith.constant 0 : i32
    return %arg0, %c0_i32, %c0_i32_0 : i32, i32, i32
  }
}

module attributes {stable_mosaic.version = 11 : i64} {
  func.func @_conv_stats_kernel(%arg0: i32, %arg1: i32, %arg2: memref<3x16x18x4xbf16, #tpu.memory_space<vmem>>, %arg3: memref<36x128xbf16, #tpu.memory_space<vmem>>, %arg4: memref<1x256x128xbf16, #tpu.memory_space<vmem>>, %arg5: memref<1x2x128xf32, #tpu.memory_space<vmem>>) attributes {dimension_semantics = [#tpu.dimension_semantics<parallel>, #tpu.dimension_semantics<parallel>], iteration_bounds = array<i64: 2, 1>, scalar_prefetch = 0 : i64, scratch_operands = 0 : i64, tpu.core_type = #tpu.core_type<tc>, window_params = [{transform_indices = @transform_0, window_bounds = array<i64: 3, 16, 18, 4>}, {pipeline_mode = #tpu.pipeline_mode<synchronous>, transform_indices = @transform_1, window_bounds = array<i64: 36, 128>}, {transform_indices = @transform_2, window_bounds = array<i64: 1, 256, 128>}, {transform_indices = @transform_3, window_bounds = array<i64: 1, 2, 128>}]} {
    %cst = arith.constant 0.000000e+00 : f32
    %0 = vector.broadcast %cst : f32 to vector<256x128xf32>
    %c0 = arith.constant 0 : index
    %c0_0 = arith.constant 0 : index
    %c0_1 = arith.constant 0 : index
    %c0_2 = arith.constant 0 : index
    %1 = vector.load %arg2[%c0, %c0_0, %c0_1, %c0_2] : memref<3x16x18x4xbf16, #tpu.memory_space<vmem>>, vector<1x16x16x4xbf16>
    %2 = vector.shape_cast %1 : vector<1x16x16x4xbf16> to vector<16x16x4xbf16>
    %3 = vector.shape_cast %2 : vector<16x16x4xbf16> to vector<256x4xbf16>
    %c0_3 = arith.constant 0 : index
    %c0_4 = arith.constant 0 : index
    %4 = vector.load %arg3[%c0_3, %c0_4] : memref<36x128xbf16, #tpu.memory_space<vmem>>, vector<4x128xbf16>
    %cst_5 = arith.constant dense<0.000000e+00> : vector<256x128xf32>
    %5 = tpu.matmul %3, %4, %cst_5 {dimension_numbers = #tpu.dot_dimension_numbers<[1], [0], [0], [1], [0, 0, 1, 1], [], []>} : vector<256x4xbf16>, vector<4x128xbf16>, vector<256x128xf32> -> vector<256x128xf32>
    %6 = arith.addf %0, %5 : vector<256x128xf32>
    %c0_6 = arith.constant 0 : index
    %c0_7 = arith.constant 0 : index
    %c1 = arith.constant 1 : index
    %c0_8 = arith.constant 0 : index
    %7 = vector.load %arg2[%c0_6, %c0_7, %c1, %c0_8] : memref<3x16x18x4xbf16, #tpu.memory_space<vmem>>, vector<1x16x16x4xbf16>
    %8 = vector.shape_cast %7 : vector<1x16x16x4xbf16> to vector<16x16x4xbf16>
    %9 = vector.shape_cast %8 : vector<16x16x4xbf16> to vector<256x4xbf16>
    %c4 = arith.constant 4 : index
    %c0_9 = arith.constant 0 : index
    %10 = vector.load %arg3[%c4, %c0_9] : memref<36x128xbf16, #tpu.memory_space<vmem>>, vector<4x128xbf16>
    %cst_10 = arith.constant dense<0.000000e+00> : vector<256x128xf32>
    %11 = tpu.matmul %9, %10, %cst_10 {dimension_numbers = #tpu.dot_dimension_numbers<[1], [0], [0], [1], [0, 0, 1, 1], [], []>} : vector<256x4xbf16>, vector<4x128xbf16>, vector<256x128xf32> -> vector<256x128xf32>
    %12 = arith.addf %6, %11 : vector<256x128xf32>
    %c0_11 = arith.constant 0 : index
    %c0_12 = arith.constant 0 : index
    %c2 = arith.constant 2 : index
    %c0_13 = arith.constant 0 : index
    %13 = vector.load %arg2[%c0_11, %c0_12, %c2, %c0_13] : memref<3x16x18x4xbf16, #tpu.memory_space<vmem>>, vector<1x16x16x4xbf16>
    %14 = vector.shape_cast %13 : vector<1x16x16x4xbf16> to vector<16x16x4xbf16>
    %15 = vector.shape_cast %14 : vector<16x16x4xbf16> to vector<256x4xbf16>
    %c8 = arith.constant 8 : index
    %c0_14 = arith.constant 0 : index
    %16 = vector.load %arg3[%c8, %c0_14] : memref<36x128xbf16, #tpu.memory_space<vmem>>, vector<4x128xbf16>
    %cst_15 = arith.constant dense<0.000000e+00> : vector<256x128xf32>
    %17 = tpu.matmul %15, %16, %cst_15 {dimension_numbers = #tpu.dot_dimension_numbers<[1], [0], [0], [1], [0, 0, 1, 1], [], []>} : vector<256x4xbf16>, vector<4x128xbf16>, vector<256x128xf32> -> vector<256x128xf32>
    %18 = arith.addf %12, %17 : vector<256x128xf32>
    %c1_16 = arith.constant 1 : index
    %c0_17 = arith.constant 0 : index
    %c0_18 = arith.constant 0 : index
    %c0_19 = arith.constant 0 : index
    %19 = vector.load %arg2[%c1_16, %c0_17, %c0_18, %c0_19] : memref<3x16x18x4xbf16, #tpu.memory_space<vmem>>, vector<1x16x16x4xbf16>
    %20 = vector.shape_cast %19 : vector<1x16x16x4xbf16> to vector<16x16x4xbf16>
    %21 = vector.shape_cast %20 : vector<16x16x4xbf16> to vector<256x4xbf16>
    %c12 = arith.constant 12 : index
    %c0_20 = arith.constant 0 : index
    %22 = vector.load %arg3[%c12, %c0_20] : memref<36x128xbf16, #tpu.memory_space<vmem>>, vector<4x128xbf16>
    %cst_21 = arith.constant dense<0.000000e+00> : vector<256x128xf32>
    %23 = tpu.matmul %21, %22, %cst_21 {dimension_numbers = #tpu.dot_dimension_numbers<[1], [0], [0], [1], [0, 0, 1, 1], [], []>} : vector<256x4xbf16>, vector<4x128xbf16>, vector<256x128xf32> -> vector<256x128xf32>
    %24 = arith.addf %18, %23 : vector<256x128xf32>
    %c1_22 = arith.constant 1 : index
    %c0_23 = arith.constant 0 : index
    %c1_24 = arith.constant 1 : index
    %c0_25 = arith.constant 0 : index
    %25 = vector.load %arg2[%c1_22, %c0_23, %c1_24, %c0_25] : memref<3x16x18x4xbf16, #tpu.memory_space<vmem>>, vector<1x16x16x4xbf16>
    %26 = vector.shape_cast %25 : vector<1x16x16x4xbf16> to vector<16x16x4xbf16>
    %27 = vector.shape_cast %26 : vector<16x16x4xbf16> to vector<256x4xbf16>
    %c16 = arith.constant 16 : index
    %c0_26 = arith.constant 0 : index
    %28 = vector.load %arg3[%c16, %c0_26] : memref<36x128xbf16, #tpu.memory_space<vmem>>, vector<4x128xbf16>
    %cst_27 = arith.constant dense<0.000000e+00> : vector<256x128xf32>
    %29 = tpu.matmul %27, %28, %cst_27 {dimension_numbers = #tpu.dot_dimension_numbers<[1], [0], [0], [1], [0, 0, 1, 1], [], []>} : vector<256x4xbf16>, vector<4x128xbf16>, vector<256x128xf32> -> vector<256x128xf32>
    %30 = arith.addf %24, %29 : vector<256x128xf32>
    %c1_28 = arith.constant 1 : index
    %c0_29 = arith.constant 0 : index
    %c2_30 = arith.constant 2 : index
    %c0_31 = arith.constant 0 : index
    %31 = vector.load %arg2[%c1_28, %c0_29, %c2_30, %c0_31] : memref<3x16x18x4xbf16, #tpu.memory_space<vmem>>, vector<1x16x16x4xbf16>
    %32 = vector.shape_cast %31 : vector<1x16x16x4xbf16> to vector<16x16x4xbf16>
    %33 = vector.shape_cast %32 : vector<16x16x4xbf16> to vector<256x4xbf16>
    %c20 = arith.constant 20 : index
    %c0_32 = arith.constant 0 : index
    %34 = vector.load %arg3[%c20, %c0_32] : memref<36x128xbf16, #tpu.memory_space<vmem>>, vector<4x128xbf16>
    %cst_33 = arith.constant dense<0.000000e+00> : vector<256x128xf32>
    %35 = tpu.matmul %33, %34, %cst_33 {dimension_numbers = #tpu.dot_dimension_numbers<[1], [0], [0], [1], [0, 0, 1, 1], [], []>} : vector<256x4xbf16>, vector<4x128xbf16>, vector<256x128xf32> -> vector<256x128xf32>
    %36 = arith.addf %30, %35 : vector<256x128xf32>
    %c2_34 = arith.constant 2 : index
    %c0_35 = arith.constant 0 : index
    %c0_36 = arith.constant 0 : index
    %c0_37 = arith.constant 0 : index
    %37 = vector.load %arg2[%c2_34, %c0_35, %c0_36, %c0_37] : memref<3x16x18x4xbf16, #tpu.memory_space<vmem>>, vector<1x16x16x4xbf16>
    %38 = vector.shape_cast %37 : vector<1x16x16x4xbf16> to vector<16x16x4xbf16>
    %39 = vector.shape_cast %38 : vector<16x16x4xbf16> to vector<256x4xbf16>
    %c24 = arith.constant 24 : index
    %c0_38 = arith.constant 0 : index
    %40 = vector.load %arg3[%c24, %c0_38] : memref<36x128xbf16, #tpu.memory_space<vmem>>, vector<4x128xbf16>
    %cst_39 = arith.constant dense<0.000000e+00> : vector<256x128xf32>
    %41 = tpu.matmul %39, %40, %cst_39 {dimension_numbers = #tpu.dot_dimension_numbers<[1], [0], [0], [1], [0, 0, 1, 1], [], []>} : vector<256x4xbf16>, vector<4x128xbf16>, vector<256x128xf32> -> vector<256x128xf32>
    %42 = arith.addf %36, %41 : vector<256x128xf32>
    %c2_40 = arith.constant 2 : index
    %c0_41 = arith.constant 0 : index
    %c1_42 = arith.constant 1 : index
    %c0_43 = arith.constant 0 : index
    %43 = vector.load %arg2[%c2_40, %c0_41, %c1_42, %c0_43] : memref<3x16x18x4xbf16, #tpu.memory_space<vmem>>, vector<1x16x16x4xbf16>
    %44 = vector.shape_cast %43 : vector<1x16x16x4xbf16> to vector<16x16x4xbf16>
    %45 = vector.shape_cast %44 : vector<16x16x4xbf16> to vector<256x4xbf16>
    %c28 = arith.constant 28 : index
    %c0_44 = arith.constant 0 : index
    %46 = vector.load %arg3[%c28, %c0_44] : memref<36x128xbf16, #tpu.memory_space<vmem>>, vector<4x128xbf16>
    %cst_45 = arith.constant dense<0.000000e+00> : vector<256x128xf32>
    %47 = tpu.matmul %45, %46, %cst_45 {dimension_numbers = #tpu.dot_dimension_numbers<[1], [0], [0], [1], [0, 0, 1, 1], [], []>} : vector<256x4xbf16>, vector<4x128xbf16>, vector<256x128xf32> -> vector<256x128xf32>
    %48 = arith.addf %42, %47 : vector<256x128xf32>
    %c2_46 = arith.constant 2 : index
    %c0_47 = arith.constant 0 : index
    %c2_48 = arith.constant 2 : index
    %c0_49 = arith.constant 0 : index
    %49 = vector.load %arg2[%c2_46, %c0_47, %c2_48, %c0_49] : memref<3x16x18x4xbf16, #tpu.memory_space<vmem>>, vector<1x16x16x4xbf16>
    %50 = vector.shape_cast %49 : vector<1x16x16x4xbf16> to vector<16x16x4xbf16>
    %51 = vector.shape_cast %50 : vector<16x16x4xbf16> to vector<256x4xbf16>
    %c32 = arith.constant 32 : index
    %c0_50 = arith.constant 0 : index
    %52 = vector.load %arg3[%c32, %c0_50] : memref<36x128xbf16, #tpu.memory_space<vmem>>, vector<4x128xbf16>
    %cst_51 = arith.constant dense<0.000000e+00> : vector<256x128xf32>
    %53 = tpu.matmul %51, %52, %cst_51 {dimension_numbers = #tpu.dot_dimension_numbers<[1], [0], [0], [1], [0, 0, 1, 1], [], []>} : vector<256x4xbf16>, vector<4x128xbf16>, vector<256x128xf32> -> vector<256x128xf32>
    %54 = arith.addf %48, %53 : vector<256x128xf32>
    %55 = vector.shape_cast %54 : vector<256x128xf32> to vector<1x256x128xf32>
    %56 = arith.truncf %55 : vector<1x256x128xf32> to vector<1x256x128xbf16>
    %c0_52 = arith.constant 0 : index
    %c0_53 = arith.constant 0 : index
    %c0_54 = arith.constant 0 : index
    %57 = vector.load %arg4[%c0_52, %c0_53, %c0_54] : memref<1x256x128xbf16, #tpu.memory_space<vmem>>, vector<1x256x128xbf16>
    tpu.vector_store %arg4[%c0_52, %c0_53, %c0_54], %56 {strides = array<i32>} : memref<1x256x128xbf16, #tpu.memory_space<vmem>>, vector<1x256x128xbf16>,
    %cst_55 = arith.constant dense<0.000000e+00> : vector<128xf32>
    %58 = vector.multi_reduction <add>, %54, %cst_55 [0] : vector<256x128xf32> to vector<128xf32>
    %59 = vector.shape_cast %58 : vector<128xf32> to vector<1x128xf32>
    %cst_56 = arith.constant 3.906250e-03 : f32
    %60 = vector.broadcast %cst_56 : f32 to vector<1x128xf32>
    %61 = arith.mulf %59, %60 : vector<1x128xf32>
    %62 = vector.broadcast %61 : vector<1x128xf32> to vector<256x128xf32>
    %63 = arith.subf %54, %62 : vector<256x128xf32>
    %64 = arith.mulf %63, %63 : vector<256x128xf32>
    %cst_57 = arith.constant dense<0.000000e+00> : vector<128xf32>
    %65 = vector.multi_reduction <add>, %64, %cst_57 [0] : vector<256x128xf32> to vector<128xf32>
    %66 = vector.shape_cast %65 : vector<128xf32> to vector<1x128xf32>
    %67 = vector.shape_cast %59 : vector<1x128xf32> to vector<1x1x128xf32>
    %c0_58 = arith.constant 0 : index
    %c0_59 = arith.constant 0 : index
    %c0_60 = arith.constant 0 : index
    %68 = vector.load %arg5[%c0_58, %c0_59, %c0_60] : memref<1x2x128xf32, #tpu.memory_space<vmem>>, vector<1x1x128xf32>
    tpu.vector_store %arg5[%c0_58, %c0_59, %c0_60], %67 {strides = array<i32>} : memref<1x2x128xf32, #tpu.memory_space<vmem>>, vector<1x1x128xf32>,
    %69 = vector.shape_cast %66 : vector<1x128xf32> to vector<1x1x128xf32>
    %c0_61 = arith.constant 0 : index
    %c1_62 = arith.constant 1 : index
    %c0_63 = arith.constant 0 : index
    %70 = vector.load %arg5[%c0_61, %c1_62, %c0_63] : memref<1x2x128xf32, #tpu.memory_space<vmem>>, vector<1x1x128xf32>
    tpu.vector_store %arg5[%c0_61, %c1_62, %c0_63], %69 {strides = array<i32>} : memref<1x2x128xf32, #tpu.memory_space<vmem>>, vector<1x1x128xf32>,
    return
  }
  func.func @transform_0(%arg0: i32, %arg1: i32) -> (i32, i32, i32, i32) {
    %c0_i32 = arith.constant 0 : i32
    %c0_i32_0 = arith.constant 0 : i32
    %c0_i32_1 = arith.constant 0 : i32
    return %arg0, %arg1, %c0_i32, %c0_i32_0 : i32, i32, i32, i32
  }
  func.func @transform_1(%arg0: i32, %arg1: i32) -> (i32, i32) {
    %c0_i32 = arith.constant 0 : i32
    %c0_i32_0 = arith.constant 0 : i32
    %c0_i32_1 = arith.constant 0 : i32
    return %c0_i32, %c0_i32_0 : i32, i32
  }
  func.func @transform_2(%arg0: i32, %arg1: i32) -> (i32, i32, i32) {
    %c1_i32 = arith.constant 1 : i32
    %0 = arith.muli %arg0, %c1_i32 : i32
    %1 = arith.addi %0, %arg1 : i32
    %c0_i32 = arith.constant 0 : i32
    %c0_i32_0 = arith.constant 0 : i32
    %c0_i32_1 = arith.constant 0 : i32
    return %1, %c0_i32, %c0_i32_0 : i32, i32, i32
  }
  func.func @transform_3(%arg0: i32, %arg1: i32) -> (i32, i32, i32) {
    %c1_i32 = arith.constant 1 : i32
    %0 = arith.muli %arg0, %c1_i32 : i32
    %1 = arith.addi %0, %arg1 : i32
    %c0_i32 = arith.constant 0 : i32
    %c0_i32_0 = arith.constant 0 : i32
    %c0_i32_1 = arith.constant 0 : i32
    return %1, %c0_i32, %c0_i32_0 : i32, i32, i32
  }
}

module attributes {stable_mosaic.version = 11 : i64} {
  func.func @_bn_relu_kernel(%arg0: i32, %arg1: memref<1x256x128xbf16, #tpu.memory_space<vmem>>, %arg2: memref<1x1x128xf32, #tpu.memory_space<vmem>>, %arg3: memref<1x1x128xf32, #tpu.memory_space<vmem>>, %arg4: memref<1x256x128xf32, #tpu.memory_space<vmem>>) attributes {dimension_semantics = [#tpu.dimension_semantics<parallel>], iteration_bounds = array<i64: 2>, scalar_prefetch = 0 : i64, scratch_operands = 0 : i64, tpu.core_type = #tpu.core_type<tc>, window_params = [{transform_indices = @transform_0, window_bounds = array<i64: 1, 256, 128>}, {pipeline_mode = #tpu.pipeline_mode<synchronous>, transform_indices = @transform_1, window_bounds = array<i64: 1, 1, 128>}, {pipeline_mode = #tpu.pipeline_mode<synchronous>, transform_indices = @transform_2, window_bounds = array<i64: 1, 1, 128>}, {transform_indices = @transform_3, window_bounds = array<i64: 1, 256, 128>}]} {
    %c0 = arith.constant 0 : index
    %c0_0 = arith.constant 0 : index
    %c0_1 = arith.constant 0 : index
    %0 = vector.load %arg1[%c0, %c0_0, %c0_1] : memref<1x256x128xbf16, #tpu.memory_space<vmem>>, vector<1x256x128xbf16>
    %1 = arith.extf %0 : vector<1x256x128xbf16> to vector<1x256x128xf32>
    %c0_2 = arith.constant 0 : index
    %c0_3 = arith.constant 0 : index
    %c0_4 = arith.constant 0 : index
    %2 = vector.load %arg2[%c0_2, %c0_3, %c0_4] : memref<1x1x128xf32, #tpu.memory_space<vmem>>, vector<1x1x128xf32>
    %3 = vector.broadcast %2 : vector<1x1x128xf32> to vector<1x256x128xf32>
    %4 = arith.mulf %1, %3 : vector<1x256x128xf32>
    %c0_5 = arith.constant 0 : index
    %c0_6 = arith.constant 0 : index
    %c0_7 = arith.constant 0 : index
    %5 = vector.load %arg3[%c0_5, %c0_6, %c0_7] : memref<1x1x128xf32, #tpu.memory_space<vmem>>, vector<1x1x128xf32>
    %6 = vector.broadcast %5 : vector<1x1x128xf32> to vector<1x256x128xf32>
    %7 = arith.addf %4, %6 : vector<1x256x128xf32>
    %cst = arith.constant 0.000000e+00 : f32
    %8 = vector.broadcast %cst : f32 to vector<1x256x128xf32>
    %9 = arith.maximumf %7, %8 : vector<1x256x128xf32>
    %c0_8 = arith.constant 0 : index
    %c0_9 = arith.constant 0 : index
    %c0_10 = arith.constant 0 : index
    %10 = vector.load %arg4[%c0_8, %c0_9, %c0_10] : memref<1x256x128xf32, #tpu.memory_space<vmem>>, vector<1x256x128xf32>
    tpu.vector_store %arg4[%c0_8, %c0_9, %c0_10], %9 {strides = array<i32>} : memref<1x256x128xf32, #tpu.memory_space<vmem>>, vector<1x256x128xf32>,
    return
  }
  func.func @transform_0(%arg0: i32) -> (i32, i32, i32) {
    %c0_i32 = arith.constant 0 : i32
    %c0_i32_0 = arith.constant 0 : i32
    %c0_i32_1 = arith.constant 0 : i32
    return %arg0, %c0_i32, %c0_i32_0 : i32, i32, i32
  }
  func.func @transform_1(%arg0: i32) -> (i32, i32, i32) {
    %c0_i32 = arith.constant 0 : i32
    %c0_i32_0 = arith.constant 0 : i32
    %c0_i32_1 = arith.constant 0 : i32
    %c0_i32_2 = arith.constant 0 : i32
    return %c0_i32, %c0_i32_0, %c0_i32_1 : i32, i32, i32
  }
  func.func @transform_2(%arg0: i32) -> (i32, i32, i32) {
    %c0_i32 = arith.constant 0 : i32
    %c0_i32_0 = arith.constant 0 : i32
    %c0_i32_1 = arith.constant 0 : i32
    %c0_i32_2 = arith.constant 0 : i32
    return %c0_i32, %c0_i32_0, %c0_i32_1 : i32, i32, i32
  }
  func.func @transform_3(%arg0: i32) -> (i32, i32, i32) {
    %c0_i32 = arith.constant 0 : i32
    %c0_i32_0 = arith.constant 0 : i32
    %c0_i32_1 = arith.constant 0 : i32
    return %arg0, %c0_i32, %c0_i32_0 : i32, i32, i32
  }
}

module attributes {stable_mosaic.version = 11 : i64} {
  func.func @_conv_stats_kernel(%arg0: i32, %arg1: i32, %arg2: memref<3x16x18x8xbf16, #tpu.memory_space<vmem>>, %arg3: memref<72x128xbf16, #tpu.memory_space<vmem>>, %arg4: memref<1x256x128xbf16, #tpu.memory_space<vmem>>, %arg5: memref<1x2x128xf32, #tpu.memory_space<vmem>>) attributes {dimension_semantics = [#tpu.dimension_semantics<parallel>, #tpu.dimension_semantics<parallel>], iteration_bounds = array<i64: 2, 1>, scalar_prefetch = 0 : i64, scratch_operands = 0 : i64, tpu.core_type = #tpu.core_type<tc>, window_params = [{transform_indices = @transform_0, window_bounds = array<i64: 3, 16, 18, 8>}, {pipeline_mode = #tpu.pipeline_mode<synchronous>, transform_indices = @transform_1, window_bounds = array<i64: 72, 128>}, {transform_indices = @transform_2, window_bounds = array<i64: 1, 256, 128>}, {transform_indices = @transform_3, window_bounds = array<i64: 1, 2, 128>}]} {
    %cst = arith.constant 0.000000e+00 : f32
    %0 = vector.broadcast %cst : f32 to vector<256x128xf32>
    %c0 = arith.constant 0 : index
    %c0_0 = arith.constant 0 : index
    %c0_1 = arith.constant 0 : index
    %c0_2 = arith.constant 0 : index
    %1 = vector.load %arg2[%c0, %c0_0, %c0_1, %c0_2] : memref<3x16x18x8xbf16, #tpu.memory_space<vmem>>, vector<1x16x16x8xbf16>
    %2 = vector.shape_cast %1 : vector<1x16x16x8xbf16> to vector<16x16x8xbf16>
    %3 = vector.shape_cast %2 : vector<16x16x8xbf16> to vector<256x8xbf16>
    %c0_3 = arith.constant 0 : index
    %c0_4 = arith.constant 0 : index
    %4 = vector.load %arg3[%c0_3, %c0_4] : memref<72x128xbf16, #tpu.memory_space<vmem>>, vector<8x128xbf16>
    %cst_5 = arith.constant dense<0.000000e+00> : vector<256x128xf32>
    %5 = tpu.matmul %3, %4, %cst_5 {dimension_numbers = #tpu.dot_dimension_numbers<[1], [0], [0], [1], [0, 0, 1, 1], [], []>} : vector<256x8xbf16>, vector<8x128xbf16>, vector<256x128xf32> -> vector<256x128xf32>
    %6 = arith.addf %0, %5 : vector<256x128xf32>
    %c0_6 = arith.constant 0 : index
    %c0_7 = arith.constant 0 : index
    %c1 = arith.constant 1 : index
    %c0_8 = arith.constant 0 : index
    %7 = vector.load %arg2[%c0_6, %c0_7, %c1, %c0_8] : memref<3x16x18x8xbf16, #tpu.memory_space<vmem>>, vector<1x16x16x8xbf16>
    %8 = vector.shape_cast %7 : vector<1x16x16x8xbf16> to vector<16x16x8xbf16>
    %9 = vector.shape_cast %8 : vector<16x16x8xbf16> to vector<256x8xbf16>
    %c8 = arith.constant 8 : index
    %c0_9 = arith.constant 0 : index
    %10 = vector.load %arg3[%c8, %c0_9] : memref<72x128xbf16, #tpu.memory_space<vmem>>, vector<8x128xbf16>
    %cst_10 = arith.constant dense<0.000000e+00> : vector<256x128xf32>
    %11 = tpu.matmul %9, %10, %cst_10 {dimension_numbers = #tpu.dot_dimension_numbers<[1], [0], [0], [1], [0, 0, 1, 1], [], []>} : vector<256x8xbf16>, vector<8x128xbf16>, vector<256x128xf32> -> vector<256x128xf32>
    %12 = arith.addf %6, %11 : vector<256x128xf32>
    %c0_11 = arith.constant 0 : index
    %c0_12 = arith.constant 0 : index
    %c2 = arith.constant 2 : index
    %c0_13 = arith.constant 0 : index
    %13 = vector.load %arg2[%c0_11, %c0_12, %c2, %c0_13] : memref<3x16x18x8xbf16, #tpu.memory_space<vmem>>, vector<1x16x16x8xbf16>
    %14 = vector.shape_cast %13 : vector<1x16x16x8xbf16> to vector<16x16x8xbf16>
    %15 = vector.shape_cast %14 : vector<16x16x8xbf16> to vector<256x8xbf16>
    %c16 = arith.constant 16 : index
    %c0_14 = arith.constant 0 : index
    %16 = vector.load %arg3[%c16, %c0_14] : memref<72x128xbf16, #tpu.memory_space<vmem>>, vector<8x128xbf16>
    %cst_15 = arith.constant dense<0.000000e+00> : vector<256x128xf32>
    %17 = tpu.matmul %15, %16, %cst_15 {dimension_numbers = #tpu.dot_dimension_numbers<[1], [0], [0], [1], [0, 0, 1, 1], [], []>} : vector<256x8xbf16>, vector<8x128xbf16>, vector<256x128xf32> -> vector<256x128xf32>
    %18 = arith.addf %12, %17 : vector<256x128xf32>
    %c1_16 = arith.constant 1 : index
    %c0_17 = arith.constant 0 : index
    %c0_18 = arith.constant 0 : index
    %c0_19 = arith.constant 0 : index
    %19 = vector.load %arg2[%c1_16, %c0_17, %c0_18, %c0_19] : memref<3x16x18x8xbf16, #tpu.memory_space<vmem>>, vector<1x16x16x8xbf16>
    %20 = vector.shape_cast %19 : vector<1x16x16x8xbf16> to vector<16x16x8xbf16>
    %21 = vector.shape_cast %20 : vector<16x16x8xbf16> to vector<256x8xbf16>
    %c24 = arith.constant 24 : index
    %c0_20 = arith.constant 0 : index
    %22 = vector.load %arg3[%c24, %c0_20] : memref<72x128xbf16, #tpu.memory_space<vmem>>, vector<8x128xbf16>
    %cst_21 = arith.constant dense<0.000000e+00> : vector<256x128xf32>
    %23 = tpu.matmul %21, %22, %cst_21 {dimension_numbers = #tpu.dot_dimension_numbers<[1], [0], [0], [1], [0, 0, 1, 1], [], []>} : vector<256x8xbf16>, vector<8x128xbf16>, vector<256x128xf32> -> vector<256x128xf32>
    %24 = arith.addf %18, %23 : vector<256x128xf32>
    %c1_22 = arith.constant 1 : index
    %c0_23 = arith.constant 0 : index
    %c1_24 = arith.constant 1 : index
    %c0_25 = arith.constant 0 : index
    %25 = vector.load %arg2[%c1_22, %c0_23, %c1_24, %c0_25] : memref<3x16x18x8xbf16, #tpu.memory_space<vmem>>, vector<1x16x16x8xbf16>
    %26 = vector.shape_cast %25 : vector<1x16x16x8xbf16> to vector<16x16x8xbf16>
    %27 = vector.shape_cast %26 : vector<16x16x8xbf16> to vector<256x8xbf16>
    %c32 = arith.constant 32 : index
    %c0_26 = arith.constant 0 : index
    %28 = vector.load %arg3[%c32, %c0_26] : memref<72x128xbf16, #tpu.memory_space<vmem>>, vector<8x128xbf16>
    %cst_27 = arith.constant dense<0.000000e+00> : vector<256x128xf32>
    %29 = tpu.matmul %27, %28, %cst_27 {dimension_numbers = #tpu.dot_dimension_numbers<[1], [0], [0], [1], [0, 0, 1, 1], [], []>} : vector<256x8xbf16>, vector<8x128xbf16>, vector<256x128xf32> -> vector<256x128xf32>
    %30 = arith.addf %24, %29 : vector<256x128xf32>
    %c1_28 = arith.constant 1 : index
    %c0_29 = arith.constant 0 : index
    %c2_30 = arith.constant 2 : index
    %c0_31 = arith.constant 0 : index
    %31 = vector.load %arg2[%c1_28, %c0_29, %c2_30, %c0_31] : memref<3x16x18x8xbf16, #tpu.memory_space<vmem>>, vector<1x16x16x8xbf16>
    %32 = vector.shape_cast %31 : vector<1x16x16x8xbf16> to vector<16x16x8xbf16>
    %33 = vector.shape_cast %32 : vector<16x16x8xbf16> to vector<256x8xbf16>
    %c40 = arith.constant 40 : index
    %c0_32 = arith.constant 0 : index
    %34 = vector.load %arg3[%c40, %c0_32] : memref<72x128xbf16, #tpu.memory_space<vmem>>, vector<8x128xbf16>
    %cst_33 = arith.constant dense<0.000000e+00> : vector<256x128xf32>
    %35 = tpu.matmul %33, %34, %cst_33 {dimension_numbers = #tpu.dot_dimension_numbers<[1], [0], [0], [1], [0, 0, 1, 1], [], []>} : vector<256x8xbf16>, vector<8x128xbf16>, vector<256x128xf32> -> vector<256x128xf32>
    %36 = arith.addf %30, %35 : vector<256x128xf32>
    %c2_34 = arith.constant 2 : index
    %c0_35 = arith.constant 0 : index
    %c0_36 = arith.constant 0 : index
    %c0_37 = arith.constant 0 : index
    %37 = vector.load %arg2[%c2_34, %c0_35, %c0_36, %c0_37] : memref<3x16x18x8xbf16, #tpu.memory_space<vmem>>, vector<1x16x16x8xbf16>
    %38 = vector.shape_cast %37 : vector<1x16x16x8xbf16> to vector<16x16x8xbf16>
    %39 = vector.shape_cast %38 : vector<16x16x8xbf16> to vector<256x8xbf16>
    %c48 = arith.constant 48 : index
    %c0_38 = arith.constant 0 : index
    %40 = vector.load %arg3[%c48, %c0_38] : memref<72x128xbf16, #tpu.memory_space<vmem>>, vector<8x128xbf16>
    %cst_39 = arith.constant dense<0.000000e+00> : vector<256x128xf32>
    %41 = tpu.matmul %39, %40, %cst_39 {dimension_numbers = #tpu.dot_dimension_numbers<[1], [0], [0], [1], [0, 0, 1, 1], [], []>} : vector<256x8xbf16>, vector<8x128xbf16>, vector<256x128xf32> -> vector<256x128xf32>
    %42 = arith.addf %36, %41 : vector<256x128xf32>
    %c2_40 = arith.constant 2 : index
    %c0_41 = arith.constant 0 : index
    %c1_42 = arith.constant 1 : index
    %c0_43 = arith.constant 0 : index
    %43 = vector.load %arg2[%c2_40, %c0_41, %c1_42, %c0_43] : memref<3x16x18x8xbf16, #tpu.memory_space<vmem>>, vector<1x16x16x8xbf16>
    %44 = vector.shape_cast %43 : vector<1x16x16x8xbf16> to vector<16x16x8xbf16>
    %45 = vector.shape_cast %44 : vector<16x16x8xbf16> to vector<256x8xbf16>
    %c56 = arith.constant 56 : index
    %c0_44 = arith.constant 0 : index
    %46 = vector.load %arg3[%c56, %c0_44] : memref<72x128xbf16, #tpu.memory_space<vmem>>, vector<8x128xbf16>
    %cst_45 = arith.constant dense<0.000000e+00> : vector<256x128xf32>
    %47 = tpu.matmul %45, %46, %cst_45 {dimension_numbers = #tpu.dot_dimension_numbers<[1], [0], [0], [1], [0, 0, 1, 1], [], []>} : vector<256x8xbf16>, vector<8x128xbf16>, vector<256x128xf32> -> vector<256x128xf32>
    %48 = arith.addf %42, %47 : vector<256x128xf32>
    %c2_46 = arith.constant 2 : index
    %c0_47 = arith.constant 0 : index
    %c2_48 = arith.constant 2 : index
    %c0_49 = arith.constant 0 : index
    %49 = vector.load %arg2[%c2_46, %c0_47, %c2_48, %c0_49] : memref<3x16x18x8xbf16, #tpu.memory_space<vmem>>, vector<1x16x16x8xbf16>
    %50 = vector.shape_cast %49 : vector<1x16x16x8xbf16> to vector<16x16x8xbf16>
    %51 = vector.shape_cast %50 : vector<16x16x8xbf16> to vector<256x8xbf16>
    %c64 = arith.constant 64 : index
    %c0_50 = arith.constant 0 : index
    %52 = vector.load %arg3[%c64, %c0_50] : memref<72x128xbf16, #tpu.memory_space<vmem>>, vector<8x128xbf16>
    %cst_51 = arith.constant dense<0.000000e+00> : vector<256x128xf32>
    %53 = tpu.matmul %51, %52, %cst_51 {dimension_numbers = #tpu.dot_dimension_numbers<[1], [0], [0], [1], [0, 0, 1, 1], [], []>} : vector<256x8xbf16>, vector<8x128xbf16>, vector<256x128xf32> -> vector<256x128xf32>
    %54 = arith.addf %48, %53 : vector<256x128xf32>
    %55 = vector.shape_cast %54 : vector<256x128xf32> to vector<1x256x128xf32>
    %56 = arith.truncf %55 : vector<1x256x128xf32> to vector<1x256x128xbf16>
    %c0_52 = arith.constant 0 : index
    %c0_53 = arith.constant 0 : index
    %c0_54 = arith.constant 0 : index
    %57 = vector.load %arg4[%c0_52, %c0_53, %c0_54] : memref<1x256x128xbf16, #tpu.memory_space<vmem>>, vector<1x256x128xbf16>
    tpu.vector_store %arg4[%c0_52, %c0_53, %c0_54], %56 {strides = array<i32>} : memref<1x256x128xbf16, #tpu.memory_space<vmem>>, vector<1x256x128xbf16>,
    %cst_55 = arith.constant dense<0.000000e+00> : vector<128xf32>
    %58 = vector.multi_reduction <add>, %54, %cst_55 [0] : vector<256x128xf32> to vector<128xf32>
    %59 = vector.shape_cast %58 : vector<128xf32> to vector<1x128xf32>
    %cst_56 = arith.constant 3.906250e-03 : f32
    %60 = vector.broadcast %cst_56 : f32 to vector<1x128xf32>
    %61 = arith.mulf %59, %60 : vector<1x128xf32>
    %62 = vector.broadcast %61 : vector<1x128xf32> to vector<256x128xf32>
    %63 = arith.subf %54, %62 : vector<256x128xf32>
    %64 = arith.mulf %63, %63 : vector<256x128xf32>
    %cst_57 = arith.constant dense<0.000000e+00> : vector<128xf32>
    %65 = vector.multi_reduction <add>, %64, %cst_57 [0] : vector<256x128xf32> to vector<128xf32>
    %66 = vector.shape_cast %65 : vector<128xf32> to vector<1x128xf32>
    %67 = vector.shape_cast %59 : vector<1x128xf32> to vector<1x1x128xf32>
    %c0_58 = arith.constant 0 : index
    %c0_59 = arith.constant 0 : index
    %c0_60 = arith.constant 0 : index
    %68 = vector.load %arg5[%c0_58, %c0_59, %c0_60] : memref<1x2x128xf32, #tpu.memory_space<vmem>>, vector<1x1x128xf32>
    tpu.vector_store %arg5[%c0_58, %c0_59, %c0_60], %67 {strides = array<i32>} : memref<1x2x128xf32, #tpu.memory_space<vmem>>, vector<1x1x128xf32>,
    %69 = vector.shape_cast %66 : vector<1x128xf32> to vector<1x1x128xf32>
    %c0_61 = arith.constant 0 : index
    %c1_62 = arith.constant 1 : index
    %c0_63 = arith.constant 0 : index
    %70 = vector.load %arg5[%c0_61, %c1_62, %c0_63] : memref<1x2x128xf32, #tpu.memory_space<vmem>>, vector<1x1x128xf32>
    tpu.vector_store %arg5[%c0_61, %c1_62, %c0_63], %69 {strides = array<i32>} : memref<1x2x128xf32, #tpu.memory_space<vmem>>, vector<1x1x128xf32>,
    return
  }
  func.func @transform_0(%arg0: i32, %arg1: i32) -> (i32, i32, i32, i32) {
    %c0_i32 = arith.constant 0 : i32
    %c0_i32_0 = arith.constant 0 : i32
    %c0_i32_1 = arith.constant 0 : i32
    return %arg0, %arg1, %c0_i32, %c0_i32_0 : i32, i32, i32, i32
  }
  func.func @transform_1(%arg0: i32, %arg1: i32) -> (i32, i32) {
    %c0_i32 = arith.constant 0 : i32
    %c0_i32_0 = arith.constant 0 : i32
    %c0_i32_1 = arith.constant 0 : i32
    return %c0_i32, %c0_i32_0 : i32, i32
  }
  func.func @transform_2(%arg0: i32, %arg1: i32) -> (i32, i32, i32) {
    %c1_i32 = arith.constant 1 : i32
    %0 = arith.muli %arg0, %c1_i32 : i32
    %1 = arith.addi %0, %arg1 : i32
    %c0_i32 = arith.constant 0 : i32
    %c0_i32_0 = arith.constant 0 : i32
    %c0_i32_1 = arith.constant 0 : i32
    return %1, %c0_i32, %c0_i32_0 : i32, i32, i32
  }
  func.func @transform_3(%arg0: i32, %arg1: i32) -> (i32, i32, i32) {
    %c1_i32 = arith.constant 1 : i32
    %0 = arith.muli %arg0, %c1_i32 : i32
    %1 = arith.addi %0, %arg1 : i32
    %c0_i32 = arith.constant 0 : i32
    %c0_i32_0 = arith.constant 0 : i32
    %c0_i32_1 = arith.constant 0 : i32
    return %1, %c0_i32, %c0_i32_0 : i32, i32, i32
  }
}

</mosaic_0001>

<bundles_post_ra>
// kernel: double_conv.5
= control target key start
LH: loop header
LB: loop body
LE: loop exit
PB: predicated region body
PF: predicated region fallthrough
CT: control target
= control target key end

     0   :  { %s683_s12 = smov 0   ;;  %s817_s0 = inlined_call_operand.vmem [shape: bf16[2,256,128], index: 0, kind: input, shape index: {}]   ;;  %s818_s1 = inlined_call_operand.vmem [shape: f32[1,1,128], index: 1, kind: input, shape index: {}]   ;;  %s819_s2 = inlined_call_operand.vmem [shape: f32[1,1,128], index: 2, kind: input, shape index: {}]   ;;  %s820_s3 = inlined_call_operand.vmem [shape: bf16[2,256,128], index: 3, kind: output, shape index: {}]  }
   0x1 LB: > { %s458_s13 = sadd.s32 4294967295, %s661_s12   ;;  %p462_p0 = scmp.ge.s32.totalorder %s661_s12, 1  ;;  %s661_s12 = sphi %s683_s12, %s13_s12  }
   0x2   : > { %p137_p1 = scmp.lt.s32.totalorder %s661_s12, 3 }
   0x4   : > { %p138_p2 = pnand %p462_p0, %p137_p1 }
   0x5   : > { %p161_p3 = scmp.lt.s32.totalorder (!%p138_p2), %s458_s13, 1 }
   0x6   : > { %141 = sbr.rel (%p138_p2) target bundleno = 57 (0x39), region = 32 }
   0xb   : > { %s822_s13 = smov (!%p161_p3, %s458_s13), 1  ;;  %v704_v0 = vld [vmem:[%s818_s1] ss:$0 sm:$0xff] }
   0xc   : > { %s469_s14 = sshll.u32 %s822_s13, 7  ;;  %v712_v6 = vld [vmem:[%s819_s2] ss:$0 sm:$0xff] }
   0xd   : > { %s699_s17 = scalar_lea.vmem %s817_s0, %s469_s14  ;;  %s738_s24 = scalar_lea.vmem %s820_s3, %s469_s14 }
   0xe   : > { %v472_v1 = vld [vmem:[%s699_s17] sm:$0xff]   ;;  %v615_v2 = vld [vmem:[%s699_s17 + $0x8] sm:$0xff]   ;;  %v616_v3 = vld [vmem:[%s699_s17 + $0x10] sm:$0xff]  }
   0xf   : > { %v473_v4 = vunpack.c.l.bf16 %v472_v1  ;;  %v474_v5 = vunpack.c.h.bf16 %v472_v1  ;;  %v477_v7 = vunpack.c.l.bf16 %v615_v2  ;;  %v478_v8 = vunpack.c.h.bf16 %v615_v2  ;;  %v617_v9 = vld [vmem:[%s699_s17 + $0x18] sm:$0xff]   ;;  %v618_v30 = vld [vmem:[%s699_s17 + $0x20] sm:$0xff]   ;;  %v619_v35 = vld [vmem:[%s699_s17 + $0x28] sm:$0xff]  }
  0x10   : > { %v481_v10 = vunpack.c.l.bf16 %v616_v3  ;;  %v482_v11 = vunpack.c.h.bf16 %v616_v3  ;;  %v485_v12 = vunpack.c.l.bf16 %v617_v9  ;;  %v486_v13 = vunpack.c.h.bf16 %v617_v9  ;;  %v620_v40 = vld [vmem:[%s699_s17 + $0x30] sm:$0xff]   ;;  %v621_v45 = vld [vmem:[%s699_s17 + $0x38] sm:$0xff]   ;;  %v622_v3 = vld [vmem:[%s699_s17 + $0x40] sm:$0xff]  }
  0x11   : > { %v239_v14 = vmul.f32 %v704_v0, %v473_v4  ;;  %v240_v15 = vmul.f32 %v704_v0, %v474_v5  ;;  %v241_v16 = vmul.f32 %v704_v0, %v477_v7  ;;  %v242_v17 = vmul.f32 %v704_v0, %v478_v8 }
  0x12   : > { %v243_v18 = vmul.f32 %v704_v0, %v481_v10  ;;  %v244_v19 = vmul.f32 %v704_v0, %v482_v11  ;;  %v245_v20 = vmul.f32 %v704_v0, %v485_v12  ;;  %v246_v21 = vmul.f32 %v704_v0, %v486_v13  ;;  %v623_v13 = vld [vmem:[%s699_s17 + $0x48] sm:$0xff]  }
  0x13   : > { %v275_v22 = vadd.f32 %v712_v6, %v239_v14  ;;  %v276_v23 = vadd.f32 %v712_v6, %v240_v15  ;;  %v277_v24 = vadd.f32 %v712_v6, %v241_v16  ;;  %v278_v25 = vadd.f32 %v712_v6, %v242_v17 }
  0x14   : > { %v279_v26 = vadd.f32 %v712_v6, %v243_v18  ;;  %v280_v27 = vadd.f32 %v712_v6, %v244_v19  ;;  %v281_v28 = vadd.f32 %v712_v6, %v245_v20  ;;  %v282_v29 = vadd.f32 %v712_v6, %v246_v21  ;;  %v624_v18 = vld [vmem:[%s699_s17 + $0x50] sm:$0xff]  }
  0x15   : > { %v307_v31 = vmax.f32 %v275_v22, 0.0  ;;  %v308_v32 = vmax.f32 %v276_v23, 0.0  ;;  %v309_v33 = vmax.f32 %v277_v24, 0.0  ;;  %v310_v34 = vmax.f32 %v278_v25, 0.0  ;;  %v625_v23 = vld [vmem:[%s699_s17 + $0x58] sm:$0xff]  }
  0x16   : > { %v311_v36 = vmax.f32 %v279_v26, 0.0  ;;  %v312_v37 = vmax.f32 %v280_v27, 0.0  ;;  %v313_v38 = vmax.f32 %v281_v28, 0.0  ;;  %v314_v39 = vmax.f32 %v282_v29, 0.0 }
  0x17   : > { %v538_v41 = vpack.c.bf16 %v308_v32, %v307_v31  ;;  %v543_v42 = vpack.c.bf16 %v310_v34, %v309_v33  ;;  %v489_v43 = vunpack.c.l.bf16 %v618_v30  ;;  %v490_v44 = vunpack.c.h.bf16 %v618_v30 }
  0x18   : > { %v548_v46 = vpack.c.bf16 %v312_v37, %v311_v36  ;;  %v553_v47 = vpack.c.bf16 %v314_v39, %v313_v38  ;;  %v493_v48 = vunpack.c.l.bf16 %v619_v35  ;;  %v494_v49 = vunpack.c.h.bf16 %v619_v35 }
  0x19   : > { %539 = vst [vmem:[%s738_s24] sm:$0xff] %v538_v41   ;;  %v247_v50 = vmul.f32 %v704_v0, %v489_v43  ;;  %v248_v51 = vmul.f32 %v704_v0, %v490_v44  ;;  %v497_v52 = vunpack.c.l.bf16 %v620_v40  ;;  %v498_v53 = vunpack.c.h.bf16 %v620_v40  ;;  %v626_v40 = vld [vmem:[%s699_s17 + $0x60] sm:$0xff]  }
  0x1a   : > { %630 = vst [vmem:[%s738_s24 + $0x8] sm:$0xff] %v543_v42   ;;  %v249_v54 = vmul.f32 %v704_v0, %v493_v48  ;;  %v250_v55 = vmul.f32 %v704_v0, %v494_v49  ;;  %v501_v56 = vunpack.c.l.bf16 %v621_v45  ;;  %v502_v57 = vunpack.c.h.bf16 %v621_v45 }
  0x1b   : > { %631 = vst [vmem:[%s738_s24 + $0x10] sm:$0xff] %v548_v46   ;;  %v283_v58 = vadd.f32 %v712_v6, %v247_v50  ;;  %v284_v59 = vadd.f32 %v712_v6, %v248_v51  ;;  %v251_v60 = vmul.f32 %v704_v0, %v497_v52  ;;  %v252_v61 = vmul.f32 %v704_v0, %v498_v53  ;;  %v627_v53 = vld [vmem:[%s699_s17 + $0x68] sm:$0xff]  }
  0x1c   : > { %632 = vst [vmem:[%s738_s24 + $0x18] sm:$0xff] %v553_v47   ;;  %v285_v62 = vadd.f32 %v712_v6, %v249_v54  ;;  %v286_v63 = vadd.f32 %v712_v6, %v250_v55  ;;  %v253_v1 = vmul.f32 %v704_v0, %v501_v56  ;;  %v254_v2 = vmul.f32 %v704_v0, %v502_v57 }
  0x1d   : > { %v315_v4 = vmax.f32 %v283_v58, 0.0  ;;  %v316_v5 = vmax.f32 %v284_v59, 0.0  ;;  %v287_v7 = vadd.f32 %v712_v6, %v251_v60  ;;  %v288_v8 = vadd.f32 %v712_v6, %v252_v61  ;;  %v628_v58 = vld [vmem:[%s699_s17 + $0x70] sm:$0xff]  }
  0x1e   : > { %v317_v9 = vmax.f32 %v285_v62, 0.0  ;;  %v318_v10 = vmax.f32 %v286_v63, 0.0  ;;  %v289_v11 = vadd.f32 %v712_v6, %v253_v1  ;;  %v290_v12 = vadd.f32 %v712_v6, %v254_v2  ;;  %v629_v63 = vld [vmem:[%s699_s17 + $0x78] sm:$0xff]  }
  0x1f   : > { %v558_v14 = vpack.c.bf16 %v316_v5, %v315_v4  ;;  %v319_v15 = vmax.f32 %v287_v7, 0.0  ;;  %v320_v16 = vmax.f32 %v288_v8, 0.0  ;;  %v505_v17 = vunpack.c.l.bf16 %v622_v3 }
  0x20   : > { %v563_v19 = vpack.c.bf16 %v318_v10, %v317_v9  ;;  %v321_v20 = vmax.f32 %v289_v11, 0.0  ;;  %v322_v21 = vmax.f32 %v290_v12, 0.0  ;;  %v506_v22 = vunpack.c.h.bf16 %v622_v3 }
  0x21   : > { %633 = vst [vmem:[%s738_s24 + $0x20] sm:$0xff] %v558_v14   ;;  %v568_v24 = vpack.c.bf16 %v320_v16, %v319_v15  ;;  %v255_v25 = vmul.f32 %v704_v0, %v505_v17  ;;  %v509_v26 = vunpack.c.l.bf16 %v623_v13  ;;  %v510_v27 = vunpack.c.h.bf16 %v623_v13 }
  0x22   : > { %634 = vst [vmem:[%s738_s24 + $0x28] sm:$0xff] %v563_v19   ;;  %v573_v28 = vpack.c.bf16 %v322_v21, %v321_v20  ;;  %v256_v29 = vmul.f32 %v704_v0, %v506_v22  ;;  %v513_v30 = vunpack.c.l.bf16 %v624_v18  ;;  %v514_v31 = vunpack.c.h.bf16 %v624_v18 }
  0x23   : > { %635 = vst [vmem:[%s738_s24 + $0x30] sm:$0xff] %v568_v24   ;;  %v291_v32 = vadd.f32 %v712_v6, %v255_v25  ;;  %v257_v33 = vmul.f32 %v704_v0, %v509_v26  ;;  %v258_v34 = vmul.f32 %v704_v0, %v510_v27  ;;  %v517_v35 = vunpack.c.l.bf16 %v625_v23 }
  0x24   : > { %636 = vst [vmem:[%s738_s24 + $0x38] sm:$0xff] %v573_v28   ;;  %v292_v36 = vadd.f32 %v712_v6, %v256_v29  ;;  %v259_v37 = vmul.f32 %v704_v0, %v513_v30  ;;  %v260_v38 = vmul.f32 %v704_v0, %v514_v31  ;;  %v518_v39 = vunpack.c.h.bf16 %v625_v23 }
  0x25   : > { %v323_v41 = vmax.f32 %v291_v32, 0.0  ;;  %v293_v42 = vadd.f32 %v712_v6, %v257_v33  ;;  %v294_v43 = vadd.f32 %v712_v6, %v258_v34  ;;  %v261_v44 = vmul.f32 %v704_v0, %v517_v35 }
  0x26   : > { %v324_v45 = vmax.f32 %v292_v36, 0.0  ;;  %v295_v46 = vadd.f32 %v712_v6, %v259_v37  ;;  %v296_v47 = vadd.f32 %v712_v6, %v260_v38  ;;  %v262_v48 = vmul.f32 %v704_v0, %v518_v39 }
  0x27   : > { %v325_v49 = vmax.f32 %v293_v42, 0.0  ;;  %v326_v50 = vmax.f32 %v294_v43, 0.0  ;;  %v297_v51 = vadd.f32 %v712_v6, %v261_v44  ;;  %v521_v52 = vunpack.c.l.bf16 %v626_v40 }
  0x28   : > { %v578_v54 = vpack.c.bf16 %v324_v45, %v323_v41  ;;  %v327_v55 = vmax.f32 %v295_v46, 0.0  ;;  %v328_v56 = vmax.f32 %v296_v47, 0.0  ;;  %v298_v57 = vadd.f32 %v712_v6, %v262_v48 }
  0x29   : > { %v583_v59 = vpack.c.bf16 %v326_v50, %v325_v49  ;;  %v329_v60 = vmax.f32 %v297_v51, 0.0  ;;  %v522_v61 = vunpack.c.h.bf16 %v626_v40  ;;  %v263_v62 = vmul.f32 %v704_v0, %v521_v52 }
  0x2a   : > { %637 = vst [vmem:[%s738_s24 + $0x40] sm:$0xff] %v578_v54   ;;  %v588_v1 = vpack.c.bf16 %v328_v56, %v327_v55  ;;  %v330_v2 = vmax.f32 %v298_v57, 0.0  ;;  %v525_v3 = vunpack.c.l.bf16 %v627_v53  ;;  %v526_v4 = vunpack.c.h.bf16 %v627_v53 }
  0x2b   : > { %638 = vst [vmem:[%s738_s24 + $0x48] sm:$0xff] %v583_v59   ;;  %v264_v5 = vmul.f32 %v704_v0, %v522_v61  ;;  %v299_v7 = vadd.f32 %v712_v6, %v263_v62  ;;  %v529_v8 = vunpack.c.l.bf16 %v628_v58  ;;  %v530_v9 = vunpack.c.h.bf16 %v628_v58 }
  0x2c   : > { %639 = vst [vmem:[%s738_s24 + $0x50] sm:$0xff] %v588_v1   ;;  %v593_v10 = vpack.c.bf16 %v330_v2, %v329_v60  ;;  %v265_v11 = vmul.f32 %v704_v0, %v525_v3  ;;  %v266_v12 = vmul.f32 %v704_v0, %v526_v4  ;;  %v533_v13 = vunpack.c.l.bf16 %v629_v63 }
  0x2d   : > { %v300_v14 = vadd.f32 %v712_v6, %v264_v5  ;;  %v331_v15 = vmax.f32 %v299_v7, 0.0  ;;  %v267_v16 = vmul.f32 %v704_v0, %v529_v8  ;;  %v268_v17 = vmul.f32 %v704_v0, %v530_v9 }
  0x2e   : > { %640 = vst [vmem:[%s738_s24 + $0x58] sm:$0xff] %v593_v10   ;;  %v301_v18 = vadd.f32 %v712_v6, %v265_v11  ;;  %v302_v19 = vadd.f32 %v712_v6, %v266_v12  ;;  %v534_v20 = vunpack.c.h.bf16 %v629_v63  ;;  %v269_v21 = vmul.f32 %v704_v0, %v533_v13 }
  0x2f   : > { %v332_v22 = vmax.f32 %v300_v14, 0.0  ;;  %v303_v23 = vadd.f32 %v712_v6, %v267_v16  ;;  %v304_v24 = vadd.f32 %v712_v6, %v268_v17 }
  0x30   : > { %v333_v25 = vmax.f32 %v301_v18, 0.0  ;;  %v334_v26 = vmax.f32 %v302_v19, 0.0  ;;  %v270_v27 = vmul.f32 %v704_v0, %v534_v20  ;;  %v305_v28 = vadd.f32 %v712_v6, %v269_v21 }
  0x31   : > { %v598_v29 = vpack.c.bf16 %v332_v22, %v331_v15  ;;  %v335_v30 = vmax.f32 %v303_v23, 0.0  ;;  %v336_v31 = vmax.f32 %v304_v24, 0.0 }
  0x32   : > { %v603_v32 = vpack.c.bf16 %v334_v26, %v333_v25  ;;  %v306_v33 = vadd.f32 %v712_v6, %v270_v27  ;;  %v337_v34 = vmax.f32 %v305_v28, 0.0 }
  0x33   : > { %641 = vst [vmem:[%s738_s24 + $0x60] sm:$0xff] %v598_v29   ;;  %v608_v35 = vpack.c.bf16 %v336_v31, %v335_v30 }
  0x34   : > { %642 = vst [vmem:[%s738_s24 + $0x68] sm:$0xff] %v603_v32   ;;  %v338_v36 = vmax.f32 %v306_v33, 0.0 }
  0x35   : > { %643 = vst [vmem:[%s738_s24 + $0x70] sm:$0xff] %v608_v35  }
  0x36   : > { %v613_v37 = vpack.c.bf16 %v338_v36, %v337_v34 }
  0x38   : > { %644 = vst [vmem:[%s738_s24 + $0x78] sm:$0xff] %v613_v37  }
  0x39 PF: > { %s13_s12 = sadd.s32 1, %s661_s12  }
  0x3a   : > { %p10_p4 = scmp.ge.s32.totalorder %s13_s12, 4  }
  0x3c   :  { %12 = sbr.rel (!%p10_p4) target bundleno = 1 (0x1), region = 62 }

// kernel: double_conv.7
= control target key start
LH: loop header
LB: loop body
LE: loop exit
PB: predicated region body
PF: predicated region fallthrough
CT: control target
= control target key end

     0   :  { %s556_s12 = smov 0   ;;  %s703_s0 = inlined_call_operand.vmem [shape: bf16[2,256,128], index: 0, kind: input, shape index: {}]   ;;  %s704_s1 = inlined_call_operand.vmem [shape: f32[1,1,128], index: 1, kind: input, shape index: {}]   ;;  %s705_s2 = inlined_call_operand.vmem [shape: f32[1,1,128], index: 2, kind: input, shape index: {}]   ;;  %s706_s3 = inlined_call_operand.vmem [shape: f32[2,256,128], index: 3, kind: output, shape index: {}]  }
   0x1 LB: > { %s426_s13 = sadd.s32 4294967295, %s534_s12   ;;  %p430_p0 = scmp.ge.s32.totalorder %s534_s12, 1  ;;  %s534_s12 = sphi %s556_s12, %s13_s12  }
   0x2   : > { %p137_p1 = scmp.lt.s32.totalorder %s534_s12, 3 }
   0x4   : > { %p138_p2 = pnand %p430_p0, %p137_p1 }
   0x5   : > { %p161_p3 = scmp.lt.s32.totalorder (!%p138_p2), %s426_s13, 1 }
   0x6   : > { %141 = sbr.rel (%p138_p2) target bundleno = 55 (0x37), region = 32 }
   0xb   : > { %s708_s13 = smov (!%p161_p3, %s426_s13), 1  ;;  %v575_v0 = vld [vmem:[%s704_s1] ss:$0 sm:$0xff] }
   0xc   : > { %s437_s14 = sshll.u32 %s708_s13, 7  ;;  %v583_v5 = vld [vmem:[%s705_s2] ss:$0 sm:$0xff]  ;;  %s438_s22 = sshll.u32 %s708_s13, 8 }
   0xd   : > { %s570_s17 = scalar_lea.vmem %s703_s0, %s437_s14  ;;  %s602_s25 = scalar_lea.vmem %s706_s3, %s438_s22 }
   0xe   : > { %v440_v1 = vld [vmem:[%s570_s17] sm:$0xff]   ;;  %v503_v2 = vld [vmem:[%s570_s17 + $0x8] sm:$0xff]   ;;  %v504_v3 = vld [vmem:[%s570_s17 + $0x10] sm:$0xff]  }
   0xf   : > { %v441_v4 = vunpack.c.l.bf16 %v440_v1  ;;  %v442_v6 = vunpack.c.h.bf16 %v440_v1  ;;  %v445_v7 = vunpack.c.l.bf16 %v503_v2  ;;  %v446_v8 = vunpack.c.h.bf16 %v503_v2  ;;  %v505_v9 = vld [vmem:[%s570_s17 + $0x18] sm:$0xff]   ;;  %v506_v30 = vld [vmem:[%s570_s17 + $0x20] sm:$0xff]   ;;  %v507_v31 = vld [vmem:[%s570_s17 + $0x28] sm:$0xff]  }
  0x10   : > { %v449_v10 = vunpack.c.l.bf16 %v504_v3  ;;  %v450_v11 = vunpack.c.h.bf16 %v504_v3  ;;  %v453_v12 = vunpack.c.l.bf16 %v505_v9  ;;  %v454_v13 = vunpack.c.h.bf16 %v505_v9  ;;  %v508_v36 = vld [vmem:[%s570_s17 + $0x30] sm:$0xff]   ;;  %v509_v37 = vld [vmem:[%s570_s17 + $0x38] sm:$0xff]   ;;  %v510_v3 = vld [vmem:[%s570_s17 + $0x40] sm:$0xff]  }
  0x11   : > { %v239_v14 = vmul.f32 %v575_v0, %v441_v4  ;;  %v240_v15 = vmul.f32 %v575_v0, %v442_v6  ;;  %v241_v16 = vmul.f32 %v575_v0, %v445_v7  ;;  %v242_v17 = vmul.f32 %v575_v0, %v446_v8  ;;  %v511_v4 = vld [vmem:[%s570_s17 + $0x48] sm:$0xff]   ;;  %v512_v6 = vld [vmem:[%s570_s17 + $0x50] sm:$0xff]  }
  0x12   : > { %v243_v18 = vmul.f32 %v575_v0, %v449_v10  ;;  %v244_v19 = vmul.f32 %v575_v0, %v450_v11  ;;  %v245_v20 = vmul.f32 %v575_v0, %v453_v12  ;;  %v246_v21 = vmul.f32 %v575_v0, %v454_v13  ;;  %v513_v11 = vld [vmem:[%s570_s17 + $0x58] sm:$0xff]  }
  0x13   : > { %v275_v22 = vadd.f32 %v583_v5, %v239_v14  ;;  %v276_v23 = vadd.f32 %v583_v5, %v240_v15  ;;  %v277_v24 = vadd.f32 %v583_v5, %v241_v16  ;;  %v278_v25 = vadd.f32 %v583_v5, %v242_v17 }
  0x14   : > { %v279_v26 = vadd.f32 %v583_v5, %v243_v18  ;;  %v280_v27 = vadd.f32 %v583_v5, %v244_v19  ;;  %v281_v28 = vadd.f32 %v583_v5, %v245_v20  ;;  %v282_v29 = vadd.f32 %v583_v5, %v246_v21 }
  0x15   : > { %v307_v32 = vmax.f32 %v275_v22, 0.0  ;;  %v308_v33 = vmax.f32 %v276_v23, 0.0  ;;  %v309_v34 = vmax.f32 %v277_v24, 0.0  ;;  %v310_v35 = vmax.f32 %v278_v25, 0.0 }
  0x16   : > { %v311_v38 = vmax.f32 %v279_v26, 0.0  ;;  %v312_v39 = vmax.f32 %v280_v27, 0.0  ;;  %v313_v40 = vmax.f32 %v281_v28, 0.0  ;;  %v314_v41 = vmax.f32 %v282_v29, 0.0 }
  0x17   : > { %339 = vst [vmem:[%s602_s25] sm:$0xff] %v307_v32  ;;  %v457_v42 = vunpack.c.l.bf16 %v506_v30  ;;  %v458_v43 = vunpack.c.h.bf16 %v506_v30  ;;  %v461_v44 = vunpack.c.l.bf16 %v507_v31  ;;  %v462_v45 = vunpack.c.h.bf16 %v507_v31 }
  0x18   : > { %340 = vst [vmem:[%s602_s25 + $0x8] sm:$0xff] %v308_v33  ;;  %v465_v46 = vunpack.c.l.bf16 %v508_v36  ;;  %v466_v47 = vunpack.c.h.bf16 %v508_v36  ;;  %v469_v48 = vunpack.c.l.bf16 %v509_v37  ;;  %v470_v49 = vunpack.c.h.bf16 %v509_v37 }
  0x19   : > { %341 = vst [vmem:[%s602_s25 + $0x10] sm:$0xff] %v309_v34  ;;  %v247_v50 = vmul.f32 %v575_v0, %v457_v42  ;;  %v248_v51 = vmul.f32 %v575_v0, %v458_v43  ;;  %v249_v52 = vmul.f32 %v575_v0, %v461_v44  ;;  %v250_v53 = vmul.f32 %v575_v0, %v462_v45  ;;  %v516_v42 = vld [vmem:[%s570_s17 + $0x70] sm:$0xff]  }
  0x1a   : > { %342 = vst [vmem:[%s602_s25 + $0x18] sm:$0xff] %v310_v35  ;;  %v251_v54 = vmul.f32 %v575_v0, %v465_v46  ;;  %v252_v55 = vmul.f32 %v575_v0, %v466_v47  ;;  %v253_v56 = vmul.f32 %v575_v0, %v469_v48  ;;  %v254_v57 = vmul.f32 %v575_v0, %v470_v49  ;;  %v517_v47 = vld [vmem:[%s570_s17 + $0x78] sm:$0xff]  }
  0x1b   : > { %343 = vst [vmem:[%s602_s25 + $0x20] sm:$0xff] %v311_v38  ;;  %v283_v58 = vadd.f32 %v583_v5, %v247_v50  ;;  %v284_v59 = vadd.f32 %v583_v5, %v248_v51  ;;  %v285_v60 = vadd.f32 %v583_v5, %v249_v52  ;;  %v286_v61 = vadd.f32 %v583_v5, %v250_v53 }
  0x1c   : > { %344 = vst [vmem:[%s602_s25 + $0x28] sm:$0xff] %v312_v39  ;;  %v287_v62 = vadd.f32 %v583_v5, %v251_v54  ;;  %v288_v63 = vadd.f32 %v583_v5, %v252_v55  ;;  %v289_v1 = vadd.f32 %v583_v5, %v253_v56  ;;  %v290_v2 = vadd.f32 %v583_v5, %v254_v57 }
  0x1d   : > { %345 = vst [vmem:[%s602_s25 + $0x30] sm:$0xff] %v313_v40  ;;  %v315_v7 = vmax.f32 %v283_v58, 0.0  ;;  %v316_v8 = vmax.f32 %v284_v59, 0.0  ;;  %v317_v9 = vmax.f32 %v285_v60, 0.0  ;;  %v318_v10 = vmax.f32 %v286_v61, 0.0  ;;  %v514_v40 = vld [vmem:[%s570_s17 + $0x60] sm:$0xff]  }
  0x1e   : > { %346 = vst [vmem:[%s602_s25 + $0x38] sm:$0xff] %v314_v41  ;;  %v319_v12 = vmax.f32 %v287_v62, 0.0  ;;  %v320_v13 = vmax.f32 %v288_v63, 0.0  ;;  %v321_v14 = vmax.f32 %v289_v1, 0.0  ;;  %v322_v15 = vmax.f32 %v290_v2, 0.0  ;;  %v515_v41 = vld [vmem:[%s570_s17 + $0x68] sm:$0xff]  }
  0x1f   : > { %347 = vst [vmem:[%s602_s25 + $0x40] sm:$0xff] %v315_v7  ;;  %v473_v16 = vunpack.c.l.bf16 %v510_v3  ;;  %v474_v17 = vunpack.c.h.bf16 %v510_v3  ;;  %v477_v18 = vunpack.c.l.bf16 %v511_v4  ;;  %v478_v19 = vunpack.c.h.bf16 %v511_v4 }
  0x20   : > { %348 = vst [vmem:[%s602_s25 + $0x48] sm:$0xff] %v316_v8  ;;  %v481_v20 = vunpack.c.l.bf16 %v512_v6  ;;  %v482_v21 = vunpack.c.h.bf16 %v512_v6  ;;  %v485_v22 = vunpack.c.l.bf16 %v513_v11  ;;  %v486_v23 = vunpack.c.h.bf16 %v513_v11 }
  0x21   : > { %349 = vst [vmem:[%s602_s25 + $0x50] sm:$0xff] %v317_v9  ;;  %v255_v24 = vmul.f32 %v575_v0, %v473_v16  ;;  %v256_v25 = vmul.f32 %v575_v0, %v474_v17  ;;  %v257_v26 = vmul.f32 %v575_v0, %v477_v18  ;;  %v258_v27 = vmul.f32 %v575_v0, %v478_v19 }
  0x22   : > { %350 = vst [vmem:[%s602_s25 + $0x58] sm:$0xff] %v318_v10  ;;  %v259_v28 = vmul.f32 %v575_v0, %v481_v20  ;;  %v260_v29 = vmul.f32 %v575_v0, %v482_v21  ;;  %v261_v30 = vmul.f32 %v575_v0, %v485_v22  ;;  %v262_v31 = vmul.f32 %v575_v0, %v486_v23 }
  0x23   : > { %351 = vst [vmem:[%s602_s25 + $0x60] sm:$0xff] %v319_v12  ;;  %v291_v32 = vadd.f32 %v583_v5, %v255_v24  ;;  %v292_v33 = vadd.f32 %v583_v5, %v256_v25  ;;  %v293_v34 = vadd.f32 %v583_v5, %v257_v26  ;;  %v294_v35 = vadd.f32 %v583_v5, %v258_v27 }
  0x24   : > { %352 = vst [vmem:[%s602_s25 + $0x68] sm:$0xff] %v320_v13  ;;  %v295_v36 = vadd.f32 %v583_v5, %v259_v28  ;;  %v296_v37 = vadd.f32 %v583_v5, %v260_v29  ;;  %v297_v38 = vadd.f32 %v583_v5, %v261_v30  ;;  %v298_v39 = vadd.f32 %v583_v5, %v262_v31 }
  0x25   : > { %353 = vst [vmem:[%s602_s25 + $0x70] sm:$0xff] %v321_v14  ;;  %v323_v43 = vmax.f32 %v291_v32, 0.0  ;;  %v324_v44 = vmax.f32 %v292_v33, 0.0  ;;  %v325_v45 = vmax.f32 %v293_v34, 0.0  ;;  %v326_v46 = vmax.f32 %v294_v35, 0.0 }
  0x26   : > { %354 = vst [vmem:[%s602_s25 + $0x78] sm:$0xff] %v322_v15  ;;  %v327_v48 = vmax.f32 %v295_v36, 0.0  ;;  %v328_v49 = vmax.f32 %v296_v37, 0.0  ;;  %v329_v50 = vmax.f32 %v297_v38, 0.0  ;;  %v330_v51 = vmax.f32 %v298_v39, 0.0 }
  0x27   : > { %355 = vst [vmem:[%s602_s25 + $0x80] sm:$0xff] %v323_v43  ;;  %v489_v52 = vunpack.c.l.bf16 %v514_v40  ;;  %v490_v53 = vunpack.c.h.bf16 %v514_v40  ;;  %v493_v54 = vunpack.c.l.bf16 %v515_v41  ;;  %v494_v55 = vunpack.c.h.bf16 %v515_v41 }
  0x28   : > { %356 = vst [vmem:[%s602_s25 + $0x88] sm:$0xff] %v324_v44  ;;  %v497_v56 = vunpack.c.l.bf16 %v516_v42  ;;  %v498_v57 = vunpack.c.h.bf16 %v516_v42  ;;  %v501_v58 = vunpack.c.l.bf16 %v517_v47  ;;  %v502_v59 = vunpack.c.h.bf16 %v517_v47 }
  0x29   : > { %357 = vst [vmem:[%s602_s25 + $0x90] sm:$0xff] %v325_v45  ;;  %v263_v60 = vmul.f32 %v575_v0, %v489_v52  ;;  %v264_v61 = vmul.f32 %v575_v0, %v490_v53  ;;  %v265_v62 = vmul.f32 %v575_v0, %v493_v54  ;;  %v266_v63 = vmul.f32 %v575_v0, %v494_v55 }
  0x2a   : > { %358 = vst [vmem:[%s602_s25 + $0x98] sm:$0xff] %v326_v46  ;;  %v267_v1 = vmul.f32 %v575_v0, %v497_v56  ;;  %v268_v2 = vmul.f32 %v575_v0, %v498_v57  ;;  %v269_v3 = vmul.f32 %v575_v0, %v501_v58  ;;  %v270_v4 = vmul.f32 %v575_v0, %v502_v59 }
  0x2b   : > { %359 = vst [vmem:[%s602_s25 + $0xa0] sm:$0xff] %v327_v48  ;;  %v299_v6 = vadd.f32 %v583_v5, %v263_v60  ;;  %v300_v7 = vadd.f32 %v583_v5, %v264_v61  ;;  %v301_v8 = vadd.f32 %v583_v5, %v265_v62  ;;  %v302_v9 = vadd.f32 %v583_v5, %v266_v63 }
  0x2c   : > { %360 = vst [vmem:[%s602_s25 + $0xa8] sm:$0xff] %v328_v49  ;;  %v303_v10 = vadd.f32 %v583_v5, %v267_v1  ;;  %v304_v11 = vadd.f32 %v583_v5, %v268_v2  ;;  %v305_v14 = vadd.f32 %v583_v5, %v269_v3  ;;  %v306_v16 = vadd.f32 %v583_v5, %v270_v4 }
  0x2d   : > { %361 = vst [vmem:[%s602_s25 + $0xb0] sm:$0xff] %v329_v50  ;;  %v331_v0 = vmax.f32 %v299_v6, 0.0  ;;  %v332_v12 = vmax.f32 %v300_v7, 0.0  ;;  %v333_v13 = vmax.f32 %v301_v8, 0.0  ;;  %v334_v15 = vmax.f32 %v302_v9, 0.0 }
  0x2e   : > { %362 = vst [vmem:[%s602_s25 + $0xb8] sm:$0xff] %v330_v51  ;;  %v335_v17 = vmax.f32 %v303_v10, 0.0  ;;  %v336_v18 = vmax.f32 %v304_v11, 0.0  ;;  %v337_v19 = vmax.f32 %v305_v14, 0.0  ;;  %v338_v20 = vmax.f32 %v306_v16, 0.0 }
  0x2f   : > { %363 = vst [vmem:[%s602_s25 + $0xc0] sm:$0xff] %v331_v0 }
  0x30   : > { %364 = vst [vmem:[%s602_s25 + $0xc8] sm:$0xff] %v332_v12 }
  0x31   : > { %365 = vst [vmem:[%s602_s25 + $0xd0] sm:$0xff] %v333_v13 }
  0x32   : > { %366 = vst [vmem:[%s602_s25 + $0xd8] sm:$0xff] %v334_v15 }
  0x33   : > { %367 = vst [vmem:[%s602_s25 + $0xe0] sm:$0xff] %v335_v17 }
  0x34   : > { %368 = vst [vmem:[%s602_s25 + $0xe8] sm:$0xff] %v336_v18 }
  0x35   : > { %369 = vst [vmem:[%s602_s25 + $0xf0] sm:$0xff] %v337_v19 }
  0x36   : > { %370 = vst [vmem:[%s602_s25 + $0xf8] sm:$0xff] %v338_v20 }
  0x37 PF: > { %s13_s12 = sadd.s32 1, %s534_s12  }
  0x38   : > { %p10_p4 = scmp.ge.s32.totalorder %s13_s12, 4  }
  0x3a   :  { %12 = sbr.rel (!%p10_p4) target bundleno = 1 (0x1), region = 62 }

// kernel: double_conv.4
= control target key start
LH: loop header
LB: loop body
LE: loop exit
PB: predicated region body
PF: predicated region fallthrough
CT: control target
= control target key end

     0   :  { %s5316_s12 = smov 0   ;;  %s5318_s13 = smov 0   ;;  %s6912_s0 = inlined_call_operand.vmem [shape: bf16[6,16,18,4], index: 0, kind: input, shape index: {}]   ;;  %s6913_s1 = inlined_call_operand.vmem [shape: bf16[36,128], index: 1, kind: input, shape index: {}]   ;;  %s6914_s2 = inlined_call_operand.vmem [shape: bf16[2,256,128], index: 2, kind: output, shape index: {0}]   ;;  %s6915_s3 = inlined_call_operand.vmem [shape: f32[2,2,128], index: 3, kind: output, shape index: {1}]  }
   0x1   :  { %s5320_s14 = smov 0  }
   0x2 LB: > { %s26_s15 = sadd.s32 1, %s5290_s13  ;;  %p4467_p0 = scmp.ge.s32.totalorder %s5294_s14, 1  ;;  %s5294_s14 = sphi %s5320_s14, %s14_s14   ;;  %s5290_s13 = sphi %s5318_s13, %s6931_s13   ;;  %s5286_s12 = sphi %s5316_s12, %s6930_s12  }
   0x3   : > { %p28_p1 = scmp.ge.s32.totalorder %s26_s15, 2  ;;  %p166_p2 = scmp.lt.s32.totalorder %s5294_s14, 3 }
   0x5   : > { %s6933_s15 = smov (%p28_p1, %s26_s15), 0  ;;  %p167_p3 = pnand %p4467_p0, %p166_p2 }
   0x7   : > { %170 = sbr.rel (%p167_p3) target bundleno = 852 (0x354), region = 28 }
   0xc   : > { %v665_v0 = vld [vmem:[%s6913_s1] sm:$0xc]  ;;  %s202_s18 = smul.u32 3, %s5286_s12  ;;  %vm767_vm0 = vcmask 1041408   ;;  %v1243_v3 = vld [vmem:[%s6913_s1 + $0x4] sm:$0x3] }
   0xd   : > { %v715_v1 = vunpack.c.l.b16 %v665_v0  ;;  %v261_v5 = vld [vmem:[%s6913_s1] sm:$0x3]  ;;  %v2186_v6 = vld [vmem:[%s6913_s1 + $0x8] sm:$0x3]  ;;  %v1341_v8 = vsel %vm767_vm0, %v1243_v3, 0  ;;  %vm718_vm3 = vcmask 31744  }
   0xe   : > { %p204_p4 = scmp.lt.s32.totalorder %s202_s18, 5  ;;  %v989_v9 = vsel %vm767_vm0, %v261_v5, 0  ;;  %vm278_vm1 = vsmask.f32 3328  ;;  %vm279_vm2 = vsmask.f32 7440 }
   0xf   : > { %v716_v2 = vpack.c.b16 %v715_v1, %v715_v1  ;;  %v2284_v10 = vsel %vm767_vm0, %v2186_v6, 0  ;;  %v1497_v19 = vld [vmem:[%s6913_s1 + $0x4] sm:$0xc]  ;;  %vm5371_vm4 = vmor %vm278_vm1, %vm279_vm2  ;;  %vm1128_vm5 = vcmask 1042432   ;;  %vm1129_vm6 = vcmask 1046532   ;;  %p216_p5 = scmp.lt.s32.totalorder %s5286_s12, 1 }
  0x10   : > { %s6935_s18 = smov (!%p204_p4, %s202_s18), 5  ;;  %v1579_v42 = vunpack.c.l.b16 %v1497_v19  ;;  %vm5546_vm7 = vmor %vm1128_vm5, %vm1129_vm6 }
  0x11   : > { %v717_v4 = vrot.slane %v716_v2, 2  ;;  %s5197_s23 = smul.u32 192, %s6935_s18  ;;  %s6937_s12 = smov (!%p216_p5, %s5286_s12), 1 }
  0x12   : > { %v1580_v6 = vpack.c.b16 %v1579_v42, %v1579_v42  ;;  %s5050_s16 = sshll.u32 %s6937_s12, 7  ;;  %s4471_s20 = sshll.u32 %s6937_s12, 1 }
  0x13   : > { %v769_v7 = vsel %vm767_vm0, %v717_v4, 0  ;;  %s5355_s28 = scalar_lea.vmem %s6912_s0, %s5197_s23  ;;  %s6455_s19 = scalar_lea.vmem %s6914_s2, %s5050_s16 }
  0x14   : > { %5194 = vmatpush.bf16.msra.mxu1 %v769_v7  ;;  %5195 = vmatpush.bf16.msra.mxu2 %v769_v7  ;;  %v237_v11 = vld [vmem:[%s5355_s28 + $0x30] sm:$0xf]  ;;  %v238_v12 = vld [vmem:[%s5355_s28 + $0x34] sm:$0xf]  ;;  %v266_v13 = vld [vmem:[%s5355_s28 + $0x38] sm:$0x1]  ;;  %s6815_s23 = scalar_lea.vmem %s6915_s3, %s4471_s20 }
  0x15   : > { %5196 = vmatpush.bf16.msra.mxu3 %v769_v7  ;;  %778 = vmatpush.bf16.msra.mxu0 %v769_v7  ;;  %v378_v14 = vshrl.u32 %v237_v11, 16  ;;  %v381_v15 = vshll.u32 %v237_v11, 16  ;;  %v387_v16 = vshll.u32 %v238_v12, 16  ;;  %v391_v17 = vshrl.u32 %v238_v12, 16  ;;  %v245_v18 = vld [vmem:[%s5355_s28 + $0x60] sm:$0xf] }
  0x16   : > { %v397_v20 = vshll.u32 %v266_v13, 16  ;;  %v246_v21 = vld [vmem:[%s5355_s28 + $0x64] sm:$0xf]  ;;  %v270_v22 = vld [vmem:[%s5355_s28 + $0x68] sm:$0x1]  ;;  %v474_v23 = vshrl.u32 %v245_v18, 16 }
  0x17   : > { %v380_v24 = vrot.slane %v378_v14, 4  ;;  %v383_v25 = vrot.slane %v381_v15, 5  ;;  %v389_v26 = vrot.slane %v387_v16, 5  ;;  %v393_v27 = vrot.slane %v391_v17, 4  ;;  %v253_v28 = vld [vmem:[%s5355_s28 + $0x90] sm:$0xf] }
  0x18   : > { %1350 = vmatpush.bf16.msrb.mxu2 %v1341_v8  ;;  %998 = vmatpush.bf16.msrb.mxu1 %v989_v9  ;;  %v399_v29 = vrot.slane %v397_v20, 5  ;;  %v476_v30 = vrot.slane %v474_v23, 4  ;;  %v477_v31 = vshll.u32 %v245_v18, 16  ;;  %v483_v32 = vshll.u32 %v246_v21, 16  ;;  %v254_v37 = vld [vmem:[%s5355_s28 + $0x94] sm:$0xf] }
  0x19   : > { %2293 = vmatpush.bf16.msrb.mxu0 %v2284_v10  ;;  %v384_v33 = vor.u32 %v383_v25, %v380_v24  ;;  %v394_v34 = vor.u32 %v393_v27, %v389_v26  ;;  %v487_v35 = vshrl.u32 %v246_v21, 16  ;;  %v493_v36 = vshll.u32 %v270_v22, 16  ;;  %v274_v48 = vld [vmem:[%s5355_s28 + $0x98] sm:$0x1]  ;;  %v229_v0 = vld [vmem:[%s5355_s28] sm:$0xf] }
  0x1a   : > { %v479_v39 = vrot.slane %v477_v31, 5  ;;  %v485_v40 = vrot.slane %v483_v32, 5  ;;  %v570_v41 = vshrl.u32 %v253_v28, 16  ;;  %v573_v50 = vshll.u32 %v253_v28, 16  ;;  %v5384_v4 = vld [vmem:[%s5355_s28 + $0x4] sm:$0xf] }
  0x1b   : > { %v385_v43 = vrot.slane %v384_v33, 4  ;;  %v395_v44 = vrot.slane %v394_v34, 4  ;;  %v489_v45 = vrot.slane %v487_v35, 4  ;;  %v495_v46 = vrot.slane %v493_v36, 5  ;;  %v5387_v5 = vld [vmem:[%s5355_s28 + $0x8] sm:$0x1] }
  0x1c   : > { %v480_v47 = vor.u32 %v479_v39, %v476_v30  ;;  %v572_v49 = vrot.slane %v570_v41, 4  ;;  %v579_v51 = vshll.u32 %v254_v37, 16  ;;  %v583_v55 = vshrl.u32 %v254_v37, 16  ;;  %v239_v23 = vld [vmem:[%s5355_s28 + $0x3c] sm:$0xf] }
  0x1d   : > { %v390_v52 = vsel %vm5371_vm4, %v385_v43, %v389_v26  ;;  %v400_v53 = vsel %vm5371_vm4, %v395_v44, %v399_v29  ;;  %v490_v54 = vor.u32 %v489_v45, %v485_v40  ;;  %v575_v59 = vrot.slane %v573_v50, 5  ;;  %v5401_v28 = vld [vmem:[%s5355_s28 + $0x40] sm:$0xf]  ;;  %v5405_v34 = vld [vmem:[%s5355_s28 + $0x44] sm:$0x1] }
  0x1e   : > { %v674_v56 = vunpack.c.l.b16 %v390_v52  ;;  %v675_v57 = vunpack.c.l.b16 %v400_v53  ;;  %v481_v58 = vrot.slane %v480_v47, 4  ;;  %v581_v61 = vrot.slane %v579_v51, 5  ;;  %v247_v42 = vld [vmem:[%s5355_s28 + $0x6c] sm:$0xf]  ;;  %v248_v51 = vld [vmem:[%s5355_s28 + $0x70] sm:$0xf] }
  0x1f   : > { %v491_v60 = vrot.slane %v490_v54, 4  ;;  %v585_v62 = vrot.slane %v583_v55, 4  ;;  %v589_v63 = vshll.u32 %v274_v48, 16  ;;  %v576_v3 = vor.u32 %v575_v59, %v572_v49  ;;  %v271_v55 = vld [vmem:[%s5355_s28 + $0x74] sm:$0x1] }
  0x20   : > { %v702_v1 = vpack.c.b16 %v675_v57, %v674_v56  ;;  %v486_v2 = vsel %vm5371_vm4, %v481_v58, %v485_v40  ;;  %v282_v13 = vshrl.u32 %v229_v0, 16  ;;  %v285_v14 = vshll.u32 %v229_v0, 16 }
  0x21   : > { %v496_v7 = vsel %vm5371_vm4, %v491_v60, %v495_v46  ;;  %v682_v8 = vunpack.c.l.b16 %v486_v2  ;;  %v586_v9 = vor.u32 %v585_v62, %v581_v61  ;;  %v591_v10 = vrot.slane %v589_v63, 5 }
  0x22   : > { %4476 = vmatmul.msk.bf16.vlgmr.msra.gmra.mxu1 %vm718_vm3, %v702_v1  ;;  %v683_v11 = vunpack.c.l.b16 %v496_v7  ;;  %v577_v12 = vrot.slane %v576_v3, 4  ;;  %v291_v16 = vshll.u32 %v5384_v4, 16  ;;  %v295_v17 = vshrl.u32 %v5384_v4, 16  ;;  %v255_v7 = vld [vmem:[%s5355_s28 + $0x9c] sm:$0xf] }
  0x23   : > { %v587_v15 = vrot.slane %v586_v9, 4  ;;  %v301_v18 = vshll.u32 %v5387_v5, 16  ;;  %v284_v21 = vrot.slane %v282_v13, 4  ;;  %v287_v22 = vrot.slane %v285_v14, 5 }
  0x24   : > { %v706_v19 = vpack.c.b16 %v683_v11, %v682_v8  ;;  %v582_v20 = vsel %vm5371_vm4, %v577_v12, %v581_v61  ;;  %v293_v26 = vrot.slane %v291_v16, 5  ;;  %v297_v27 = vrot.slane %v295_v17, 4  ;;  %v256_v11 = vld [vmem:[%s5355_s28 + $0xa0] sm:$0xf]  ;;  %v275_v12 = vld [vmem:[%s5355_s28 + $0xa4] sm:$0x1] }
  0x25   : > { %v592_v24 = vsel %vm5371_vm4, %v587_v15, %v591_v10  ;;  %v690_v25 = vunpack.c.l.b16 %v582_v20  ;;  %v288_v30 = vor.u32 %v287_v22, %v284_v21  ;;  %v303_v31 = vrot.slane %v301_v18, 5 }
  0x26   : > { %4480 = vmatmul.msk.bf16.vlgmr.msra.gmra.mxu2 %vm718_vm3, %v706_v19  ;;  %v691_v29 = vunpack.c.l.b16 %v592_v24  ;;  %v298_v32 = vor.u32 %v297_v27, %v293_v26  ;;  %v1581_v33 = vrot.slane %v1580_v6, 2  ;;  %v402_v35 = vshrl.u32 %v239_v23, 16 }
  0x27   : > { %v405_v36 = vshll.u32 %v239_v23, 16  ;;  %v289_v39 = vrot.slane %v288_v30, 4  ;;  %v411_v40 = vshll.u32 %v5401_v28, 16  ;;  %v415_v41 = vshrl.u32 %v5401_v28, 16  ;;  %v231_v30 = vld [vmem:[%s5355_s28 + $0xc] sm:$0xf] }
  0x28   : > { %v710_v37 = vpack.c.b16 %v691_v29, %v690_v25  ;;  %v299_v43 = vrot.slane %v298_v32, 4  ;;  %v1631_v44 = vsel %vm767_vm0, %v1581_v33, 0  ;;  %v404_v45 = vrot.slane %v402_v35, 4  ;;  %v5431_v35 = vld [vmem:[%s5355_s28 + $0x10] sm:$0xf] }
  0x29   : > { %v407_v46 = vrot.slane %v405_v36, 5  ;;  %v294_v47 = vsel %vm5371_vm4, %v289_v39, %v293_v26  ;;  %v413_v48 = vrot.slane %v411_v40, 5  ;;  %v417_v49 = vrot.slane %v415_v41, 4  ;;  %1640 = vmatpush.bf16.msrb.mxu3 %v1631_v44  ;;  %v5434_v36 = vld [vmem:[%s5355_s28 + $0x14] sm:$0x1] }
  0x2a   : > { %4484 = vmatmul.msk.bf16.vlgmr.msra.gmra.mxu3 %vm718_vm3, %v710_v37  ;;  %v421_v50 = vshll.u32 %v5405_v34, 16  ;;  %v304_v52 = vsel %vm5371_vm4, %v299_v43, %v303_v31  ;;  %v666_v53 = vunpack.c.l.b16 %v294_v47  ;;  %v498_v56 = vshrl.u32 %v247_v42, 16 }
  0x2b   : > { %v408_v54 = vor.u32 %v407_v46, %v404_v45  ;;  %v667_v57 = vunpack.c.l.b16 %v304_v52  ;;  %v418_v58 = vor.u32 %v417_v49, %v413_v48  ;;  %v501_v60 = vshll.u32 %v247_v42, 16 }
  0x2c   : > { %v423_v59 = vrot.slane %v421_v50, 5  ;;  %v500_v62 = vrot.slane %v498_v56, 4  ;;  %v507_v63 = vshll.u32 %v248_v51, 16  ;;  %v511_v0 = vshrl.u32 %v248_v51, 16  ;;  %v241_v50 = vld [vmem:[%s5355_s28 + $0x48] sm:$0xf] }
  0x2d   : > { %v409_v61 = vrot.slane %v408_v54, 4  ;;  %v698_v1 = vpack.c.b16 %v667_v57, %v666_v53  ;;  %v419_v2 = vrot.slane %v418_v58, 4  ;;  %v503_v3 = vrot.slane %v501_v60, 5  ;;  %v5449_v60 = vld [vmem:[%s5355_s28 + $0x50] sm:$0x1] }
  0x2e   : > { %v517_v6 = vshll.u32 %v271_v55, 16  ;;  %v509_v9 = vrot.slane %v507_v63, 5  ;;  %v513_v10 = vrot.slane %v511_v0, 4  ;;  %v594_v19 = vshrl.u32 %v255_v7, 16  ;;  %v5444_v55 = vld [vmem:[%s5355_s28 + $0x4c] sm:$0xf] }
  0x2f   : > { %v414_v8 = vsel %vm5371_vm4, %v409_v61, %v413_v48  ;;  %4472 = vmatmul.msk.bf16.vlgmr.msra.gmra.mxu0 %vm718_vm3, %v698_v1  ;;  %v424_v13 = vsel %vm5371_vm4, %v419_v2, %v423_v59  ;;  %v504_v15 = vor.u32 %v503_v3, %v500_v62  ;;  %v597_v20 = vshll.u32 %v255_v7, 16  ;;  %v249_v7 = vld [vmem:[%s5355_s28 + $0x78] sm:$0xf] }
  0x30   : > { %v676_v14 = vunpack.c.l.b16 %v414_v8  ;;  %v519_v16 = vrot.slane %v517_v6, 5  ;;  %v677_v17 = vunpack.c.l.b16 %v424_v13  ;;  %v514_v18 = vor.u32 %v513_v10, %v509_v9 }
  0x31   : > { %v505_v21 = vrot.slane %v504_v15, 4  ;;  %v603_v22 = vshll.u32 %v256_v11, 16  ;;  %v607_v23 = vshrl.u32 %v256_v11, 16  ;;  %v613_v24 = vshll.u32 %v275_v12, 16 }
  0x32   : > { %v703_v25 = vpack.c.b16 %v677_v17, %v676_v14  ;;  %v515_v26 = vrot.slane %v514_v18, 4  ;;  %v596_v27 = vrot.slane %v594_v19, 4  ;;  %v599_v29 = vrot.slane %v597_v20, 5  ;;  %v272_v20 = vld [vmem:[%s5355_s28 + $0x80] sm:$0x1] }
  0x33   : > { %v510_v31 = vsel %vm5371_vm4, %v505_v21, %v509_v9  ;;  %v605_v32 = vrot.slane %v603_v22, 5  ;;  %v609_v33 = vrot.slane %v607_v23, 4  ;;  %v615_v41 = vrot.slane %v613_v24, 5 }
  0x34   : > { %4477 = vmatmul.msk.bf16.gmra.mxu1 %vm718_vm3, %v703_v25  ;;  %v520_v37 = vsel %vm5371_vm4, %v515_v26, %v519_v16  ;;  %v684_v39 = vunpack.c.l.b16 %v510_v31  ;;  %v600_v40 = vor.u32 %v599_v29, %v596_v27  ;;  %v306_v44 = vshrl.u32 %v231_v30, 16  ;;  %v250_v16 = vld [vmem:[%s5355_s28 + $0x7c] sm:$0xf] }
  0x35   : > { %v685_v42 = vunpack.c.l.b16 %v520_v37  ;;  %v610_v43 = vor.u32 %v609_v33, %v605_v32  ;;  %v309_v45 = vshll.u32 %v231_v30, 16  ;;  %v315_v47 = vshll.u32 %v5431_v35, 16 }
  0x36   : > { %v601_v46 = vrot.slane %v600_v40, 4  ;;  %v319_v48 = vshrl.u32 %v5431_v35, 16  ;;  %v325_v49 = vshll.u32 %v5434_v36, 16  ;;  %v308_v53 = vrot.slane %v306_v44, 4 }
  0x37   : > { %v707_v51 = vpack.c.b16 %v685_v42, %v684_v39  ;;  %v611_v52 = vrot.slane %v610_v43, 4  ;;  %v311_v54 = vrot.slane %v309_v45, 5  ;;  %v317_v57 = vrot.slane %v315_v47, 5  ;;  %v257_v39 = vld [vmem:[%s5355_s28 + $0xa8] sm:$0xf] }
  0x38   : > { %v606_v56 = vsel %vm5371_vm4, %v601_v46, %v605_v32  ;;  %v321_v58 = vrot.slane %v319_v48, 4  ;;  %v327_v59 = vrot.slane %v325_v49, 5  ;;  %v426_v0 = vshrl.u32 %v241_v50, 16  ;;  %v258_v43 = vld [vmem:[%s5355_s28 + $0xac] sm:$0xf] }
  0x39   : > { %4481 = vmatmul.msk.bf16.gmra.mxu2 %vm718_vm3, %v707_v51  ;;  %v616_v61 = vsel %vm5371_vm4, %v611_v52, %v615_v41  ;;  %v692_v62 = vunpack.c.l.b16 %v606_v56  ;;  %v312_v63 = vor.u32 %v311_v54, %v308_v53  ;;  %v429_v3 = vshll.u32 %v241_v50, 16  ;;  %v276_v48 = vld [vmem:[%s5355_s28 + $0xb0] sm:$0x1] }
  0x3a   : > { %v693_v1 = vunpack.c.l.b16 %v616_v61  ;;  %v322_v2 = vor.u32 %v321_v58, %v317_v57  ;;  %v435_v6 = vshll.u32 %v5444_v55, 16  ;;  %v428_v9 = vrot.slane %v426_v0, 4 }
  0x3b   : > { %v313_v8 = vrot.slane %v312_v63, 4  ;;  %v439_v10 = vshrl.u32 %v5444_v55, 16  ;;  %v445_v11 = vshll.u32 %v5449_v60, 16  ;;  %v431_v14 = vrot.slane %v429_v3, 5  ;;  %v233_v63 = vld [vmem:[%s5355_s28 + $0x18] sm:$0xf] }
  0x3c   : > { %v711_v12 = vpack.c.b16 %v693_v1, %v692_v62  ;;  %v323_v13 = vrot.slane %v322_v2, 4  ;;  %v437_v15 = vrot.slane %v435_v6, 5  ;;  %v522_v21 = vshrl.u32 %v249_v7, 16  ;;  %v5477_v6 = vld [vmem:[%s5355_s28 + $0x1c] sm:$0xf] }
  0x3d   : > { %v318_v17 = vsel %vm5371_vm4, %v313_v8, %v317_v57  ;;  %v441_v18 = vrot.slane %v439_v10, 4  ;;  %v447_v19 = vrot.slane %v445_v11, 5  ;;  %v432_v24 = vor.u32 %v431_v14, %v428_v9  ;;  %v5480_v10 = vld [vmem:[%s5355_s28 + $0x20] sm:$0x1] }
  0x3e   : > { %4485 = vmatmul.msk.bf16.gmra.mxu3 %vm718_vm3, %v711_v12  ;;  %v328_v22 = vsel %vm5371_vm4, %v323_v13, %v327_v59  ;;  %v668_v23 = vunpack.c.l.b16 %v318_v17  ;;  %v525_v25 = vshll.u32 %v249_v7, 16  ;;  %v524_v29 = vrot.slane %v522_v21, 4 }
  0x3f   : > { %v669_v26 = vunpack.c.l.b16 %v328_v22  ;;  %v442_v27 = vor.u32 %v441_v18, %v437_v15  ;;  %v531_v30 = vshll.u32 %v250_v16, 16  ;;  %v433_v31 = vrot.slane %v432_v24, 4  ;;  %v5490_v24 = vld [vmem:[%s5355_s28 + $0x58] sm:$0xf] }
  0x40   : > { %v527_v32 = vrot.slane %v525_v25, 5  ;;  %v535_v33 = vshrl.u32 %v250_v16, 16  ;;  %v541_v37 = vshll.u32 %v272_v20, 16  ;;  %v618_v51 = vshrl.u32 %v257_v39, 16 }
  0x41   : > { %v699_v40 = vpack.c.b16 %v669_v26, %v668_v23  ;;  %v443_v41 = vrot.slane %v442_v27, 4  ;;  %v533_v42 = vrot.slane %v531_v30, 5  ;;  %v438_v44 = vsel %vm5371_vm4, %v433_v31, %v437_v15 }
  0x42   : > { %v528_v45 = vor.u32 %v527_v32, %v524_v29  ;;  %v537_v46 = vrot.slane %v535_v33, 4  ;;  %v543_v47 = vrot.slane %v541_v37, 5  ;;  %v678_v50 = vunpack.c.l.b16 %v438_v44  ;;  %v5495_v37 = vld [vmem:[%s5355_s28 + $0x5c] sm:$0x1] }
  0x43   : > { %4473 = vmatmul.msk.bf16.gmra.mxu0 %vm718_vm3, %v699_v40  ;;  %v448_v49 = vsel %vm5371_vm4, %v443_v41, %v447_v19  ;;  %v621_v52 = vshll.u32 %v257_v39, 16  ;;  %v627_v57 = vshll.u32 %v258_v43, 16  ;;  %v620_v58 = vrot.slane %v618_v51, 4  ;;  %v243_v19 = vld [vmem:[%s5355_s28 + $0x54] sm:$0xf] }
  0x44   : > { %v679_v53 = vunpack.c.l.b16 %v448_v49  ;;  %v529_v54 = vrot.slane %v528_v45, 4  ;;  %v538_v56 = vor.u32 %v537_v46, %v533_v42  ;;  %v631_v61 = vshrl.u32 %v258_v43, 16 }
  0x45   : > { %v623_v59 = vrot.slane %v621_v52, 5  ;;  %v637_v62 = vshll.u32 %v276_v48, 16  ;;  %v629_v3 = vrot.slane %v627_v57, 5  ;;  %v330_v13 = vshrl.u32 %v233_v63, 16  ;;  %v252_v52 = vld [vmem:[%s5355_s28 + $0x88] sm:$0xf] }
  0x46   : > { %v704_v0 = vpack.c.b16 %v679_v53, %v678_v50  ;;  %v534_v1 = vsel %vm5371_vm4, %v529_v54, %v533_v42  ;;  %v539_v2 = vrot.slane %v538_v56, 4  ;;  %v633_v9 = vrot.slane %v631_v61, 4 }
  0x47   : > { %v686_v7 = vunpack.c.l.b16 %v534_v1  ;;  %v624_v8 = vor.u32 %v623_v59, %v620_v58  ;;  %v639_v12 = vrot.slane %v637_v62, 5  ;;  %v333_v14 = vshll.u32 %v233_v63, 16  ;;  %v273_v62 = vld [vmem:[%s5355_s28 + $0x8c] sm:$0x1] }
  0x48   : > { %4478 = vmatmul.msk.bf16.gmra.mxu1 %vm718_vm3, %v704_v0  ;;  %v544_v11 = vsel %vm5371_vm4, %v539_v2, %v543_v47  ;;  %v634_v17 = vor.u32 %v633_v9, %v629_v3  ;;  %v339_v18 = vshll.u32 %v5477_v6, 16  ;;  %v332_v20 = vrot.slane %v330_v13, 4  ;;  %v251_v47 = vld [vmem:[%s5355_s28 + $0x84] sm:$0xf] }
  0x49   : > { %v687_v15 = vunpack.c.l.b16 %v544_v11  ;;  %v625_v16 = vrot.slane %v624_v8, 4  ;;  %v335_v21 = vrot.slane %v333_v14, 5  ;;  %v343_v22 = vshrl.u32 %v5477_v6, 16 }
  0x4a   : > { %v349_v23 = vshll.u32 %v5480_v10, 16  ;;  %v635_v27 = vrot.slane %v634_v17, 4  ;;  %v341_v29 = vrot.slane %v339_v18, 5  ;;  %v450_v40 = vshrl.u32 %v243_v19, 16 }
  0x4b   : > { %v708_v25 = vpack.c.b16 %v687_v15, %v686_v7  ;;  %v630_v26 = vsel %vm5371_vm4, %v625_v16, %v629_v3  ;;  %v336_v31 = vor.u32 %v335_v21, %v332_v20  ;;  %v345_v32 = vrot.slane %v343_v22, 4  ;;  %v259_v16 = vld [vmem:[%s5355_s28 + $0xb4] sm:$0xf]  ;;  %v260_v21 = vld [vmem:[%s5355_s28 + $0xb8] sm:$0xf] }
  0x4c   : > { %v694_v30 = vunpack.c.l.b16 %v630_v26  ;;  %v351_v33 = vrot.slane %v349_v23, 5  ;;  %v640_v39 = vsel %vm5371_vm4, %v635_v27, %v639_v12  ;;  %v453_v41 = vshll.u32 %v243_v19, 16  ;;  %v277_v22 = vld [vmem:[%s5355_s28 + $0xbc] sm:$0x1] }
  0x4d   : > { %4482 = vmatmul.msk.bf16.gmra.mxu2 %vm718_vm3, %v708_v25  ;;  %v459_v42 = vshll.u32 %v5490_v24, 16  ;;  %v695_v43 = vunpack.c.l.b16 %v640_v39  ;;  %v337_v44 = vrot.slane %v336_v31, 4  ;;  %v346_v45 = vor.u32 %v345_v32, %v341_v29 }
  0x4e   : > { %v463_v46 = vshrl.u32 %v5490_v24, 16  ;;  %v452_v48 = vrot.slane %v450_v40, 4  ;;  %v455_v49 = vrot.slane %v453_v41, 5  ;;  %v469_v51 = vshll.u32 %v5495_v37, 16 }
  0x4f   : > { %v461_v50 = vrot.slane %v459_v42, 5  ;;  %v712_v53 = vpack.c.b16 %v695_v43, %v694_v30  ;;  %v342_v54 = vsel %vm5371_vm4, %v337_v44, %v341_v29  ;;  %v347_v56 = vrot.slane %v346_v45, 4 }
  0x50   : > { %v465_v57 = vrot.slane %v463_v46, 4  ;;  %v670_v58 = vunpack.c.l.b16 %v342_v54  ;;  %v456_v59 = vor.u32 %v455_v49, %v452_v48  ;;  %v471_v61 = vrot.slane %v469_v51, 5  ;;  %v235_v46 = vld [vmem:[%s5355_s28 + $0x24] sm:$0xf]  ;;  %v5527_v51 = vld [vmem:[%s5355_s28 + $0x2c] sm:$0x1] }
  0x51   : > { %v546_v63 = vshrl.u32 %v251_v47, 16  ;;  %4486 = vmatmul.msk.bf16.gmra.mxu3 %vm718_vm3, %v712_v53  ;;  %v352_v0 = vsel %vm5371_vm4, %v347_v56, %v351_v33  ;;  %v549_v2 = vshll.u32 %v251_v47, 16  ;;  %v555_v3 = vshll.u32 %v252_v52, 16 }
  0x52   : > { %v466_v1 = vor.u32 %v465_v57, %v461_v50  ;;  %v671_v7 = vunpack.c.l.b16 %v352_v0  ;;  %v457_v8 = vrot.slane %v456_v59, 4  ;;  %v559_v11 = vshrl.u32 %v252_v52, 16 }
  0x53   : > { %v548_v9 = vrot.slane %v546_v63, 4  ;;  %v551_v13 = vrot.slane %v549_v2, 5  ;;  %v557_v14 = vrot.slane %v555_v3, 5  ;;  %v565_v15 = vshll.u32 %v273_v62, 16  ;;  %v1080_v2 = vld [vmem:[%s5355_s28] sm:$0xe] }
  0x54   : > { %v467_v12 = vrot.slane %v466_v1, 4  ;;  %v1136_v17 = vrot.slane %v5387_v5, 5  ;;  %v700_v18 = vpack.c.b16 %v671_v7, %v670_v58  ;;  %v462_v19 = vsel %vm5371_vm4, %v457_v8, %v461_v50  ;;  %v5524_v50 = vld [vmem:[%s5355_s28 + $0x28] sm:$0xf] }
  0x55   : > { %v561_v20 = vrot.slane %v559_v11, 4  ;;  %v680_v25 = vunpack.c.l.b16 %v462_v19  ;;  %v552_v26 = vor.u32 %v551_v13, %v548_v9  ;;  %v567_v27 = vrot.slane %v565_v15, 5  ;;  %v4712_v11 = vld [vmem:[%s5355_s28 + $0xc0] sm:$0xf] }
  0x56   : > { %v472_v23 = vsel %vm5371_vm4, %v467_v12, %v471_v61  ;;  %4474 = vmatmul.msk.bf16.gmra.mxu0 %vm718_vm3, %v700_v18  ;;  %v642_v31 = vshrl.u32 %v259_v16, 16  ;;  %v645_v32 = vshll.u32 %v259_v16, 16  ;;  %v651_v39 = vshll.u32 %v260_v21, 16  ;;  %v2841_v16 = vld [vmem:[%s6913_s1 + $0xc] sm:$0x3] }
  0x57   : > { %v681_v29 = vunpack.c.l.b16 %v472_v23  ;;  %v562_v30 = vor.u32 %v561_v20, %v557_v14  ;;  %v553_v33 = vrot.slane %v552_v26, 4  ;;  %v655_v40 = vshrl.u32 %v260_v21, 16  ;;  %v4713_v21 = vld [vmem:[%s5355_s28 + $0xc4] sm:$0xf] }
  0x58   : > { %v661_v41 = vshll.u32 %v277_v22, 16  ;;  %v644_v44 = vrot.slane %v642_v31, 4  ;;  %v647_v45 = vrot.slane %v645_v32, 5  ;;  %v653_v48 = vrot.slane %v651_v39, 5 }
  0x59   : > { %v705_v42 = vpack.c.b16 %v681_v29, %v680_v25  ;;  %v563_v43 = vrot.slane %v562_v30, 4  ;;  %v558_v47 = vsel %vm5371_vm4, %v553_v33, %v557_v14  ;;  %v657_v49 = vrot.slane %v655_v40, 4 }
  0x5a   : > { %v688_v53 = vunpack.c.l.b16 %v558_v47  ;;  %v648_v54 = vor.u32 %v647_v45, %v644_v44  ;;  %v663_v56 = vrot.slane %v661_v41, 5  ;;  %v354_v59 = vshrl.u32 %v235_v46, 16  ;;  %v4714_v44 = vld [vmem:[%s5355_s28 + $0xc8] sm:$0x1] }
  0x5b   : > { %4479 = vmatmul.msk.bf16.gmra.mxu1 %vm718_vm3, %v705_v42  ;;  %v568_v52 = vsel %vm5371_vm4, %v563_v43, %v567_v27  ;;  %v658_v58 = vor.u32 %v657_v49, %v653_v48  ;;  %v357_v61 = vshll.u32 %v235_v46, 16  ;;  %v363_v63 = vshll.u32 %v5524_v50, 16  ;;  %v3526_v49 = vld [vmem:[%s6913_s1 + $0xc] sm:$0xc] }
  0x5c   : > { %v689_v57 = vunpack.c.l.b16 %v568_v52  ;;  %v649_v62 = vrot.slane %v648_v54, 4  ;;  %v367_v0 = vshrl.u32 %v5524_v50, 16  ;;  %v373_v1 = vshll.u32 %v5527_v51, 16 }
  0x5d   : > { %v659_v7 = vrot.slane %v658_v58, 4  ;;  %v356_v8 = vrot.slane %v354_v59, 4  ;;  %v359_v9 = vrot.slane %v357_v61, 5  ;;  %v365_v13 = vrot.slane %v363_v63, 5  ;;  %v3927_v63 = vld [vmem:[%s6913_s1 + $0x10] sm:$0x3] }
  0x5e   : > { %v709_v3 = vpack.c.b16 %v689_v57, %v688_v53  ;;  %v654_v12 = vsel %vm5371_vm4, %v649_v62, %v653_v48  ;;  %v369_v14 = vrot.slane %v367_v0, 4  ;;  %v375_v15 = vrot.slane %v373_v1, 5  ;;  %v5051_v57 = vld [vmem:[%s5355_s28] sm:$0xff]  ;;  %v2583_v62 = vld [vmem:[%s6913_s1 + $0x8] sm:$0xc] }
  0x5f   : > { %v664_v18 = vsel %vm5371_vm4, %v659_v7, %v663_v56  ;;  %v696_v19 = vunpack.c.l.b16 %v654_v12  ;;  %v360_v20 = vor.u32 %v359_v9, %v356_v8  ;;  %v4568_v25 = vrot.slane %v1080_v2, 9  ;;  %v4715_v12 = vld [vmem:[%s5355_s28 + $0xcc] sm:$0xf] }
  0x60   : > { %4483 = vmatmul.msk.bf16.gmra.mxu2 %vm718_vm3, %v709_v3  ;;  %v697_v22 = vunpack.c.l.b16 %v664_v18  ;;  %v370_v23 = vor.u32 %v369_v14, %v365_v13  ;;  %v1133_v29 = vrot.slane %v5384_v4, 5  ;;  %v2971_v30 = vsel %vm767_vm0, %v2841_v16, 0  ;;  %v4716_v18 = vld [vmem:[%s5355_s28 + $0xd0] sm:$0xf] }
  0x61   : > { %v361_v26 = vrot.slane %v360_v20, 4  ;;  %v1803_v31 = vshrl.u32 %v4712_v11, 16  ;;  %2980 = vmatpush.bf16.msra.mxu2 %v2971_v30  ;;  %v1806_v39 = vshll.u32 %v4712_v11, 16  ;;  %v1812_v40 = vshll.u32 %v4713_v21, 16 }
  0x62   : > { %v713_v32 = vpack.c.b16 %v697_v22, %v696_v19  ;;  %v371_v33 = vrot.slane %v370_v23, 4  ;;  %v1134_v42 = vsel %vm5546_vm7, %v4568_v25, %v1133_v29  ;;  %v1135_v43 = vrot.slane %v1133_v29, 4 }
  0x63   : > { %v366_v41 = vsel %vm5371_vm4, %v361_v26, %v365_v13  ;;  %v1805_v45 = vrot.slane %v1803_v31, 4  ;;  %v1244_v47 = vunpack.c.l.b16 %v1134_v42  ;;  %v1808_v48 = vrot.slane %v1806_v39, 5  ;;  %v5067_v31 = vld [vmem:[%s5355_s28 + $0xc0] sm:$0xff] }
  0x64   : > { %4487 = vmatmul.msk.bf16.gmra.mxu3 %vm718_vm3, %v713_v32  ;;  %v376_v4 = vsel %vm5371_vm4, %v371_v33, %v375_v15  ;;  %v672_v46 = vunpack.c.l.b16 %v366_v41  ;;  %v1137_v53 = vsel %vm5546_vm7, %v1135_v43, %v1136_v17  ;;  %v1814_v54 = vrot.slane %v1812_v40, 5 }
  0x65   : > { %v673_v52 = vunpack.c.l.b16 %v376_v4  ;;  %v1816_v56 = vshrl.u32 %v4713_v21, 16  ;;  %v1245_v58 = vunpack.c.l.b16 %v1137_v53  ;;  %v1809_v59 = vor.u32 %v1808_v48, %v1805_v45  ;;  %v1081_v21 = vld [vmem:[%s5355_s28 + $0xc] sm:$0xe]  ;;  %v4717_v4 = vld [vmem:[%s5355_s28 + $0xd4] sm:$0x1] }
  0x66   : > { %v1822_v61 = vshll.u32 %v4714_v44, 16  ;;  %v3576_v1 = vunpack.c.l.b16 %v3526_v49  ;;  %v2633_v7 = vunpack.c.l.b16 %v2583_v62  ;;  %v4025_v8 = vsel %vm767_vm0, %v3927_v63, 0  ;;  %v5052_v49 = vld [vmem:[%s5355_s28 + $0xc] sm:$0xff]  ;;  %v4719_v62 = vld [vmem:[%s5355_s28 + $0xdc] sm:$0xf] }
  0x67   : > { %v701_v0 = vpack.c.b16 %v673_v52, %v672_v46  ;;  %v1818_v5 = vrot.slane %v1816_v56, 4  ;;  %v1276_v17 = vpack.c.b16 %v1245_v58, %v1244_v47  ;;  %v1810_v9 = vrot.slane %v1809_v59, 4  ;;  %4034 = vmatpush.bf16.msra.mxu0 %v4025_v8  ;;  %v4718_v58 = vld [vmem:[%s5355_s28 + $0xd8] sm:$0xf] }
  0x68   : > { %v3577_v3 = vpack.c.b16 %v3576_v1, %v3576_v1  ;;  %v1824_v11 = vrot.slane %v1822_v61, 5  ;;  %v2634_v15 = vpack.c.b16 %v2633_v7, %v2633_v7  ;;  %v1140_v16 = vrot.slane %v5431_v35, 5 }
  0x69   : > { %4475 = vmatmul.msk.bf16.gmra.mxu0 %vm718_vm3, %v701_v0  ;;  %v1819_v2 = vor.u32 %v1818_v5, %v1814_v54  ;;  %v1827_v22 = vshrl.u32 %v4715_v12, 16  ;;  %v1830_v23 = vshll.u32 %v4715_v12, 16  ;;  %v1815_v25 = vsel %vm5371_vm4, %v1810_v9, %v1814_v54  ;;  %v1082_v0 = vld [vmem:[%s5355_s28 + $0x18] sm:$0xe] }
  0x6a   : > { %v3578_v14 = vrot.slane %v3577_v3, 2  ;;  %v2635_v20 = vrot.slane %v2634_v15, 2  ;;  %v1836_v35 = vshll.u32 %v4716_v18, 16  ;;  %v1840_v30 = vshrl.u32 %v4716_v18, 16 }
  0x6b   : > { %4552 = vmatmul.msk.bf16.vlgmr.msrb.gmra.mxu1 %vm718_vm3, %v5051_v57  ;;  %v1820_v13 = vrot.slane %v1819_v2, 4  ;;  %v4569_v32 = vrot.slane %v1081_v21, 9  ;;  %v1142_v33 = vrot.slane %v1140_v16, 4  ;;  %v1143_v39 = vrot.slane %v5434_v36, 5 }
  0x6c   : > { %v3628_v19 = vsel %vm767_vm0, %v3578_v14, 0  ;;  %v2685_v29 = vsel %vm767_vm0, %v2635_v20, 0  ;;  %v2187_v40 = vunpack.c.l.b16 %v1815_v25  ;;  %v1829_v42 = vrot.slane %v1827_v22, 4  ;;  %v4720_v20 = vld [vmem:[%s5355_s28 + $0xe0] sm:$0x1] }
  0x6d   : > { %v1825_v26 = vsel %vm5371_vm4, %v1820_v13, %v1824_v11  ;;  %3637 = vmatpush.bf16.msra.mxu3 %v3628_v19  ;;  %2694 = vmatpush.bf16.msra.mxu1 %v2685_v29  ;;  %v1832_v43 = vrot.slane %v1830_v23, 5  ;;  %v1838_v44 = vrot.slane %v1836_v35, 5  ;;  %v1842_v45 = vrot.slane %v1840_v30, 4  ;;  %v5068_v11 = vld [vmem:[%s5355_s28 + $0xcc] sm:$0xff]  ;;  %v5053_v29 = vld [vmem:[%s5355_s28 + $0x18] sm:$0xff] }
  0x6e   : > { %v2188_v41 = vunpack.c.l.b16 %v1825_v26  ;;  %v1141_v46 = vsel %vm5546_vm7, %v4569_v32, %v1140_v16  ;;  %v1144_v47 = vsel %vm5546_vm7, %v1142_v33, %v1143_v39  ;;  %v1846_v53 = vshll.u32 %v4717_v4, 16 }
  0x6f   : > { %v1833_v36 = vor.u32 %v1832_v43, %v1829_v42  ;;  %v1843_v52 = vor.u32 %v1842_v45, %v1838_v44  ;;  %v1246_v54 = vunpack.c.l.b16 %v1141_v46  ;;  %v1247_v56 = vunpack.c.l.b16 %v1144_v47  ;;  %v1083_v45 = vld [vmem:[%s5355_s28 + $0x24] sm:$0xe] }
  0x70   : > { %4584 = vmatmul.msk.bf16.vlgmr.msrb.gmra.mxu2 %vm718_vm3, %v1276_v17  ;;  %v2219_v48 = vpack.c.b16 %v2188_v41, %v2187_v40  ;;  %v1848_v61 = vrot.slane %v1846_v53, 5  ;;  %v1147_v5 = vrot.slane %v5477_v6, 5  ;;  %v1851_v1 = vshrl.u32 %v4718_v58, 16  ;;  %v4721_v40 = vld [vmem:[%s5355_s28 + $0xe4] sm:$0xf] }
  0x71   : > { %v1834_v57 = vrot.slane %v1833_v36, 4  ;;  %v1844_v59 = vrot.slane %v1843_v52, 4  ;;  %v1277_v63 = vpack.c.b16 %v1247_v56, %v1246_v54  ;;  %v1854_v2 = vshll.u32 %v4718_v58, 16  ;;  %v4722_v41 = vld [vmem:[%s5355_s28 + $0xe8] sm:$0xf]  ;;  %v5069_v36 = vld [vmem:[%s5355_s28 + $0xd8] sm:$0xff] }
  0x72   : > { %v1860_v3 = vshll.u32 %v4719_v62, 16  ;;  %v1864_v7 = vshrl.u32 %v4719_v62, 16  ;;  %v4570_v9 = vrot.slane %v1082_v0, 9  ;;  %v1149_v13 = vrot.slane %v1147_v5, 4 }
  0x73   : > { %v1839_v17 = vsel %vm5371_vm4, %v1834_v57, %v1838_v44  ;;  %v1849_v8 = vsel %vm5371_vm4, %v1844_v59, %v1848_v61  ;;  %v1150_v6 = vrot.slane %v5480_v10, 5  ;;  %v1853_v14 = vrot.slane %v1851_v1, 4  ;;  %v4723_v61 = vld [vmem:[%s5355_s28 + $0xec] sm:$0x1] }
  0x74   : > { %4696 = vmatmul.msk.bf16.vlgmr.msrb.gmra.mxu3 %vm718_vm3, %v5067_v31  ;;  %v2189_v12 = vunpack.c.l.b16 %v1839_v17  ;;  %v2190_v15 = vunpack.c.l.b16 %v1849_v8  ;;  %v1856_v16 = vrot.slane %v1854_v2, 5  ;;  %v1862_v18 = vrot.slane %v1860_v3, 5  ;;  %v4725_v8 = vld [vmem:[%s5355_s28 + $0xf4] sm:$0xf] }
  0x75   : > { %v1866_v19 = vrot.slane %v1864_v7, 4  ;;  %v1148_v21 = vsel %vm5546_vm7, %v4570_v9, %v1147_v5  ;;  %v1151_v22 = vsel %vm5546_vm7, %v1149_v13, %v1150_v6  ;;  %v1870_v10 = vshll.u32 %v4720_v20, 16  ;;  %v4724_v7 = vld [vmem:[%s5355_s28 + $0xf0] sm:$0xf]  ;;  %v5222_v6 = vld [vmem:[%s5355_s28 + $0x34] sm:$0xf] }
  0x76   : > { %v2220_v23 = vpack.c.b16 %v2190_v15, %v2189_v12  ;;  %v1857_v25 = vor.u32 %v1856_v16, %v1853_v14  ;;  %v1248_v35 = vunpack.c.l.b16 %v1148_v21  ;;  %v1249_v30 = vunpack.c.l.b16 %v1151_v22  ;;  %v1084_v15 = vld [vmem:[%s5355_s28 + $0x30] sm:$0xe] }
  0x77   : > { %v1867_v26 = vor.u32 %v1866_v19, %v1862_v18  ;;  %v1872_v33 = vrot.slane %v1870_v10, 5  ;;  %v1154_v42 = vrot.slane %v5524_v50, 5  ;;  %v1875_v4 = vshrl.u32 %v4721_v40, 16  ;;  %v5223_v10 = vld [vmem:[%s5355_s28 + $0x38] sm:$0x1] }
  0x78   : > { %v1858_v31 = vrot.slane %v1857_v25, 4  ;;  %v1278_v39 = vpack.c.b16 %v1249_v30, %v1248_v35  ;;  %v1878_v46 = vshll.u32 %v4721_v40, 16  ;;  %v1884_v47 = vshll.u32 %v4722_v41, 16  ;;  %v5070_v35 = vld [vmem:[%s5355_s28 + $0xe4] sm:$0xff] }
  0x79   : > { %4760 = vmatmul.msk.bf16.vlgmr.msrb.gmra.mxu0 %vm718_vm3, %v2219_v48  ;;  %v1868_v32 = vrot.slane %v1867_v26, 4  ;;  %v1888_v48 = vshrl.u32 %v4722_v41, 16  ;;  %v1156_v52 = vrot.slane %v1154_v42, 4  ;;  %v1157_v50 = vrot.slane %v5527_v51, 5  ;;  %v5054_v51 = vld [vmem:[%s5355_s28 + $0x24] sm:$0xff] }
  0x7a   : > { %v1863_v43 = vsel %vm5371_vm4, %v1858_v31, %v1862_v18  ;;  %v1877_v56 = vrot.slane %v1875_v4, 4  ;;  %v1880_v57 = vrot.slane %v1878_v46, 5  ;;  %v1886_v58 = vrot.slane %v1884_v47, 5  ;;  %v4726_v41 = vld [vmem:[%s5355_s28 + $0xf8] sm:$0x1]  ;;  %v5055_v47 = vld [vmem:[%s5355_s28 + $0x30] sm:$0xff] }
  0x7b   : > { %4553 = vmatmul.msk.bf16.gmra.mxu1 %vm718_vm3, %v5052_v49  ;;  %v1873_v44 = vsel %vm5371_vm4, %v1868_v32, %v1872_v33  ;;  %v4571_v49 = vrot.slane %v1083_v45, 9  ;;  %v2191_v53 = vunpack.c.l.b16 %v1863_v43  ;;  %v1890_v59 = vrot.slane %v1888_v48, 4 }
  0x7c   : > { %v2192_v54 = vunpack.c.l.b16 %v1873_v44  ;;  %v1881_v5 = vor.u32 %v1880_v57, %v1877_v56  ;;  %v1894_v17 = vshll.u32 %v4723_v61, 16  ;;  %v1161_v14 = vrot.slane %v5222_v6, 5  ;;  %v4727_v56 = vld [vmem:[%s5355_s28 + $0xfc] sm:$0xf]  ;;  %v4728_v57 = vld [vmem:[%s5355_s28 + $0x100] sm:$0xf] }
  0x7d   : > { %v1155_v62 = vsel %vm5546_vm7, %v4571_v49, %v1154_v42  ;;  %v1891_v1 = vor.u32 %v1890_v59, %v1886_v58  ;;  %v1899_v16 = vshrl.u32 %v4724_v7, 16  ;;  %v1902_v18 = vshll.u32 %v4724_v7, 16  ;;  %v5071_v7 = vld [vmem:[%s5355_s28 + $0xf0] sm:$0xff] }
  0x7e   : > { %v2221_v0 = vpack.c.b16 %v2192_v54, %v2191_v53  ;;  %v1250_v2 = vunpack.c.l.b16 %v1155_v62  ;;  %v1882_v9 = vrot.slane %v1881_v5, 4  ;;  %v1896_v12 = vrot.slane %v1894_v17, 5 }
  0x7f   : > { %v1908_v19 = vshll.u32 %v4725_v8, 16  ;;  %v1912_v20 = vshrl.u32 %v4725_v8, 16  ;;  %v4572_v25 = vrot.slane %v1084_v15, 9  ;;  %v1163_v26 = vrot.slane %v1161_v14, 4 }
  0x80   : > { %4585 = vmatmul.msk.bf16.gmra.mxu2 %vm718_vm3, %v1277_v63  ;;  %v1158_v63 = vsel %vm5546_vm7, %v1156_v52, %v1157_v50  ;;  %v1887_v22 = vsel %vm5371_vm4, %v1882_v9, %v1886_v58  ;;  %v1901_v30 = vrot.slane %v1899_v16, 4  ;;  %v1904_v31 = vrot.slane %v1902_v18, 5  ;;  %v4729_v18 = vld [vmem:[%s5355_s28 + $0x104] sm:$0x1] }
  0x81   : > { %v1251_v3 = vunpack.c.l.b16 %v1158_v63  ;;  %v1910_v32 = vrot.slane %v1908_v19, 5  ;;  %v1914_v33 = vrot.slane %v1912_v20, 4  ;;  %v1162_v42 = vsel %vm5546_vm7, %v4572_v25, %v1161_v14 }
  0x82   : > { %v1905_v44 = vor.u32 %v1904_v31, %v1901_v30  ;;  %v1918_v4 = vshll.u32 %v4726_v41, 16  ;;  %v1923_v5 = vshrl.u32 %v4727_v56, 16  ;;  %v1932_v17 = vshll.u32 %v4728_v57, 16 }
  0x83   : > { %v1279_v13 = vpack.c.b16 %v1251_v3, %v1250_v2  ;;  %v1915_v45 = vor.u32 %v1914_v33, %v1910_v32  ;;  %v1936_v2 = vshrl.u32 %v4728_v57, 16 }
  0x84   : > { %4697 = vmatmul.msk.bf16.gmra.mxu3 %vm718_vm3, %v5068_v11  ;;  %v1892_v11 = vrot.slane %v1891_v1, 4  ;;  %v1906_v50 = vrot.slane %v1905_v44, 4  ;;  %v1920_v54 = vrot.slane %v1918_v4, 5  ;;  %v1926_v1 = vshll.u32 %v4727_v56, 16 }
  0x85   : > { %v1916_v53 = vrot.slane %v1915_v45, 4  ;;  %v1934_v15 = vrot.slane %v1932_v17, 5  ;;  %v1938_v16 = vrot.slane %v1936_v2, 4  ;;  %v1175_v44 = vrot.slane %v5444_v55, 5  ;;  %v4732_v17 = vld [vmem:[%s5355_s28 + $0x110] sm:$0x1] }
  0x86   : > { %v1911_v61 = vsel %vm5371_vm4, %v1906_v50, %v1910_v32  ;;  %v1928_v14 = vrot.slane %v1926_v1, 5 }
  0x87   : > { %v1921_v62 = vsel %vm5371_vm4, %v1916_v53, %v1920_v54  ;;  %v2195_v3 = vunpack.c.l.b16 %v1911_v61  ;;  %v1939_v25 = vor.u32 %v1938_v16, %v1934_v15  ;;  %v5072_v54 = vld [vmem:[%s5355_s28 + $0xfc] sm:$0xff]  ;;  %v1177_v57 = vrot.slane %v1175_v44, 4  ;;  %v4733_v16 = vld [vmem:[%s5355_s28 + $0x114] sm:$0xf] }
  0x88   : > { %v2196_v8 = vunpack.c.l.b16 %v1921_v62 }
  0x89   : > { %4761 = vmatmul.msk.bf16.gmra.mxu0 %vm718_vm3, %v2220_v23  ;;  %v1897_v23 = vsel %vm5371_vm4, %v1892_v11, %v1896_v12  ;;  %v1940_v32 = vrot.slane %v1939_v25, 4 }
  0x8a   : > { %v2194_v40 = vunpack.c.l.b16 %v1897_v23 }
  0x8b   : > { %4554 = vmatmul.msk.bf16.gmra.mxu1 %vm718_vm3, %v5053_v29  ;;  %v1164_v29 = vrot.slane %v5223_v10, 5 }
  0x8d   : > { %v1165_v43 = vsel %vm5546_vm7, %v1163_v26, %v1164_v29  ;;  %v1942_v26 = vshll.u32 %v4729_v18, 16  ;;  %v5056_v29 = vld [vmem:[%s5355_s28 + $0x3c] sm:$0xff]  ;;  %v4734_v18 = vld [vmem:[%s5355_s28 + $0x118] sm:$0xf] }
  0x8e   : > { %v1253_v49 = vunpack.c.l.b16 %v1165_v43  ;;  %v4731_v43 = vld [vmem:[%s5355_s28 + $0x10c] sm:$0xf] }
  0x8f   : > { %v1944_v33 = vrot.slane %v1942_v26, 5  ;;  %v1960_v50 = vshrl.u32 %v4731_v43, 16 }
  0x90   : > { %4586 = vmatmul.msk.bf16.gmra.mxu2 %vm718_vm3, %v1278_v39  ;;  %v2193_v39 = vunpack.c.l.b16 %v1887_v22  ;;  %v2223_v22 = vpack.c.b16 %v2196_v8, %v2195_v3 }
  0x91   : > { %v1945_v4 = vsel %vm5371_vm4, %v1940_v32, %v1944_v33  ;;  %v1962_v1 = vrot.slane %v1960_v50, 4  ;;  %v1984_v32 = vshrl.u32 %v4734_v18, 16 }
  0x92   : > { %v2222_v46 = vpack.c.b16 %v2194_v40, %v2193_v39  ;;  %v2198_v62 = vunpack.c.l.b16 %v1945_v4 }
  0x93   : > { %v1986_v50 = vrot.slane %v1984_v32, 4 }
  0x94   : > { %4698 = vmatmul.msk.bf16.gmra.mxu3 %vm718_vm3, %v5069_v36  ;;  %v1252_v36 = vunpack.c.l.b16 %v1162_v42  ;;  %v4730_v42 = vld [vmem:[%s5355_s28 + $0x108] sm:$0xf] }
  0x96   : > { %v1280_v59 = vpack.c.b16 %v1253_v49, %v1252_v36  ;;  %v1950_v36 = vshll.u32 %v4730_v42, 16  ;;  %v1956_v49 = vshll.u32 %v4731_v43, 16 }
  0x99   : > { %4762 = vmatmul.msk.bf16.gmra.mxu0 %vm718_vm3, %v2221_v0  ;;  %v1168_v0 = vrot.slane %v5401_v28, 5  ;;  %v1925_v28 = vrot.slane %v1923_v5, 4  ;;  %v1958_v5 = vrot.slane %v1956_v49, 5  ;;  %v1185_v49 = vrot.slane %v5495_v37, 5 }
  0x9b   : > { %4555 = vmatmul.msk.bf16.gmra.mxu1 %vm718_vm3, %v5054_v51  ;;  %v1085_v51 = vld [vmem:[%s5355_s28 + $0x3c] sm:$0xe]  ;;  %v1170_v12 = vrot.slane %v1168_v0, 4 }
  0x9c   : > { %v4573_v11 = vrot.slane %v1085_v51, 9  ;;  %v1952_v51 = vrot.slane %v1950_v36, 5 }
  0x9e   : > { %v1169_v19 = vsel %vm5546_vm7, %v4573_v11, %v1168_v0  ;;  %v5057_v11 = vld [vmem:[%s5355_s28 + $0x48] sm:$0xff] }
  0x9f   : > { %v5643_v21 = vpop.f32.mrf.mxu1 }
  0xa0   : > { %4587 = vmatmul.msk.bf16.gmra.mxu2 %vm718_vm3, %v1279_v13  ;;  %v1171_v13 = vrot.slane %v5405_v34, 5  ;;  %v1929_v34 = vor.u32 %v1928_v14, %v1925_v28  ;;  %v1966_v28 = vshll.u32 %v4732_v17, 16  ;;  %v5058_v17 = vld [vmem:[%s5355_s28 + $0x54] sm:$0xff] }
  0xa2   : > { %v1172_v20 = vsel %vm5546_vm7, %v1170_v12, %v1171_v13  ;;  %v1930_v31 = vrot.slane %v1929_v34, 4  ;;  %v1963_v13 = vor.u32 %v1962_v1, %v1958_v5  ;;  %v1968_v25 = vrot.slane %v1966_v28, 5 }
  0xa3   : > { %v1255_v30 = vunpack.c.l.b16 %v1172_v20 }
  0xa4   : > { %4699 = vmatmul.msk.bf16.gmra.mxu3 %vm718_vm3, %v5070_v35  ;;  %v1254_v35 = vunpack.c.l.b16 %v1169_v19  ;;  %v1935_v45 = vsel %vm5371_vm4, %v1930_v31, %v1934_v15  ;;  %v1964_v34 = vrot.slane %v1963_v13, 4  ;;  %v1182_v31 = vrot.slane %v5490_v24, 5 }
  0xa5   : > { %v2197_v61 = vunpack.c.l.b16 %v1935_v45 }
  0xa6   : > { %v1281_v40 = vpack.c.b16 %v1255_v30, %v1254_v35  ;;  %v1974_v35 = vshll.u32 %v4733_v16, 16  ;;  %v1980_v30 = vshll.u32 %v4734_v18, 16  ;;  %v1969_v43 = vsel %vm5371_vm4, %v1964_v34, %v1968_v25  ;;  %v5224_v25 = vld [vmem:[%s5355_s28 + $0x64] sm:$0xf] }
  0xa7   : > { %v5659_v48 = vpop.f32.mrf.mxu1  ;;  %v1184_v36 = vrot.slane %v1182_v31, 4 }
  0xa8   : > { %v1976_v4 = vrot.slane %v1974_v35, 5  ;;  %v1088_v35 = vld [vmem:[%s5355_s28 + $0x60] sm:$0xe] }
  0xa9   : > { %v5661_v52 = vpop.f32.mrf.mxu2  ;;  %4763 = vmatmul.msk.bf16.gmra.mxu0 %vm718_vm3, %v2222_v46  ;;  %v1086_v46 = vld [vmem:[%s5355_s28 + $0x48] sm:$0xe] }
  0xaa   : > { %v4574_v55 = vrot.slane %v1086_v46, 9  ;;  %v1982_v46 = vrot.slane %v1980_v30, 5 }
  0xab   : > { %4556 = vmatmul.msk.bf16.gmra.mxu1 %vm718_vm3, %v5055_v47  ;;  %v1947_v47 = vshrl.u32 %v4730_v42, 16 }
  0xac   : > { %v5667_v58 = vpop.f32.mrf.mxu0  ;;  %v1176_v3 = vsel %vm5546_vm7, %v4574_v55, %v1175_v44  ;;  %v2200_v55 = vunpack.c.l.b16 %v1969_v43  ;;  %v1987_v37 = vor.u32 %v1986_v50, %v1982_v46 }
  0xad   : > { %v5673_v63 = vpop.f32.mrf.mxu3  ;;  %v1949_v0 = vrot.slane %v1947_v47, 4  ;;  %v1256_v14 = vunpack.c.l.b16 %v1176_v3  ;;  %v5073_v47 = vld [vmem:[%s5355_s28 + $0x108] sm:$0xff] }
  0xae   : > { %v1988_v13 = vrot.slane %v1987_v37, 4 }
  0xaf   : > { %v1953_v12 = vor.u32 %v1952_v51, %v1949_v0  ;;  %v1186_v51 = vsel %vm5546_vm7, %v1184_v36, %v1185_v49 }
  0xb0   : > { %4588 = vmatmul.msk.bf16.gmra.mxu2 %vm718_vm3, %v1280_v59  ;;  %v1178_v59 = vrot.slane %v5449_v60, 5  ;;  %v2224_v60 = vpack.c.b16 %v2198_v62, %v2197_v61 }
  0xb1   : > { %v5679_v9 = vpop.f32.mrf.mxu1  ;;  %v5682_v6 = vpop.f32.mrf.mxu2 }
  0xb4   : > { %4700 = vmatmul.msk.bf16.gmra.mxu3 %vm718_vm3, %v5071_v7  ;;  %v5690_v23 = vpop.f32.mrf.mxu0  ;;  %v1179_v7 = vsel %vm5546_vm7, %v1177_v57, %v1178_v59  ;;  %v4735_v57 = vld [vmem:[%s5355_s28 + $0x11c] sm:$0x1] }
  0xb5   : > { %v5692_v10 = vpop.f32.mrf.mxu3  ;;  %v1257_v15 = vunpack.c.l.b16 %v1179_v7 }
  0xb7   : > { %v1282_v26 = vpack.c.b16 %v1257_v15, %v1256_v14  ;;  %v4736_v14 = vld [vmem:[%s5355_s28 + $0x120] sm:$0xf]  ;;  %v4737_v15 = vld [vmem:[%s5355_s28 + $0x124] sm:$0xf] }
  0xb8   : > { %v1995_v30 = vshrl.u32 %v4736_v14, 16  ;;  %v2004_v32 = vshll.u32 %v4737_v15, 16 }
  0xb9   : > { %4764 = vmatmul.msk.bf16.gmra.mxu0 %vm718_vm3, %v2223_v22  ;;  %v5697_v39 = vpop.f32.mrf.mxu1  ;;  %v1954_v22 = vrot.slane %v1953_v12, 4 }
  0xba   : > { %v1997_v49 = vrot.slane %v1995_v30, 4  ;;  %v4740_v30 = vld [vmem:[%s5355_s28 + $0x130] sm:$0xf] }
  0xbb   : > { %4557 = vmatmul.msk.bf16.gmra.mxu1 %vm718_vm3, %v5056_v29  ;;  %v1971_v29 = vshrl.u32 %v4733_v16, 16  ;;  %v1959_v42 = vsel %vm5371_vm4, %v1954_v22, %v1958_v5  ;;  %v1990_v5 = vshll.u32 %v4735_v57, 16 }
  0xbc   : > { %v5699_v41 = vpop.f32.mrf.mxu2 }
  0xbd   : > { %v1973_v45 = vrot.slane %v1971_v29, 4  ;;  %v1992_v28 = vrot.slane %v1990_v5, 5 }
  0xbf   : > { %v1977_v61 = vor.u32 %v1976_v4, %v1973_v45  ;;  %v1993_v34 = vsel %vm5371_vm4, %v1988_v13, %v1992_v28  ;;  %v5074_v4 = vld [vmem:[%s5355_s28 + $0x114] sm:$0xff] }
  0xc0   : > { %v5709_v53 = vpop.f32.mrf.mxu0  ;;  %4589 = vmatmul.msk.bf16.gmra.mxu2 %vm718_vm3, %v1281_v40  ;;  %v1087_v40 = vld [vmem:[%s5355_s28 + $0x54] sm:$0xe] }
  0xc1   : > { %v5713_v56 = vpop.f32.mrf.mxu3  ;;  %v4575_v24 = vrot.slane %v1087_v40, 9  ;;  %v1978_v12 = vrot.slane %v1977_v61, 4  ;;  %v2008_v40 = vshrl.u32 %v4737_v15, 16  ;;  %v4738_v61 = vld [vmem:[%s5355_s28 + $0x128] sm:$0x1] }
  0xc3   : > { %v1183_v0 = vsel %vm5546_vm7, %v4575_v24, %v1182_v31  ;;  %v1983_v22 = vsel %vm5371_vm4, %v1978_v12, %v1982_v46  ;;  %v1998_v31 = vshll.u32 %v4736_v14, 16  ;;  %v4576_v24 = vrot.slane %v1088_v35, 9  ;;  %v4739_v35 = vld [vmem:[%s5355_s28 + $0x12c] sm:$0xf] }
  0xc4   : > { %4701 = vmatmul.msk.bf16.gmra.mxu3 %vm718_vm3, %v5072_v54  ;;  %v5724_v8 = vpop.f32.mrf.mxu2  ;;  %v2199_v54 = vunpack.c.l.b16 %v1959_v42  ;;  %v1258_v7 = vunpack.c.l.b16 %v1183_v0  ;;  %v5225_v42 = vld [vmem:[%s5355_s28 + $0x68] sm:$0x1]  ;;  %v2201_v46 = vunpack.c.l.b16 %v1983_v22 }
  0xc5   : > { %v5718_v2 = vpop.f32.mrf.mxu1  ;;  %v1192_v43 = vrot.slane %v5225_v42, 5  ;;  %v2000_v50 = vrot.slane %v1998_v31, 5  ;;  %v5226_v31 = vld [vmem:[%s5355_s28 + $0x70] sm:$0xf]  ;;  %v1089_v42 = vld [vmem:[%s5355_s28 + $0x6c] sm:$0xe] }
  0xc6   : > { %v2225_v1 = vpack.c.b16 %v2200_v55, %v2199_v54  ;;  %v2006_v54 = vrot.slane %v2004_v32, 5  ;;  %v2010_v55 = vrot.slane %v2008_v40, 4  ;;  %v1196_v32 = vrot.slane %v5226_v31, 5 }
  0xc7   : > { %v2001_v5 = vor.u32 %v2000_v50, %v1997_v49  ;;  %v5227_v50 = vld [vmem:[%s5355_s28 + $0x74] sm:$0x1] }
  0xc8   : > { %v5730_v19 = vpop.f32.mrf.mxu0 }
  0xc9   : > { %4765 = vmatmul.msk.bf16.gmra.mxu0 %vm718_vm3, %v2224_v60  ;;  %v5732_v20 = vpop.f32.mrf.mxu3  ;;  %v1259_v60 = vunpack.c.l.b16 %v1186_v51 }
  0xcb   : > { %4558 = vmatmul.msk.bf16.gmra.mxu1 %vm718_vm3, %v5057_v11  ;;  %v1283_v16 = vpack.c.b16 %v1259_v60, %v1258_v7  ;;  %v5059_v60 = vld [vmem:[%s5355_s28 + $0x60] sm:$0xff] }
  0xcd   : > { %v5736_v33 = vpop.f32.mrf.mxu1 }
  0xd0   : > { %4590 = vmatmul.msk.bf16.gmra.mxu2 %vm718_vm3, %v1282_v26  ;;  %v5744_v44 = vpop.f32.mrf.mxu2  ;;  %v1189_v26 = vrot.slane %v5224_v25, 5 }
  0xd2   : > { %v1191_v36 = vrot.slane %v1189_v26, 4  ;;  %v1190_v0 = vsel %vm5546_vm7, %v4576_v24, %v1189_v26  ;;  %v2032_v24 = vshrl.u32 %v4740_v30, 16 }
  0xd3   : > { %v5749_v59 = vpop.f32.mrf.mxu0  ;;  %v1260_v28 = vunpack.c.l.b16 %v1190_v0  ;;  %v4577_v0 = vrot.slane %v1089_v42, 9 }
  0xd4   : > { %4702 = vmatmul.msk.bf16.gmra.mxu3 %vm718_vm3, %v5073_v47  ;;  %v5752_v62 = vpop.f32.mrf.mxu3  ;;  %v2202_v47 = vunpack.c.l.b16 %v1993_v34  ;;  %v1193_v51 = vsel %vm5546_vm7, %v1191_v36, %v1192_v43 }
  0xd5   : > { %v1261_v14 = vunpack.c.l.b16 %v1193_v51  ;;  %v1198_v51 = vrot.slane %v1196_v32, 4 }
  0xd6   : > { %v2226_v37 = vpack.c.b16 %v2202_v47, %v2201_v46  ;;  %v2022_v46 = vshll.u32 %v4739_v35, 16  ;;  %v2028_v47 = vshll.u32 %v4740_v30, 16 }
  0xd7   : > { %v1284_v26 = vpack.c.b16 %v1261_v14, %v1260_v28  ;;  %v2034_v28 = vrot.slane %v2032_v24, 4 }
  0xd8   : > { %v5759_v3 = vpop.f32.mrf.mxu1  ;;  %v5761_v11 = vpop.f32.mrf.mxu2 }
  0xd9   : > { %4766 = vmatmul.msk.bf16.gmra.mxu0 %vm718_vm3, %v2225_v1  ;;  %v2011_v1 = vor.u32 %v2010_v55, %v2006_v54  ;;  %v1199_v55 = vrot.slane %v5227_v50, 5 }
  0xdb   : > { %4559 = vmatmul.msk.bf16.gmra.mxu1 %vm718_vm3, %v5058_v17  ;;  %v5767_v18 = vpop.f32.mrf.mxu0  ;;  %v2014_v17 = vshll.u32 %v4738_v61, 16  ;;  %v2012_v22 = vrot.slane %v2011_v1, 4  ;;  %v5075_v61 = vld [vmem:[%s5355_s28 + $0x120] sm:$0xff] }
  0xdc   : > { %v5774_v29 = vpop.f32.mrf.mxu3 }
  0xdd   : > { %v2016_v34 = vrot.slane %v2014_v17, 5 }
  0xe0   : > { %4591 = vmatmul.msk.bf16.gmra.mxu2 %vm718_vm3, %v1283_v16  ;;  %v5779_v45 = vpop.f32.mrf.mxu1  ;;  %v2002_v16 = vrot.slane %v2001_v5, 4 }
  0xe2   : > { %v2007_v40 = vsel %vm5371_vm4, %v2002_v16, %v2006_v54  ;;  %v4741_v16 = vld [vmem:[%s5355_s28 + $0x134] sm:$0x1] }
  0xe3   : > { %v5782_v57 = vpop.f32.mrf.mxu2 }
  0xe4   : > { %4703 = vmatmul.msk.bf16.gmra.mxu3 %vm718_vm3, %v5074_v4  ;;  %v2019_v4 = vshrl.u32 %v4739_v35, 16  ;;  %v5060_v35 = vld [vmem:[%s5355_s28 + $0x6c] sm:$0xff] }
  0xe6   : > { %v5790_v7 = vpop.f32.mrf.mxu0  ;;  %v2021_v17 = vrot.slane %v2019_v4, 4 }
  0xe7   : > { %v5793_v12 = vpop.f32.mrf.mxu3 }
  0xe8   : > { %v1000_v13 = vpop.f32.mrf.mxu1 }
  0xe9   : > { %v1001_v15 = vadd.f32 %v1000_v13, %v5667_v58  ;;  %4767 = vmatmul.msk.bf16.gmra.mxu0 %vm718_vm3, %v2226_v37  ;;  %v2017_v58 = vsel %vm5371_vm4, %v2012_v22, %v2016_v34  ;;  %v2203_v37 = vunpack.c.l.b16 %v2007_v40  ;;  %v2030_v13 = vrot.slane %v2028_v47, 5 }
  0xea   : > { %v2204_v5 = vunpack.c.l.b16 %v2017_v58  ;;  %v1197_v22 = vsel %vm5546_vm7, %v4577_v0, %v1196_v32  ;;  %v2038_v40 = vshll.u32 %v4741_v16, 16 }
  0xeb   : > { %v5797_v25 = vpop.f32.mrf.mxu2  ;;  %4560 = vmatmul.msk.bf16.gmra.mxu1 %vm718_vm3, %v5059_v60  ;;  %v2024_v60 = vrot.slane %v2022_v46, 5  ;;  %v2035_v31 = vor.u32 %v2034_v28, %v2030_v13 }
  0xec   : > { %v2227_v34 = vpack.c.b16 %v2204_v5, %v2203_v37  ;;  %v2040_v50 = vrot.slane %v2038_v40, 5  ;;  %v4743_v37 = vld [vmem:[%s5355_s28 + $0x13c] sm:$0xf] }
  0xed   : > { %v2025_v30 = vor.u32 %v2024_v60, %v2021_v17  ;;  %v5228_v5 = vld [vmem:[%s5355_s28 + $0x7c] sm:$0xf]  ;;  %v1090_v17 = vld [vmem:[%s5355_s28 + $0x78] sm:$0xe] }
  0xee   : > { %v5808_v43 = vpop.f32.mrf.mxu0 }
  0xef   : > { %v5810_v36 = vpop.f32.mrf.mxu3  ;;  %v2026_v24 = vrot.slane %v2025_v30, 4 }
  0xf0   : > { %4592 = vmatmul.msk.bf16.gmra.mxu2 %vm718_vm3, %v1284_v26  ;;  %v1002_v49 = vpop.f32.mrf.mxu1 }
  0xf1   : > { %v1003_v54 = vadd.f32 %v1002_v49, %v5690_v23  ;;  %v1200_v23 = vsel %vm5546_vm7, %v1198_v51, %v1199_v55  ;;  %v2036_v49 = vrot.slane %v2035_v31, 4  ;;  %v4742_v55 = vld [vmem:[%s5355_s28 + $0x138] sm:$0xf]  ;;  %v5076_v31 = vld [vmem:[%s5355_s28 + $0x12c] sm:$0xff] }
  0xf2   : > { %v1263_v4 = vunpack.c.l.b16 %v1200_v23  ;;  %v2046_v60 = vshll.u32 %v4742_v55, 16  ;;  %v2056_v23 = vshrl.u32 %v4743_v37, 16 }
  0xf3   : > { %v1352_v1 = vpop.f32.mrf.mxu2  ;;  %v2041_v16 = vsel %vm5371_vm4, %v2036_v49, %v2040_v50 }
  0xf4   : > { %v1432_v14 = vadd.f32 %v1352_v1, %v1001_v15  ;;  %4704 = vmatmul.msk.bf16.gmra.mxu3 %vm718_vm3, %v5075_v61  ;;  %v1262_v15 = vunpack.c.l.b16 %v1197_v22  ;;  %v1203_v1 = vrot.slane %v5228_v5, 5  ;;  %v2052_v22 = vshll.u32 %v4743_v37, 16 }
  0xf5   : > { %v2058_v49 = vrot.slane %v2056_v23, 4 }
  0xf6   : > { %v2295_v26 = vpop.f32.mrf.mxu0  ;;  %v1285_v51 = vpack.c.b16 %v1263_v4, %v1262_v15 }
  0xf7   : > { %v1642_v58 = vpop.f32.mrf.mxu3 }
  0xf8   : > { %v1005_v42 = vpop.f32.mrf.mxu1  ;;  %v1722_v46 = vadd.f32 %v1642_v58, %v1432_v14  ;;  %v2031_v14 = vsel %vm5371_vm4, %v2026_v24, %v2030_v13  ;;  %v4578_v58 = vrot.slane %v1090_v17, 9  ;;  %v2206_v13 = vunpack.c.l.b16 %v2041_v16 }
  0xf9   : > { %v1006_v32 = vadd.f32 %v1005_v42, %v5709_v53  ;;  %4768 = vmatmul.msk.bf16.gmra.mxu0 %vm718_vm3, %v2227_v34  ;;  %v2043_v53 = vshrl.u32 %v4742_v55, 16  ;;  %v5229_v34 = vld [vmem:[%s5355_s28 + $0x80] sm:$0x1]  ;;  %v1205_v42 = vrot.slane %v1203_v1, 4  ;;  %v2205_v15 = vunpack.c.l.b16 %v2031_v14 }
  0xfa   : > { %v5827_v61 = vadd.f32 %v2295_v26, %v1722_v46  ;;  %v1206_v26 = vrot.slane %v5229_v34, 5  ;;  %v2048_v46 = vrot.slane %v2046_v60, 5  ;;  %v2054_v24 = vrot.slane %v2052_v22, 5 }
  0xfb   : > { %v1354_v47 = vpop.f32.mrf.mxu2  ;;  %4561 = vmatmul.msk.bf16.gmra.mxu1 %vm718_vm3, %v5060_v35  ;;  %v2045_v4 = vrot.slane %v2043_v53, 4  ;;  %v2228_v37 = vpack.c.b16 %v2206_v13, %v2205_v15  ;;  %v5061_v53 = vld [vmem:[%s5355_s28 + $0x78] sm:$0xff]  ;;  %v4746_v15 = vld [vmem:[%s5355_s28 + $0x148] sm:$0xf] }
  0xfc   : > { %v1433_v0 = vadd.f32 %v1354_v47, %v1003_v54  ;;  %v2059_v60 = vor.u32 %v2058_v49, %v2054_v24  ;;  %v5230_v13 = vld [vmem:[%s5355_s28 + $0x88] sm:$0xf] }
  0xfd   : > { %v2049_v5 = vor.u32 %v2048_v46, %v2045_v4  ;;  %v1210_v4 = vrot.slane %v5230_v13, 5  ;;  %v1091_v46 = vld [vmem:[%s5355_s28 + $0x84] sm:$0xe] }
  0xfe   : > { %v2297_v28 = vpop.f32.mrf.mxu0 }
  0xff   : > { %v1644_v54 = vpop.f32.mrf.mxu3  ;;  %v2050_v34 = vrot.slane %v2049_v5, 4 }
 0x100   : > { %4593 = vmatmul.msk.bf16.gmra.mxu2 %vm718_vm3, %v1285_v51  ;;  %v1007_v35 = vpop.f32.mrf.mxu1  ;;  %v1723_v30 = vadd.f32 %v1644_v54, %v1433_v0  ;;  %v4744_v51 = vld [vmem:[%s5355_s28 + $0x140] sm:$0x1]  ;;  %v1204_v0 = vsel %vm5546_vm7, %v4578_v58, %v1203_v1  ;;  %v2060_v54 = vrot.slane %v2059_v60, 4  ;;  %v5077_v60 = vld [vmem:[%s5355_s28 + $0x138] sm:$0xff] }
 0x101   : > { %v1008_v40 = vadd.f32 %v1007_v35, %v5730_v19  ;;  %v1207_v19 = vsel %vm5546_vm7, %v1205_v42, %v1206_v26  ;;  %v2062_v14 = vshll.u32 %v4744_v51, 16 }
 0x102   : > { %v5840_v50 = vadd.f32 %v2297_v28, %v1723_v30  ;;  %v1265_v22 = vunpack.c.l.b16 %v1207_v19  ;;  %v4745_v30 = vld [vmem:[%s5355_s28 + $0x144] sm:$0xf]  ;;  %v2080_v19 = vshrl.u32 %v4746_v15, 16 }
 0x103   : > { %v1357_v47 = vpop.f32.mrf.mxu2  ;;  %v2064_v35 = vrot.slane %v2062_v14, 5  ;;  %v2070_v51 = vshll.u32 %v4745_v30, 16  ;;  %v4579_v14 = vrot.slane %v1091_v46, 9 }
 0x104   : > { %v1434_v55 = vadd.f32 %v1357_v47, %v1006_v32  ;;  %4705 = vmatmul.msk.bf16.gmra.mxu3 %vm718_vm3, %v5076_v31  ;;  %v1264_v32 = vunpack.c.l.b16 %v1204_v0  ;;  %v2067_v47 = vshrl.u32 %v4745_v30, 16  ;;  %v2076_v0 = vshll.u32 %v4746_v15, 16 }
 0x106   : > { %v2300_v17 = vpop.f32.mrf.mxu0  ;;  %v1286_v42 = vpack.c.b16 %v1265_v22, %v1264_v32  ;;  %v2069_v22 = vrot.slane %v2067_v47, 4 }
 0x107   : > { %v1647_v16 = vpop.f32.mrf.mxu3 }
 0x108   : > { %v1010_v28 = vpop.f32.mrf.mxu1  ;;  %v1724_v23 = vadd.f32 %v1647_v16, %v1434_v55  ;;  %v2065_v55 = vsel %vm5371_vm4, %v2060_v54, %v2064_v35  ;;  %v1212_v16 = vrot.slane %v1210_v4, 4  ;;  %v2082_v54 = vrot.slane %v2080_v19, 4 }
 0x109   : > { %v1011_v1 = vadd.f32 %v1010_v28, %v5749_v59  ;;  %4769 = vmatmul.msk.bf16.gmra.mxu0 %vm718_vm3, %v2228_v37  ;;  %v2055_v59 = vsel %vm5371_vm4, %v2050_v34, %v2054_v24  ;;  %v5231_v37 = vld [vmem:[%s5355_s28 + $0x8c] sm:$0x1]  ;;  %v2208_v32 = vunpack.c.l.b16 %v2065_v55  ;;  %v2072_v34 = vrot.slane %v2070_v51, 5 }
 0x10a   : > { %v5853_v31 = vadd.f32 %v2300_v17, %v1724_v23  ;;  %v1213_v5 = vrot.slane %v5231_v37, 5  ;;  %v2207_v28 = vunpack.c.l.b16 %v2055_v59  ;;  %v5062_v59 = vld [vmem:[%s5355_s28 + $0x84] sm:$0xff] }
 0x10b   : > { %v1359_v26 = vpop.f32.mrf.mxu2  ;;  %4562 = vmatmul.msk.bf16.gmra.mxu1 %vm718_vm3, %v5061_v53  ;;  %v2073_v46 = vor.u32 %v2072_v34, %v2069_v22  ;;  %v1092_v34 = vld [vmem:[%s5355_s28 + $0x90] sm:$0xe] }
 0x10c   : > { %v1435_v58 = vadd.f32 %v1359_v26, %v1008_v40  ;;  %v2078_v26 = vrot.slane %v2076_v0, 5  ;;  %v2229_v15 = vpack.c.b16 %v2208_v32, %v2207_v28  ;;  %v4749_v28 = vld [vmem:[%s5355_s28 + $0x154] sm:$0xf] }
 0x10e   : > { %v2302_v49 = vpop.f32.mrf.mxu0  ;;  %v2083_v47 = vor.u32 %v2082_v54, %v2078_v26 }
 0x10f   : > { %v1649_v40 = vpop.f32.mrf.mxu3 }
 0x110   : > { %4594 = vmatmul.msk.bf16.gmra.mxu2 %vm718_vm3, %v1286_v42  ;;  %v1012_v17 = vpop.f32.mrf.mxu1  ;;  %v1725_v53 = vadd.f32 %v1649_v40, %v1435_v58  ;;  %v4747_v42 = vld [vmem:[%s5355_s28 + $0x14c] sm:$0x1]  ;;  %v1214_v58 = vsel %vm5546_vm7, %v1212_v16, %v1213_v5  ;;  %v2074_v40 = vrot.slane %v2073_v46, 4 }
 0x111   : > { %v1013_v24 = vadd.f32 %v1012_v17, %v5767_v18  ;;  %v1211_v18 = vsel %vm5546_vm7, %v4579_v14, %v1210_v4  ;;  %v2086_v55 = vshll.u32 %v4747_v42, 16  ;;  %v1267_v0 = vunpack.c.l.b16 %v1214_v58  ;;  %v4748_v4 = vld [vmem:[%s5355_s28 + $0x150] sm:$0xf] }
 0x112   : > { %v5866_v35 = vadd.f32 %v2302_v49, %v1725_v53  ;;  %v2084_v17 = vrot.slane %v2083_v47, 4  ;;  %v2091_v32 = vshrl.u32 %v4748_v4, 16  ;;  %v2094_v22 = vshll.u32 %v4748_v4, 16 }
 0x113   : > { %v1362_v23 = vpop.f32.mrf.mxu2  ;;  %v2088_v53 = vrot.slane %v2086_v55, 5  ;;  %v2104_v58 = vshrl.u32 %v4749_v28, 16 }
 0x114   : > { %v1436_v30 = vadd.f32 %v1362_v23, %v1011_v1  ;;  %4706 = vmatmul.msk.bf16.gmra.mxu3 %vm718_vm3, %v5077_v60  ;;  %v1266_v1 = vunpack.c.l.b16 %v1211_v18  ;;  %v5232_v23 = vld [vmem:[%s5355_s28 + $0x94] sm:$0xf]  ;;  %v2100_v18 = vshll.u32 %v4749_v28, 16  ;;  %v2093_v46 = vrot.slane %v2091_v32, 4 }
 0x115   : > { %v2089_v42 = vsel %vm5371_vm4, %v2084_v17, %v2088_v53  ;;  %v2096_v47 = vrot.slane %v2094_v22, 5 }
 0x116   : > { %v2305_v13 = vpop.f32.mrf.mxu0  ;;  %v1287_v16 = vpack.c.b16 %v1267_v0, %v1266_v1  ;;  %v4580_v1 = vrot.slane %v1092_v34, 9 }
 0x117   : > { %v1652_v51 = vpop.f32.mrf.mxu3  ;;  %v2097_v28 = vor.u32 %v2096_v47, %v2093_v46  ;;  %v4752_v46 = vld [vmem:[%s5355_s28 + $0x160] sm:$0xf] }
 0x118   : > { %v1015_v49 = vpop.f32.mrf.mxu1  ;;  %v1726_v19 = vadd.f32 %v1652_v51, %v1436_v30  ;;  %v2079_v30 = vsel %vm5371_vm4, %v2074_v40, %v2078_v26  ;;  %v5078_v51 = vld [vmem:[%s5355_s28 + $0x144] sm:$0xff]  ;;  %v2106_v40 = vrot.slane %v2104_v58, 4 }
 0x119   : > { %v1016_v37 = vadd.f32 %v1015_v49, %v5790_v7  ;;  %4770 = vmatmul.msk.bf16.gmra.mxu0 %vm718_vm3, %v2229_v15  ;;  %v1217_v7 = vrot.slane %v5232_v23, 5  ;;  %v5233_v15 = vld [vmem:[%s5355_s28 + $0x98] sm:$0x1]  ;;  %v2209_v0 = vunpack.c.l.b16 %v2079_v30  ;;  %v5063_v23 = vld [vmem:[%s5355_s28 + $0x90] sm:$0xff] }
 0x11a   : > { %v5879_v60 = vadd.f32 %v2305_v13, %v1726_v19  ;;  %v1220_v13 = vrot.slane %v5233_v15, 5  ;;  %v2210_v19 = vunpack.c.l.b16 %v2089_v42  ;;  %v2098_v15 = vrot.slane %v2097_v28, 4  ;;  %v5235_v28 = vld [vmem:[%s5355_s28 + $0xa4] sm:$0x1] }
 0x11b   : > { %v1364_v5 = vpop.f32.mrf.mxu2  ;;  %4563 = vmatmul.msk.bf16.gmra.mxu1 %vm718_vm3, %v5062_v59  ;;  %v1219_v26 = vrot.slane %v1217_v7, 4 }
 0x11c   : > { %v1437_v14 = vadd.f32 %v1364_v5, %v1013_v24  ;;  %v2102_v5 = vrot.slane %v2100_v18, 5  ;;  %v2230_v32 = vpack.c.b16 %v2210_v19, %v2209_v0  ;;  %v5234_v0 = vld [vmem:[%s5355_s28 + $0xa0] sm:$0xf] }
 0x11d   : > { %v1224_v19 = vrot.slane %v5234_v0, 5 }
 0x11e   : > { %v2307_v54 = vpop.f32.mrf.mxu0  ;;  %v2107_v34 = vor.u32 %v2106_v40, %v2102_v5  ;;  %v1093_v40 = vld [vmem:[%s5355_s28 + $0x9c] sm:$0xe] }
 0x11f   : > { %v1654_v24 = vpop.f32.mrf.mxu3 }
 0x120   : > { %4595 = vmatmul.msk.bf16.gmra.mxu2 %vm718_vm3, %v1287_v16  ;;  %v1017_v59 = vpop.f32.mrf.mxu1  ;;  %v1727_v55 = vadd.f32 %v1654_v24, %v1437_v14  ;;  %v4750_v16 = vld [vmem:[%s5355_s28 + $0x158] sm:$0x1]  ;;  %v1218_v14 = vsel %vm5546_vm7, %v4580_v1, %v1217_v7  ;;  %v4751_v24 = vld [vmem:[%s5355_s28 + $0x15c] sm:$0xf] }
 0x121   : > { %v1018_v49 = vadd.f32 %v1017_v59, %v5808_v43  ;;  %v1221_v43 = vsel %vm5546_vm7, %v1219_v26, %v1220_v13  ;;  %v2110_v30 = vshll.u32 %v4750_v16, 16  ;;  %v2108_v13 = vrot.slane %v2107_v34, 4 }
 0x122   : > { %v5892_v17 = vadd.f32 %v2307_v54, %v1727_v55  ;;  %v1269_v18 = vunpack.c.l.b16 %v1221_v43  ;;  %v2115_v1 = vshrl.u32 %v4751_v24, 16  ;;  %v2103_v26 = vsel %vm5371_vm4, %v2098_v15, %v2102_v5 }
 0x123   : > { %v1367_v4 = vpop.f32.mrf.mxu2  ;;  %v2112_v59 = vrot.slane %v2110_v30, 5  ;;  %v2128_v16 = vshrl.u32 %v4752_v46, 16  ;;  %v5079_v30 = vld [vmem:[%s5355_s28 + $0x150] sm:$0xff] }
 0x124   : > { %v1438_v53 = vadd.f32 %v1367_v4, %v1016_v37  ;;  %4707 = vmatmul.msk.bf16.gmra.mxu3 %vm718_vm3, %v5078_v51  ;;  %v1268_v37 = vunpack.c.l.b16 %v1218_v14  ;;  %v2118_v4 = vshll.u32 %v4751_v24, 16  ;;  %v2117_v5 = vrot.slane %v2115_v1, 4 }
 0x125   : > { %v2113_v43 = vsel %vm5371_vm4, %v2108_v13, %v2112_v59  ;;  %v4753_v59 = vld [vmem:[%s5355_s28 + $0x164] sm:$0x1] }
 0x126   : > { %v2310_v22 = vpop.f32.mrf.mxu0  ;;  %v1288_v51 = vpack.c.b16 %v1269_v18, %v1268_v37  ;;  %v1226_v37 = vrot.slane %v1224_v19, 4  ;;  %v2120_v18 = vrot.slane %v2118_v4, 5  ;;  %v2212_v15 = vunpack.c.l.b16 %v2113_v43 }
 0x127   : > { %v1657_v54 = vpop.f32.mrf.mxu3 }
 0x128   : > { %v1020_v42 = vpop.f32.mrf.mxu1  ;;  %v1728_v58 = vadd.f32 %v1657_v54, %v1438_v53  ;;  %v2124_v53 = vshll.u32 %v4752_v46, 16  ;;  %v4581_v54 = vrot.slane %v1093_v40, 9  ;;  %v2121_v1 = vor.u32 %v2120_v18, %v2117_v5  ;;  %v5064_v40 = vld [vmem:[%s5355_s28 + $0x9c] sm:$0xff] }
 0x129   : > { %4771 = vmatmul.msk.bf16.gmra.mxu0 %vm718_vm3, %v2230_v32  ;;  %v1227_v32 = vrot.slane %v5235_v28, 5 }
 0x12a   : > { %v5905_v47 = vadd.f32 %v2310_v22, %v1728_v58  ;;  %v2211_v22 = vunpack.c.l.b16 %v2103_v26  ;;  %v1021_v58 = vadd.f32 %v1020_v42, %v5643_v21  ;;  %v2126_v24 = vrot.slane %v2124_v53, 5 }
 0x12b   : > { %v1369_v7 = vpop.f32.mrf.mxu2  ;;  %4564 = vmatmul.msk.bf16.gmra.mxu1 %vm718_vm3, %v5063_v23  ;;  %v2134_v26 = vshll.u32 %v4753_v59, 16 }
 0x12c   : > { %v1439_v55 = vadd.f32 %v1369_v7, %v1018_v49  ;;  %v2130_v7 = vrot.slane %v2128_v16, 4  ;;  %v2231_v21 = vpack.c.b16 %v2212_v15, %v2211_v22  ;;  %v4754_v22 = vld [vmem:[%s5355_s28 + $0x168] sm:$0xf] }
 0x12d   : > { %v2136_v5 = vrot.slane %v2134_v26, 5  ;;  %v2142_v59 = vshll.u32 %v4754_v22, 16 }
 0x12e   : > { %v2312_v14 = vpop.f32.mrf.mxu0  ;;  %v2131_v42 = vor.u32 %v2130_v7, %v2126_v24 }
 0x12f   : > { %v1659_v49 = vpop.f32.mrf.mxu3 }
 0x130   : > { %4596 = vmatmul.msk.bf16.gmra.mxu2 %vm718_vm3, %v1288_v51  ;;  %v1022_v23 = vpop.f32.mrf.mxu1  ;;  %v1729_v34 = vadd.f32 %v1659_v49, %v1439_v55  ;;  %v1225_v55 = vsel %vm5546_vm7, %v4581_v54, %v1224_v19  ;;  %v1228_v51 = vsel %vm5546_vm7, %v1226_v37, %v1227_v32  ;;  %v2122_v49 = vrot.slane %v2121_v1, 4  ;;  %v5237_v1 = vld [vmem:[%s5355_s28 + $0xb0] sm:$0x1] }
 0x131   : > { %v1271_v43 = vunpack.c.l.b16 %v1228_v51  ;;  %v1023_v19 = vadd.f32 %v1022_v23, %v5659_v48  ;;  %v2132_v32 = vrot.slane %v2131_v42, 4  ;;  %v2139_v48 = vshrl.u32 %v4754_v22, 16 }
 0x132   : > { %v5918_v46 = vadd.f32 %v2312_v14, %v1729_v34  ;;  %v1270_v14 = vunpack.c.l.b16 %v1225_v55  ;;  %v2127_v7 = vsel %vm5371_vm4, %v2122_v49, %v2126_v24 }
 0x133   : > { %v1372_v13 = vpop.f32.mrf.mxu2  ;;  %v2137_v23 = vsel %vm5371_vm4, %v2132_v32, %v2136_v5 }
 0x134   : > { %v1440_v0 = vadd.f32 %v1372_v13, %v1021_v58  ;;  %4708 = vmatmul.msk.bf16.gmra.mxu3 %vm718_vm3, %v5079_v30  ;;  %v4755_v30 = vld [vmem:[%s5355_s28 + $0x16c] sm:$0xf]  ;;  %v1289_v18 = vpack.c.b16 %v1271_v43, %v1270_v14  ;;  %v1094_v13 = vld [vmem:[%s5355_s28 + $0xa8] sm:$0xe]  ;;  %v2213_v14 = vunpack.c.l.b16 %v2127_v7  ;;  %v2214_v43 = vunpack.c.l.b16 %v2137_v23 }
 0x135   : > { %v5236_v58 = vld [vmem:[%s5355_s28 + $0xac] sm:$0xf]  ;;  %v2152_v55 = vshrl.u32 %v4755_v30, 16 }
 0x136   : > { %v2315_v4 = vpop.f32.mrf.mxu0  ;;  %v1231_v15 = vrot.slane %v5236_v58, 5  ;;  %v4756_v58 = vld [vmem:[%s5355_s28 + $0x170] sm:$0x1] }
 0x137   : > { %v1662_v53 = vpop.f32.mrf.mxu3  ;;  %v2154_v5 = vrot.slane %v2152_v55, 4 }
 0x138   : > { %v1025_v16 = vpop.f32.mrf.mxu1  ;;  %v1730_v28 = vadd.f32 %v1662_v53, %v1440_v0  ;;  %v2148_v0 = vshll.u32 %v4755_v30, 16  ;;  %v5080_v53 = vld [vmem:[%s5355_s28 + $0x15c] sm:$0xff] }
 0x139   : > { %4772 = vmatmul.msk.bf16.gmra.mxu0 %vm718_vm3, %v2231_v21  ;;  %v1234_v21 = vrot.slane %v5237_v1, 5  ;;  %v1026_v49 = vadd.f32 %v1025_v16, %v5679_v9  ;;  %v2232_v9 = vpack.c.b16 %v2214_v43, %v2213_v14 }
 0x13a   : > { %v5931_v54 = vadd.f32 %v2315_v4, %v1730_v28  ;;  %v4582_v4 = vrot.slane %v1094_v13, 9  ;;  %v2141_v28 = vrot.slane %v2139_v48, 4  ;;  %v5943_v32 = vrot.slane %v2148_v0, 5  ;;  %v5065_v48 = vld [vmem:[%s5355_s28 + $0xa8] sm:$0xff] }
 0x13b   : > { %v1374_v34 = vpop.f32.mrf.mxu2  ;;  %4565 = vmatmul.msk.bf16.gmra.mxu1 %vm718_vm3, %v5064_v40  ;;  %v1233_v40 = vrot.slane %v1231_v15, 4  ;;  %v2158_v0 = vshll.u32 %v4756_v58, 16 }
 0x13c   : > { %v1441_v37 = vadd.f32 %v1374_v34, %v1023_v19  ;;  %v2144_v19 = vrot.slane %v2142_v59, 5  ;;  %v2155_v7 = vor.u32 %v2154_v5, %v5943_v32 }
 0x13e   : > { %v2317_v51 = vpop.f32.mrf.mxu0  ;;  %v2145_v16 = vor.u32 %v2144_v19, %v2141_v28  ;;  %v2160_v28 = vrot.slane %v2158_v0, 5 }
 0x13f   : > { %v1664_v42 = vpop.f32.mrf.mxu3 }
 0x140   : > { %4597 = vmatmul.msk.bf16.gmra.mxu2 %vm718_vm3, %v1289_v18  ;;  %v1027_v26 = vpop.f32.mrf.mxu1  ;;  %v1731_v24 = vadd.f32 %v1664_v42, %v1441_v37  ;;  %v1232_v18 = vsel %vm5546_vm7, %v4582_v4, %v1231_v15  ;;  %v1235_v37 = vsel %vm5546_vm7, %v1233_v40, %v1234_v21  ;;  %v4757_v15 = vld [vmem:[%s5355_s28 + $0x174] sm:$0xf]  ;;  %v4758_v42 = vld [vmem:[%s5355_s28 + $0x178] sm:$0xf]  ;;  %v5238_v4 = vld [vmem:[%s5355_s28 + $0xc4] sm:$0xf] }
 0x141   : > { %v1272_v23 = vunpack.c.l.b16 %v1232_v18  ;;  %v1273_v59 = vunpack.c.l.b16 %v1235_v37  ;;  %v2473_v21 = vrot.slane %v5238_v4, 5  ;;  %v1028_v40 = vadd.f32 %v1027_v26, %v5697_v39  ;;  %v5239_v37 = vld [vmem:[%s5355_s28 + $0xb8] sm:$0xf]  ;;  %v1095_v26 = vld [vmem:[%s5355_s28 + $0xb4] sm:$0xe] }
 0x142   : > { %v5945_v34 = vadd.f32 %v2317_v51, %v1731_v24  ;;  %v2146_v24 = vrot.slane %v2145_v16, 4  ;;  %v2166_v19 = vshll.u32 %v4757_v15, 16  ;;  %v1238_v58 = vrot.slane %v5239_v37, 5  ;;  %v5081_v37 = vld [vmem:[%s5355_s28 + $0x168] sm:$0xff] }
 0x143   : > { %v1377_v22 = vpop.f32.mrf.mxu2  ;;  %v1290_v43 = vpack.c.b16 %v1273_v59, %v1272_v23  ;;  %v2475_v16 = vrot.slane %v2473_v21, 4 }
 0x144   : > { %v1442_v30 = vadd.f32 %v1377_v22, %v1026_v49  ;;  %4709 = vmatmul.msk.bf16.gmra.mxu3 %vm718_vm3, %v5080_v53  ;;  %v2156_v53 = vrot.slane %v2155_v7, 4  ;;  %v2163_v49 = vshrl.u32 %v4757_v15, 16  ;;  %v2172_v22 = vshll.u32 %v4758_v42, 16  ;;  %v5241_v7 = vld [vmem:[%s5355_s28 + $0xc8] sm:$0x1] }
 0x145   : > { %v2151_v23 = vsel %vm5371_vm4, %v2146_v24, %v5943_v32 }
 0x146   : > { %v2320_v13 = vpop.f32.mrf.mxu0  ;;  %v2161_v59 = vsel %vm5371_vm4, %v2156_v53, %v2160_v28  ;;  %v2165_v15 = vrot.slane %v2163_v49, 4  ;;  %v2215_v24 = vunpack.c.l.b16 %v2151_v23 }
 0x147   : > { %v1667_v55 = vpop.f32.mrf.mxu3  ;;  %v2216_v53 = vunpack.c.l.b16 %v2161_v59 }
 0x148   : > { %v1030_v51 = vpop.f32.mrf.mxu1  ;;  %v1732_v1 = vadd.f32 %v1667_v55, %v1442_v30  ;;  %v2176_v30 = vshrl.u32 %v4758_v42, 16  ;;  %v2476_v55 = vrot.slane %v5241_v7, 5  ;;  %v5973_v42 = vrot.slane %v2172_v22, 5 }
 0x149   : > { %4773 = vmatmul.msk.bf16.gmra.mxu0 %vm718_vm3, %v2232_v9  ;;  %v5240_v9 = vld [vmem:[%s5355_s28 + $0xbc] sm:$0x1]  ;;  %v1240_v7 = vrot.slane %v1238_v58, 4  ;;  %v1031_v32 = vadd.f32 %v1030_v51, %v5718_v2 }
 0x14a   : > { %v5961_v18 = vadd.f32 %v2320_v13, %v1732_v1  ;;  %v1241_v39 = vrot.slane %v5240_v9, 5  ;;  %v2168_v1 = vrot.slane %v2166_v19, 5  ;;  %v2178_v4 = vrot.slane %v2176_v30, 4 }
 0x14b   : > { %v1379_v14 = vpop.f32.mrf.mxu2  ;;  %4566 = vmatmul.msk.bf16.gmra.mxu1 %vm718_vm3, %v5065_v48  ;;  %v4583_v9 = vrot.slane %v1095_v26, 9  ;;  %v2477_v19 = vsel %vm5546_vm7, %v2475_v16, %v2476_v55  ;;  %v4936_v16 = vld [vmem:[%s5355_s28 + $0x180] sm:$0xf] }
 0x14c   : > { %v1443_v5 = vadd.f32 %v1379_v14, %v1028_v40  ;;  %6920 = vst [vmem:[#allocation2_spill] sm:$0xff] %v5961_v18  ;;  %v4776_v40 = vld [vmem:[%s5355_s28 + $0xc0] sm:$0xe]  ;;  %v2169_v22 = vor.u32 %v2168_v1, %v2165_v15  ;;  %v2585_v26 = vunpack.c.l.b16 %v2477_v19  ;;  %v1242_v51 = vsel %vm5546_vm7, %v1240_v7, %v1241_v39  ;;  %v5066_v15 = vld [vmem:[%s5355_s28 + $0xb4] sm:$0xff]  ;;  %v5996_v1 = vld [vmem:[%s5355_s28 + $0x184] sm:$0xf] }
 0x14d   : > { %v4792_v18 = vrot.slane %v4776_v40, 9  ;;  %v1239_v2 = vsel %vm5546_vm7, %v4583_v9, %v1238_v58  ;;  %v2179_v23 = vor.u32 %v2178_v4, %v5973_v42  ;;  %v1275_v58 = vunpack.c.l.b16 %v1242_v51 }
 0x14e   : > { %v2322_v48 = vpop.f32.mrf.mxu0  ;;  %v2170_v9 = vrot.slane %v2169_v22, 4  ;;  %v3143_v7 = vshrl.u32 %v4936_v16, 16  ;;  %v3146_v4 = vshll.u32 %v4936_v16, 16 }
 0x14f   : > { %v1669_v13 = vpop.f32.mrf.mxu3  ;;  %v2474_v49 = vsel %vm5546_vm7, %v4792_v18, %v2473_v21  ;;  %v2233_v21 = vpack.c.b16 %v2216_v53, %v2215_v24  ;;  %v2180_v39 = vrot.slane %v2179_v23, 4  ;;  %v3156_v53 = vshrl.u32 %v5996_v1, 16  ;;  %v4938_v23 = vld [vmem:[%s5355_s28 + $0x188] sm:$0x1] }
 0x150   : > { %4598 = vmatmul.msk.bf16.gmra.mxu2 %vm718_vm3, %v1290_v43  ;;  %v1032_v0 = vpop.f32.mrf.mxu1  ;;  %v1733_v14 = vadd.f32 %v1669_v13, %v1443_v5  ;;  %v4759_v43 = vld [vmem:[%s5355_s28 + $0x17c] sm:$0x1]  ;;  %v2584_v30 = vunpack.c.l.b16 %v2474_v49  ;;  %v3145_v22 = vrot.slane %v3143_v7, 4  ;;  %v4939_v7 = vld [vmem:[%s5355_s28 + $0x18c] sm:$0xf] }
 0x151   : > { %v2182_v18 = vshll.u32 %v4759_v43, 16  ;;  %v1033_v24 = vadd.f32 %v1032_v0, %v5736_v33  ;;  %v2175_v33 = vsel %vm5371_vm4, %v2170_v9, %v5973_v42  ;;  %v3162_v9 = vshll.u32 %v4938_v23, 16 }
 0x152   : > { %v5989_v59 = vpack.c.b16 %v2585_v26, %v2584_v30  ;;  %v5992_v55 = vadd.f32 %v2322_v48, %v1733_v14  ;;  %v3152_v14 = vshll.u32 %v5996_v1, 16  ;;  %v3148_v30 = vrot.slane %v3146_v4, 5  ;;  %v6016_v4 = vld [vmem:[%s5355_s28 + $0x190] sm:$0xf] }
 0x153   : > { %v1382_v28 = vpop.f32.mrf.mxu2  ;;  %v2184_v48 = vrot.slane %v2182_v18, 5 }
 0x154   : > { %v1444_v5 = vadd.f32 %v1382_v28, %v1031_v32  ;;  %4710 = vmatmul.msk.bf16.gmra.mxu3 %vm718_vm3, %v5081_v37  ;;  %v1274_v32 = vunpack.c.l.b16 %v1239_v2  ;;  %v3154_v26 = vrot.slane %v3152_v14, 5  ;;  %v3158_v2 = vrot.slane %v3156_v53, 4 }
 0x155   : > { %v2185_v0 = vsel %vm5371_vm4, %v2180_v39, %v2184_v48  ;;  %v3164_v53 = vrot.slane %v3162_v9, 5 }
 0x156   : > { %v2325_v13 = vpop.f32.mrf.mxu0  ;;  %v1291_v19 = vpack.c.b16 %v1275_v58, %v1274_v32  ;;  %v3149_v32 = vor.u32 %v3148_v30, %v3145_v22  ;;  %v3159_v58 = vor.u32 %v3158_v2, %v3154_v26  ;;  %v3170_v22 = vshll.u32 %v4939_v7, 16 }
 0x157   : > { %v1672_v40 = vpop.f32.mrf.mxu3  ;;  %v3176_v30 = vshll.u32 %v6016_v4, 16 }
 0x158   : > { %v1035_v37 = vpop.f32.mrf.mxu1  ;;  %v1734_v28 = vadd.f32 %v1672_v40, %v1444_v5  ;;  %v2218_v40 = vunpack.c.l.b16 %v2185_v0  ;;  %v3150_v48 = vrot.slane %v3149_v32, 4  ;;  %v3160_v14 = vrot.slane %v3159_v58, 4 }
 0x159   : > { %4774 = vmatmul.msk.bf16.gmra.mxu0 %vm718_vm3, %v2233_v21  ;;  %v1036_v42 = vadd.f32 %v1035_v37, %v5759_v3 }
 0x15a   : > { %v6003_v5 = vadd.f32 %v2325_v13, %v1734_v28  ;;  %v5082_v13 = vld [vmem:[%s5355_s28 + $0x174] sm:$0xff]  ;;  %v3165_v58 = vsel %vm5371_vm4, %v3160_v14, %v3164_v53 }
 0x15b   : > { %v1384_v43 = vpop.f32.mrf.mxu2  ;;  %4567 = vmatmul.msk.bf16.gmra.mxu1 %vm718_vm3, %v5066_v15  ;;  %v2217_v15 = vunpack.c.l.b16 %v2175_v33  ;;  %v3180_v33 = vshrl.u32 %v6016_v4, 16  ;;  %v3528_v14 = vunpack.c.l.b16 %v3165_v58  ;;  %v6042_v53 = vld [vmem:[%s5355_s28 + $0x194] sm:$0x1] }
 0x15c   : > { %v1445_v49 = vadd.f32 %v1384_v43, %v1033_v24  ;;  %v5000_v43 = vld [vmem:[%s5355_s28 + $0x180] sm:$0xe] }
 0x15d   : > { %v2234_v24 = vpack.c.b16 %v2218_v40, %v2217_v15  ;;  %v5243_v15 = vld [vmem:[%s5355_s28 + $0xd4] sm:$0x1] }
 0x15e   : > { %v2327_v51 = vpop.f32.mrf.mxu0  ;;  %v2483_v40 = vrot.slane %v5243_v15, 5 }
 0x15f   : > { %v1674_v21 = vpop.f32.mrf.mxu3 }
 0x160   : > { %4599 = vmatmul.msk.bf16.gmra.mxu2 %vm718_vm3, %v1291_v19  ;;  %v1037_v18 = vpop.f32.mrf.mxu1  ;;  %v1735_v16 = vadd.f32 %v1674_v21, %v1445_v49  ;;  %v3817_v49 = vrot.slane %v5996_v1, 5  ;;  %v3167_v19 = vshrl.u32 %v4939_v7, 16  ;;  %v5242_v21 = vld [vmem:[%s5355_s28 + $0xd0] sm:$0xf]  ;;  %v3155_v1 = vsel %vm5371_vm4, %v3150_v48, %v3154_v26 }
 0x161   : > { %v3182_v26 = vrot.slane %v3180_v33, 4 }
 0x162   : > { %v6021_v3 = vadd.f32 %v2327_v51, %v1735_v16  ;;  %v5016_v51 = vrot.slane %v5000_v43, 9  ;;  %v4777_v16 = vld [vmem:[%s5355_s28 + $0xcc] sm:$0xe]  ;;  %v3819_v9 = vrot.slane %v3817_v49, 4  ;;  %v5083_v43 = vld [vmem:[%s5355_s28 + $0x180] sm:$0xff] }
 0x163   : > { %v1387_v28 = vpop.f32.mrf.mxu2 }
 0x164   : > { %v1446_v39 = vadd.f32 %v1387_v28, %v1036_v42  ;;  %4711 = vmatmul.msk.bf16.gmra.mxu3 %vm718_vm3, %v5082_v13  ;;  %6921 = vst [vmem:[#allocation3_spill] sm:$0xff] %v6021_v3  ;;  %v2480_v13 = vrot.slane %v5242_v21, 5  ;;  %v1038_v42 = vadd.f32 %v1037_v18, %v5779_v45  ;;  %v3820_v28 = vrot.slane %v4938_v23, 5 }
 0x165   : > { %v6036_v21 = vrot.slane %v3176_v30, 5  ;;  %v3527_v18 = vunpack.c.l.b16 %v3155_v1  ;;  %v3818_v3 = vsel %vm5546_vm7, %v5016_v51, %v3817_v49  ;;  %v3186_v49 = vshll.u32 %v6042_v53, 16 }
 0x166   : > { %v2330_v37 = vpop.f32.mrf.mxu0  ;;  %v2482_v15 = vrot.slane %v2480_v13, 4 }
 0x167   : > { %v1677_v0 = vpop.f32.mrf.mxu3  ;;  %v3559_v51 = vpack.c.b16 %v3528_v14, %v3527_v18  ;;  %v5244_v18 = vld [vmem:[%s5355_s28 + $0xdc] sm:$0xf] }
 0x168   : > { %v1040_v2 = vpop.f32.mrf.mxu1  ;;  %v1736_v32 = vadd.f32 %v1677_v0, %v1446_v39  ;;  %v3169_v39 = vrot.slane %v3167_v19, 4  ;;  %v3172_v0 = vrot.slane %v3170_v22, 5  ;;  %v2484_v33 = vsel %vm5546_vm7, %v2482_v15, %v2483_v40  ;;  %v6061_v15 = vld [vmem:[%s5355_s28 + $0x19c] sm:$0xf] }
 0x169   : > { %4775 = vmatmul.msk.bf16.gmra.mxu0 %vm718_vm3, %v2234_v24  ;;  %v4793_v24 = vrot.slane %v4777_v16, 9  ;;  %v1041_v16 = vadd.f32 %v1040_v2, %v5661_v52  ;;  %v2487_v14 = vrot.slane %v5244_v18, 5 }
 0x16a   : > { %v6039_v45 = vadd.f32 %v2330_v37, %v1736_v32  ;;  %v3173_v19 = vor.u32 %v3172_v0, %v3169_v39  ;;  %v3183_v32 = vor.u32 %v3182_v26, %v6036_v21  ;;  %v3188_v0 = vrot.slane %v3186_v49, 5  ;;  %v5001_v26 = vld [vmem:[%s5355_s28 + $0x18c] sm:$0xe] }
 0x16b   : > { %v1389_v7 = vpop.f32.mrf.mxu2  ;;  %4808 = vmatmul.msk.bf16.vlgmr.msra.gmra.mxu1 %vm718_vm3, %v5989_v59  ;;  %v3821_v59 = vsel %vm5546_vm7, %v3819_v9, %v3820_v28  ;;  %v2481_v37 = vsel %vm5546_vm7, %v4793_v24, %v2480_v13  ;;  %v2587_v13 = vunpack.c.l.b16 %v2484_v33  ;;  %v3824_v24 = vrot.slane %v6016_v4, 5  ;;  %v4778_v4 = vld [vmem:[%s5355_s28 + $0xd8] sm:$0xe] }
 0x16c   : > { %v1447_v48 = vadd.f32 %v1389_v7, %v1038_v42  ;;  %v3928_v42 = vunpack.c.l.b16 %v3818_v3  ;;  %v3929_v58 = vunpack.c.l.b16 %v3821_v59  ;;  %v2586_v28 = vunpack.c.l.b16 %v2481_v37 }
 0x16d   : > { %v3174_v39 = vrot.slane %v3173_v19, 4  ;;  %v3184_v40 = vrot.slane %v3183_v32, 4  ;;  %v5017_v33 = vrot.slane %v5001_v26, 9 }
 0x16e   : > { %v2332_v23 = vpop.f32.mrf.mxu0  ;;  %v2617_v2 = vpack.c.b16 %v2587_v13, %v2586_v28 }
 0x16f   : > { %v1679_v22 = vpop.f32.mrf.mxu3  ;;  %v3189_v37 = vsel %vm5371_vm4, %v3184_v40, %v3188_v0  ;;  %v5084_v0 = vld [vmem:[%s5355_s28 + $0x18c] sm:$0xff] }
 0x170   : > { %4920 = vmatmul.msk.bf16.vlgmr.msra.gmra.mxu2 %vm718_vm3, %v5083_v43  ;;  %v1042_v30 = vpop.f32.mrf.mxu1  ;;  %v1737_v1 = vadd.f32 %v1679_v22, %v1447_v48  ;;  %v4942_v43 = vld [vmem:[%s5355_s28 + $0x198] sm:$0xf]  ;;  %v3960_v48 = vpack.c.b16 %v3929_v58, %v3928_v42  ;;  %v3179_v22 = vsel %vm5371_vm4, %v3174_v39, %v6036_v21  ;;  %v3826_v42 = vrot.slane %v3824_v24, 4  ;;  %v5245_v58 = vld [vmem:[%s5355_s28 + $0xe0] sm:$0x1] }
 0x171   : > { %v3191_v32 = vshrl.u32 %v4942_v43, 16  ;;  %v3827_v21 = vrot.slane %v6042_v53, 5  ;;  %v3529_v13 = vunpack.c.l.b16 %v3179_v22  ;;  %v2489_v39 = vrot.slane %v2487_v14, 4 }
 0x172   : > { %v6063_v52 = vadd.f32 %v2332_v23, %v1737_v1  ;;  %v3194_v23 = vshll.u32 %v4942_v43, 16  ;;  %v3200_v1 = vshll.u32 %v6061_v15, 16  ;;  %v3530_v26 = vunpack.c.l.b16 %v3189_v37 }
 0x173   : > { %v1392_v9 = vpop.f32.mrf.mxu2  ;;  %v3825_v43 = vsel %vm5546_vm7, %v5017_v33, %v3824_v24 }
 0x174   : > { %v1448_v7 = vadd.f32 %v1392_v9, %v1041_v16  ;;  %4984 = vmatmul.msk.bf16.vlgmr.msra.gmra.mxu3 %vm718_vm3, %v3559_v51  ;;  %v3204_v51 = vshrl.u32 %v6061_v15, 16  ;;  %v1043_v16 = vadd.f32 %v1042_v30, %v5682_v6  ;;  %v2490_v9 = vrot.slane %v5245_v58, 5 }
 0x175   : > { %v3193_v6 = vrot.slane %v3191_v32, 4  ;;  %v3196_v30 = vrot.slane %v3194_v23, 5  ;;  %v6084_v53 = vrot.slane %v3200_v1, 5  ;;  %v3930_v33 = vunpack.c.l.b16 %v3825_v43  ;;  %v5002_v43 = vld [vmem:[%s5355_s28 + $0x198] sm:$0xe] }
 0x176   : > { %v2335_v3 = vpop.f32.mrf.mxu0  ;;  %v3206_v18 = vrot.slane %v3204_v51, 4  ;;  %v2491_v37 = vsel %vm5546_vm7, %v2489_v39, %v2490_v9 }
 0x177   : > { %v1682_v59 = vpop.f32.mrf.mxu3  ;;  %v3197_v1 = vor.u32 %v3196_v30, %v3193_v6 }
 0x178   : > { %v1045_v19 = vpop.f32.mrf.mxu1  ;;  %v1738_v49 = vadd.f32 %v1682_v59, %v1448_v7  ;;  %v4794_v7 = vrot.slane %v4778_v4, 9  ;;  %v6093_v4 = vld [vmem:[%s5355_s28 + $0x1a0] sm:$0x1]  ;;  %v3207_v51 = vor.u32 %v3206_v18, %v6084_v53 }
 0x179   : > { %5032 = vmatmul.msk.bf16.vlgmr.msra.gmra.mxu0 %vm718_vm3, %v3960_v48  ;;  %v3198_v39 = vrot.slane %v3197_v1, 4 }
 0x17a   : > { %v6082_v48 = vadd.f32 %v2335_v3, %v1738_v49  ;;  %v2488_v22 = vsel %vm5546_vm7, %v4794_v7, %v2487_v14  ;;  %v3560_v3 = vpack.c.b16 %v3530_v26, %v3529_v13  ;;  %v1046_v14 = vadd.f32 %v1045_v19, %v5699_v41  ;;  %v6101_v7 = vld [vmem:[%s5355_s28 + $0x1a8] sm:$0xf] }
 0x17b   : > { %v1394_v28 = vpop.f32.mrf.mxu2  ;;  %4809 = vmatmul.msk.bf16.gmra.mxu1 %vm718_vm3, %v2617_v2  ;;  %v3828_v2 = vsel %vm5546_vm7, %v3826_v42, %v3827_v21  ;;  %v2589_v42 = vunpack.c.l.b16 %v2491_v37  ;;  %v3210_v21 = vshll.u32 %v6093_v4, 16  ;;  %v3831_v41 = vrot.slane %v6061_v15, 5 }
 0x17c   : > { %v1449_v40 = vadd.f32 %v1394_v28, %v1043_v16  ;;  %v3931_v23 = vunpack.c.l.b16 %v3828_v2  ;;  %v2588_v16 = vunpack.c.l.b16 %v2488_v22  ;;  %v4945_v28 = vld [vmem:[%s5355_s28 + $0x1a4] sm:$0xf]  ;;  %v3224_v2 = vshll.u32 %v6101_v7, 16 }
 0x17d   : > { %v3212_v26 = vrot.slane %v3210_v21, 5  ;;  %v3215_v30 = vshrl.u32 %v4945_v28, 16  ;;  %v3218_v18 = vshll.u32 %v4945_v28, 16  ;;  %v3228_v22 = vshrl.u32 %v6101_v7, 16 }
 0x17e   : > { %v2337_v59 = vpop.f32.mrf.mxu0  ;;  %v3961_v13 = vpack.c.b16 %v3931_v23, %v3930_v33  ;;  %v5247_v23 = vld [vmem:[%s5355_s28 + $0xec] sm:$0x1]  ;;  %v3834_v15 = vrot.slane %v6093_v4, 5  ;;  %v3833_v21 = vrot.slane %v3831_v41, 4  ;;  %v6122_v4 = vrot.slane %v3224_v2, 5 }
 0x17f   : > { %v1684_v24 = vpop.f32.mrf.mxu3  ;;  %v2497_v1 = vrot.slane %v5247_v23, 5  ;;  %v3220_v28 = vrot.slane %v3218_v18, 5  ;;  %v6128_v23 = vld [vmem:[%s5355_s28 + $0x1ac] sm:$0x1] }
 0x180   : > { %4921 = vmatmul.msk.bf16.gmra.mxu2 %vm718_vm3, %v5084_v0  ;;  %v1047_v32 = vpop.f32.mrf.mxu1  ;;  %v1739_v49 = vadd.f32 %v1684_v24, %v1449_v40  ;;  %v3208_v40 = vrot.slane %v3207_v51, 4  ;;  %v2618_v0 = vpack.c.b16 %v2589_v42, %v2588_v16  ;;  %v3203_v16 = vsel %vm5371_vm4, %v3198_v39, %v6084_v53 }
 0x181   : > { %v3531_v53 = vunpack.c.l.b16 %v3203_v16 }
 0x182   : > { %v6106_v19 = vadd.f32 %v2337_v59, %v1739_v49  ;;  %v4779_v59 = vld [vmem:[%s5355_s28 + $0xe4] sm:$0xe]  ;;  %v1048_v49 = vadd.f32 %v1047_v32, %v5724_v8  ;;  %v3213_v42 = vsel %vm5371_vm4, %v3208_v40, %v3212_v26 }
 0x183   : > { %v1397_v58 = vpop.f32.mrf.mxu2  ;;  %v4795_v8 = vrot.slane %v4779_v59, 9  ;;  %v3532_v39 = vunpack.c.l.b16 %v3213_v42 }
 0x184   : > { %v1450_v9 = vadd.f32 %v1397_v58, %v1046_v14  ;;  %4985 = vmatmul.msk.bf16.gmra.mxu3 %vm718_vm3, %v3560_v3  ;;  %v5246_v3 = vld [vmem:[%s5355_s28 + $0xe8] sm:$0xf]  ;;  %v5018_v14 = vrot.slane %v5002_v43, 9  ;;  %v3230_v43 = vrot.slane %v3228_v22, 4 }
 0x185   : > { %v2494_v33 = vrot.slane %v5246_v3, 5  ;;  %v3561_v59 = vpack.c.b16 %v3532_v39, %v3531_v53  ;;  %v5248_v39 = vld [vmem:[%s5355_s28 + $0xf4] sm:$0xf] }
 0x186   : > { %v2340_v6 = vpop.f32.mrf.mxu0  ;;  %v3832_v26 = vsel %vm5546_vm7, %v5018_v14, %v3831_v41  ;;  %v3234_v41 = vshll.u32 %v6128_v23, 16 }
 0x187   : > { %v1687_v37 = vpop.f32.mrf.mxu3  ;;  %v2496_v32 = vrot.slane %v2494_v33, 4 }
 0x188   : > { %v1050_v24 = vpop.f32.mrf.mxu1  ;;  %v1740_v51 = vadd.f32 %v1687_v37, %v1450_v9  ;;  %v3217_v9 = vrot.slane %v3215_v30, 4  ;;  %v5085_v37 = vld [vmem:[%s5355_s28 + $0x198] sm:$0xff] }
 0x189   : > { %5033 = vmatmul.msk.bf16.gmra.mxu0 %vm718_vm3, %v3961_v13  ;;  %v2498_v22 = vsel %vm5546_vm7, %v2496_v32, %v2497_v1  ;;  %v6147_v32 = vld [vmem:[%s5355_s28 + $0x1b4] sm:$0xf] }
 0x18a   : > { %v6125_v3 = vadd.f32 %v2340_v6, %v1740_v51  ;;  %v3221_v30 = vor.u32 %v3220_v28, %v3217_v9  ;;  %v2495_v6 = vsel %vm5546_vm7, %v4795_v8, %v2494_v33  ;;  %v3231_v51 = vor.u32 %v3230_v43, %v6122_v4  ;;  %v5003_v43 = vld [vmem:[%s5355_s28 + $0x1a4] sm:$0xe] }
 0x18b   : > { %v1399_v58 = vpop.f32.mrf.mxu2  ;;  %4810 = vmatmul.msk.bf16.gmra.mxu1 %vm718_vm3, %v2618_v0  ;;  %v3835_v0 = vsel %vm5546_vm7, %v3833_v21, %v3834_v15  ;;  %v1051_v15 = vadd.f32 %v1050_v24, %v5744_v44  ;;  %v2590_v21 = vunpack.c.l.b16 %v2495_v6  ;;  %v2591_v33 = vunpack.c.l.b16 %v2498_v22 }
 0x18c   : > { %v1451_v13 = vadd.f32 %v1399_v58, %v1048_v49  ;;  %v3932_v49 = vunpack.c.l.b16 %v3832_v26  ;;  %v3933_v16 = vunpack.c.l.b16 %v3835_v0  ;;  %v3222_v9 = vrot.slane %v3221_v30, 4 }
 0x18d   : > { %v3232_v1 = vrot.slane %v3231_v51, 4  ;;  %v3236_v28 = vrot.slane %v3234_v41, 5  ;;  %v3838_v8 = vrot.slane %v6101_v7, 5  ;;  %v2619_v53 = vpack.c.b16 %v2591_v33, %v2590_v21  ;;  %v4780_v7 = vld [vmem:[%s5355_s28 + $0xf0] sm:$0xe] }
 0x18e   : > { %v2342_v40 = vpop.f32.mrf.mxu0  ;;  %v2501_v26 = vrot.slane %v5248_v39, 5  ;;  %v5019_v22 = vrot.slane %v5003_v43, 9 }
 0x18f   : > { %v1689_v18 = vpop.f32.mrf.mxu3  ;;  %v3237_v6 = vsel %vm5371_vm4, %v3232_v1, %v3236_v28  ;;  %v5086_v28 = vld [vmem:[%s5355_s28 + $0x1a4] sm:$0xff] }
 0x190   : > { %4922 = vmatmul.msk.bf16.gmra.mxu2 %vm718_vm3, %v5085_v37  ;;  %v1052_v2 = vpop.f32.mrf.mxu1  ;;  %v1741_v14 = vadd.f32 %v1689_v18, %v1451_v13  ;;  %v4948_v37 = vld [vmem:[%s5355_s28 + $0x1b0] sm:$0xf]  ;;  %v3962_v13 = vpack.c.b16 %v3933_v16, %v3932_v49  ;;  %v3227_v18 = vsel %vm5371_vm4, %v3222_v9, %v6122_v4  ;;  %v3840_v49 = vrot.slane %v3838_v8, 4  ;;  %v5249_v16 = vld [vmem:[%s5355_s28 + $0xf8] sm:$0x1] }
 0x191   : > { %v3239_v51 = vshrl.u32 %v4948_v37, 16  ;;  %v3841_v4 = vrot.slane %v6128_v23, 5  ;;  %v3533_v33 = vunpack.c.l.b16 %v3227_v18  ;;  %v2503_v9 = vrot.slane %v2501_v26, 4 }
 0x192   : > { %v6149_v44 = vadd.f32 %v2342_v40, %v1741_v14  ;;  %v3242_v40 = vshll.u32 %v4948_v37, 16  ;;  %v3248_v14 = vshll.u32 %v6147_v32, 16  ;;  %v3534_v43 = vunpack.c.l.b16 %v3237_v6 }
 0x193   : > { %v1402_v42 = vpop.f32.mrf.mxu2  ;;  %v3839_v37 = vsel %vm5546_vm7, %v5019_v22, %v3838_v8 }
 0x194   : > { %v1452_v58 = vadd.f32 %v1402_v42, %v1051_v15  ;;  %4986 = vmatmul.msk.bf16.gmra.mxu3 %vm718_vm3, %v3561_v59  ;;  %v3252_v59 = vshrl.u32 %v6147_v32, 16  ;;  %v1053_v15 = vadd.f32 %v1052_v2, %v5761_v11  ;;  %v2504_v42 = vrot.slane %v5249_v16, 5 }
 0x195   : > { %v3241_v11 = vrot.slane %v3239_v51, 4  ;;  %v3244_v2 = vrot.slane %v3242_v40, 5  ;;  %v6170_v23 = vrot.slane %v3248_v14, 5  ;;  %v3934_v22 = vunpack.c.l.b16 %v3839_v37  ;;  %v5004_v37 = vld [vmem:[%s5355_s28 + $0x1b0] sm:$0xe] }
 0x196   : > { %v2345_v24 = vpop.f32.mrf.mxu0  ;;  %v3254_v39 = vrot.slane %v3252_v59, 4  ;;  %v2505_v6 = vsel %vm5546_vm7, %v2503_v9, %v2504_v42 }
 0x197   : > { %v1692_v0 = vpop.f32.mrf.mxu3  ;;  %v3245_v14 = vor.u32 %v3244_v2, %v3241_v11 }
 0x198   : > { %v1055_v30 = vpop.f32.mrf.mxu1  ;;  %v1742_v41 = vadd.f32 %v1692_v0, %v1452_v58  ;;  %v4796_v58 = vrot.slane %v4780_v7, 9  ;;  %v6179_v7 = vld [vmem:[%s5355_s28 + $0x1b8] sm:$0x1]  ;;  %v3255_v59 = vor.u32 %v3254_v39, %v6170_v23 }
 0x199   : > { %5034 = vmatmul.msk.bf16.gmra.mxu0 %vm718_vm3, %v3962_v13  ;;  %v3246_v9 = vrot.slane %v3245_v14, 4 }
 0x19a   : > { %v6168_v13 = vadd.f32 %v2345_v24, %v1742_v41  ;;  %v2502_v18 = vsel %vm5546_vm7, %v4796_v58, %v2501_v26  ;;  %v3562_v24 = vpack.c.b16 %v3534_v43, %v3533_v33  ;;  %v1056_v26 = vadd.f32 %v1055_v30, %v5782_v57  ;;  %v6187_v58 = vld [vmem:[%s5355_s28 + $0x1c0] sm:$0xf] }
 0x19b   : > { %v1404_v21 = vpop.f32.mrf.mxu2  ;;  %4811 = vmatmul.msk.bf16.gmra.mxu1 %vm718_vm3, %v2619_v53  ;;  %v3842_v53 = vsel %vm5546_vm7, %v3840_v49, %v3841_v4  ;;  %v2593_v49 = vunpack.c.l.b16 %v2505_v6  ;;  %v3258_v4 = vshll.u32 %v6179_v7, 16  ;;  %v3845_v57 = vrot.slane %v6147_v32, 5 }
 0x19c   : > { %v1453_v1 = vadd.f32 %v1404_v21, %v1053_v15  ;;  %v3935_v40 = vunpack.c.l.b16 %v3842_v53  ;;  %v2592_v15 = vunpack.c.l.b16 %v2502_v18  ;;  %v4951_v21 = vld [vmem:[%s5355_s28 + $0x1bc] sm:$0xf]  ;;  %v3272_v53 = vshll.u32 %v6187_v58, 16 }
 0x19d   : > { %v3260_v43 = vrot.slane %v3258_v4, 5  ;;  %v3263_v2 = vshrl.u32 %v4951_v21, 16  ;;  %v3266_v39 = vshll.u32 %v4951_v21, 16  ;;  %v3276_v18 = vshrl.u32 %v6187_v58, 16 }
 0x19e   : > { %v2347_v0 = vpop.f32.mrf.mxu0  ;;  %v3963_v33 = vpack.c.b16 %v3935_v40, %v3934_v22  ;;  %v5251_v40 = vld [vmem:[%s5355_s28 + $0x104] sm:$0x1]  ;;  %v3848_v32 = vrot.slane %v6179_v7, 5  ;;  %v3847_v4 = vrot.slane %v3845_v57, 4  ;;  %v6208_v7 = vrot.slane %v3272_v53, 5 }
 0x19f   : > { %v1694_v8 = vpop.f32.mrf.mxu3  ;;  %v2511_v14 = vrot.slane %v5251_v40, 5  ;;  %v3268_v21 = vrot.slane %v3266_v39, 5  ;;  %v6214_v40 = vld [vmem:[%s5355_s28 + $0x1c4] sm:$0x1] }
 0x1a0   : > { %4923 = vmatmul.msk.bf16.gmra.mxu2 %vm718_vm3, %v5086_v28  ;;  %v1057_v51 = vpop.f32.mrf.mxu1  ;;  %v1743_v41 = vadd.f32 %v1694_v8, %v1453_v1  ;;  %v3256_v1 = vrot.slane %v3255_v59, 4  ;;  %v2620_v28 = vpack.c.b16 %v2593_v49, %v2592_v15  ;;  %v3251_v15 = vsel %vm5371_vm4, %v3246_v9, %v6170_v23 }
 0x1a1   : > { %v3535_v23 = vunpack.c.l.b16 %v3251_v15 }
 0x1a2   : > { %v6192_v30 = vadd.f32 %v2347_v0, %v1743_v41  ;;  %v4781_v0 = vld [vmem:[%s5355_s28 + $0xfc] sm:$0xe]  ;;  %v1058_v41 = vadd.f32 %v1057_v51, %v5797_v25  ;;  %v3261_v49 = vsel %vm5371_vm4, %v3256_v1, %v3260_v43 }
 0x1a3   : > { %v1407_v16 = vpop.f32.mrf.mxu2  ;;  %v4797_v25 = vrot.slane %v4781_v0, 9  ;;  %v3536_v9 = vunpack.c.l.b16 %v3261_v49 }
 0x1a4   : > { %v1454_v42 = vadd.f32 %v1407_v16, %v1056_v26  ;;  %4987 = vmatmul.msk.bf16.gmra.mxu3 %vm718_vm3, %v3562_v24  ;;  %v5250_v24 = vld [vmem:[%s5355_s28 + $0x100] sm:$0xf]  ;;  %v5020_v26 = vrot.slane %v5004_v37, 9  ;;  %v3278_v37 = vrot.slane %v3276_v18, 4 }
 0x1a5   : > { %v2508_v22 = vrot.slane %v5250_v24, 5  ;;  %v3563_v0 = vpack.c.b16 %v3536_v9, %v3535_v23  ;;  %v5252_v9 = vld [vmem:[%s5355_s28 + $0x10c] sm:$0xf] }
 0x1a6   : > { %v2350_v11 = vpop.f32.mrf.mxu0  ;;  %v3846_v43 = vsel %vm5546_vm7, %v5020_v26, %v3845_v57  ;;  %v3282_v57 = vshll.u32 %v6214_v40, 16 }
 0x1a7   : > { %v1697_v6 = vpop.f32.mrf.mxu3  ;;  %v2510_v51 = vrot.slane %v2508_v22, 4 }
 0x1a8   : > { %v1060_v8 = vpop.f32.mrf.mxu1  ;;  %v1744_v59 = vadd.f32 %v1697_v6, %v1454_v42  ;;  %v3265_v42 = vrot.slane %v3263_v2, 4  ;;  %v5087_v6 = vld [vmem:[%s5355_s28 + $0x1b0] sm:$0xff] }
 0x1a9   : > { %5035 = vmatmul.msk.bf16.gmra.mxu0 %vm718_vm3, %v3963_v33  ;;  %v2512_v18 = vsel %vm5546_vm7, %v2510_v51, %v2511_v14  ;;  %v6233_v51 = vld [vmem:[%s5355_s28 + $0x1cc] sm:$0xf] }
 0x1aa   : > { %v6211_v24 = vadd.f32 %v2350_v11, %v1744_v59  ;;  %v3269_v2 = vor.u32 %v3268_v21, %v3265_v42  ;;  %v2509_v11 = vsel %vm5546_vm7, %v4797_v25, %v2508_v22  ;;  %v3279_v59 = vor.u32 %v3278_v37, %v6208_v7  ;;  %v5005_v37 = vld [vmem:[%s5355_s28 + $0x1bc] sm:$0xe] }
 0x1ab   : > { %v1409_v16 = vpop.f32.mrf.mxu2  ;;  %4812 = vmatmul.msk.bf16.gmra.mxu1 %vm718_vm3, %v2620_v28  ;;  %v3849_v28 = vsel %vm5546_vm7, %v3847_v4, %v3848_v32  ;;  %v1061_v32 = vadd.f32 %v1060_v8, %v5673_v63  ;;  %v2594_v4 = vunpack.c.l.b16 %v2509_v11  ;;  %v2595_v22 = vunpack.c.l.b16 %v2512_v18 }
 0x1ac   : > { %v1455_v33 = vadd.f32 %v1409_v16, %v1058_v41  ;;  %v3936_v41 = vunpack.c.l.b16 %v3846_v43  ;;  %v3937_v15 = vunpack.c.l.b16 %v3849_v28  ;;  %v3270_v42 = vrot.slane %v3269_v2, 4 }
 0x1ad   : > { %v3280_v14 = vrot.slane %v3279_v59, 4  ;;  %v3284_v21 = vrot.slane %v3282_v57, 5  ;;  %v3852_v25 = vrot.slane %v6187_v58, 5  ;;  %v2621_v23 = vpack.c.b16 %v2595_v22, %v2594_v4  ;;  %v4782_v58 = vld [vmem:[%s5355_s28 + $0x108] sm:$0xe] }
 0x1ae   : > { %v2352_v1 = vpop.f32.mrf.mxu0  ;;  %v2515_v43 = vrot.slane %v5252_v9, 5  ;;  %v5021_v18 = vrot.slane %v5005_v37, 9 }
 0x1af   : > { %v1699_v39 = vpop.f32.mrf.mxu3  ;;  %v3285_v11 = vsel %vm5371_vm4, %v3280_v14, %v3284_v21  ;;  %v5088_v21 = vld [vmem:[%s5355_s28 + $0x1bc] sm:$0xff] }
 0x1b0   : > { %4924 = vmatmul.msk.bf16.gmra.mxu2 %vm718_vm3, %v5087_v6  ;;  %v1062_v53 = vpop.f32.mrf.mxu1  ;;  %v1745_v26 = vadd.f32 %v1699_v39, %v1455_v33  ;;  %v4954_v6 = vld [vmem:[%s5355_s28 + $0x1c8] sm:$0xf]  ;;  %v3964_v33 = vpack.c.b16 %v3937_v15, %v3936_v41  ;;  %v3275_v39 = vsel %vm5371_vm4, %v3270_v42, %v6208_v7  ;;  %v3854_v41 = vrot.slane %v3852_v25, 4  ;;  %v5253_v15 = vld [vmem:[%s5355_s28 + $0x110] sm:$0x1] }
 0x1b1   : > { %v3287_v59 = vshrl.u32 %v4954_v6, 16  ;;  %v3855_v7 = vrot.slane %v6214_v40, 5  ;;  %v3537_v22 = vunpack.c.l.b16 %v3275_v39  ;;  %v2517_v42 = vrot.slane %v2515_v43, 4 }
 0x1b2   : > { %v6235_v63 = vadd.f32 %v2352_v1, %v1745_v26  ;;  %v3290_v1 = vshll.u32 %v4954_v6, 16  ;;  %v3296_v26 = vshll.u32 %v6233_v51, 16  ;;  %v3538_v37 = vunpack.c.l.b16 %v3285_v11 }
 0x1b3   : > { %v1412_v49 = vpop.f32.mrf.mxu2  ;;  %v3853_v6 = vsel %vm5546_vm7, %v5021_v18, %v3852_v25 }
 0x1b4   : > { %v1456_v16 = vadd.f32 %v1412_v49, %v1061_v32  ;;  %4988 = vmatmul.msk.bf16.gmra.mxu3 %vm718_vm3, %v3563_v0  ;;  %v3300_v0 = vshrl.u32 %v6233_v51, 16  ;;  %v1063_v32 = vadd.f32 %v1062_v53, %v5692_v10  ;;  %v2518_v49 = vrot.slane %v5253_v15, 5 }
 0x1b5   : > { %v3289_v10 = vrot.slane %v3287_v59, 4  ;;  %v3292_v53 = vrot.slane %v3290_v1, 5  ;;  %v6256_v40 = vrot.slane %v3296_v26, 5  ;;  %v3938_v18 = vunpack.c.l.b16 %v3853_v6  ;;  %v5006_v6 = vld [vmem:[%s5355_s28 + $0x1c8] sm:$0xe] }
 0x1b6   : > { %v2355_v8 = vpop.f32.mrf.mxu0  ;;  %v3302_v9 = vrot.slane %v3300_v0, 4  ;;  %v2519_v11 = vsel %vm5546_vm7, %v2517_v42, %v2518_v49 }
 0x1b7   : > { %v1702_v28 = vpop.f32.mrf.mxu3  ;;  %v3293_v26 = vor.u32 %v3292_v53, %v3289_v10 }
 0x1b8   : > { %v1065_v2 = vpop.f32.mrf.mxu1  ;;  %v1746_v57 = vadd.f32 %v1702_v28, %v1456_v16  ;;  %v4798_v16 = vrot.slane %v4782_v58, 9  ;;  %v6265_v58 = vld [vmem:[%s5355_s28 + $0x1d0] sm:$0x1]  ;;  %v3303_v0 = vor.u32 %v3302_v9, %v6256_v40 }
 0x1b9   : > { %5036 = vmatmul.msk.bf16.gmra.mxu0 %vm718_vm3, %v3964_v33  ;;  %v3294_v42 = vrot.slane %v3293_v26, 4 }
 0x1ba   : > { %v6254_v33 = vadd.f32 %v2355_v8, %v1746_v57  ;;  %v2516_v39 = vsel %vm5546_vm7, %v4798_v16, %v2515_v43  ;;  %v3564_v8 = vpack.c.b16 %v3538_v37, %v3537_v22  ;;  %v1066_v43 = vadd.f32 %v1065_v2, %v5713_v56  ;;  %v6273_v16 = vld [vmem:[%s5355_s28 + $0x1d8] sm:$0xf] }
 0x1bb   : > { %v1414_v4 = vpop.f32.mrf.mxu2  ;;  %4813 = vmatmul.msk.bf16.gmra.mxu1 %vm718_vm3, %v2621_v23  ;;  %v3856_v23 = vsel %vm5546_vm7, %v3854_v41, %v3855_v7  ;;  %v2597_v41 = vunpack.c.l.b16 %v2519_v11  ;;  %v3306_v7 = vshll.u32 %v6265_v58, 16  ;;  %v3859_v56 = vrot.slane %v6233_v51, 5 }
 0x1bc   : > { %v1457_v14 = vadd.f32 %v1414_v4, %v1063_v32  ;;  %v3939_v1 = vunpack.c.l.b16 %v3856_v23  ;;  %v2596_v32 = vunpack.c.l.b16 %v2516_v39  ;;  %v4957_v4 = vld [vmem:[%s5355_s28 + $0x1d4] sm:$0xf]  ;;  %v3320_v23 = vshll.u32 %v6273_v16, 16 }
 0x1bd   : > { %v3308_v37 = vrot.slane %v3306_v7, 5  ;;  %v3311_v53 = vshrl.u32 %v4957_v4, 16  ;;  %v3314_v9 = vshll.u32 %v4957_v4, 16  ;;  %v3324_v39 = vshrl.u32 %v6273_v16, 16 }
 0x1be   : > { %v2357_v28 = vpop.f32.mrf.mxu0  ;;  %v3965_v22 = vpack.c.b16 %v3939_v1, %v3938_v18  ;;  %v5255_v1 = vld [vmem:[%s5355_s28 + $0x11c] sm:$0x1]  ;;  %v3862_v51 = vrot.slane %v6265_v58, 5  ;;  %v3861_v7 = vrot.slane %v3859_v56, 4  ;;  %v3322_v58 = vrot.slane %v3320_v23, 5 }
 0x1bf   : > { %v1704_v25 = vpop.f32.mrf.mxu3  ;;  %v2525_v26 = vrot.slane %v5255_v1, 5  ;;  %v3316_v4 = vrot.slane %v3314_v9, 5 }
 0x1c0   : > { %4925 = vmatmul.msk.bf16.gmra.mxu2 %vm718_vm3, %v5088_v21  ;;  %v1067_v59 = vpop.f32.mrf.mxu1  ;;  %v1747_v57 = vadd.f32 %v1704_v25, %v1457_v14  ;;  %v3304_v14 = vrot.slane %v3303_v0, 4  ;;  %v2622_v21 = vpack.c.b16 %v2597_v41, %v2596_v32  ;;  %v3299_v32 = vsel %vm5371_vm4, %v3294_v42, %v6256_v40  ;;  %v6298_v42 = vld [vmem:[%s5355_s28 + $0x1dc] sm:$0x1] }
 0x1c1   : > { %v3539_v1 = vunpack.c.l.b16 %v3299_v32 }
 0x1c2   : > { %v6278_v2 = vadd.f32 %v2357_v28, %v1747_v57  ;;  %v4783_v28 = vld [vmem:[%s5355_s28 + $0x114] sm:$0xe]  ;;  %v1068_v57 = vadd.f32 %v1067_v59, %v5732_v20  ;;  %v3309_v41 = vsel %vm5371_vm4, %v3304_v14, %v3308_v37 }
 0x1c3   : > { %v1417_v15 = vpop.f32.mrf.mxu2  ;;  %v3540_v40 = vunpack.c.l.b16 %v3309_v41 }
 0x1c4   : > { %v1458_v49 = vadd.f32 %v1417_v15, %v1066_v43  ;;  %4989 = vmatmul.msk.bf16.gmra.mxu3 %vm718_vm3, %v3564_v8  ;;  %6922 = vst [vmem:[#allocation4_spill] sm:$0xff] %v6278_v2  ;;  %v5254_v8 = vld [vmem:[%s5355_s28 + $0x118] sm:$0xf]  ;;  %v5022_v43 = vrot.slane %v5006_v6, 9  ;;  %v3326_v6 = vrot.slane %v3324_v39, 4 }
 0x1c5   : > { %v2522_v18 = vrot.slane %v5254_v8, 5  ;;  %v4799_v8 = vrot.slane %v4783_v28, 9 }
 0x1c6   : > { %v2360_v10 = vpop.f32.mrf.mxu0  ;;  %v3860_v14 = vsel %vm5546_vm7, %v5022_v43, %v3859_v56  ;;  %v3327_v39 = vor.u32 %v3326_v6, %v3322_v58  ;;  %v3565_v43 = vpack.c.b16 %v3540_v40, %v3539_v1  ;;  %v4960_v6 = vld [vmem:[%s5355_s28 + $0x1e0] sm:$0xf] }
 0x1c7   : > { %v1707_v11 = vpop.f32.mrf.mxu3  ;;  %v2524_v20 = vrot.slane %v2522_v18, 4  ;;  %v3940_v28 = vunpack.c.l.b16 %v3860_v14 }
 0x1c8   : > { %v1070_v25 = vpop.f32.mrf.mxu1  ;;  %v1748_v0 = vadd.f32 %v1707_v11, %v1458_v49  ;;  %v3313_v49 = vrot.slane %v3311_v53, 4 }
 0x1c9   : > { %5037 = vmatmul.msk.bf16.gmra.mxu0 %vm718_vm3, %v3965_v22  ;;  %v5089_v22 = vld [vmem:[%s5355_s28 + $0x1c8] sm:$0xff]  ;;  %v2526_v23 = vsel %vm5546_vm7, %v2524_v20, %v2525_v26  ;;  %v5007_v26 = vld [vmem:[%s5355_s28 + $0x1d4] sm:$0xe] }
 0x1ca   : > { %v6295_v59 = vadd.f32 %v2360_v10, %v1748_v0  ;;  %v3317_v37 = vor.u32 %v3316_v4, %v3313_v49  ;;  %v2523_v10 = vsel %vm5546_vm7, %v4799_v8, %v2522_v18  ;;  %v3330_v0 = vshll.u32 %v6298_v42, 16  ;;  %v6316_v8 = vld [vmem:[%s5355_s28 + $0x1e4] sm:$0xf] }
 0x1cb   : > { %v1419_v15 = vpop.f32.mrf.mxu2  ;;  %4814 = vmatmul.msk.bf16.gmra.mxu1 %vm718_vm3, %v2622_v21  ;;  %v3863_v21 = vsel %vm5546_vm7, %v3861_v7, %v3862_v51  ;;  %v1071_v51 = vadd.f32 %v1070_v25, %v5752_v62  ;;  %v2598_v41 = vunpack.c.l.b16 %v2523_v10  ;;  %v2599_v7 = vunpack.c.l.b16 %v2526_v23  ;;  %v5256_v10 = vld [vmem:[%s5355_s28 + $0x124] sm:$0xf] }
 0x1cc   : > { %v1459_v11 = vadd.f32 %v1419_v15, %v1068_v57  ;;  %v3941_v57 = vunpack.c.l.b16 %v3863_v21  ;;  %v3318_v18 = vrot.slane %v3317_v37, 4  ;;  %v3328_v49 = vrot.slane %v3327_v39, 4 }
 0x1cd   : > { %v3332_v4 = vrot.slane %v3330_v0, 5  ;;  %v2623_v20 = vpack.c.b16 %v2599_v7, %v2598_v41  ;;  %v5023_v1 = vrot.slane %v5007_v26, 9  ;;  %v2529_v23 = vrot.slane %v5256_v10, 5 }
 0x1ce   : > { %v2362_v2 = vpop.f32.mrf.mxu0  ;;  %v3323_v21 = vsel %vm5371_vm4, %v3318_v18, %v3322_v58  ;;  %v3335_v39 = vshrl.u32 %v4960_v6, 16  ;;  %v3338_v0 = vshll.u32 %v4960_v6, 16  ;;  %v5090_v18 = vld [vmem:[%s5355_s28 + $0x1d4] sm:$0xff] }
 0x1cf   : > { %v1709_v53 = vpop.f32.mrf.mxu3  ;;  %v3333_v37 = vsel %vm5371_vm4, %v3328_v49, %v3332_v4  ;;  %v2531_v49 = vrot.slane %v2529_v23, 4  ;;  %v5257_v4 = vld [vmem:[%s5355_s28 + $0x128] sm:$0x1] }
 0x1d0   : > { %4926 = vmatmul.msk.bf16.gmra.mxu2 %vm718_vm3, %v5089_v22  ;;  %v1072_v9 = vpop.f32.mrf.mxu1  ;;  %v1749_v56 = vadd.f32 %v1709_v53, %v1459_v11  ;;  %v3966_v11 = vpack.c.b16 %v3941_v57, %v3940_v28  ;;  %v3866_v22 = vrot.slane %v6273_v16, 5  ;;  %v4784_v53 = vld [vmem:[%s5355_s28 + $0x120] sm:$0xe]  ;;  %v3541_v57 = vunpack.c.l.b16 %v3323_v21  ;;  %v6343_v21 = vld [vmem:[%s5355_s28 + $0x1e8] sm:$0x1] }
 0x1d1   : > { %v4800_v7 = vrot.slane %v4784_v53, 9  ;;  %v2532_v26 = vrot.slane %v5257_v4, 5 }
 0x1d2   : > { %v6318_v62 = vadd.f32 %v2362_v2, %v1749_v56  ;;  %v3344_v2 = vshll.u32 %v6316_v8, 16  ;;  %v3348_v56 = vshrl.u32 %v6316_v8, 16  ;;  %v3868_v58 = vrot.slane %v3866_v22, 4 }
 0x1d3   : > { %v1422_v32 = vpop.f32.mrf.mxu2  ;;  %v3867_v41 = vsel %vm5546_vm7, %v5023_v1, %v3866_v22  ;;  %v2530_v53 = vsel %vm5546_vm7, %v4800_v7, %v2529_v23  ;;  %v2533_v10 = vsel %vm5546_vm7, %v2531_v49, %v2532_v26  ;;  %v5008_v49 = vld [vmem:[%s5355_s28 + $0x1e0] sm:$0xe] }
 0x1d4   : > { %v1460_v15 = vadd.f32 %v1422_v32, %v1071_v51  ;;  %4990 = vmatmul.msk.bf16.gmra.mxu3 %vm718_vm3, %v3565_v43  ;;  %v1073_v43 = vadd.f32 %v1072_v9, %v5774_v29  ;;  %v3869_v51 = vrot.slane %v6298_v42, 5  ;;  %v3542_v32 = vunpack.c.l.b16 %v3333_v37 }
 0x1d5   : > { %v3337_v29 = vrot.slane %v3335_v39, 4  ;;  %v3340_v9 = vrot.slane %v3338_v0, 5  ;;  %v6338_v42 = vrot.slane %v3344_v2, 5  ;;  %v3942_v37 = vunpack.c.l.b16 %v3867_v41  ;;  %v6355_v41 = vld [vmem:[%s5355_s28 + $0x1f0] sm:$0xf] }
 0x1d6   : > { %v2365_v25 = vpop.f32.mrf.mxu0  ;;  %v3566_v1 = vpack.c.b16 %v3542_v32, %v3541_v57  ;;  %v4963_v57 = vld [vmem:[%s5355_s28 + $0x1ec] sm:$0xf] }
 0x1d7   : > { %v1712_v40 = vpop.f32.mrf.mxu3  ;;  %v3341_v0 = vor.u32 %v3340_v9, %v3337_v29  ;;  %v3362_v9 = vshll.u32 %v4963_v57, 16 }
 0x1d8   : > { %v1075_v14 = vpop.f32.mrf.mxu1  ;;  %v1750_v16 = vadd.f32 %v1712_v40, %v1460_v15 }
 0x1d9   : > { %5038 = vmatmul.msk.bf16.gmra.mxu0 %vm718_vm3, %v3966_v11  ;;  %v3350_v11 = vrot.slane %v3348_v56, 4  ;;  %v1076_v56 = vadd.f32 %v1075_v14, %v5793_v12  ;;  %v3342_v7 = vrot.slane %v3341_v0, 4  ;;  %v3873_v12 = vrot.slane %v6316_v8, 5 }
 0x1da   : > { %v6336_v6 = vadd.f32 %v2365_v25, %v1750_v16  ;;  %v3359_v14 = vshrl.u32 %v4963_v57, 16 }
 0x1db   : > { %v1424_v28 = vpop.f32.mrf.mxu2  ;;  %4815 = vmatmul.msk.bf16.gmra.mxu1 %vm718_vm3, %v2623_v20  ;;  %v3870_v20 = vsel %vm5546_vm7, %v3868_v58, %v3869_v51  ;;  %v3351_v2 = vor.u32 %v3350_v11, %v6338_v42  ;;  %v2600_v51 = vunpack.c.l.b16 %v2530_v53  ;;  %v3368_v11 = vshll.u32 %v6355_v41, 16  ;;  %v5258_v53 = vld [vmem:[%s5355_s28 + $0x130] sm:$0xf] }
 0x1dc   : > { %v1461_v15 = vadd.f32 %v1424_v28, %v1073_v43  ;;  %v3943_v16 = vunpack.c.l.b16 %v3870_v20  ;;  %v3354_v43 = vshll.u32 %v6343_v21, 16  ;;  %v2601_v28 = vunpack.c.l.b16 %v2533_v10 }
 0x1dd   : > { %v3372_v20 = vshrl.u32 %v6355_v41, 16  ;;  %v2536_v10 = vrot.slane %v5258_v53, 5  ;;  %v3347_v8 = vsel %vm5371_vm4, %v3342_v7, %v6338_v42  ;;  %v3370_v42 = vrot.slane %v3368_v11, 5  ;;  %v5091_v7 = vld [vmem:[%s5355_s28 + $0x1e0] sm:$0xff] }
 0x1de   : > { %v2367_v40 = vpop.f32.mrf.mxu0  ;;  %v3967_v23 = vpack.c.b16 %v3943_v16, %v3942_v37  ;;  %v2624_v29 = vpack.c.b16 %v2601_v28, %v2600_v51  ;;  %v4785_v37 = vld [vmem:[%s5355_s28 + $0x12c] sm:$0xe]  ;;  %v3364_v28 = vrot.slane %v3362_v9, 5 }
 0x1df   : > { %v1714_v22 = vpop.f32.mrf.mxu3  ;;  %v4801_v51 = vrot.slane %v4785_v37, 9  ;;  %v3374_v57 = vrot.slane %v3372_v20, 4 }
 0x1e0   : > { %4927 = vmatmul.msk.bf16.gmra.mxu2 %vm718_vm3, %v5090_v18  ;;  %v1077_v25 = vpop.f32.mrf.mxu1  ;;  %v1751_v39 = vadd.f32 %v1714_v22, %v1461_v15  ;;  %v3352_v15 = vrot.slane %v3351_v2, 4  ;;  %v3356_v18 = vrot.slane %v3354_v43, 5  ;;  %v3361_v43 = vrot.slane %v3359_v14, 4 }
 0x1e1   : > { %v1078_v0 = vadd.f32 %v1077_v25, %v5810_v36  ;;  %v3543_v36 = vunpack.c.l.b16 %v3347_v8  ;;  %v3375_v53 = vor.u32 %v3374_v57, %v3370_v42 }
 0x1e2   : > { %v6360_v4 = vadd.f32 %v2367_v40, %v1751_v39  ;;  %v5024_v40 = vrot.slane %v5008_v49, 9  ;;  %v3876_v39 = vrot.slane %v6343_v21, 5  ;;  %v3357_v2 = vsel %vm5371_vm4, %v3352_v15, %v3356_v18  ;;  %v5259_v49 = vld [vmem:[%s5355_s28 + $0x134] sm:$0x1] }
 0x1e3   : > { %v1427_v58 = vpop.f32.mrf.mxu2  ;;  %v2538_v21 = vrot.slane %v2536_v10, 4  ;;  %v3544_v25 = vunpack.c.l.b16 %v3357_v2  ;;  %v6382_v15 = vld [vmem:[%s5355_s28 + $0x1f4] sm:$0x1]  ;;  %v3365_v9 = vor.u32 %v3364_v28, %v3361_v43  ;;  %v3376_v28 = vrot.slane %v3375_v53, 4 }
 0x1e4   : > { %v1462_v32 = vadd.f32 %v1427_v58, %v1076_v56  ;;  %4991 = vmatmul.msk.bf16.gmra.mxu3 %vm718_vm3, %v3566_v1  ;;  %v3875_v56 = vrot.slane %v3873_v12, 4  ;;  %v3874_v14 = vsel %vm5546_vm7, %v5024_v40, %v3873_v12 }
 0x1e5   : > { %v3567_v8 = vpack.c.b16 %v3544_v25, %v3543_v36  ;;  %v3944_v40 = vunpack.c.l.b16 %v3874_v14  ;;  %v3366_v43 = vrot.slane %v3365_v9, 4 }
 0x1e6   : > { %v2370_v26 = vpop.f32.mrf.mxu0 }
 0x1e7   : > { %v1717_v22 = vpop.f32.mrf.mxu3  ;;  %v3371_v25 = vsel %vm5371_vm4, %v3366_v43, %v3370_v42  ;;  %v4786_v42 = vld [vmem:[%s5355_s28 + $0x138] sm:$0xe]  ;;  %v5092_v43 = vld [vmem:[%s5355_s28 + $0x1ec] sm:$0xff] }
 0x1e8   : > { %v6364_v1 = vpop.f32.mrf.mxu1  ;;  %v1752_v16 = vadd.f32 %v1717_v22, %v1462_v32 }
 0x1e9   : > { %5039 = vmatmul.msk.bf16.gmra.mxu0 %vm718_vm3, %v3967_v23  ;;  %v2539_v23 = vrot.slane %v5259_v49, 5 }
 0x1ea   : > { %v6379_v22 = vadd.f32 %v2370_v26, %v1752_v16  ;;  %v2537_v26 = vsel %vm5546_vm7, %v4801_v51, %v2536_v10  ;;  %v3378_v16 = vshll.u32 %v6382_v15, 16  ;;  %v4966_v10 = vld [vmem:[%s5355_s28 + $0x1f8] sm:$0xf]  ;;  %v3880_v51 = vrot.slane %v6355_v41, 5 }
 0x1eb   : > { %v1429_v58 = vpop.f32.mrf.mxu2  ;;  %4816 = vmatmul.msk.bf16.gmra.mxu1 %vm718_vm3, %v2624_v29  ;;  %v3877_v29 = vsel %vm5546_vm7, %v3875_v56, %v3876_v39  ;;  %v2540_v37 = vsel %vm5546_vm7, %v2538_v21, %v2539_v23  ;;  %v2602_v2 = vunpack.c.l.b16 %v2537_v26  ;;  %v6399_v21 = vld [vmem:[%s5355_s28 + $0x1fc] sm:$0xf]  ;;  %v3383_v14 = vshrl.u32 %v4966_v10, 16 }
 0x1ec   : > { %v1463_v32 = vadd.f32 %v1429_v58, %v1078_v0  ;;  %6923 = vst [vmem:[#allocation5_spill] sm:$0xff] %v6379_v22  ;;  %v3945_v39 = vunpack.c.l.b16 %v3877_v29  ;;  %v2603_v56 = vunpack.c.l.b16 %v2540_v37  ;;  %v5009_v58 = vld [vmem:[%s5355_s28 + $0x1ec] sm:$0xe]  ;;  %v5260_v26 = vld [vmem:[%s5355_s28 + $0x13c] sm:$0xf]  ;;  %v3386_v53 = vshll.u32 %v4966_v10, 16 }
 0x1ed   : > { %v2543_v37 = vrot.slane %v5260_v26, 5  ;;  %v4983_v22 = vld [vmem:[%s5355_s28 + $0x23c] sm:$0x1] }
 0x1ee   : > { %v2372_v18 = vpop.f32.mrf.mxu0  ;;  %v3968_v57 = vpack.c.b16 %v3945_v39, %v3944_v40  ;;  %v2625_v36 = vpack.c.b16 %v2603_v56, %v2602_v2  ;;  %v3385_v56 = vrot.slane %v3383_v14, 4 }
 0x1ef   : > { %v1719_v11 = vpop.f32.mrf.mxu3 }
 0x1f0   : > { %4928 = vmatmul.msk.bf16.gmra.mxu2 %vm718_vm3, %v5091_v7  ;;  %v2698_v20 = vpop.f32.mrf.mxu1  ;;  %v1753_v12 = vadd.f32 %v1719_v11, %v1463_v32  ;;  %v3380_v7 = vrot.slane %v3378_v16, 5  ;;  %v5025_v32 = vrot.slane %v5009_v58, 9  ;;  %v3883_v11 = vrot.slane %v6382_v15, 5 }
 0x1f1   : > { %v3882_v16 = vrot.slane %v3880_v51, 4  ;;  %v3545_v15 = vunpack.c.l.b16 %v3371_v25  ;;  %v2777_v2 = vadd.f32 %v2698_v20, %v5840_v50  ;;  %v4802_v58 = vrot.slane %v4786_v42, 9 }
 0x1f2   : > { %v6401_v49 = vadd.f32 %v2372_v18, %v1753_v12  ;;  %v3381_v41 = vsel %vm5371_vm4, %v3376_v28, %v3380_v7  ;;  %v2776_v18 = vadd.f32 %v6364_v1, %v5827_v61  ;;  %v3392_v12 = vshll.u32 %v6399_v21, 16  ;;  %v5261_v7 = vld [vmem:[%s5355_s28 + $0x140] sm:$0x1] }
 0x1f3   : > { %v2982_v0 = vpop.f32.mrf.mxu2  ;;  %v3881_v40 = vsel %vm5546_vm7, %v5025_v32, %v3880_v51  ;;  %v3546_v1 = vunpack.c.l.b16 %v3381_v41  ;;  %v2545_v28 = vrot.slane %v2543_v37, 4  ;;  %v2546_v10 = vrot.slane %v5261_v7, 5  ;;  %v6434_v51 = vld [vmem:[%s5355_s28 + $0x200] sm:$0x1]  ;;  %v5010_v7 = vld [vmem:[%s5355_s28 + $0x1f8] sm:$0xe] }
 0x1f4   : > { %4992 = vmatmul.msk.bf16.gmra.mxu3 %vm718_vm3, %v3567_v8  ;;  %6924 = vst [vmem:[#allocation6_spill] sm:$0xff] %v6401_v49  ;;  %v3396_v8 = vshrl.u32 %v6399_v21, 16  ;;  %v3062_v39 = vadd.f32 %v2982_v0, %v2776_v18  ;;  %v3884_v50 = vsel %vm5546_vm7, %v3882_v16, %v3883_v11  ;;  %v6431_v20 = vrot.slane %v3392_v12, 5 }
 0x1f5   : > { %v3946_v25 = vunpack.c.l.b16 %v3881_v40  ;;  %v3947_v41 = vunpack.c.l.b16 %v3884_v50  ;;  %v2544_v18 = vsel %vm5546_vm7, %v4802_v58, %v2543_v37  ;;  %v2547_v11 = vsel %vm5546_vm7, %v2545_v28, %v2546_v10  ;;  %v4969_v37 = vld [vmem:[%s5355_s28 + $0x204] sm:$0xf]  ;;  %v6450_v58 = vld [vmem:[%s5355_s28 + $0x208] sm:$0xf] }
 0x1f6   : > { %v4036_v23 = vpop.f32.mrf.mxu0  ;;  %v3398_v0 = vrot.slane %v3396_v8, 4  ;;  %v3568_v12 = vpack.c.b16 %v3546_v1, %v3545_v15  ;;  %v3402_v8 = vshll.u32 %v6434_v51, 16  ;;  %v3887_v10 = vrot.slane %v6399_v21, 5 }
 0x1f7   : > { %v3639_v29 = vpop.f32.mrf.mxu3  ;;  %v3969_v15 = vpack.c.b16 %v3947_v41, %v3946_v25  ;;  %v3416_v50 = vshll.u32 %v6450_v58, 16  ;;  %v5026_v41 = vrot.slane %v5010_v7, 9  ;;  %v5263_v7 = vld [vmem:[%s5355_s28 + $0x14c] sm:$0x1] }
 0x1f8   : > { %v6405_v9 = vpop.f32.mrf.mxu1  ;;  %v3719_v32 = vadd.f32 %v3639_v29, %v3062_v39  ;;  %v3399_v29 = vor.u32 %v3398_v0, %v6431_v20  ;;  %v3404_v28 = vrot.slane %v3402_v8, 5  ;;  %v3420_v0 = vshrl.u32 %v6450_v58, 16  ;;  %v4787_v8 = vld [vmem:[%s5355_s28 + $0x144] sm:$0xe] }
 0x1f9   : > { %5040 = vmatmul.msk.bf16.gmra.mxu0 %vm718_vm3, %v3968_v57  ;;  %v3388_v57 = vrot.slane %v3386_v53, 5  ;;  %v2778_v21 = vadd.f32 %v6405_v9, %v5853_v31 }
 0x1fa   : > { %v6444_v40 = vadd.f32 %v4036_v23, %v3719_v32 }
 0x1fb   : > { %v2984_v61 = vpop.f32.mrf.mxu2  ;;  %4817 = vmatmul.msk.bf16.gmra.mxu1 %vm718_vm3, %v2625_v36  ;;  %v3389_v16 = vor.u32 %v3388_v57, %v3385_v56  ;;  %v3400_v56 = vrot.slane %v3399_v29, 4  ;;  %v3407_v57 = vshrl.u32 %v4969_v37, 16  ;;  %v3889_v29 = vrot.slane %v3887_v10, 4 }
 0x1fc   : > { %v3063_v26 = vadd.f32 %v2984_v61, %v2777_v2  ;;  %v2604_v61 = vunpack.c.l.b16 %v2544_v18  ;;  %v3890_v18 = vrot.slane %v6434_v51, 5 }
 0x1fd   : > { %v3390_v1 = vrot.slane %v3389_v16, 4  ;;  %v3409_v51 = vrot.slane %v3407_v57, 4 }
 0x1fe   : > { %v4038_v36 = vpop.f32.mrf.mxu0 }
 0x1ff   : > { %v3641_v14 = vpop.f32.mrf.mxu3 }
 0x200   : > { %4929 = vmatmul.msk.bf16.gmra.mxu2 %vm718_vm3, %v5092_v43  ;;  %v2703_v53 = vpop.f32.mrf.mxu1  ;;  %v3720_v42 = vadd.f32 %v3641_v14, %v3063_v26  ;;  %v2605_v43 = vunpack.c.l.b16 %v2547_v11  ;;  %v3410_v26 = vshll.u32 %v4969_v37, 16  ;;  %v5262_v11 = vld [vmem:[%s5355_s28 + $0x148] sm:$0xf]  ;;  %v3422_v37 = vrot.slane %v3420_v0, 4 }
 0x201   : > { %v2550_v16 = vrot.slane %v5262_v11, 5  ;;  %v2779_v31 = vadd.f32 %v2703_v53, %v5866_v35  ;;  %v2553_v11 = vrot.slane %v5263_v7, 5 }
 0x202   : > { %v6446_v39 = vadd.f32 %v4038_v36, %v3720_v42  ;;  %v2626_v36 = vpack.c.b16 %v2605_v43, %v2604_v61  ;;  %v3395_v42 = vsel %vm5371_vm4, %v3390_v1, %v6431_v20  ;;  %v3412_v61 = vrot.slane %v3410_v26, 5  ;;  %v6483_v20 = vld [vmem:[%s5355_s28 + $0x20c] sm:$0x1]  ;;  %v5093_v1 = vld [vmem:[%s5355_s28 + $0x1f8] sm:$0xff] }
 0x203   : > { %v2987_v2 = vpop.f32.mrf.mxu2  ;;  %v6478_v43 = vrot.slane %v3416_v50, 5  ;;  %v3888_v26 = vsel %vm5546_vm7, %v5026_v41, %v3887_v10  ;;  %v3426_v50 = vshll.u32 %v6483_v20, 16 }
 0x204   : > { %v5102_v23 = vpack.c.bf16 %v6446_v39, %v6444_v40  ;;  %4993 = vmatmul.msk.bf16.gmra.mxu3 %vm718_vm3, %v3568_v12  ;;  %v3405_v12 = vsel %vm5371_vm4, %v3400_v56, %v3404_v28  ;;  %v4803_v56 = vrot.slane %v4787_v8, 9  ;;  %v2552_v28 = vrot.slane %v2550_v16, 4 }
 0x205   : > { %v3548_v57 = vunpack.c.l.b16 %v3405_v12  ;;  %v3413_v35 = vor.u32 %v3412_v61, %v3409_v51  ;;  %v3423_v53 = vor.u32 %v3422_v37, %v6478_v43  ;;  %v3948_v12 = vunpack.c.l.b16 %v3888_v26 }
 0x206   : > { %5103 = vst [vmem:[%s6455_s19] sm:$0xff] %v5102_v23   ;;  %v4041_v32 = vpop.f32.mrf.mxu0  ;;  %v3064_v23 = vadd.f32 %v2987_v2, %v2778_v21  ;;  %v3891_v2 = vsel %vm5546_vm7, %v3889_v29, %v3890_v18  ;;  %v2554_v10 = vsel %vm5546_vm7, %v2552_v28, %v2553_v11  ;;  %v3428_v61 = vrot.slane %v3426_v50, 5  ;;  %v4972_v28 = vld [vmem:[%s5355_s28 + $0x210] sm:$0xf]  ;;  %v6512_v11 = vld [vmem:[%s5355_s28 + $0x214] sm:$0xf] }
 0x207   : > { %v3644_v25 = vpop.f32.mrf.mxu3  ;;  %v3949_v29 = vunpack.c.l.b16 %v3891_v2  ;;  %v3414_v51 = vrot.slane %v3413_v35, 4  ;;  %v3894_v37 = vrot.slane %v6450_v58, 5  ;;  %v3897_v35 = vrot.slane %v6483_v20, 5 }
 0x208   : > { %v6465_v14 = vpop.f32.mrf.mxu1  ;;  %v3721_v0 = vadd.f32 %v3644_v25, %v3064_v23  ;;  %v3424_v25 = vrot.slane %v3423_v53, 4 }
 0x209   : > { %5041 = vmatmul.msk.bf16.gmra.mxu0 %vm718_vm3, %v3969_v15  ;;  %v3547_v15 = vunpack.c.l.b16 %v3395_v42  ;;  %v2551_v42 = vsel %vm5546_vm7, %v4803_v56, %v2550_v16  ;;  %v5011_v56 = vld [vmem:[%s5355_s28 + $0x204] sm:$0xe]  ;;  %v3970_v7 = vpack.c.b16 %v3949_v29, %v3948_v12  ;;  %v3419_v58 = vsel %vm5371_vm4, %v3414_v51, %v6478_v43 }
 0x20a   : > { %v6499_v23 = vadd.f32 %v4041_v32, %v3721_v0  ;;  %v5027_v32 = vrot.slane %v5011_v56, 9  ;;  %v3429_v26 = vsel %vm5371_vm4, %v3424_v25, %v3428_v61  ;;  %v3896_v2 = vrot.slane %v3894_v37, 4  ;;  %v5264_v0 = vld [vmem:[%s5355_s28 + $0x154] sm:$0xf]  ;;  %v5094_v61 = vld [vmem:[%s5355_s28 + $0x204] sm:$0xff] }
 0x20b   : > { %v2989_v9 = vpop.f32.mrf.mxu2  ;;  %4818 = vmatmul.msk.bf16.gmra.mxu1 %vm718_vm3, %v2626_v36  ;;  %v3569_v18 = vpack.c.b16 %v3548_v57, %v3547_v15  ;;  %v2780_v43 = vadd.f32 %v6465_v14, %v5879_v60  ;;  %v3549_v20 = vunpack.c.l.b16 %v3419_v58  ;;  %v3550_v12 = vunpack.c.l.b16 %v3429_v26  ;;  %v5265_v56 = vld [vmem:[%s5355_s28 + $0x158] sm:$0x1] }
 0x20c   : > { %v3065_v49 = vadd.f32 %v2989_v9, %v2779_v31  ;;  %v2606_v9 = vunpack.c.l.b16 %v2551_v42  ;;  %v4788_v42 = vld [vmem:[%s5355_s28 + $0x150] sm:$0xe]  ;;  %v3895_v60 = vsel %vm5546_vm7, %v5027_v32, %v3894_v37  ;;  %v3898_v14 = vsel %vm5546_vm7, %v3896_v2, %v3897_v35 }
 0x20d   : > { %v3570_v32 = vpack.c.b16 %v3550_v12, %v3549_v20  ;;  %v3951_v2 = vunpack.c.l.b16 %v3898_v14 }
 0x20e   : > { %v4043_v36 = vpop.f32.mrf.mxu0 }
 0x20f   : > { %v3646_v21 = vpop.f32.mrf.mxu3 }
 0x210   : > { %4930 = vmatmul.msk.bf16.gmra.mxu2 %vm718_vm3, %v5093_v1  ;;  %v2708_v8 = vpop.f32.mrf.mxu1  ;;  %v3722_v41 = vadd.f32 %v3646_v21, %v3065_v49  ;;  %v2607_v1 = vunpack.c.l.b16 %v2554_v10  ;;  %v3431_v21 = vshrl.u32 %v4972_v28, 16  ;;  %v3434_v10 = vshll.u32 %v4972_v28, 16 }
 0x211   : > { %v2781_v51 = vadd.f32 %v2708_v8, %v5892_v17  ;;  %v6538_v8 = vld [vmem:[%s5355_s28 + $0x218] sm:$0x1] }
 0x212   : > { %v6501_v31 = vadd.f32 %v4043_v36, %v3722_v41  ;;  %v2627_v57 = vpack.c.b16 %v2607_v1, %v2606_v9  ;;  %v2557_v36 = vrot.slane %v5264_v0, 5  ;;  %v3440_v41 = vshll.u32 %v6512_v11, 16 }
 0x213   : > { %v2992_v16 = vpop.f32.mrf.mxu2  ;;  %v4804_v9 = vrot.slane %v4788_v42, 9  ;;  %v3433_v28 = vrot.slane %v3431_v21, 4  ;;  %v3950_v0 = vunpack.c.l.b16 %v3895_v60 }
 0x214   : > { %v5107_v49 = vpack.c.bf16 %v6501_v31, %v6499_v23  ;;  %4994 = vmatmul.msk.bf16.gmra.mxu3 %vm718_vm3, %v3569_v18  ;;  %v3444_v18 = vshrl.u32 %v6512_v11, 16  ;;  %v3066_v29 = vadd.f32 %v2992_v16, %v2780_v43  ;;  %v2559_v1 = vrot.slane %v2557_v36, 4 }
 0x215   : > { %v3436_v16 = vrot.slane %v3434_v10, 5  ;;  %v6535_v58 = vrot.slane %v3440_v41, 5  ;;  %v2558_v21 = vsel %vm5546_vm7, %v4804_v9, %v2557_v36  ;;  %v3450_v41 = vshll.u32 %v6538_v8, 16  ;;  %v6553_v36 = vld [vmem:[%s5355_s28 + $0x220] sm:$0xf] }
 0x216   : > { %5179 = vst [vmem:[%s6455_s19 + $0x8] sm:$0xff] %v5107_v49   ;;  %v4046_v15 = vpop.f32.mrf.mxu0  ;;  %v2560_v49 = vrot.slane %v5265_v56, 5  ;;  %v3446_v17 = vrot.slane %v3444_v18, 4  ;;  %v2608_v12 = vunpack.c.l.b16 %v2558_v21  ;;  %v3971_v60 = vpack.c.b16 %v3951_v2, %v3950_v0 }
 0x217   : > { %v3649_v53 = vpop.f32.mrf.mxu3  ;;  %v3437_v10 = vor.u32 %v3436_v16, %v3433_v28  ;;  %v3464_v28 = vshll.u32 %v6553_v36, 16 }
 0x218   : > { %v6518_v50 = vpop.f32.mrf.mxu1  ;;  %v2561_v43 = vsel %vm5546_vm7, %v2559_v1, %v2560_v49  ;;  %v5012_v1 = vld [vmem:[%s5355_s28 + $0x210] sm:$0xe] }
 0x219   : > { %5042 = vmatmul.msk.bf16.gmra.mxu0 %vm718_vm3, %v3970_v7  ;;  %v2782_v2 = vadd.f32 %v6518_v50, %v5905_v47 }
 0x21b   : > { %v2994_v25 = vpop.f32.mrf.mxu2  ;;  %4819 = vmatmul.msk.bf16.gmra.mxu1 %vm718_vm3, %v2627_v57  ;;  %v3723_v57 = vadd.f32 %v3649_v53, %v3066_v29  ;;  %v3447_v53 = vor.u32 %v3446_v17, %v6535_v58 }
 0x21c   : > { %v3067_v7 = vadd.f32 %v2994_v25, %v2781_v51  ;;  %v2609_v51 = vunpack.c.l.b16 %v2561_v43  ;;  %v4975_v25 = vld [vmem:[%s5355_s28 + $0x21c] sm:$0xf] }
 0x21d   : > { %v6547_v18 = vadd.f32 %v4046_v15, %v3723_v57  ;;  %v3448_v9 = vrot.slane %v3447_v53, 4  ;;  %v3452_v15 = vrot.slane %v3450_v41, 5  ;;  %v3455_v56 = vshrl.u32 %v4975_v25, 16 }
 0x21e   : > { %v4048_v26 = vpop.f32.mrf.mxu0  ;;  %v3458_v49 = vshll.u32 %v4975_v25, 16  ;;  %v2628_v17 = vpack.c.b16 %v2609_v51, %v2608_v12  ;;  %v3901_v57 = vrot.slane %v6512_v11, 5  ;;  %v6575_v41 = vrot.slane %v3464_v28, 5 }
 0x21f   : > { %v3651_v37 = vpop.f32.mrf.mxu3  ;;  %v3453_v43 = vsel %vm5371_vm4, %v3448_v9, %v3452_v15  ;;  %v3457_v11 = vrot.slane %v3455_v56, 4  ;;  %v3904_v25 = vrot.slane %v6538_v8, 5 }
 0x220   : > { %4931 = vmatmul.msk.bf16.gmra.mxu2 %vm718_vm3, %v5094_v61  ;;  %v2713_v35 = vpop.f32.mrf.mxu1  ;;  %v3724_v42 = vadd.f32 %v3651_v37, %v3067_v7  ;;  %v3438_v61 = vrot.slane %v3437_v10, 4  ;;  %v3468_v7 = vshrl.u32 %v6553_v36, 16  ;;  %v5266_v37 = vld [vmem:[%s5355_s28 + $0x160] sm:$0xf]  ;;  %v4789_v10 = vld [vmem:[%s5355_s28 + $0x15c] sm:$0xe]  ;;  %v3552_v28 = vunpack.c.l.b16 %v3453_v43 }
 0x221   : > { %v3460_v53 = vrot.slane %v3458_v49, 5  ;;  %v2783_v50 = vadd.f32 %v2713_v35, %v5918_v46  ;;  %v4805_v9 = vrot.slane %v4789_v10, 9 }
 0x222   : > { %v6549_v29 = vadd.f32 %v4048_v26, %v3724_v42  ;;  %v3443_v21 = vsel %vm5371_vm4, %v3438_v61, %v6535_v58  ;;  %v5028_v42 = vrot.slane %v5012_v1, 9  ;;  %v3470_v12 = vrot.slane %v3468_v7, 4  ;;  %v5095_v61 = vld [vmem:[%s5355_s28 + $0x210] sm:$0xff] }
 0x223   : > { %v2997_v20 = vpop.f32.mrf.mxu2  ;;  %v3903_v58 = vrot.slane %v3901_v57, 4  ;;  %v3551_v49 = vunpack.c.l.b16 %v3443_v21  ;;  %v3461_v46 = vor.u32 %v3460_v53, %v3457_v11 }
 0x224   : > { %v5112_v14 = vpack.c.bf16 %v6549_v29, %v6547_v18  ;;  %4995 = vmatmul.msk.bf16.gmra.mxu3 %vm718_vm3, %v3570_v32  ;;  %v2564_v32 = vrot.slane %v5266_v37, 5  ;;  %v3068_v47 = vadd.f32 %v2997_v20, %v2782_v2  ;;  %v3902_v20 = vsel %vm5546_vm7, %v5028_v42, %v3901_v57 }
 0x225   : > { %v3471_v35 = vor.u32 %v3470_v12, %v6575_v41  ;;  %v3905_v37 = vsel %vm5546_vm7, %v3903_v58, %v3904_v25  ;;  %v3571_v42 = vpack.c.b16 %v3552_v28, %v3551_v49  ;;  %v3462_v53 = vrot.slane %v3461_v46, 4  ;;  %v5013_v28 = vld [vmem:[%s5355_s28 + $0x21c] sm:$0xe] }
 0x226   : > { %5180 = vst [vmem:[%s6455_s19 + $0x10] sm:$0xff] %v5112_v14   ;;  %v4051_v16 = vpop.f32.mrf.mxu0  ;;  %v6581_v14 = vld [vmem:[%s5355_s28 + $0x224] sm:$0x1]  ;;  %v2566_v15 = vrot.slane %v2564_v32, 4  ;;  %v2565_v21 = vsel %vm5546_vm7, %v4805_v9, %v2564_v32  ;;  %v3953_v11 = vunpack.c.l.b16 %v3905_v37  ;;  %v4978_v9 = vld [vmem:[%s5355_s28 + $0x228] sm:$0xf] }
 0x227   : > { %v3654_v26 = vpop.f32.mrf.mxu3  ;;  %v3474_v7 = vshll.u32 %v6581_v14, 16  ;;  %v3472_v12 = vrot.slane %v3471_v35, 4  ;;  %v2610_v32 = vunpack.c.l.b16 %v2565_v21  ;;  %v3482_v21 = vshll.u32 %v4978_v9, 16 }
 0x228   : > { %v6563_v0 = vpop.f32.mrf.mxu1 }
 0x229   : > { %5043 = vmatmul.msk.bf16.gmra.mxu0 %vm718_vm3, %v3971_v60  ;;  %v5267_v60 = vld [vmem:[%s5355_s28 + $0x164] sm:$0x1]  ;;  %v2784_v37 = vadd.f32 %v6563_v0, %v5931_v54  ;;  %v3911_v0 = vrot.slane %v6581_v14, 5 }
 0x22a   : > { %v2567_v1 = vrot.slane %v5267_v60, 5  ;;  %v6605_v60 = vld [vmem:[%s5355_s28 + $0x22c] sm:$0xf] }
 0x22b   : > { %v2999_v51 = vpop.f32.mrf.mxu2  ;;  %4820 = vmatmul.msk.bf16.gmra.mxu1 %vm718_vm3, %v2628_v17  ;;  %v3725_v17 = vadd.f32 %v3654_v26, %v3068_v47  ;;  %v3952_v26 = vunpack.c.l.b16 %v3902_v20  ;;  %v3476_v47 = vrot.slane %v3474_v7, 5  ;;  %v3908_v20 = vrot.slane %v6553_v36, 5  ;;  %v5268_v7 = vld [vmem:[%s5355_s28 + $0x16c] sm:$0xf] }
 0x22c   : > { %v3069_v56 = vadd.f32 %v2999_v51, %v2783_v50  ;;  %v2568_v57 = vsel %vm5546_vm7, %v2566_v15, %v2567_v1 }
 0x22d   : > { %v6596_v50 = vadd.f32 %v4051_v16, %v3725_v17  ;;  %v2611_v25 = vunpack.c.l.b16 %v2568_v57  ;;  %v3972_v15 = vpack.c.b16 %v3953_v11, %v3952_v26  ;;  %v3477_v49 = vsel %vm5371_vm4, %v3472_v12, %v3476_v47  ;;  %v5096_v12 = vld [vmem:[%s5355_s28 + $0x21c] sm:$0xff] }
 0x22e   : > { %v4053_v8 = vpop.f32.mrf.mxu0  ;;  %v2571_v17 = vrot.slane %v5268_v7, 5  ;;  %v3492_v57 = vshrl.u32 %v6605_v60, 16  ;;  %v3910_v54 = vrot.slane %v3908_v20, 4 }
 0x22f   : > { %v3656_v2 = vpop.f32.mrf.mxu3  ;;  %v2629_v16 = vpack.c.b16 %v2611_v25, %v2610_v32  ;;  %v5269_v25 = vld [vmem:[%s5355_s28 + $0x170] sm:$0x1] }
 0x230   : > { %4932 = vmatmul.msk.bf16.gmra.mxu2 %vm718_vm3, %v5095_v61  ;;  %v2718_v10 = vpop.f32.mrf.mxu1  ;;  %v3726_v43 = vadd.f32 %v3656_v2, %v3069_v56  ;;  %v3467_v56 = vsel %vm5371_vm4, %v3462_v53, %v6575_v41  ;;  %v4790_v2 = vld [vmem:[%s5355_s28 + $0x168] sm:$0xe]  ;;  %v3488_v41 = vshll.u32 %v6605_v60, 16  ;;  %v2573_v32 = vrot.slane %v2571_v17, 4 }
 0x231   : > { %v3553_v36 = vunpack.c.l.b16 %v3467_v56  ;;  %v2785_v11 = vadd.f32 %v2718_v10, %v5945_v34  ;;  %v4806_v47 = vrot.slane %v4790_v2, 9  ;;  %v3484_v56 = vrot.slane %v3482_v21, 5 }
 0x232   : > { %v6598_v51 = vadd.f32 %v4053_v8, %v3726_v43  ;;  %v3479_v8 = vshrl.u32 %v4978_v9, 16  ;;  %v3554_v43 = vunpack.c.l.b16 %v3477_v49  ;;  %v6629_v49 = vrot.slane %v3488_v41, 5 }
 0x233   : > { %v3002_v58 = vpop.f32.mrf.mxu2  ;;  %v3912_v14 = vsel %vm5546_vm7, %v3910_v54, %v3911_v0  ;;  %v2572_v2 = vsel %vm5546_vm7, %v4806_v47, %v2571_v17 }
 0x234   : > { %v5117_v61 = vpack.c.bf16 %v6598_v51, %v6596_v50  ;;  %4996 = vmatmul.msk.bf16.gmra.mxu3 %vm718_vm3, %v3571_v42  ;;  %v5029_v42 = vrot.slane %v5013_v28, 9  ;;  %v3070_v26 = vadd.f32 %v3002_v58, %v2784_v37  ;;  %v3481_v9 = vrot.slane %v3479_v8, 4  ;;  %v6632_v28 = vld [vmem:[%s5355_s28 + $0x230] sm:$0x1] }
 0x235   : > { %v3494_v58 = vrot.slane %v3492_v57, 4  ;;  %v3572_v37 = vpack.c.b16 %v3554_v43, %v3553_v36  ;;  %v2612_v43 = vunpack.c.l.b16 %v2572_v2 }
 0x236   : > { %5181 = vst [vmem:[%s6455_s19 + $0x18] sm:$0xff] %v5117_v61   ;;  %v4056_v1 = vpop.f32.mrf.mxu0  ;;  %v2574_v61 = vrot.slane %v5269_v25, 5 }
 0x237   : > { %v3659_v46 = vpop.f32.mrf.mxu3  ;;  %v3495_v57 = vor.u32 %v3494_v58, %v6629_v49 }
 0x238   : > { %v6615_v35 = vpop.f32.mrf.mxu1  ;;  %v3727_v34 = vadd.f32 %v3659_v46, %v3070_v26  ;;  %v2575_v21 = vsel %vm5546_vm7, %v2573_v32, %v2574_v61  ;;  %v3485_v46 = vor.u32 %v3484_v56, %v3481_v9  ;;  %v3955_v26 = vunpack.c.l.b16 %v3912_v14  ;;  %v6657_v56 = vld [vmem:[%s5355_s28 + $0x238] sm:$0xf]  ;;  %v6925_v14 = vld [vmem:[#allocation2_spill] sm:$0xff] }
 0x239   : > { %5044 = vmatmul.msk.bf16.gmra.mxu0 %vm718_vm3, %v3972_v15  ;;  %v3915_v9 = vrot.slane %v6605_v60, 5 }
 0x23a   : > { %v3486_v0 = vrot.slane %v3485_v46, 4 }
 0x23b   : > { %v3004_v53 = vpop.f32.mrf.mxu2  ;;  %4821 = vmatmul.msk.bf16.gmra.mxu1 %vm718_vm3, %v2629_v16  ;;  %v3909_v16 = vsel %vm5546_vm7, %v5029_v42, %v3908_v20  ;;  %v3498_v20 = vshll.u32 %v6632_v28, 16 }
 0x23c   : > { %v3071_v15 = vadd.f32 %v3004_v53, %v2785_v11  ;;  %v3954_v42 = vunpack.c.l.b16 %v3909_v16  ;;  %v6645_v11 = vadd.f32 %v4056_v1, %v3727_v34  ;;  %v2613_v53 = vunpack.c.l.b16 %v2575_v21  ;;  %v5014_v1 = vld [vmem:[%s5355_s28 + $0x228] sm:$0xe]  ;;  %v4791_v21 = vld [vmem:[%s5355_s28 + $0x174] sm:$0xe] }
 0x23d   : > { %v3500_v47 = vrot.slane %v3498_v20, 5  ;;  %v5030_v60 = vrot.slane %v5014_v1, 9  ;;  %v3516_v20 = vshrl.u32 %v6657_v56, 16 }
 0x23e   : > { %v4058_v10 = vpop.f32.mrf.mxu0  ;;  %v3973_v32 = vpack.c.b16 %v3955_v26, %v3954_v42  ;;  %v2630_v61 = vpack.c.b16 %v2613_v53, %v2612_v43  ;;  %v3918_v43 = vrot.slane %v6632_v28, 5  ;;  %v5097_v53 = vld [vmem:[%s5355_s28 + $0x228] sm:$0xff] }
 0x23f   : > { %v3661_v7 = vpop.f32.mrf.mxu3 }
 0x240   : > { %4933 = vmatmul.msk.bf16.gmra.mxu2 %vm718_vm3, %v5096_v12  ;;  %v2723_v8 = vpop.f32.mrf.mxu1  ;;  %v3728_v41 = vadd.f32 %v3661_v7, %v3071_v15  ;;  %v3496_v12 = vrot.slane %v3495_v57, 4  ;;  %v4981_v15 = vld [vmem:[%s5355_s28 + $0x234] sm:$0xf]  ;;  %v2786_v7 = vadd.f32 %v6615_v35, %v6925_v14  ;;  %v3512_v57 = vshll.u32 %v6657_v56, 16 }
 0x241   : > { %v3506_v46 = vshll.u32 %v4981_v15, 16  ;;  %v2787_v42 = vadd.f32 %v2723_v8, %v5992_v55  ;;  %v3518_v14 = vrot.slane %v3516_v20, 4  ;;  %v3522_v20 = vshll.u32 %v4983_v22, 16 }
 0x242   : > { %v6647_v36 = vadd.f32 %v4058_v10, %v3728_v41  ;;  %v5270_v10 = vld [vmem:[%s5355_s28 + $0x178] sm:$0xf]  ;;  %v3501_v2 = vsel %vm5371_vm4, %v3496_v12, %v3500_v47  ;;  %v3503_v41 = vshrl.u32 %v4981_v15, 16  ;;  %v5271_v12 = vld [vmem:[%s5355_s28 + $0x17c] sm:$0x1]  ;;  %v3514_v8 = vrot.slane %v3512_v57, 5 }
 0x243   : > { %v3007_v17 = vpop.f32.mrf.mxu2  ;;  %v2578_v16 = vrot.slane %v5270_v10, 5  ;;  %v2581_v47 = vrot.slane %v5271_v12, 5  ;;  %v3556_v15 = vunpack.c.l.b16 %v3501_v2  ;;  %v3508_v55 = vrot.slane %v3506_v46, 5 }
 0x244   : > { %v5122_v54 = vpack.c.bf16 %v6647_v36, %v6645_v11  ;;  %4997 = vmatmul.msk.bf16.gmra.mxu3 %vm718_vm3, %v3572_v37  ;;  %v3491_v37 = vsel %vm5371_vm4, %v3486_v0, %v6629_v49  ;;  %v3072_v35 = vadd.f32 %v3007_v17, %v2786_v7  ;;  %v3917_v49 = vrot.slane %v3915_v9, 4 }
 0x245   : > { %v2580_v0 = vrot.slane %v2578_v16, 4  ;;  %v3555_v1 = vunpack.c.l.b16 %v3491_v37  ;;  %v3916_v17 = vsel %vm5546_vm7, %v5030_v60, %v3915_v9  ;;  %v3505_v10 = vrot.slane %v3503_v41, 4 }
 0x246   : > { %5182 = vst [vmem:[%s6455_s19 + $0x20] sm:$0xff] %v5122_v54   ;;  %v4061_v25 = vpop.f32.mrf.mxu0  ;;  %v4807_v54 = vrot.slane %v4791_v21, 9  ;;  %v3919_v28 = vsel %vm5546_vm7, %v3917_v49, %v3918_v43  ;;  %v3956_v41 = vunpack.c.l.b16 %v3916_v17  ;;  %v3519_v57 = vor.u32 %v3518_v14, %v3514_v8 }
 0x247   : > { %v3664_v58 = vpop.f32.mrf.mxu3  ;;  %v2582_v9 = vsel %vm5546_vm7, %v2580_v0, %v2581_v47  ;;  %v3573_v60 = vpack.c.b16 %v3556_v15, %v3555_v1  ;;  %v3509_v46 = vor.u32 %v3508_v55, %v3505_v10  ;;  %v3524_v47 = vrot.slane %v3522_v20, 5 }
 0x248   : > { %v6659_v34 = vpop.f32.mrf.mxu1  ;;  %v2579_v37 = vsel %vm5546_vm7, %v4807_v54, %v2578_v16  ;;  %v2615_v43 = vunpack.c.l.b16 %v2582_v9  ;;  %v3520_v0 = vrot.slane %v3519_v57, 4  ;;  %v3922_v15 = vrot.slane %v6657_v56, 5 }
 0x249   : > { %5045 = vmatmul.msk.bf16.gmra.mxu0 %vm718_vm3, %v3973_v32  ;;  %v2614_v49 = vunpack.c.l.b16 %v2579_v37  ;;  %v3510_v54 = vrot.slane %v3509_v46, 4  ;;  %v2788_v55 = vadd.f32 %v6659_v34, %v6003_v5 }
 0x24a   : > { %v3924_v56 = vrot.slane %v3922_v15, 4 }
 0x24b   : > { %v3009_v26 = vpop.f32.mrf.mxu2  ;;  %4822 = vmatmul.msk.bf16.gmra.mxu1 %vm718_vm3, %v2630_v61  ;;  %v3729_v61 = vadd.f32 %v3664_v58, %v3072_v35  ;;  %v3957_v58 = vunpack.c.l.b16 %v3919_v28  ;;  %v2631_v1 = vpack.c.b16 %v2615_v43, %v2614_v49  ;;  %v3515_v14 = vsel %vm5371_vm4, %v3510_v54, %v3514_v8 }
 0x24c   : > { %v3073_v32 = vadd.f32 %v3009_v26, %v2787_v42  ;;  %v3557_v5 = vunpack.c.l.b16 %v3515_v14 }
 0x24d   : > { %v6688_v35 = vadd.f32 %v4061_v25, %v3729_v61  ;;  %v5015_v25 = vld [vmem:[%s5355_s28 + $0x234] sm:$0xe]  ;;  %v3525_v61 = vsel %vm5371_vm4, %v3520_v0, %v3524_v47 }
 0x24e   : > { %v4063_v7 = vpop.f32.mrf.mxu0  ;;  %v3558_v34 = vunpack.c.l.b16 %v3525_v61 }
 0x24f   : > { %v3666_v21 = vpop.f32.mrf.mxu3 }
 0x250   : > { %4934 = vmatmul.msk.bf16.gmra.mxu2 %vm718_vm3, %v5097_v53  ;;  %v2728_v12 = vpop.f32.mrf.mxu1  ;;  %v3730_v2 = vadd.f32 %v3666_v21, %v3073_v32  ;;  %v3974_v53 = vpack.c.b16 %v3957_v58, %v3956_v41  ;;  %v6926_v21 = vld [vmem:[#allocation3_spill] sm:$0xff] }
 0x251   : > { %v2789_v37 = vadd.f32 %v2728_v12, %v6926_v21 }
 0x252   : > { %v6690_v42 = vadd.f32 %v4063_v7, %v3730_v2  ;;  %v5031_v7 = vrot.slane %v5015_v25, 9  ;;  %v3925_v2 = vrot.slane %v4983_v22, 5 }
 0x253   : > { %v3012_v26 = vpop.f32.mrf.mxu2 }
 0x254   : > { %v5127_v16 = vpack.c.bf16 %v6690_v42, %v6688_v35  ;;  %4998 = vmatmul.msk.bf16.gmra.mxu3 %vm718_vm3, %v3573_v60  ;;  %v3074_v28 = vadd.f32 %v3012_v26, %v2788_v55  ;;  %v5098_v60 = vld [vmem:[%s5355_s28 + $0x234] sm:$0xff]  ;;  %v3923_v38 = vsel %vm5546_vm7, %v5031_v7, %v3922_v15  ;;  %v3926_v8 = vsel %vm5546_vm7, %v3924_v56, %v3925_v2 }
 0x255   : > { %v3574_v26 = vpack.c.b16 %v3558_v34, %v3557_v5  ;;  %v3958_v22 = vunpack.c.l.b16 %v3923_v38  ;;  %v3959_v49 = vunpack.c.l.b16 %v3926_v8 }
 0x256   : > { %5183 = vst [vmem:[%s6455_s19 + $0x28] sm:$0xff] %v5127_v16   ;;  %v4066_v32 = vpop.f32.mrf.mxu0 }
 0x257   : > { %v3669_v17 = vpop.f32.mrf.mxu3  ;;  %v3975_v27 = vpack.c.b16 %v3959_v49, %v3958_v22 }
 0x258   : > { %v2731_v10 = vpop.f32.mrf.mxu1  ;;  %v3731_v58 = vadd.f32 %v3669_v17, %v3074_v28 }
 0x259   : > { %5046 = vmatmul.msk.bf16.gmra.mxu0 %vm718_vm3, %v3974_v53  ;;  %v2790_v25 = vadd.f32 %v2731_v10, %v6039_v45 }
 0x25a   : > { %v6713_v43 = vadd.f32 %v4066_v32, %v3731_v58 }
 0x25b   : > { %v3014_v9 = vpop.f32.mrf.mxu2  ;;  %4823 = vmatmul.msk.bf16.gmra.mxu1 %vm718_vm3, %v2631_v1 }
 0x25c   : > { %v3075_v41 = vadd.f32 %v3014_v9, %v2789_v37 }
 0x25e   : > { %v4068_v46 = vpop.f32.mrf.mxu0 }
 0x25f   : > { %v3671_v57 = vpop.f32.mrf.mxu3 }
 0x260   : > { %4935 = vmatmul.msk.bf16.gmra.mxu2 %vm718_vm3, %v5098_v60  ;;  %v2733_v12 = vpop.f32.mrf.mxu1  ;;  %v3732_v20 = vadd.f32 %v3671_v57, %v3075_v41 }
 0x261   : > { %v2791_v15 = vadd.f32 %v2733_v12, %v6063_v52 }
 0x262   : > { %v6715_v16 = vadd.f32 %v4068_v46, %v3732_v20 }
 0x263   : > { %v3017_v53 = vpop.f32.mrf.mxu2 }
 0x264   : > { %v5132_v54 = vpack.c.bf16 %v6715_v16, %v6713_v43  ;;  %4999 = vmatmul.msk.bf16.gmra.mxu3 %vm718_vm3, %v3574_v26  ;;  %v3076_v32 = vadd.f32 %v3017_v53, %v2790_v25 }
 0x266   : > { %5184 = vst [vmem:[%s6455_s19 + $0x30] sm:$0xff] %v5132_v54   ;;  %v4071_v0 = vpop.f32.mrf.mxu0 }
 0x267   : > { %v3674_v47 = vpop.f32.mrf.mxu3 }
 0x268   : > { %v2736_v1 = vpop.f32.mrf.mxu1  ;;  %v3733_v14 = vadd.f32 %v3674_v47, %v3076_v32 }
 0x269   : > { %5047 = vmatmul.msk.bf16.gmra.mxu0 %vm718_vm3, %v3975_v27  ;;  %v2792_v60 = vadd.f32 %v2736_v1, %v6082_v48 }
 0x26a   : > { %v6724_v37 = vadd.f32 %v4071_v0, %v3733_v14 }
 0x26b   : > { %v3019_v17 = vpop.f32.mrf.mxu2 }
 0x26c   : > { %v3077_v55 = vadd.f32 %v3019_v17, %v2791_v15 }
 0x26e   : > { %v4073_v61 = vpop.f32.mrf.mxu0 }
 0x26f   : > { %v3676_v7 = vpop.f32.mrf.mxu3 }
 0x270   : > { %v2738_v28 = vpop.f32.mrf.mxu1  ;;  %v3734_v21 = vadd.f32 %v3676_v7, %v3077_v55 }
 0x271   : > { %v2793_v5 = vadd.f32 %v2738_v28, %v6106_v19 }
 0x272   : > { %v6726_v9 = vadd.f32 %v4073_v61, %v3734_v21 }
 0x273   : > { %v3022_v56 = vpop.f32.mrf.mxu2 }
 0x274   : > { %v5137_v45 = vpack.c.bf16 %v6726_v9, %v6724_v37  ;;  %v3078_v41 = vadd.f32 %v3022_v56, %v2792_v60 }
 0x276   : > { %5185 = vst [vmem:[%s6455_s19 + $0x38] sm:$0xff] %v5137_v45   ;;  %v4076_v10 = vpop.f32.mrf.mxu0 }
 0x277   : > { %v3679_v2 = vpop.f32.mrf.mxu3 }
 0x278   : > { %v2741_v52 = vpop.f32.mrf.mxu1  ;;  %v3735_v46 = vadd.f32 %v3679_v2, %v3078_v41 }
 0x279   : > { %v2794_v54 = vadd.f32 %v2741_v52, %v6125_v3 }
 0x27a   : > { %v6733_v20 = vadd.f32 %v4076_v10, %v3735_v46 }
 0x27b   : > { %v3024_v34 = vpop.f32.mrf.mxu2 }
 0x27c   : > { %v3079_v58 = vadd.f32 %v3024_v34, %v2793_v5 }
 0x27e   : > { %v4078_v38 = vpop.f32.mrf.mxu0 }
 0x27f   : > { %v3681_v8 = vpop.f32.mrf.mxu3 }
 0x280   : > { %v2743_v57 = vpop.f32.mrf.mxu1  ;;  %v3736_v12 = vadd.f32 %v3681_v8, %v3079_v58  ;;  %v4212_v58 = vadd.f32 %v6446_v39, %v6444_v40 }
 0x281   : > { %v2795_v0 = vadd.f32 %v2743_v57, %v6149_v44 }
 0x282   : > { %v6735_v26 = vadd.f32 %v4078_v38, %v3736_v12  ;;  %v4213_v38 = vadd.f32 %v4212_v58, %v6499_v23 }
 0x283   : > { %v3027_v22 = vpop.f32.mrf.mxu2 }
 0x284   : > { %v5142_v49 = vpack.c.bf16 %v6735_v26, %v6733_v20  ;;  %v3080_v27 = vadd.f32 %v3027_v22, %v2794_v54 }
 0x286   : > { %5186 = vst [vmem:[%s6455_s19 + $0x40] sm:$0xff] %v5142_v49   ;;  %v4081_v48 = vpop.f32.mrf.mxu0 }
 0x287   : > { %v3684_v53 = vpop.f32.mrf.mxu3 }
 0x288   : > { %v2746_v19 = vpop.f32.mrf.mxu1  ;;  %v3737_v25 = vadd.f32 %v3684_v53, %v3080_v27 }
 0x289   : > { %v2796_v44 = vadd.f32 %v2746_v19, %v6168_v13 }
 0x28a   : > { %v6742_v14 = vadd.f32 %v4081_v48, %v3737_v25 }
 0x28b   : > { %v3029_v47 = vpop.f32.mrf.mxu2 }
 0x28c   : > { %v3081_v1 = vadd.f32 %v3029_v47, %v2795_v0 }
 0x28e   : > { %v4083_v32 = vpop.f32.mrf.mxu0 }
 0x28f   : > { %v3686_v15 = vpop.f32.mrf.mxu3 }
 0x290   : > { %v2748_v17 = vpop.f32.mrf.mxu1  ;;  %v3738_v55 = vadd.f32 %v3686_v15, %v3081_v1 }
 0x291   : > { %v2797_v10 = vadd.f32 %v2748_v17, %v6192_v30  ;;  %v4214_v30 = vadd.f32 %v4213_v38, %v6501_v31  ;;  %v6927_v38 = vld [vmem:[#allocation4_spill] sm:$0xff] }
 0x292   : > { %v6744_v61 = vadd.f32 %v4083_v32, %v3738_v55 }
 0x293   : > { %v3032_v7 = vpop.f32.mrf.mxu2  ;;  %v4215_v22 = vadd.f32 %v4214_v30, %v6547_v18 }
 0x294   : > { %v5147_v28 = vpack.c.bf16 %v6744_v61, %v6742_v14  ;;  %v3082_v45 = vadd.f32 %v3032_v7, %v2796_v44 }
 0x295   : > { %v4216_v19 = vadd.f32 %v4215_v22, %v6549_v29 }
 0x296   : > { %5187 = vst [vmem:[%s6455_s19 + $0x48] sm:$0xff] %v5147_v28   ;;  %v4086_v3 = vpop.f32.mrf.mxu0 }
 0x297   : > { %v3689_v21 = vpop.f32.mrf.mxu3  ;;  %v4217_v27 = vadd.f32 %v4216_v19, %v6596_v50 }
 0x298   : > { %v2751_v56 = vpop.f32.mrf.mxu1  ;;  %v3739_v60 = vadd.f32 %v3689_v21, %v3082_v45 }
 0x299   : > { %v2798_v54 = vadd.f32 %v2751_v56, %v6211_v24  ;;  %v4218_v25 = vadd.f32 %v4217_v27, %v6598_v51 }
 0x29a   : > { %v6754_v8 = vadd.f32 %v4086_v3, %v3739_v60 }
 0x29b   : > { %v3034_v2 = vpop.f32.mrf.mxu2  ;;  %v4219_v15 = vadd.f32 %v4218_v25, %v6645_v11 }
 0x29c   : > { %v3083_v52 = vadd.f32 %v3034_v2, %v2797_v10 }
 0x29d   : > { %v4220_v3 = vadd.f32 %v4219_v15, %v6647_v36 }
 0x29e   : > { %v4088_v41 = vpop.f32.mrf.mxu0 }
 0x29f   : > { %v3691_v5 = vpop.f32.mrf.mxu3  ;;  %v4221_v24 = vadd.f32 %v4220_v3, %v6688_v35 }
 0x2a0   : > { %v2753_v34 = vpop.f32.mrf.mxu1  ;;  %v3740_v46 = vadd.f32 %v3691_v5, %v3083_v52 }
 0x2a1   : > { %v2799_v47 = vadd.f32 %v2753_v34, %v6235_v63  ;;  %v4222_v45 = vadd.f32 %v4221_v24, %v6690_v42 }
 0x2a2   : > { %v6756_v57 = vadd.f32 %v4088_v41, %v3740_v46 }
 0x2a3   : > { %v3037_v13 = vpop.f32.mrf.mxu2  ;;  %v4223_v2 = vadd.f32 %v4222_v45, %v6713_v43 }
 0x2a4   : > { %v5152_v12 = vpack.c.bf16 %v6756_v57, %v6754_v8  ;;  %v3084_v0 = vadd.f32 %v3037_v13, %v2798_v54 }
 0x2a5   : > { %v4224_v5 = vadd.f32 %v4223_v2, %v6715_v16 }
 0x2a6   : > { %5188 = vst [vmem:[%s6455_s19 + $0x50] sm:$0xff] %v5152_v12   ;;  %v4091_v49 = vpop.f32.mrf.mxu0 }
 0x2a7   : > { %v3694_v48 = vpop.f32.mrf.mxu3  ;;  %v4225_v58 = vadd.f32 %v4224_v5, %v6724_v37 }
 0x2a8   : > { %v2756_v53 = vpop.f32.mrf.mxu1  ;;  %v3741_v17 = vadd.f32 %v3694_v48, %v3084_v0 }
 0x2a9   : > { %v2800_v34 = vadd.f32 %v2756_v53, %v6254_v33  ;;  %v4226_v12 = vadd.f32 %v4225_v58, %v6726_v9 }
 0x2aa   : > { %v6771_v56 = vadd.f32 %v4091_v49, %v3741_v17 }
 0x2ab   : > { %v3039_v1 = vpop.f32.mrf.mxu2  ;;  %v4227_v49 = vadd.f32 %v4226_v12, %v6733_v20 }
 0x2ac   : > { %v3085_v32 = vadd.f32 %v3039_v1, %v2799_v47 }
 0x2ad   : > { %v4228_v0 = vadd.f32 %v4227_v49, %v6735_v26 }
 0x2ae   : > { %v4093_v55 = vpop.f32.mrf.mxu0 }
 0x2af   : > { %v3696_v7 = vpop.f32.mrf.mxu3  ;;  %v4229_v33 = vadd.f32 %v4228_v0, %v6742_v14 }
 0x2b0   : > { %v2758_v28 = vpop.f32.mrf.mxu1  ;;  %v3742_v21 = vadd.f32 %v3696_v7, %v3085_v32 }
 0x2b1   : > { %v2801_v13 = vadd.f32 %v2758_v28, %v6927_v38  ;;  %v4230_v32 = vadd.f32 %v4229_v33, %v6744_v61 }
 0x2b2   : > { %v6773_v44 = vadd.f32 %v4093_v55, %v3742_v21 }
 0x2b3   : > { %v3042_v63 = vpop.f32.mrf.mxu2  ;;  %v4231_v55 = vadd.f32 %v4230_v32, %v6754_v8 }
 0x2b4   : > { %v5157_v10 = vpack.c.bf16 %v6773_v44, %v6771_v56  ;;  %v3086_v46 = vadd.f32 %v3042_v63, %v2800_v34 }
 0x2b5   : > { %v4232_v21 = vadd.f32 %v4231_v55, %v6756_v57 }
 0x2b6   : > { %5189 = vst [vmem:[%s6455_s19 + $0x58] sm:$0xff] %v5157_v10   ;;  %v4096_v52 = vpop.f32.mrf.mxu0 }
 0x2b7   : > { %v3699_v60 = vpop.f32.mrf.mxu3  ;;  %v4233_v63 = vadd.f32 %v4232_v21, %v6771_v56 }
 0x2b8   : > { %v2761_v41 = vpop.f32.mrf.mxu1  ;;  %v3743_v48 = vadd.f32 %v3699_v60, %v3086_v46 }
 0x2b9   : > { %v2802_v17 = vadd.f32 %v2761_v41, %v6295_v59 }
 0x2ba   : > { %v6788_v53 = vadd.f32 %v4096_v52, %v3743_v48  ;;  %v4234_v52 = vadd.f32 %v4233_v63, %v6773_v44 }
 0x2bb   : > { %v3044_v30 = vpop.f32.mrf.mxu2 }
 0x2bc   : > { %v3087_v22 = vadd.f32 %v3044_v30, %v2801_v13  ;;  %v4235_v59 = vadd.f32 %v4234_v52, %v6788_v53 }
 0x2be   : > { %v4098_v19 = vpop.f32.mrf.mxu0 }
 0x2bf   : > { %v3701_v54 = vpop.f32.mrf.mxu3 }
 0x2c0   : > { %v2763_v27 = vpop.f32.mrf.mxu1  ;;  %v3744_v47 = vadd.f32 %v3701_v54, %v3087_v22 }
 0x2c1   : > { %v2803_v10 = vadd.f32 %v2763_v27, %v6318_v62 }
 0x2c2   : > { %v6790_v1 = vadd.f32 %v4098_v19, %v3744_v47 }
 0x2c3   : > { %v3047_v25 = vpop.f32.mrf.mxu2 }
 0x2c4   : > { %v5162_v15 = vpack.c.bf16 %v6790_v1, %v6788_v53  ;;  %v3088_v28 = vadd.f32 %v3047_v25, %v2802_v17  ;;  %v4236_v58 = vadd.f32 %v4235_v59, %v6790_v1  ;;  %v6929_v59 = vld [vmem:[#allocation6_spill] sm:$0xff] }
 0x2c6   : > { %5190 = vst [vmem:[%s6455_s19 + $0x60] sm:$0xff] %v5162_v15   ;;  %v4101_v7 = vpop.f32.mrf.mxu0 }
 0x2c7   : > { %v3704_v3 = vpop.f32.mrf.mxu3 }
 0x2c8   : > { %v2766_v24 = vpop.f32.mrf.mxu1  ;;  %v3745_v45 = vadd.f32 %v3704_v3, %v3088_v28  ;;  %v6928_v28 = vld [vmem:[#allocation5_spill] sm:$0xff] }
 0x2c9   : > { %v2804_v30 = vadd.f32 %v2766_v24, %v6336_v6 }
 0x2ca   : > { %v4142_v41 = vadd.f32 %v4101_v7, %v3745_v45 }
 0x2cb   : > { %v3049_v2 = vpop.f32.mrf.mxu2 }
 0x2cc   : > { %v3089_v60 = vadd.f32 %v3049_v2, %v2803_v10  ;;  %v4237_v38 = vadd.f32 %v4236_v58, %v4142_v41 }
 0x2ce   : > { %v4103_v5 = vpop.f32.mrf.mxu0 }
 0x2cf   : > { %v3706_v34 = vpop.f32.mrf.mxu3 }
 0x2d0   : > { %v3746_v46 = vadd.f32 %v3706_v34, %v3089_v60  ;;  %v2768_v22 = vpop.f32.mrf.mxu1 }
 0x2d1   : > { %v2805_v47 = vadd.f32 %v2768_v22, %v6360_v4 }
 0x2d2   : > { %v4143_v13 = vadd.f32 %v4103_v5, %v3746_v46 }
 0x2d3   : > { %v3052_v12 = vpop.f32.mrf.mxu2 }
 0x2d4   : > { %v5167_v62 = vpack.c.bf16 %v4143_v13, %v4142_v41  ;;  %v4238_v49 = vadd.f32 %v4237_v38, %v4143_v13  ;;  %v3090_v48 = vadd.f32 %v3052_v12, %v2804_v30 }
 0x2d6   : > { %5191 = vst [vmem:[%s6455_s19 + $0x68] sm:$0xff] %v5167_v62   ;;  %v4106_v19 = vpop.f32.mrf.mxu0 }
 0x2d7   : > { %v3709_v54 = vpop.f32.mrf.mxu3 }
 0x2d8   : > { %v3747_v27 = vadd.f32 %v3709_v54, %v3090_v48  ;;  %v2771_v15 = vpop.f32.mrf.mxu1 }
 0x2d9   : > { %v2806_v3 = vadd.f32 %v2771_v15, %v6928_v28 }
 0x2da   : > { %v4144_v0 = vadd.f32 %v4106_v19, %v3747_v27 }
 0x2db   : > { %v3054_v33 = vpop.f32.mrf.mxu2 }
 0x2dc   : > { %v4239_v25 = vadd.f32 %v4238_v49, %v4144_v0  ;;  %v3091_v32 = vadd.f32 %v3054_v33, %v2805_v47 }
 0x2de   : > { %v4108_v17 = vpop.f32.mrf.mxu0 }
 0x2df   : > { %v3711_v55 = vpop.f32.mrf.mxu3 }
 0x2e0   : > { %v3748_v6 = vadd.f32 %v3711_v55, %v3091_v32  ;;  %v2773_v10 = vpop.f32.mrf.mxu1 }
 0x2e1   : > { %v2807_v5 = vadd.f32 %v2773_v10, %v6929_v59 }
 0x2e2   : > { %v4145_v7 = vadd.f32 %v4108_v17, %v3748_v6 }
 0x2e3   : > { %v3057_v21 = vpop.f32.mrf.mxu2 }
 0x2e4   : > { %v5172_v24 = vpack.c.bf16 %v4145_v7, %v4144_v0  ;;  %v4240_v63 = vadd.f32 %v4239_v25, %v4145_v7  ;;  %v3092_v45 = vadd.f32 %v3057_v21, %v2806_v3 }
 0x2e6   : > { %5192 = vst [vmem:[%s6455_s19 + $0x70] sm:$0xff] %v5172_v24   ;;  %v4111_v2 = vpop.f32.mrf.mxu0 }
 0x2e7   : > { %v3714_v52 = vpop.f32.mrf.mxu3 }
 0x2e8   : > { %v3749_v4 = vadd.f32 %v3714_v52, %v3092_v45 }
 0x2ea   : > { %v4146_v60 = vadd.f32 %v4111_v2, %v3749_v4 }
 0x2eb   : > { %v3059_v34 = vpop.f32.mrf.mxu2 }
 0x2ec   : > { %v4241_v58 = vadd.f32 %v4240_v63, %v4146_v60  ;;  %v3093_v46 = vadd.f32 %v3059_v34, %v2807_v5 }
 0x2ee   : > { %v4113_v12 = vpop.f32.mrf.mxu0 }
 0x2ef   : > { %v3716_v38 = vpop.f32.mrf.mxu3 }
 0x2f0   : > { %v3750_v30 = vadd.f32 %v3716_v38, %v3093_v46 }
 0x2f2   : > { %v4147_v22 = vadd.f32 %v4113_v12, %v3750_v30 }
 0x2f4   : > { %v5177_v62 = vpack.c.bf16 %v4147_v22, %v4146_v60  ;;  %v4242_v49 = vadd.f32 %v4241_v58, %v4147_v22 }
 0x2f6   : > { %5193 = vst [vmem:[%s6455_s19 + $0x78] sm:$0xff] %v5177_v62   ;;  %v4243_v48 = vrot.slane %v4242_v49, 4 }
 0x2f8   : > { %v4244_v19 = vadd.f32 %v4243_v48, %v4242_v49 }
 0x2fa   : > { %v4245_v54 = vrot.slane %v4244_v19, 2 }
 0x2fc   : > { %v4246_v27 = vadd.f32 %v4245_v54, %v4244_v19 }
 0x2fe   : > { %v4247_v47 = vrot.slane %v4246_v27, 1 }
 0x300   : > { %v4248_v33 = vadd.f32 %v4247_v47, %v4246_v27 }
 0x302   : > { %4351 = vst [vmem:[%s6815_s23] sm:$0x1] %v4248_v33  ;;  %v6818_v25 = vmul.f32 0.00390625, %v4248_v33 }
 0x304   : > { %v6821_v32 = vsub.f32 %v4142_v41, %v6818_v25  ;;  %v6824_v15 = vsub.f32 %v4143_v13, %v6818_v25  ;;  %v6827_v17 = vsub.f32 %v4144_v0, %v6818_v25  ;;  %v6830_v55 = vsub.f32 %v4145_v7, %v6818_v25 }
 0x305   : > { %v6833_v6 = vsub.f32 %v4146_v60, %v6818_v25  ;;  %v6836_v28 = vsub.f32 %v4147_v22, %v6818_v25  ;;  %v4250_v3 = vsub.f32 %v6444_v40, %v6818_v25  ;;  %v4251_v41 = vsub.f32 %v6446_v39, %v6818_v25 }
 0x306   : > { %v4252_v13 = vsub.f32 %v6499_v23, %v6818_v25  ;;  %v4253_v7 = vsub.f32 %v6501_v31, %v6818_v25  ;;  %v4254_v24 = vsub.f32 %v6547_v18, %v6818_v25  ;;  %v4255_v10 = vsub.f32 %v6549_v29, %v6818_v25 }
 0x307   : > { %v4282_v0 = vmul.f32 %v4250_v3, %v4250_v3  ;;  %v4283_v21 = vmul.f32 %v4251_v41, %v4251_v41  ;;  %v4256_v39 = vsub.f32 %v6596_v50, %v6818_v25  ;;  %v4257_v4 = vsub.f32 %v6598_v51, %v6818_v25 }
 0x308   : > { %v4284_v63 = vmul.f32 %v4252_v13, %v4252_v13  ;;  %v4285_v40 = vmul.f32 %v4253_v7, %v4253_v7  ;;  %v4286_v52 = vmul.f32 %v4254_v24, %v4254_v24  ;;  %v4287_v60 = vmul.f32 %v4255_v10, %v4255_v10 }
 0x309   : > { %v4314_v45 = vadd.f32 %v4283_v21, %v4282_v0  ;;  %v4258_v18 = vsub.f32 %v6645_v11, %v6818_v25  ;;  %v4288_v59 = vmul.f32 %v4256_v39, %v4256_v39  ;;  %v4259_v29 = vsub.f32 %v6647_v36, %v6818_v25 }
 0x30a   : > { %v4289_v34 = vmul.f32 %v4257_v4, %v4257_v4  ;;  %v4260_v50 = vsub.f32 %v6688_v35, %v6818_v25  ;;  %v4261_v51 = vsub.f32 %v6690_v42, %v6818_v25  ;;  %v4262_v11 = vsub.f32 %v6713_v43, %v6818_v25 }
 0x30b   : > { %v4315_v2 = vadd.f32 %v4314_v45, %v4284_v63  ;;  %v4290_v46 = vmul.f32 %v4258_v18, %v4258_v18  ;;  %v4291_v30 = vmul.f32 %v4259_v29, %v4259_v29  ;;  %v4263_v36 = vsub.f32 %v6715_v16, %v6818_v25 }
 0x30c   : > { %v4292_v22 = vmul.f32 %v4260_v50, %v4260_v50  ;;  %v4293_v49 = vmul.f32 %v4261_v51, %v4261_v51  ;;  %v4264_v35 = vsub.f32 %v6724_v37, %v6818_v25  ;;  %v4294_v19 = vmul.f32 %v4262_v11, %v4262_v11 }
 0x30d   : > { %v4316_v23 = vadd.f32 %v4315_v2, %v4285_v40  ;;  %v4265_v42 = vsub.f32 %v6726_v9, %v6818_v25  ;;  %v4295_v27 = vmul.f32 %v4263_v36, %v4263_v36  ;;  %v4266_v43 = vsub.f32 %v6733_v20, %v6818_v25 }
 0x30e   : > { %v4296_v33 = vmul.f32 %v4264_v35, %v4264_v35  ;;  %v4267_v16 = vsub.f32 %v6735_v26, %v6818_v25  ;;  %v4268_v37 = vsub.f32 %v6742_v14, %v6818_v25  ;;  %v4269_v9 = vsub.f32 %v6744_v61, %v6818_v25 }
 0x30f   : > { %v4317_v31 = vadd.f32 %v4316_v23, %v4286_v52  ;;  %v4297_v41 = vmul.f32 %v4265_v42, %v4265_v42  ;;  %v4298_v0 = vmul.f32 %v4266_v43, %v4266_v43  ;;  %v4270_v20 = vsub.f32 %v6754_v8, %v6818_v25 }
 0x310   : > { %v4299_v7 = vmul.f32 %v4267_v16, %v4267_v16  ;;  %v4300_v63 = vmul.f32 %v4268_v37, %v4268_v37  ;;  %v4271_v26 = vsub.f32 %v6756_v57, %v6818_v25  ;;  %v4301_v10 = vmul.f32 %v4269_v9, %v4269_v9 }
 0x311   : > { %v4318_v5 = vadd.f32 %v4317_v31, %v4287_v60  ;;  %v4272_v14 = vsub.f32 %v6771_v56, %v6818_v25  ;;  %v4302_v2 = vmul.f32 %v4270_v20, %v4270_v20  ;;  %v4273_v61 = vsub.f32 %v6773_v44, %v6818_v25 }
 0x312   : > { %v4303_v52 = vmul.f32 %v4271_v26, %v4271_v26  ;;  %v4274_v8 = vsub.f32 %v6788_v53, %v6818_v25  ;;  %v4275_v57 = vsub.f32 %v6790_v1, %v6818_v25  ;;  %v4310_v53 = vmul.f32 %v6827_v17, %v6827_v17 }
 0x313   : > { %v4319_v58 = vadd.f32 %v4318_v5, %v4288_v59  ;;  %v4304_v4 = vmul.f32 %v4272_v14, %v4272_v14  ;;  %v4305_v31 = vmul.f32 %v4273_v61, %v4273_v61  ;;  %v4311_v1 = vmul.f32 %v6830_v55, %v6830_v55 }
 0x314   : > { %v4306_v59 = vmul.f32 %v4274_v8, %v4274_v8  ;;  %v4307_v56 = vmul.f32 %v4275_v57, %v4275_v57 }
 0x315   : > { %v4320_v38 = vadd.f32 %v4319_v58, %v4289_v34  ;;  %v4308_v34 = vmul.f32 %v6821_v32, %v6821_v32  ;;  %v4309_v58 = vmul.f32 %v6824_v15, %v6824_v15  ;;  %v4313_v32 = vmul.f32 %v6836_v28, %v6836_v28 }
 0x317   : > { %v4321_v12 = vadd.f32 %v4320_v38, %v4290_v46  ;;  %v4312_v38 = vmul.f32 %v6833_v6, %v6833_v6 }
 0x319   : > { %v4322_v62 = vadd.f32 %v4321_v12, %v4291_v30 }
 0x31b   : > { %v4323_v48 = vadd.f32 %v4322_v62, %v4292_v22 }
 0x31d   : > { %v4324_v54 = vadd.f32 %v4323_v48, %v4293_v49 }
 0x31f   : > { %v4325_v47 = vadd.f32 %v4324_v54, %v4294_v19 }
 0x321   : > { %v4326_v3 = vadd.f32 %v4325_v47, %v4295_v27 }
 0x323   : > { %v4327_v13 = vadd.f32 %v4326_v3, %v4296_v33 }
 0x325   : > { %v4328_v21 = vadd.f32 %v4327_v13, %v4297_v41 }
 0x327   : > { %v4329_v24 = vadd.f32 %v4328_v21, %v4298_v0 }
 0x329   : > { %v4330_v45 = vadd.f32 %v4329_v24, %v4299_v7 }
 0x32b   : > { %v4331_v40 = vadd.f32 %v4330_v45, %v4300_v63 }
 0x32d   : > { %v4332_v39 = vadd.f32 %v4331_v40, %v4301_v10 }
 0x32f   : > { %v4333_v23 = vadd.f32 %v4332_v39, %v4302_v2 }
 0x331   : > { %v4334_v60 = vadd.f32 %v4333_v23, %v4303_v52 }
 0x333   : > { %v4335_v18 = vadd.f32 %v4334_v60, %v4304_v4 }
 0x335   : > { %v4336_v5 = vadd.f32 %v4335_v18, %v4305_v31 }
 0x337   : > { %v4337_v29 = vadd.f32 %v4336_v5, %v4306_v59 }
 0x339   : > { %v4338_v44 = vadd.f32 %v4337_v29, %v4307_v56 }
 0x33b   : > { %v4339_v50 = vadd.f32 %v4338_v44, %v4308_v34 }
 0x33d   : > { %v4340_v46 = vadd.f32 %v4339_v50, %v4309_v58 }
 0x33f   : > { %v4341_v25 = vadd.f32 %v4340_v46, %v4310_v53 }
 0x341   : > { %v4342_v51 = vadd.f32 %v4341_v25, %v4311_v1 }
 0x343   : > { %v4343_v30 = vadd.f32 %v4342_v51, %v4312_v38 }
 0x345   : > { %v4344_v12 = vadd.f32 %v4343_v30, %v4313_v32 }
 0x347   : > { %v4345_v15 = vrot.slane %v4344_v12, 4 }
 0x349   : > { %v4346_v11 = vadd.f32 %v4345_v15, %v4344_v12 }
 0x34b   : > { %v4347_v22 = vrot.slane %v4346_v11, 2 }
 0x34d   : > { %v4348_v62 = vadd.f32 %v4347_v22, %v4346_v11 }
 0x34f   : > { %v4349_v36 = vrot.slane %v4348_v62, 1 }
 0x351   : > { %v4350_v17 = vadd.f32 %v4349_v36, %v4348_v62 }
 0x353   : > { %4352 = vst [vmem:[%s6815_s23 + $0x1] sm:$0x1] %v4350_v17 }
 0x354 PF: > { %s14_s14 = sadd.s32 1, %s5294_s14   ;;  %s6930_s12 = smov %s5290_s13 }
 0x355   : > { %p11_p6 = scmp.ge.s32.totalorder %s14_s14, 4   ;;  %s6931_s13 = smov %s6933_s15 }
 0x357   :  { %13 = sbr.rel (!%p11_p6) target bundleno = 2 (0x2), region = 72 }

// kernel: double_conv.6
= control target key start
LH: loop header
LB: loop body
LE: loop exit
PB: predicated region body
PF: predicated region fallthrough
CT: control target
= control target key end

     0   :  { %s5300_s12 = smov 0   ;;  %s5302_s13 = smov 0   ;;  %s6894_s0 = inlined_call_operand.vmem [shape: bf16[6,16,18,8], index: 0, kind: input, shape index: {}]   ;;  %s6895_s1 = inlined_call_operand.vmem [shape: bf16[72,128], index: 1, kind: input, shape index: {}]   ;;  %s6896_s2 = inlined_call_operand.vmem [shape: bf16[2,256,128], index: 2, kind: output, shape index: {0}]   ;;  %s6897_s3 = inlined_call_operand.vmem [shape: f32[2,2,128], index: 3, kind: output, shape index: {1}]  }
   0x1   :  { %s5304_s14 = smov 0  }
   0x2 LB: > { %s26_s15 = sadd.s32 1, %s5274_s13  ;;  %p4451_p0 = scmp.ge.s32.totalorder %s5278_s14, 1  ;;  %s5278_s14 = sphi %s5304_s14, %s14_s14   ;;  %s5274_s13 = sphi %s5302_s13, %s6913_s13   ;;  %s5270_s12 = sphi %s5300_s12, %s6912_s12  }
   0x3   : > { %p28_p1 = scmp.ge.s32.totalorder %s26_s15, 2  ;;  %p166_p2 = scmp.lt.s32.totalorder %s5278_s14, 3 }
   0x5   : > { %s6915_s15 = smov (%p28_p1, %s26_s15), 0  ;;  %p167_p3 = pnand %p4451_p0, %p166_p2 }
   0x7   : > { %170 = sbr.rel (%p167_p3) target bundleno = 852 (0x354), region = 28 }
   0xc   : > { %v665_v0 = vld [vmem:[%s6895_s1 + $0x4] sm:$0xf]  ;;  %vm763_vm0 = vcmask 1043456   ;;  %s202_s18 = smul.u32 3, %s5270_s12  ;;  %v1239_v2 = vld [vmem:[%s6895_s1 + $0x8] sm:$0xf] }
   0xd   : > { %v765_v1 = vsel %vm763_vm0, %v665_v0, 0  ;;  %v1337_v3 = vsel %vm763_vm0, %v1239_v2, 0  ;;  %v1493_v4 = vld [vmem:[%s6895_s1 + $0xc] sm:$0xf]  ;;  %v261_v5 = vld [vmem:[%s6895_s1] sm:$0xf] }
   0xe   : > { %5178 = vmatpush.bf16.msra.mxu1 %v765_v1  ;;  %5179 = vmatpush.bf16.msra.mxu2 %v765_v1  ;;  %p204_p4 = scmp.lt.s32.totalorder %s202_s18, 5  ;;  %v2178_v6 = vld [vmem:[%s6895_s1 + $0x10] sm:$0xf]  ;;  %v1623_v7 = vsel %vm763_vm0, %v1493_v4, 0  ;;  %v985_v8 = vsel %vm763_vm0, %v261_v5, 0  ;;  %vm714_vm4 = vcmask 64512  }
   0xf   : > { %5180 = vmatpush.bf16.msra.mxu3 %v765_v1  ;;  %774 = vmatpush.bf16.msra.mxu0 %v765_v1  ;;  %v2276_v9 = vsel %vm763_vm0, %v2178_v6, 0  ;;  %vm278_vm1 = vsmask.f32 3328  ;;  %vm279_vm2 = vsmask.f32 7440  ;;  %vm1124_vm5 = vcmask 1042432  }
  0x10   : > { %s6917_s18 = smov (!%p204_p4, %s202_s18), 5  ;;  %vm5356_vm3 = vmor %vm278_vm1, %vm279_vm2  ;;  %vm1125_vm6 = vcmask 1046532   ;;  %p216_p5 = scmp.lt.s32.totalorder %s5270_s12, 1 }
  0x11   : > { %s5181_s27 = smul.u32 192, %s6917_s18  ;;  %vm5530_vm7 = vmor %vm1124_vm5, %vm1125_vm6 }
  0x12   : > { %1346 = vmatpush.bf16.msrb.mxu2 %v1337_v3  ;;  %994 = vmatpush.bf16.msrb.mxu1 %v985_v8  ;;  %s6919_s12 = smov (!%p216_p5, %s5270_s12), 1 }
  0x13   : > { %1632 = vmatpush.bf16.msrb.mxu3 %v1623_v7  ;;  %s5344_s30 = scalar_lea.vmem %s6894_s0, %s5181_s27  ;;  %2285 = vmatpush.bf16.msrb.mxu0 %v2276_v9  ;;  %s5034_s16 = sshll.u32 %s6919_s12, 7 }
  0x14   : > { %v237_v10 = vld [vmem:[%s5344_s30 + $0x30] sm:$0xf]  ;;  %v238_v11 = vld [vmem:[%s5344_s30 + $0x34] sm:$0xf]  ;;  %v266_v12 = vld [vmem:[%s5344_s30 + $0x38] sm:$0x1]  ;;  %s6437_s19 = scalar_lea.vmem %s6896_s2, %s5034_s16 }
  0x15   : > { %v378_v13 = vshrl.u32 %v237_v10, 16  ;;  %v381_v14 = vshll.u32 %v237_v10, 16  ;;  %v387_v15 = vshll.u32 %v238_v11, 16  ;;  %v391_v16 = vshrl.u32 %v238_v11, 16  ;;  %v245_v17 = vld [vmem:[%s5344_s30 + $0x60] sm:$0xf] }
  0x16   : > { %v397_v18 = vshll.u32 %v266_v12, 16  ;;  %v246_v19 = vld [vmem:[%s5344_s30 + $0x64] sm:$0xf]  ;;  %v270_v20 = vld [vmem:[%s5344_s30 + $0x68] sm:$0x1]  ;;  %v474_v21 = vshrl.u32 %v245_v17, 16 }
  0x17   : > { %v380_v22 = vrot.slane %v378_v13, 4  ;;  %v383_v23 = vrot.slane %v381_v14, 5  ;;  %v389_v24 = vrot.slane %v387_v15, 5  ;;  %v393_v25 = vrot.slane %v391_v16, 4  ;;  %v253_v26 = vld [vmem:[%s5344_s30 + $0x90] sm:$0xf] }
  0x18   : > { %v399_v27 = vrot.slane %v397_v18, 5  ;;  %v476_v28 = vrot.slane %v474_v21, 4  ;;  %v477_v29 = vshll.u32 %v245_v17, 16  ;;  %v483_v30 = vshll.u32 %v246_v19, 16  ;;  %v254_v35 = vld [vmem:[%s5344_s30 + $0x94] sm:$0xf] }
  0x19   : > { %v384_v31 = vor.u32 %v383_v23, %v380_v22  ;;  %v394_v32 = vor.u32 %v393_v25, %v389_v24  ;;  %v487_v33 = vshrl.u32 %v246_v19, 16  ;;  %v493_v34 = vshll.u32 %v270_v20, 16  ;;  %v274_v45 = vld [vmem:[%s5344_s30 + $0x98] sm:$0x1]  ;;  %v229_v61 = vld [vmem:[%s5344_s30] sm:$0xf] }
  0x1a   : > { %v479_v37 = vrot.slane %v477_v29, 5  ;;  %v485_v38 = vrot.slane %v483_v30, 5  ;;  %v570_v39 = vshrl.u32 %v253_v26, 16  ;;  %v573_v47 = vshll.u32 %v253_v26, 16  ;;  %v5369_v1 = vld [vmem:[%s5344_s30 + $0x4] sm:$0xf] }
  0x1b   : > { %v385_v40 = vrot.slane %v384_v31, 4  ;;  %v395_v41 = vrot.slane %v394_v32, 4  ;;  %v489_v42 = vrot.slane %v487_v33, 4  ;;  %v495_v43 = vrot.slane %v493_v34, 5  ;;  %v5372_v2 = vld [vmem:[%s5344_s30 + $0x8] sm:$0x1] }
  0x1c   : > { %v480_v44 = vor.u32 %v479_v37, %v476_v28  ;;  %v572_v46 = vrot.slane %v570_v39, 4  ;;  %v579_v48 = vshll.u32 %v254_v35, 16  ;;  %v583_v52 = vshrl.u32 %v254_v35, 16  ;;  %v239_v19 = vld [vmem:[%s5344_s30 + $0x3c] sm:$0xf]  ;;  %s4455_s20 = sshll.u32 %s6919_s12, 1 }
  0x1d   : > { %v390_v49 = vsel %vm5356_vm3, %v385_v40, %v389_v24  ;;  %v400_v50 = vsel %vm5356_vm3, %v395_v41, %v399_v27  ;;  %v490_v51 = vor.u32 %v489_v42, %v485_v38  ;;  %v575_v56 = vrot.slane %v573_v47, 5  ;;  %v5384_v20 = vld [vmem:[%s5344_s30 + $0x40] sm:$0xf]  ;;  %v5389_v25 = vld [vmem:[%s5344_s30 + $0x44] sm:$0x1]  ;;  %s6797_s23 = scalar_lea.vmem %s6897_s3, %s4455_s20 }
  0x1e   : > { %v674_v53 = vunpack.c.l.b16 %v390_v49  ;;  %v675_v54 = vunpack.c.l.b16 %v400_v50  ;;  %v481_v55 = vrot.slane %v480_v44, 4  ;;  %v581_v58 = vrot.slane %v579_v48, 5  ;;  %v247_v33 = vld [vmem:[%s5344_s30 + $0x6c] sm:$0xf]  ;;  %v271_v47 = vld [vmem:[%s5344_s30 + $0x74] sm:$0x1] }
  0x1f   : > { %v491_v57 = vrot.slane %v490_v51, 4  ;;  %v585_v59 = vrot.slane %v583_v52, 4  ;;  %v589_v60 = vshll.u32 %v274_v45, 16  ;;  %v576_v0 = vor.u32 %v575_v56, %v572_v46 }
  0x20   : > { %v702_v62 = vpack.c.b16 %v675_v54, %v674_v53  ;;  %v486_v63 = vsel %vm5356_vm3, %v481_v55, %v485_v38  ;;  %v282_v9 = vshrl.u32 %v229_v61, 16  ;;  %v285_v10 = vshll.u32 %v229_v61, 16  ;;  %v255_v61 = vld [vmem:[%s5344_s30 + $0x9c] sm:$0xf] }
  0x21   : > { %v496_v3 = vsel %vm5356_vm3, %v491_v57, %v495_v43  ;;  %v682_v4 = vunpack.c.l.b16 %v486_v63  ;;  %v586_v5 = vor.u32 %v585_v59, %v581_v58  ;;  %v591_v6 = vrot.slane %v589_v60, 5  ;;  %v248_v43 = vld [vmem:[%s5344_s30 + $0x70] sm:$0xf] }
  0x22   : > { %4460 = vmatmul.msk.bf16.vlgmr.msra.gmra.mxu1 %vm714_vm4, %v702_v62  ;;  %v683_v7 = vunpack.c.l.b16 %v496_v3  ;;  %v577_v8 = vrot.slane %v576_v0, 4  ;;  %v291_v12 = vshll.u32 %v5369_v1, 16  ;;  %v295_v13 = vshrl.u32 %v5369_v1, 16  ;;  %v256_v3 = vld [vmem:[%s5344_s30 + $0xa0] sm:$0xf] }
  0x23   : > { %v587_v11 = vrot.slane %v586_v5, 4  ;;  %v301_v14 = vshll.u32 %v5372_v2, 16  ;;  %v284_v17 = vrot.slane %v282_v9, 4  ;;  %v287_v18 = vrot.slane %v285_v10, 5 }
  0x24   : > { %v706_v15 = vpack.c.b16 %v683_v7, %v682_v4  ;;  %v582_v16 = vsel %vm5356_vm3, %v577_v8, %v581_v58  ;;  %v293_v23 = vrot.slane %v291_v12, 5  ;;  %v297_v24 = vrot.slane %v295_v13, 4  ;;  %v275_v8 = vld [vmem:[%s5344_s30 + $0xa4] sm:$0x1] }
  0x25   : > { %v592_v21 = vsel %vm5356_vm3, %v587_v11, %v591_v6  ;;  %v690_v22 = vunpack.c.l.b16 %v582_v16  ;;  %v288_v27 = vor.u32 %v287_v18, %v284_v17  ;;  %v303_v28 = vrot.slane %v301_v14, 5 }
  0x26   : > { %4464 = vmatmul.msk.bf16.vlgmr.msra.gmra.mxu2 %vm714_vm4, %v706_v15  ;;  %v691_v26 = vunpack.c.l.b16 %v592_v21  ;;  %v298_v29 = vor.u32 %v297_v24, %v293_v23  ;;  %v402_v30 = vshrl.u32 %v239_v19, 16  ;;  %v405_v31 = vshll.u32 %v239_v19, 16 }
  0x27   : > { %v411_v32 = vshll.u32 %v5384_v20, 16  ;;  %v289_v35 = vrot.slane %v288_v27, 4  ;;  %v415_v37 = vshrl.u32 %v5384_v20, 16  ;;  %v421_v38 = vshll.u32 %v5389_v25, 16 }
  0x28   : > { %v710_v34 = vpack.c.b16 %v691_v26, %v690_v22  ;;  %v299_v39 = vrot.slane %v298_v29, 4  ;;  %v404_v40 = vrot.slane %v402_v30, 4  ;;  %v407_v41 = vrot.slane %v405_v31, 5  ;;  %v231_v22 = vld [vmem:[%s5344_s30 + $0xc] sm:$0xf] }
  0x29   : > { %v413_v42 = vrot.slane %v411_v32, 5  ;;  %v294_v44 = vsel %vm5356_vm3, %v289_v35, %v293_v23  ;;  %v417_v45 = vrot.slane %v415_v37, 4  ;;  %v423_v46 = vrot.slane %v421_v38, 5  ;;  %v5418_v32 = vld [vmem:[%s5344_s30 + $0x14] sm:$0x1] }
  0x2a   : > { %4468 = vmatmul.msk.bf16.vlgmr.msra.gmra.mxu3 %vm714_vm4, %v710_v34  ;;  %v498_v48 = vshrl.u32 %v247_v33, 16  ;;  %v304_v49 = vsel %vm5356_vm3, %v299_v39, %v303_v28  ;;  %v666_v50 = vunpack.c.l.b16 %v294_v44  ;;  %v408_v51 = vor.u32 %v407_v41, %v404_v40  ;;  %v5415_v28 = vld [vmem:[%s5344_s30 + $0x10] sm:$0xf] }
  0x2b   : > { %v501_v52 = vshll.u32 %v247_v33, 16  ;;  %v667_v53 = vunpack.c.l.b16 %v304_v49  ;;  %v418_v54 = vor.u32 %v417_v45, %v413_v42  ;;  %v507_v56 = vshll.u32 %v248_v43, 16 }
  0x2c   : > { %v500_v55 = vrot.slane %v498_v48, 4  ;;  %v409_v57 = vrot.slane %v408_v51, 4  ;;  %v511_v59 = vshrl.u32 %v248_v43, 16  ;;  %v517_v60 = vshll.u32 %v271_v47, 16  ;;  %v5428_v47 = vld [vmem:[%s5344_s30 + $0x4c] sm:$0xf] }
  0x2d   : > { %v503_v58 = vrot.slane %v501_v52, 5  ;;  %v698_v62 = vpack.c.b16 %v667_v53, %v666_v50  ;;  %v419_v63 = vrot.slane %v418_v54, 4  ;;  %v509_v0 = vrot.slane %v507_v56, 5  ;;  %v5433_v56 = vld [vmem:[%s5344_s30 + $0x50] sm:$0x1] }
  0x2e   : > { %v414_v4 = vsel %vm5356_vm3, %v409_v57, %v413_v42  ;;  %v513_v6 = vrot.slane %v511_v59, 4  ;;  %v519_v7 = vrot.slane %v517_v60, 5  ;;  %v594_v11 = vshrl.u32 %v255_v61, 16  ;;  %v241_v42 = vld [vmem:[%s5344_s30 + $0x48] sm:$0xf] }
  0x2f   : > { %v504_v5 = vor.u32 %v503_v58, %v500_v55  ;;  %4456 = vmatmul.msk.bf16.vlgmr.msra.gmra.mxu0 %vm714_vm4, %v698_v62  ;;  %v424_v9 = vsel %vm5356_vm3, %v419_v63, %v423_v46  ;;  %v676_v10 = vunpack.c.l.b16 %v414_v4  ;;  %v597_v12 = vshll.u32 %v255_v61, 16 }
  0x30   : > { %v677_v13 = vunpack.c.l.b16 %v424_v9  ;;  %v514_v15 = vor.u32 %v513_v6, %v509_v0  ;;  %v603_v16 = vshll.u32 %v256_v3, 16  ;;  %v596_v17 = vrot.slane %v594_v11, 4 }
  0x31   : > { %v505_v14 = vrot.slane %v504_v5, 4  ;;  %v599_v18 = vrot.slane %v597_v12, 5  ;;  %v607_v19 = vshrl.u32 %v256_v3, 16  ;;  %v613_v21 = vshll.u32 %v275_v8, 16  ;;  %v249_v3 = vld [vmem:[%s5344_s30 + $0x78] sm:$0xf] }
  0x32   : > { %v703_v23 = vpack.c.b16 %v677_v13, %v676_v10  ;;  %v515_v26 = vrot.slane %v514_v15, 4  ;;  %v605_v27 = vrot.slane %v603_v16, 5  ;;  %v306_v35 = vshrl.u32 %v231_v22, 16  ;;  %v250_v8 = vld [vmem:[%s5344_s30 + $0x7c] sm:$0xf] }
  0x33   : > { %v510_v24 = vsel %vm5356_vm3, %v505_v14, %v509_v0  ;;  %v600_v30 = vor.u32 %v599_v18, %v596_v17  ;;  %v609_v31 = vrot.slane %v607_v19, 4  ;;  %v615_v34 = vrot.slane %v613_v21, 5  ;;  %v272_v16 = vld [vmem:[%s5344_s30 + $0x80] sm:$0x1] }
  0x34   : > { %v684_v29 = vunpack.c.l.b16 %v510_v24  ;;  %4461 = vmatmul.msk.bf16.gmra.mxu1 %vm714_vm4, %v703_v23  ;;  %v520_v33 = vsel %vm5356_vm3, %v515_v26, %v519_v7  ;;  %v309_v37 = vshll.u32 %v231_v22, 16  ;;  %v315_v41 = vshll.u32 %v5415_v28, 16 }
  0x35   : > { %v685_v38 = vunpack.c.l.b16 %v520_v33  ;;  %v601_v39 = vrot.slane %v600_v30, 4  ;;  %v610_v40 = vor.u32 %v609_v31, %v605_v27  ;;  %v308_v43 = vrot.slane %v306_v35, 4 }
  0x36   : > { %v311_v44 = vrot.slane %v309_v37, 5  ;;  %v319_v45 = vshrl.u32 %v5415_v28, 16  ;;  %v325_v46 = vshll.u32 %v5418_v32, 16  ;;  %v317_v51 = vrot.slane %v315_v41, 5 }
  0x37   : > { %v707_v48 = vpack.c.b16 %v685_v38, %v684_v29  ;;  %v606_v49 = vsel %vm5356_vm3, %v601_v39, %v605_v27  ;;  %v611_v50 = vrot.slane %v610_v40, 4  ;;  %v426_v58 = vshrl.u32 %v241_v42, 16  ;;  %v258_v39 = vld [vmem:[%s5344_s30 + $0xac] sm:$0xf]  ;;  %v276_v40 = vld [vmem:[%s5344_s30 + $0xb0] sm:$0x1] }
  0x38   : > { %v692_v52 = vunpack.c.l.b16 %v606_v49  ;;  %v312_v53 = vor.u32 %v311_v44, %v308_v43  ;;  %v321_v54 = vrot.slane %v319_v45, 4  ;;  %v327_v55 = vrot.slane %v325_v46, 5 }
  0x39   : > { %4465 = vmatmul.msk.bf16.gmra.mxu2 %vm714_vm4, %v707_v48  ;;  %v616_v57 = vsel %vm5356_vm3, %v611_v50, %v615_v34  ;;  %v429_v59 = vshll.u32 %v241_v42, 16  ;;  %v435_v60 = vshll.u32 %v5428_v47, 16  ;;  %v439_v0 = vshrl.u32 %v5428_v47, 16  ;;  %v257_v34 = vld [vmem:[%s5344_s30 + $0xa8] sm:$0xf] }
  0x3a   : > { %v693_v61 = vunpack.c.l.b16 %v616_v57  ;;  %v313_v62 = vrot.slane %v312_v53, 4  ;;  %v322_v63 = vor.u32 %v321_v54, %v317_v51  ;;  %v428_v4 = vrot.slane %v426_v58, 4 }
  0x3b   : > { %v431_v5 = vrot.slane %v429_v59, 5  ;;  %v437_v6 = vrot.slane %v435_v60, 5  ;;  %v445_v7 = vshll.u32 %v5433_v56, 16  ;;  %v441_v12 = vrot.slane %v439_v0, 4  ;;  %v233_v59 = vld [vmem:[%s5344_s30 + $0x18] sm:$0xf] }
  0x3c   : > { %v711_v9 = vpack.c.b16 %v693_v61, %v692_v52  ;;  %v318_v10 = vsel %vm5356_vm3, %v313_v62, %v317_v51  ;;  %v323_v11 = vrot.slane %v322_v63, 4  ;;  %v522_v17 = vshrl.u32 %v249_v3, 16  ;;  %v5461_v63 = vld [vmem:[%s5344_s30 + $0x1c] sm:$0xf]  ;;  %v5464_v0 = vld [vmem:[%s5344_s30 + $0x20] sm:$0x1] }
  0x3d   : > { %v668_v13 = vunpack.c.l.b16 %v318_v10  ;;  %v432_v14 = vor.u32 %v431_v5, %v428_v4  ;;  %v447_v15 = vrot.slane %v445_v7, 5  ;;  %v442_v19 = vor.u32 %v441_v12, %v437_v6 }
  0x3e   : > { %4469 = vmatmul.msk.bf16.gmra.mxu3 %vm714_vm4, %v711_v9  ;;  %v328_v18 = vsel %vm5356_vm3, %v323_v11, %v327_v55  ;;  %v525_v21 = vshll.u32 %v249_v3, 16  ;;  %v531_v22 = vshll.u32 %v250_v8, 16  ;;  %v524_v26 = vrot.slane %v522_v17, 4 }
  0x3f   : > { %v669_v23 = vunpack.c.l.b16 %v328_v18  ;;  %v433_v24 = vrot.slane %v432_v14, 4  ;;  %v535_v27 = vshrl.u32 %v250_v8, 16  ;;  %v443_v29 = vrot.slane %v442_v19, 4 }
  0x40   : > { %v527_v30 = vrot.slane %v525_v21, 5  ;;  %v533_v31 = vrot.slane %v531_v22, 5  ;;  %v541_v33 = vshll.u32 %v272_v16, 16  ;;  %v618_v48 = vshrl.u32 %v257_v34, 16  ;;  %v5474_v21 = vld [vmem:[%s5344_s30 + $0x58] sm:$0xf] }
  0x41   : > { %v699_v35 = vpack.c.b16 %v669_v23, %v668_v13  ;;  %v438_v37 = vsel %vm5356_vm3, %v433_v24, %v437_v6  ;;  %v537_v38 = vrot.slane %v535_v27, 4  ;;  %v448_v41 = vsel %vm5356_vm3, %v443_v29, %v447_v15  ;;  %v243_v15 = vld [vmem:[%s5344_s30 + $0x54] sm:$0xf]  ;;  %v5479_v27 = vld [vmem:[%s5344_s30 + $0x5c] sm:$0x1] }
  0x42   : > { %v678_v42 = vunpack.c.l.b16 %v438_v37  ;;  %v528_v43 = vor.u32 %v527_v30, %v524_v26  ;;  %v543_v44 = vrot.slane %v541_v33, 5  ;;  %v679_v45 = vunpack.c.l.b16 %v448_v41 }
  0x43   : > { %4457 = vmatmul.msk.bf16.gmra.mxu0 %vm714_vm4, %v699_v35  ;;  %v538_v46 = vor.u32 %v537_v38, %v533_v31  ;;  %v621_v49 = vshll.u32 %v257_v34, 16  ;;  %v627_v51 = vshll.u32 %v258_v39, 16  ;;  %v631_v52 = vshrl.u32 %v258_v39, 16  ;;  %v251_v39 = vld [vmem:[%s5344_s30 + $0x84] sm:$0xf] }
  0x44   : > { %v529_v50 = vrot.slane %v528_v43, 4  ;;  %v637_v53 = vshll.u32 %v276_v40, 16  ;;  %v704_v54 = vpack.c.b16 %v679_v45, %v678_v42  ;;  %v620_v57 = vrot.slane %v618_v48, 4 }
  0x45   : > { %v539_v55 = vrot.slane %v538_v46, 4  ;;  %v623_v58 = vrot.slane %v621_v49, 5  ;;  %v629_v61 = vrot.slane %v627_v51, 5  ;;  %v633_v62 = vrot.slane %v631_v52, 4  ;;  %v252_v49 = vld [vmem:[%s5344_s30 + $0x88] sm:$0xf] }
  0x46   : > { %v534_v60 = vsel %vm5356_vm3, %v529_v50, %v533_v31  ;;  %4462 = vmatmul.msk.bf16.gmra.mxu1 %vm714_vm4, %v704_v54  ;;  %v639_v6 = vrot.slane %v637_v53, 5  ;;  %v330_v9 = vshrl.u32 %v233_v59, 16  ;;  %v333_v10 = vshll.u32 %v233_v59, 16  ;;  %v273_v53 = vld [vmem:[%s5344_s30 + $0x8c] sm:$0x1] }
  0x47   : > { %v544_v3 = vsel %vm5356_vm3, %v539_v55, %v543_v44  ;;  %v686_v4 = vunpack.c.l.b16 %v534_v60  ;;  %v624_v5 = vor.u32 %v623_v58, %v620_v57  ;;  %v634_v8 = vor.u32 %v633_v62, %v629_v61 }
  0x48   : > { %v687_v7 = vunpack.c.l.b16 %v544_v3  ;;  %v339_v12 = vshll.u32 %v5461_v63, 16  ;;  %v343_v13 = vshrl.u32 %v5461_v63, 16  ;;  %v349_v14 = vshll.u32 %v5464_v0, 16 }
  0x49   : > { %v625_v11 = vrot.slane %v624_v5, 4  ;;  %v635_v17 = vrot.slane %v634_v8, 4  ;;  %v332_v18 = vrot.slane %v330_v9, 4  ;;  %v335_v19 = vrot.slane %v333_v10, 5  ;;  %v259_v8 = vld [vmem:[%s5344_s30 + $0xb4] sm:$0xf] }
  0x4a   : > { %v708_v16 = vpack.c.b16 %v687_v7, %v686_v4  ;;  %v341_v23 = vrot.slane %v339_v12, 5  ;;  %v345_v24 = vrot.slane %v343_v13, 4  ;;  %v351_v26 = vrot.slane %v349_v14, 5  ;;  %v260_v12 = vld [vmem:[%s5344_s30 + $0xb8] sm:$0xf] }
  0x4b   : > { %v630_v22 = vsel %vm5356_vm3, %v625_v11, %v629_v61  ;;  %v640_v29 = vsel %vm5356_vm3, %v635_v17, %v639_v6  ;;  %v336_v31 = vor.u32 %v335_v19, %v332_v18  ;;  %v450_v33 = vshrl.u32 %v243_v15, 16  ;;  %v277_v17 = vld [vmem:[%s5344_s30 + $0xbc] sm:$0x1] }
  0x4c   : > { %4466 = vmatmul.msk.bf16.gmra.mxu2 %vm714_vm4, %v708_v16  ;;  %v694_v30 = vunpack.c.l.b16 %v630_v22  ;;  %v695_v34 = vunpack.c.l.b16 %v640_v29  ;;  %v346_v35 = vor.u32 %v345_v24, %v341_v23  ;;  %v453_v37 = vshll.u32 %v243_v15, 16 }
  0x4d   : > { %v459_v38 = vshll.u32 %v5474_v21, 16  ;;  %v337_v40 = vrot.slane %v336_v31, 4  ;;  %v452_v41 = vrot.slane %v450_v33, 4  ;;  %v463_v42 = vshrl.u32 %v5474_v21, 16 }
  0x4e   : > { %v469_v43 = vshll.u32 %v5479_v27, 16  ;;  %v712_v44 = vpack.c.b16 %v695_v34, %v694_v30  ;;  %v347_v45 = vrot.slane %v346_v35, 4  ;;  %v455_v46 = vrot.slane %v453_v37, 5  ;;  %v235_v37 = vld [vmem:[%s5344_s30 + $0x24] sm:$0xf] }
  0x4f   : > { %v461_v48 = vrot.slane %v459_v38, 5  ;;  %v342_v50 = vsel %vm5356_vm3, %v337_v40, %v341_v23  ;;  %v465_v51 = vrot.slane %v463_v42, 4  ;;  %v546_v54 = vshrl.u32 %v251_v39, 16  ;;  %v5507_v42 = vld [vmem:[%s5344_s30 + $0x28] sm:$0xf] }
  0x50   : > { %v471_v52 = vrot.slane %v469_v43, 5  ;;  %4470 = vmatmul.msk.bf16.gmra.mxu3 %vm714_vm4, %v712_v44  ;;  %v352_v55 = vsel %vm5356_vm3, %v347_v45, %v351_v26  ;;  %v670_v57 = vunpack.c.l.b16 %v342_v50  ;;  %v456_v58 = vor.u32 %v455_v46, %v452_v41 }
  0x51   : > { %v549_v59 = vshll.u32 %v251_v39, 16  ;;  %v671_v60 = vunpack.c.l.b16 %v352_v55  ;;  %v466_v61 = vor.u32 %v465_v51, %v461_v48  ;;  %v548_v62 = vrot.slane %v546_v54, 4 }
  0x52   : > { %v555_v3 = vshll.u32 %v252_v49, 16  ;;  %v457_v4 = vrot.slane %v456_v58, 4  ;;  %v559_v6 = vshrl.u32 %v252_v49, 16  ;;  %v565_v7 = vshll.u32 %v273_v53, 16 }
  0x53   : > { %v551_v5 = vrot.slane %v549_v59, 5  ;;  %v700_v9 = vpack.c.b16 %v671_v60, %v670_v57  ;;  %v467_v10 = vrot.slane %v466_v61, 4  ;;  %v642_v22 = vshrl.u32 %v259_v8, 16  ;;  %v1076_v61 = vld [vmem:[%s5344_s30] sm:$0xe] }
  0x54   : > { %v557_v11 = vrot.slane %v555_v3, 5  ;;  %v462_v13 = vsel %vm5356_vm3, %v457_v4, %v461_v48  ;;  %v561_v15 = vrot.slane %v559_v6, 4  ;;  %v567_v16 = vrot.slane %v565_v7, 5  ;;  %v5511_v48 = vld [vmem:[%s5344_s30 + $0x2c] sm:$0x1] }
  0x55   : > { %v552_v14 = vor.u32 %v551_v5, %v548_v62  ;;  %4458 = vmatmul.msk.bf16.gmra.mxu0 %vm714_vm4, %v700_v9  ;;  %v472_v18 = vsel %vm5356_vm3, %v467_v10, %v471_v52  ;;  %v680_v19 = vunpack.c.l.b16 %v462_v13  ;;  %v645_v23 = vshll.u32 %v259_v8, 16  ;;  %v4696_v6 = vld [vmem:[%s5344_s30 + $0xc0] sm:$0xf] }
  0x56   : > { %v681_v24 = vunpack.c.l.b16 %v472_v18  ;;  %v562_v29 = vor.u32 %v561_v15, %v557_v11  ;;  %v651_v30 = vshll.u32 %v260_v12, 16  ;;  %v644_v31 = vrot.slane %v642_v22, 4 }
  0x57   : > { %v553_v26 = vrot.slane %v552_v14, 4  ;;  %v647_v33 = vrot.slane %v645_v23, 5  ;;  %v655_v34 = vshrl.u32 %v260_v12, 16  ;;  %v661_v35 = vshll.u32 %v277_v17, 16  ;;  %v4697_v12 = vld [vmem:[%s5344_s30 + $0xc4] sm:$0xf] }
  0x58   : > { %v705_v38 = vpack.c.b16 %v681_v24, %v680_v19  ;;  %v563_v40 = vrot.slane %v562_v29, 4  ;;  %v653_v41 = vrot.slane %v651_v30, 5  ;;  %v1132_v43 = vrot.slane %v5372_v2, 5 }
  0x59   : > { %v558_v39 = vsel %vm5356_vm3, %v553_v26, %v557_v11  ;;  %v648_v45 = vor.u32 %v647_v33, %v644_v31  ;;  %v657_v46 = vrot.slane %v655_v34, 4  ;;  %v663_v50 = vrot.slane %v661_v35, 5  ;;  %v2829_v11 = vld [vmem:[%s6895_s1 + $0x18] sm:$0xf] }
  0x5a   : > { %v688_v44 = vunpack.c.l.b16 %v558_v39  ;;  %4463 = vmatmul.msk.bf16.gmra.mxu1 %vm714_vm4, %v705_v38  ;;  %v568_v49 = vsel %vm5356_vm3, %v563_v40, %v567_v16  ;;  %v354_v51 = vshrl.u32 %v235_v37, 16  ;;  %v357_v52 = vshll.u32 %v235_v37, 16  ;;  %v4698_v38 = vld [vmem:[%s5344_s30 + $0xc8] sm:$0x1] }
  0x5b   : > { %v689_v53 = vunpack.c.l.b16 %v568_v49  ;;  %v649_v54 = vrot.slane %v648_v45, 4  ;;  %v658_v55 = vor.u32 %v657_v46, %v653_v41  ;;  %v363_v2 = vshll.u32 %v5507_v42, 16  ;;  %v3514_v45 = vld [vmem:[%s6895_s1 + $0x1c] sm:$0xf] }
  0x5c   : > { %v356_v57 = vrot.slane %v354_v51, 4  ;;  %v359_v58 = vrot.slane %v357_v52, 5  ;;  %v367_v59 = vshrl.u32 %v5507_v42, 16  ;;  %v373_v60 = vshll.u32 %v5511_v48, 16  ;;  %v5035_v51 = vld [vmem:[%s5344_s30] sm:$0xff] }
  0x5d   : > { %v709_v62 = vpack.c.b16 %v689_v53, %v688_v44  ;;  %v654_v3 = vsel %vm5356_vm3, %v649_v54, %v653_v41  ;;  %v659_v4 = vrot.slane %v658_v55, 4  ;;  %v365_v5 = vrot.slane %v363_v2, 5  ;;  %v3911_v2 = vld [vmem:[%s6895_s1 + $0x20] sm:$0xf] }
  0x5e   : > { %v696_v7 = vunpack.c.l.b16 %v654_v3  ;;  %v360_v8 = vor.u32 %v359_v58, %v356_v57  ;;  %v369_v9 = vrot.slane %v367_v59, 4  ;;  %v375_v10 = vrot.slane %v373_v60, 5 }
  0x5f   : > { %4467 = vmatmul.msk.bf16.gmra.mxu2 %vm714_vm4, %v709_v62  ;;  %v664_v13 = vsel %vm5356_vm3, %v659_v4, %v663_v50  ;;  %v4552_v14 = vrot.slane %v1076_v61, 9  ;;  %v1129_v19 = vrot.slane %v5369_v1, 5  ;;  %v2959_v22 = vsel %vm763_vm0, %v2829_v11, 0  ;;  %v2575_v50 = vld [vmem:[%s6895_s1 + $0x14] sm:$0xf] }
  0x60   : > { %v697_v15 = vunpack.c.l.b16 %v664_v13  ;;  %v361_v16 = vrot.slane %v360_v8, 4  ;;  %v370_v17 = vor.u32 %v369_v9, %v365_v5  ;;  %v1795_v23 = vshrl.u32 %v4696_v6, 16  ;;  %2968 = vmatpush.bf16.msra.mxu2 %v2959_v22  ;;  %v1077_v8 = vld [vmem:[%s5344_s30 + $0xc] sm:$0xe] }
  0x61   : > { %v1798_v24 = vshll.u32 %v4696_v6, 16  ;;  %v1804_v26 = vshll.u32 %v4697_v12, 16  ;;  %v1130_v33 = vsel %vm5530_vm7, %v4552_v14, %v1129_v19  ;;  %v1131_v35 = vrot.slane %v1129_v19, 4  ;;  %v4700_v6 = vld [vmem:[%s5344_s30 + $0xd0] sm:$0xf] }
  0x62   : > { %v713_v29 = vpack.c.b16 %v697_v15, %v696_v7  ;;  %v366_v30 = vsel %vm5356_vm3, %v361_v16, %v365_v5  ;;  %v371_v31 = vrot.slane %v370_v17, 4  ;;  %v1240_v37 = vunpack.c.l.b16 %v1130_v33  ;;  %v4699_v5 = vld [vmem:[%s5344_s30 + $0xcc] sm:$0xf]  ;;  %v5051_v15 = vld [vmem:[%s5344_s30 + $0xc0] sm:$0xff] }
  0x63   : > { %v672_v34 = vunpack.c.l.b16 %v366_v30  ;;  %v1797_v1 = vrot.slane %v1795_v23, 4  ;;  %v1800_v40 = vrot.slane %v1798_v24, 5  ;;  %v1806_v41 = vrot.slane %v1804_v26, 5  ;;  %v4701_v30 = vld [vmem:[%s5344_s30 + $0xd4] sm:$0x1] }
  0x64   : > { %4471 = vmatmul.msk.bf16.gmra.mxu3 %vm714_vm4, %v713_v29  ;;  %v376_v39 = vsel %vm5356_vm3, %v371_v31, %v375_v10  ;;  %v1808_v44 = vshrl.u32 %v4697_v12, 16  ;;  %v1133_v49 = vsel %vm5530_vm7, %v1131_v35, %v1132_v43  ;;  %v1814_v55 = vshll.u32 %v4698_v38, 16  ;;  %v5036_v35 = vld [vmem:[%s5344_s30 + $0xc] sm:$0xff] }
  0x65   : > { %v673_v46 = vunpack.c.l.b16 %v376_v39  ;;  %v1241_v52 = vunpack.c.l.b16 %v1133_v49  ;;  %v1801_v53 = vor.u32 %v1800_v40, %v1797_v1  ;;  %v3612_v58 = vsel %vm763_vm0, %v3514_v45, 0 }
  0x66   : > { %v1810_v54 = vrot.slane %v1808_v44, 4  ;;  %3621 = vmatpush.bf16.msra.mxu3 %v3612_v58  ;;  %v2673_v60 = vsel %vm763_vm0, %v2575_v50, 0  ;;  %v4009_v61 = vsel %vm763_vm0, %v3911_v2, 0  ;;  %v1816_v4 = vrot.slane %v1814_v55, 5  ;;  %v1078_v50 = vld [vmem:[%s5344_s30 + $0x18] sm:$0xe] }
  0x67   : > { %v701_v57 = vpack.c.b16 %v673_v46, %v672_v34  ;;  %v1272_v43 = vpack.c.b16 %v1241_v52, %v1240_v37  ;;  %2682 = vmatpush.bf16.msra.mxu1 %v2673_v60  ;;  %v1802_v62 = vrot.slane %v1801_v53, 4  ;;  %4018 = vmatpush.bf16.msra.mxu0 %v4009_v61  ;;  %v1136_v7 = vrot.slane %v5415_v28, 5  ;;  %v4703_v46 = vld [vmem:[%s5344_s30 + $0xdc] sm:$0xf] }
  0x68   : > { %v1811_v59 = vor.u32 %v1810_v54, %v1806_v41  ;;  %v1819_v9 = vshrl.u32 %v4699_v5, 16  ;;  %v1822_v10 = vshll.u32 %v4699_v5, 16  ;;  %v1828_v13 = vshll.u32 %v4700_v6, 16 }
  0x69   : > { %4459 = vmatmul.msk.bf16.gmra.mxu0 %vm714_vm4, %v701_v57  ;;  %v1807_v11 = vsel %vm5356_vm3, %v1802_v62, %v1806_v41  ;;  %v1832_v14 = vshrl.u32 %v4700_v6, 16  ;;  %v4553_v16 = vrot.slane %v1077_v8, 9  ;;  %v1138_v17 = vrot.slane %v1136_v7, 4  ;;  %v4702_v41 = vld [vmem:[%s5344_s30 + $0xd8] sm:$0xf] }
  0x6a   : > { %4536 = vmatmul.msk.bf16.vlgmr.msrb.gmra.mxu1 %vm714_vm4, %v5035_v51  ;;  %v1812_v3 = vrot.slane %v1811_v59, 4  ;;  %v1139_v28 = vrot.slane %v5418_v32, 5  ;;  %v2179_v19 = vunpack.c.l.b16 %v1807_v11  ;;  %v1821_v23 = vrot.slane %v1819_v9, 4  ;;  %v4704_v6 = vld [vmem:[%s5344_s30 + $0xe0] sm:$0x1] }
  0x6b   : > { %v1824_v24 = vrot.slane %v1822_v10, 5  ;;  %v1830_v26 = vrot.slane %v1828_v13, 5  ;;  %v1834_v29 = vrot.slane %v1832_v14, 4  ;;  %v1137_v31 = vsel %vm5530_vm7, %v4553_v16, %v1136_v7 }
  0x6c   : > { %v1817_v12 = vsel %vm5356_vm3, %v1812_v3, %v1816_v4  ;;  %v1140_v33 = vsel %vm5530_vm7, %v1138_v17, %v1139_v28  ;;  %v1838_v38 = vshll.u32 %v4701_v30, 16  ;;  %v1242_v1 = vunpack.c.l.b16 %v1137_v31 }
  0x6d   : > { %v2180_v22 = vunpack.c.l.b16 %v1817_v12  ;;  %v1825_v32 = vor.u32 %v1824_v24, %v1821_v23  ;;  %v1835_v37 = vor.u32 %v1834_v29, %v1830_v26  ;;  %v1243_v39 = vunpack.c.l.b16 %v1140_v33  ;;  %v5037_v12 = vld [vmem:[%s5344_s30 + $0x18] sm:$0xff]  ;;  %v1079_v29 = vld [vmem:[%s5344_s30 + $0x24] sm:$0xe] }
  0x6e   : > { %v1840_v45 = vrot.slane %v1838_v38, 5  ;;  %v1143_v51 = vrot.slane %v5461_v63, 5  ;;  %v1843_v52 = vshrl.u32 %v4702_v41, 16  ;;  %v1846_v54 = vshll.u32 %v4702_v41, 16 }
  0x6f   : > { %4568 = vmatmul.msk.bf16.vlgmr.msrb.gmra.mxu2 %vm714_vm4, %v1272_v43  ;;  %v2211_v34 = vpack.c.b16 %v2180_v22, %v2179_v19  ;;  %v1826_v40 = vrot.slane %v1825_v32, 4  ;;  %v1836_v44 = vrot.slane %v1835_v37, 4  ;;  %v1273_v49 = vpack.c.b16 %v1243_v39, %v1242_v1  ;;  %v5052_v43 = vld [vmem:[%s5344_s30 + $0xcc] sm:$0xff]  ;;  %v4705_v19 = vld [vmem:[%s5344_s30 + $0xe4] sm:$0xf]  ;;  %v5053_v32 = vld [vmem:[%s5344_s30 + $0xd8] sm:$0xff] }
  0x70   : > { %v1852_v55 = vshll.u32 %v4703_v46, 16  ;;  %v1856_v2 = vshrl.u32 %v4703_v46, 16  ;;  %v4554_v58 = vrot.slane %v1078_v50, 9  ;;  %v1145_v60 = vrot.slane %v1143_v51, 4  ;;  %v4706_v22 = vld [vmem:[%s5344_s30 + $0xe8] sm:$0xf] }
  0x71   : > { %v1831_v53 = vsel %vm5356_vm3, %v1826_v40, %v1830_v26  ;;  %v1841_v57 = vsel %vm5356_vm3, %v1836_v44, %v1840_v45  ;;  %v1146_v63 = vrot.slane %v5464_v0, 5  ;;  %v1845_v61 = vrot.slane %v1843_v52, 4  ;;  %v4707_v45 = vld [vmem:[%s5344_s30 + $0xec] sm:$0x1] }
  0x72   : > { %v2181_v59 = vunpack.c.l.b16 %v1831_v53  ;;  %v2182_v62 = vunpack.c.l.b16 %v1841_v57  ;;  %v1848_v3 = vrot.slane %v1846_v54, 5  ;;  %v1854_v4 = vrot.slane %v1852_v55, 5  ;;  %v4709_v57 = vld [vmem:[%s5344_s30 + $0xf4] sm:$0xf] }
  0x73   : > { %v1858_v5 = vrot.slane %v1856_v2, 4  ;;  %v1144_v7 = vsel %vm5530_vm7, %v4554_v58, %v1143_v51  ;;  %v1147_v8 = vsel %vm5530_vm7, %v1145_v60, %v1146_v63  ;;  %v1862_v0 = vshll.u32 %v4704_v6, 16  ;;  %v4708_v2 = vld [vmem:[%s5344_s30 + $0xf0] sm:$0xf]  ;;  %v5206_v63 = vld [vmem:[%s5344_s30 + $0x34] sm:$0xf] }
  0x74   : > { %4680 = vmatmul.msk.bf16.vlgmr.msrb.gmra.mxu3 %vm714_vm4, %v5051_v15  ;;  %v2212_v9 = vpack.c.b16 %v2182_v62, %v2181_v59  ;;  %v1849_v10 = vor.u32 %v1848_v3, %v1845_v61  ;;  %v1244_v13 = vunpack.c.l.b16 %v1144_v7  ;;  %v1245_v14 = vunpack.c.l.b16 %v1147_v8  ;;  %v1080_v62 = vld [vmem:[%s5344_s30 + $0x30] sm:$0xe] }
  0x75   : > { %v1859_v11 = vor.u32 %v1858_v5, %v1854_v4  ;;  %v1864_v17 = vrot.slane %v1862_v0, 5  ;;  %v1150_v23 = vrot.slane %v5507_v42, 5  ;;  %v1867_v30 = vshrl.u32 %v4705_v19, 16  ;;  %v5207_v0 = vld [vmem:[%s5344_s30 + $0x38] sm:$0x1] }
  0x76   : > { %v1850_v15 = vrot.slane %v1849_v10, 4  ;;  %v1274_v28 = vpack.c.b16 %v1245_v14, %v1244_v13  ;;  %v1870_v31 = vshll.u32 %v4705_v19, 16  ;;  %v1876_v33 = vshll.u32 %v4706_v22, 16  ;;  %v5054_v13 = vld [vmem:[%s5344_s30 + $0xe4] sm:$0xff] }
  0x77   : > { %v1860_v16 = vrot.slane %v1859_v11, 4  ;;  %v1152_v37 = vrot.slane %v1150_v23, 4  ;;  %v1153_v42 = vrot.slane %v5511_v48, 5  ;;  %v1869_v39 = vrot.slane %v1867_v30, 4  ;;  %v5038_v48 = vld [vmem:[%s5344_s30 + $0x24] sm:$0xff] }
  0x78   : > { %v1855_v24 = vsel %vm5356_vm3, %v1850_v15, %v1854_v4  ;;  %v1872_v40 = vrot.slane %v1870_v31, 5  ;;  %v1878_v41 = vrot.slane %v1876_v33, 5  ;;  %v1886_v53 = vshll.u32 %v4707_v45, 16  ;;  %v5039_v33 = vld [vmem:[%s5344_s30 + $0x30] sm:$0xff] }
  0x79   : > { %4744 = vmatmul.msk.bf16.vlgmr.msrb.gmra.mxu0 %vm714_vm4, %v2211_v34  ;;  %v1865_v26 = vsel %vm5356_vm3, %v1860_v16, %v1864_v17  ;;  %v1880_v34 = vshrl.u32 %v4706_v22, 16  ;;  %v2183_v38 = vunpack.c.l.b16 %v1855_v24  ;;  %v1157_v61 = vrot.slane %v5206_v63, 5  ;;  %v4710_v22 = vld [vmem:[%s5344_s30 + $0xf8] sm:$0x1] }
  0x7a   : > { %4537 = vmatmul.msk.bf16.gmra.mxu1 %vm714_vm4, %v5036_v35  ;;  %v4555_v35 = vrot.slane %v1079_v29, 9  ;;  %v2184_v1 = vunpack.c.l.b16 %v1865_v26  ;;  %v1873_v51 = vor.u32 %v1872_v40, %v1869_v39  ;;  %v1888_v59 = vrot.slane %v1886_v53, 5  ;;  %v4711_v39 = vld [vmem:[%s5344_s30 + $0xfc] sm:$0xf]  ;;  %v4712_v40 = vld [vmem:[%s5344_s30 + $0x100] sm:$0xf] }
  0x7b   : > { %v1882_v44 = vrot.slane %v1880_v34, 4  ;;  %v1891_v3 = vshrl.u32 %v4708_v2, 16  ;;  %v1894_v4 = vshll.u32 %v4708_v2, 16  ;;  %v1900_v5 = vshll.u32 %v4709_v57, 16  ;;  %v5055_v2 = vld [vmem:[%s5344_s30 + $0xf0] sm:$0xff] }
  0x7c   : > { %v1151_v46 = vsel %vm5530_vm7, %v4555_v35, %v1150_v23  ;;  %v2213_v50 = vpack.c.b16 %v2184_v1, %v2183_v38  ;;  %v1874_v58 = vrot.slane %v1873_v51, 4  ;;  %v1904_v6 = vshrl.u32 %v4709_v57, 16 }
  0x7d   : > { %v1883_v52 = vor.u32 %v1882_v44, %v1878_v41  ;;  %v1246_v54 = vunpack.c.l.b16 %v1151_v46  ;;  %v4556_v10 = vrot.slane %v1080_v62, 9  ;;  %v1159_v11 = vrot.slane %v1157_v61, 4 }
  0x7e   : > { %v1879_v8 = vsel %vm5356_vm3, %v1874_v58, %v1878_v41  ;;  %v1893_v14 = vrot.slane %v1891_v3, 4  ;;  %v1896_v15 = vrot.slane %v1894_v4, 5  ;;  %v1902_v16 = vrot.slane %v1900_v5, 5  ;;  %v4713_v4 = vld [vmem:[%s5344_s30 + $0x104] sm:$0x1] }
  0x7f   : > { %4569 = vmatmul.msk.bf16.gmra.mxu2 %vm714_vm4, %v1273_v49  ;;  %v1154_v49 = vsel %vm5530_vm7, %v1152_v37, %v1153_v42  ;;  %v1906_v17 = vrot.slane %v1904_v6, 4  ;;  %v1158_v23 = vsel %vm5530_vm7, %v4556_v10, %v1157_v61  ;;  %v1910_v30 = vshll.u32 %v4710_v22, 16 }
  0x80   : > { %v1247_v55 = vunpack.c.l.b16 %v1154_v49  ;;  %v1897_v26 = vor.u32 %v1896_v15, %v1893_v14  ;;  %v1915_v51 = vshrl.u32 %v4711_v39, 16  ;;  %v1924_v53 = vshll.u32 %v4712_v40, 16 }
  0x81   : > { %v1907_v29 = vor.u32 %v1906_v17, %v1902_v16  ;;  %v1912_v1 = vrot.slane %v1910_v30, 5 }
  0x82   : > { %v1275_v60 = vpack.c.b16 %v1247_v55, %v1246_v54  ;;  %v1898_v42 = vrot.slane %v1897_v26, 4  ;;  %v1928_v54 = vshrl.u32 %v4712_v40, 16  ;;  %v1926_v62 = vrot.slane %v1924_v53, 5 }
  0x83   : > { %v1908_v38 = vrot.slane %v1907_v29, 4  ;;  %v1171_v26 = vrot.slane %v5428_v47, 5 }
  0x84   : > { %4681 = vmatmul.msk.bf16.gmra.mxu3 %vm714_vm4, %v5052_v43  ;;  %v1884_v43 = vrot.slane %v1883_v52, 4  ;;  %v1903_v45 = vsel %vm5356_vm3, %v1898_v42, %v1902_v16  ;;  %v1918_v52 = vshll.u32 %v4711_v39, 16  ;;  %v1930_v3 = vrot.slane %v1928_v54, 4  ;;  %v4716_v54 = vld [vmem:[%s5344_s30 + $0x110] sm:$0x1] }
  0x85   : > { %v1913_v46 = vsel %vm5356_vm3, %v1908_v38, %v1912_v1  ;;  %v2187_v55 = vunpack.c.l.b16 %v1903_v45  ;;  %v5056_v1 = vld [vmem:[%s5344_s30 + $0xfc] sm:$0xff]  ;;  %v1173_v40 = vrot.slane %v1171_v26, 4 }
  0x86   : > { %v2188_v57 = vunpack.c.l.b16 %v1913_v46  ;;  %v1920_v61 = vrot.slane %v1918_v52, 5  ;;  %v1931_v10 = vor.u32 %v1930_v3, %v1926_v62 }
  0x88   : > { %v1932_v16 = vrot.slane %v1931_v10, 4 }
  0x89   : > { %4745 = vmatmul.msk.bf16.gmra.mxu0 %vm714_vm4, %v2212_v9  ;;  %v1889_v9 = vsel %vm5356_vm3, %v1884_v43, %v1888_v59 }
  0x8a   : > { %4538 = vmatmul.msk.bf16.gmra.mxu1 %vm714_vm4, %v5037_v12  ;;  %v1160_v12 = vrot.slane %v5207_v0, 5  ;;  %v2186_v19 = vunpack.c.l.b16 %v1889_v9 }
  0x8c   : > { %v1161_v24 = vsel %vm5530_vm7, %v1159_v11, %v1160_v12  ;;  %v1934_v11 = vshll.u32 %v4713_v4, 16  ;;  %v5040_v12 = vld [vmem:[%s5344_s30 + $0x3c] sm:$0xff]  ;;  %v4717_v4 = vld [vmem:[%s5344_s30 + $0x114] sm:$0xf] }
  0x8d   : > { %v1249_v35 = vunpack.c.l.b16 %v1161_v24  ;;  %v4715_v24 = vld [vmem:[%s5344_s30 + $0x10c] sm:$0xf] }
  0x8e   : > { %v1936_v17 = vrot.slane %v1934_v11, 5  ;;  %v1952_v42 = vshrl.u32 %v4715_v24, 16 }
  0x8f   : > { %4570 = vmatmul.msk.bf16.gmra.mxu2 %vm714_vm4, %v1274_v28  ;;  %v2185_v28 = vunpack.c.l.b16 %v1879_v8  ;;  %v2215_v8 = vpack.c.b16 %v2188_v57, %v2187_v55 }
  0x90   : > { %v1937_v30 = vsel %vm5356_vm3, %v1932_v16, %v1936_v17  ;;  %v1954_v52 = vrot.slane %v1952_v42, 4 }
  0x91   : > { %v2214_v31 = vpack.c.b16 %v2186_v19, %v2185_v28  ;;  %v2190_v46 = vunpack.c.l.b16 %v1937_v30 }
  0x94   : > { %4682 = vmatmul.msk.bf16.gmra.mxu3 %vm714_vm4, %v5053_v32  ;;  %v1248_v32 = vunpack.c.l.b16 %v1158_v23  ;;  %v4714_v23 = vld [vmem:[%s5344_s30 + $0x108] sm:$0xf] }
  0x96   : > { %v1276_v44 = vpack.c.b16 %v1249_v35, %v1248_v32  ;;  %v1942_v32 = vshll.u32 %v4714_v23, 16  ;;  %v1948_v35 = vshll.u32 %v4715_v24, 16 }
  0x99   : > { %4746 = vmatmul.msk.bf16.gmra.mxu0 %vm714_vm4, %v2213_v50  ;;  %v1164_v50 = vrot.slane %v5384_v20, 5  ;;  %v1917_v20 = vrot.slane %v1915_v51, 4  ;;  %v1950_v51 = vrot.slane %v1948_v35, 5  ;;  %v1181_v35 = vrot.slane %v5479_v27, 5 }
  0x9a   : > { %4539 = vmatmul.msk.bf16.gmra.mxu1 %vm714_vm4, %v5038_v48  ;;  %v1081_v48 = vld [vmem:[%s5344_s30 + $0x3c] sm:$0xe] }
  0x9b   : > { %v4557_v43 = vrot.slane %v1081_v48, 9  ;;  %v1166_v59 = vrot.slane %v1164_v50, 4  ;;  %v1944_v48 = vrot.slane %v1942_v32, 5 }
  0x9d   : > { %v1165_v5 = vsel %vm5530_vm7, %v4557_v43, %v1164_v50  ;;  %v5041_v43 = vld [vmem:[%s5344_s30 + $0x48] sm:$0xff] }
  0x9f   : > { %v5625_v7 = vpop.f32.mrf.mxu1  ;;  %4571 = vmatmul.msk.bf16.gmra.mxu2 %vm714_vm4, %v1275_v60  ;;  %v1167_v60 = vrot.slane %v5389_v25, 5  ;;  %v1921_v25 = vor.u32 %v1920_v61, %v1917_v20  ;;  %v1958_v20 = vshll.u32 %v4716_v54, 16  ;;  %v5042_v54 = vld [vmem:[%s5344_s30 + $0x54] sm:$0xff] }
  0xa1   : > { %v1168_v6 = vsel %vm5530_vm7, %v1166_v59, %v1167_v60  ;;  %v1922_v15 = vrot.slane %v1921_v25, 4  ;;  %v1955_v60 = vor.u32 %v1954_v52, %v1950_v51  ;;  %v1960_v10 = vrot.slane %v1958_v20, 5 }
  0xa2   : > { %v1251_v14 = vunpack.c.l.b16 %v1168_v6 }
  0xa3   : > { %v1927_v29 = vsel %vm5356_vm3, %v1922_v15, %v1926_v62  ;;  %v1956_v25 = vrot.slane %v1955_v60, 4  ;;  %v1178_v15 = vrot.slane %v5474_v21, 5 }
  0xa4   : > { %4683 = vmatmul.msk.bf16.gmra.mxu3 %vm714_vm4, %v5054_v13  ;;  %v1250_v13 = vunpack.c.l.b16 %v1165_v5  ;;  %v2189_v45 = vunpack.c.l.b16 %v1927_v29  ;;  %v4718_v5 = vld [vmem:[%s5344_s30 + $0x118] sm:$0xf] }
  0xa5   : > { %v1976_v16 = vshrl.u32 %v4718_v5, 16  ;;  %v1961_v24 = vsel %vm5356_vm3, %v1956_v25, %v1960_v10  ;;  %v1180_v32 = vrot.slane %v1178_v15, 4  ;;  %v5208_v10 = vld [vmem:[%s5344_s30 + $0x64] sm:$0xf] }
  0xa6   : > { %v1277_v19 = vpack.c.b16 %v1251_v14, %v1250_v13  ;;  %v2216_v57 = vpack.c.b16 %v2190_v46, %v2189_v45  ;;  %v1966_v13 = vshll.u32 %v4717_v4, 16  ;;  %v1972_v14 = vshll.u32 %v4718_v5, 16 }
  0xa7   : > { %v5641_v34 = vpop.f32.mrf.mxu1  ;;  %v1978_v42 = vrot.slane %v1976_v16, 4 }
  0xa8   : > { %v1968_v30 = vrot.slane %v1966_v13, 5  ;;  %v1084_v13 = vld [vmem:[%s5344_s30 + $0x60] sm:$0xe] }
  0xa9   : > { %v5643_v37 = vpop.f32.mrf.mxu2  ;;  %4747 = vmatmul.msk.bf16.gmra.mxu0 %vm714_vm4, %v2214_v31  ;;  %v1082_v31 = vld [vmem:[%s5344_s30 + $0x48] sm:$0xe] }
  0xaa   : > { %4540 = vmatmul.msk.bf16.gmra.mxu1 %vm714_vm4, %v5039_v33  ;;  %v1939_v33 = vshrl.u32 %v4714_v23, 16  ;;  %v4558_v47 = vrot.slane %v1082_v31, 9  ;;  %v1974_v31 = vrot.slane %v1972_v14, 5 }
  0xac   : > { %v5649_v41 = vpop.f32.mrf.mxu0  ;;  %v1941_v50 = vrot.slane %v1939_v33, 4  ;;  %v5057_v33 = vld [vmem:[%s5344_s30 + $0x108] sm:$0xff]  ;;  %v1979_v27 = vor.u32 %v1978_v42, %v1974_v31 }
  0xad   : > { %v5655_v49 = vpop.f32.mrf.mxu3 }
  0xae   : > { %v1945_v59 = vor.u32 %v1944_v48, %v1941_v50  ;;  %v1182_v48 = vsel %vm5530_vm7, %v1180_v32, %v1181_v35  ;;  %v1980_v60 = vrot.slane %v1979_v27, 4 }
  0xaf   : > { %4572 = vmatmul.msk.bf16.gmra.mxu2 %vm714_vm4, %v1276_v44  ;;  %v1174_v44 = vrot.slane %v5433_v56, 5 }
  0xb1   : > { %v5661_v58 = vpop.f32.mrf.mxu1  ;;  %v5664_v63 = vpop.f32.mrf.mxu2  ;;  %v1175_v56 = vsel %vm5530_vm7, %v1173_v40, %v1174_v44  ;;  %v4719_v40 = vld [vmem:[%s5344_s30 + $0x11c] sm:$0x1] }
  0xb2   : > { %v1253_v62 = vunpack.c.l.b16 %v1175_v56 }
  0xb4   : > { %4684 = vmatmul.msk.bf16.gmra.mxu3 %vm714_vm4, %v5055_v2  ;;  %v5672_v9 = vpop.f32.mrf.mxu0  ;;  %v1172_v2 = vsel %vm5530_vm7, %v4558_v47, %v1171_v26  ;;  %v2192_v47 = vunpack.c.l.b16 %v1961_v24 }
  0xb5   : > { %v5674_v0 = vpop.f32.mrf.mxu3  ;;  %v1252_v61 = vunpack.c.l.b16 %v1172_v2 }
  0xb7   : > { %v1278_v11 = vpack.c.b16 %v1253_v62, %v1252_v61  ;;  %v4720_v61 = vld [vmem:[%s5344_s30 + $0x120] sm:$0xf]  ;;  %v4721_v62 = vld [vmem:[%s5344_s30 + $0x124] sm:$0xf] }
  0xb8   : > { %v1987_v14 = vshrl.u32 %v4720_v61, 16  ;;  %v1996_v16 = vshll.u32 %v4721_v62, 16 }
  0xb9   : > { %4748 = vmatmul.msk.bf16.gmra.mxu0 %vm714_vm4, %v2215_v8  ;;  %v5678_v28 = vpop.f32.mrf.mxu1  ;;  %v1946_v8 = vrot.slane %v1945_v59, 4 }
  0xba   : > { %4541 = vmatmul.msk.bf16.gmra.mxu1 %vm714_vm4, %v5040_v12  ;;  %v1963_v12 = vshrl.u32 %v4717_v4, 16  ;;  %v1989_v35 = vrot.slane %v1987_v14, 4  ;;  %v4724_v14 = vld [vmem:[%s5344_s30 + $0x130] sm:$0xf] }
  0xbb   : > { %v1951_v23 = vsel %vm5356_vm3, %v1946_v8, %v1950_v51  ;;  %v1982_v51 = vshll.u32 %v4719_v40, 16 }
  0xbc   : > { %v5681_v22 = vpop.f32.mrf.mxu2  ;;  %v1965_v29 = vrot.slane %v1963_v12, 4 }
  0xbd   : > { %v1984_v20 = vrot.slane %v1982_v51, 5 }
  0xbe   : > { %v1969_v46 = vor.u32 %v1968_v30, %v1965_v29  ;;  %v5058_v30 = vld [vmem:[%s5344_s30 + $0x114] sm:$0xff] }
  0xbf   : > { %4573 = vmatmul.msk.bf16.gmra.mxu2 %vm714_vm4, %v1277_v19  ;;  %v1083_v19 = vld [vmem:[%s5344_s30 + $0x54] sm:$0xe]  ;;  %v1985_v25 = vsel %vm5356_vm3, %v1980_v60, %v1984_v20 }
  0xc0   : > { %v5691_v38 = vpop.f32.mrf.mxu0  ;;  %v4559_v21 = vrot.slane %v1083_v19, 9  ;;  %v1970_v59 = vrot.slane %v1969_v46, 4  ;;  %v2000_v19 = vshrl.u32 %v4721_v62, 16  ;;  %v4722_v46 = vld [vmem:[%s5344_s30 + $0x128] sm:$0x1] }
  0xc1   : > { %v5695_v39 = vpop.f32.mrf.mxu3 }
  0xc2   : > { %v1179_v50 = vsel %vm5530_vm7, %v4559_v21, %v1178_v15  ;;  %v1975_v8 = vsel %vm5356_vm3, %v1970_v59, %v1974_v31  ;;  %v1990_v15 = vshll.u32 %v4720_v61, 16  ;;  %v4560_v21 = vrot.slane %v1084_v13, 9  ;;  %v4723_v13 = vld [vmem:[%s5344_s30 + $0x12c] sm:$0xf] }
  0xc3   : > { %v5698_v53 = vpop.f32.mrf.mxu1  ;;  %v1254_v56 = vunpack.c.l.b16 %v1179_v50  ;;  %v2193_v31 = vunpack.c.l.b16 %v1975_v8 }
  0xc4   : > { %4685 = vmatmul.msk.bf16.gmra.mxu3 %vm714_vm4, %v5056_v1  ;;  %v5702_v55 = vpop.f32.mrf.mxu2  ;;  %v2191_v1 = vunpack.c.l.b16 %v1951_v23  ;;  %v5209_v23 = vld [vmem:[%s5344_s30 + $0x68] sm:$0x1]  ;;  %v1992_v42 = vrot.slane %v1990_v15, 5  ;;  %v5210_v15 = vld [vmem:[%s5344_s30 + $0x70] sm:$0xf] }
  0xc5   : > { %v1188_v24 = vrot.slane %v5209_v23, 5  ;;  %v1085_v23 = vld [vmem:[%s5344_s30 + $0x6c] sm:$0xe] }
  0xc6   : > { %v2217_v52 = vpack.c.b16 %v2192_v47, %v2191_v1  ;;  %v1998_v1 = vrot.slane %v1996_v16, 5  ;;  %v2002_v47 = vrot.slane %v2000_v19, 4  ;;  %v1993_v51 = vor.u32 %v1992_v42, %v1989_v35  ;;  %v5211_v42 = vld [vmem:[%s5344_s30 + $0x74] sm:$0x1] }
  0xc7   : > { %v1192_v16 = vrot.slane %v5210_v15, 5 }
  0xc8   : > { %v5709_v3 = vpop.f32.mrf.mxu0 }
  0xc9   : > { %4749 = vmatmul.msk.bf16.gmra.mxu0 %vm714_vm4, %v2216_v57  ;;  %v5714_v6 = vpop.f32.mrf.mxu3  ;;  %v1255_v57 = vunpack.c.l.b16 %v1182_v48 }
  0xca   : > { %4542 = vmatmul.msk.bf16.gmra.mxu1 %vm714_vm4, %v5041_v43 }
  0xcb   : > { %v5718_v17 = vpop.f32.mrf.mxu1  ;;  %v1279_v4 = vpack.c.b16 %v1255_v57, %v1254_v56  ;;  %v5043_v57 = vld [vmem:[%s5344_s30 + $0x60] sm:$0xff] }
  0xcf   : > { %v5725_v26 = vpop.f32.mrf.mxu2  ;;  %4574 = vmatmul.msk.bf16.gmra.mxu2 %vm714_vm4, %v1278_v11  ;;  %v1185_v11 = vrot.slane %v5208_v10, 5 }
  0xd1   : > { %v1187_v32 = vrot.slane %v1185_v11, 4  ;;  %v1186_v50 = vsel %vm5530_vm7, %v4560_v21, %v1185_v11  ;;  %v2024_v21 = vshrl.u32 %v4724_v14, 16 }
  0xd2   : > { %v5731_v44 = vpop.f32.mrf.mxu0  ;;  %v1256_v20 = vunpack.c.l.b16 %v1186_v50  ;;  %v4561_v50 = vrot.slane %v1085_v23, 9 }
  0xd3   : > { %v5733_v45 = vpop.f32.mrf.mxu3  ;;  %v1189_v48 = vsel %vm5530_vm7, %v1187_v32, %v1188_v24 }
  0xd4   : > { %4686 = vmatmul.msk.bf16.gmra.mxu3 %vm714_vm4, %v5057_v33  ;;  %v2194_v33 = vunpack.c.l.b16 %v1985_v25  ;;  %v1257_v61 = vunpack.c.l.b16 %v1189_v48  ;;  %v1194_v48 = vrot.slane %v1192_v16, 4 }
  0xd6   : > { %v2218_v27 = vpack.c.b16 %v2194_v33, %v2193_v31  ;;  %v1280_v11 = vpack.c.b16 %v1257_v61, %v1256_v20  ;;  %v2014_v31 = vshll.u32 %v4723_v13, 16  ;;  %v2020_v33 = vshll.u32 %v4724_v14, 16 }
  0xd7   : > { %v5741_v2 = vpop.f32.mrf.mxu1  ;;  %v5743_v43 = vpop.f32.mrf.mxu2  ;;  %v2026_v20 = vrot.slane %v2024_v21, 4 }
  0xd9   : > { %4750 = vmatmul.msk.bf16.gmra.mxu0 %vm714_vm4, %v2217_v52  ;;  %v2003_v52 = vor.u32 %v2002_v47, %v1998_v1  ;;  %v1195_v47 = vrot.slane %v5211_v42, 5 }
  0xda   : > { %4543 = vmatmul.msk.bf16.gmra.mxu1 %vm714_vm4, %v5042_v54  ;;  %v5749_v5 = vpop.f32.mrf.mxu0  ;;  %v2006_v54 = vshll.u32 %v4722_v46, 16  ;;  %v5059_v46 = vld [vmem:[%s5344_s30 + $0x120] sm:$0xff] }
  0xdb   : > { %v5756_v12 = vpop.f32.mrf.mxu3  ;;  %v2004_v8 = vrot.slane %v2003_v52, 4 }
  0xdc   : > { %v2008_v25 = vrot.slane %v2006_v54, 5 }
  0xdf   : > { %4575 = vmatmul.msk.bf16.gmra.mxu2 %vm714_vm4, %v1279_v4  ;;  %v5761_v29 = vpop.f32.mrf.mxu1  ;;  %v1994_v4 = vrot.slane %v1993_v51, 4 }
  0xe1   : > { %v1999_v19 = vsel %vm5356_vm3, %v1994_v4, %v1998_v1  ;;  %v4725_v4 = vld [vmem:[%s5344_s30 + $0x134] sm:$0x1] }
  0xe2   : > { %v5764_v40 = vpop.f32.mrf.mxu2 }
  0xe4   : > { %4687 = vmatmul.msk.bf16.gmra.mxu3 %vm714_vm4, %v5058_v30  ;;  %v2011_v30 = vshrl.u32 %v4723_v13, 16  ;;  %v5044_v13 = vld [vmem:[%s5344_s30 + $0x6c] sm:$0xff] }
  0xe6   : > { %v5772_v56 = vpop.f32.mrf.mxu0  ;;  %v2013_v54 = vrot.slane %v2011_v30, 4 }
  0xe7   : > { %v5775_v59 = vpop.f32.mrf.mxu3  ;;  %v996_v60 = vpop.f32.mrf.mxu1 }
  0xe8   : > { %v997_v62 = vadd.f32 %v996_v60, %v5649_v41  ;;  %v2009_v41 = vsel %vm5356_vm3, %v2004_v8, %v2008_v25  ;;  %v2022_v60 = vrot.slane %v2020_v33, 5  ;;  %v1193_v8 = vsel %vm5530_vm7, %v4561_v50, %v1192_v16 }
  0xe9   : > { %4751 = vmatmul.msk.bf16.gmra.mxu0 %vm714_vm4, %v2218_v27  ;;  %v2195_v27 = vunpack.c.l.b16 %v1999_v19  ;;  %v2196_v51 = vunpack.c.l.b16 %v2009_v41  ;;  %v2030_v19 = vshll.u32 %v4725_v4, 16 }
  0xea   : > { %v5779_v10 = vpop.f32.mrf.mxu2  ;;  %4544 = vmatmul.msk.bf16.gmra.mxu1 %vm714_vm4, %v5043_v57  ;;  %v2016_v57 = vrot.slane %v2014_v31, 5  ;;  %v2027_v15 = vor.u32 %v2026_v20, %v2022_v60 }
  0xeb   : > { %v2219_v25 = vpack.c.b16 %v2196_v51, %v2195_v27  ;;  %v2032_v42 = vrot.slane %v2030_v19, 5  ;;  %v4727_v27 = vld [vmem:[%s5344_s30 + $0x13c] sm:$0xf] }
  0xec   : > { %v2017_v14 = vor.u32 %v2016_v57, %v2013_v54  ;;  %v5212_v51 = vld [vmem:[%s5344_s30 + $0x7c] sm:$0xf]  ;;  %v1086_v54 = vld [vmem:[%s5344_s30 + $0x78] sm:$0xe] }
  0xee   : > { %v5790_v24 = vpop.f32.mrf.mxu0  ;;  %v2018_v21 = vrot.slane %v2017_v14, 4 }
  0xef   : > { %v5792_v32 = vpop.f32.mrf.mxu3  ;;  %4576 = vmatmul.msk.bf16.gmra.mxu2 %vm714_vm4, %v1280_v11  ;;  %v998_v35 = vpop.f32.mrf.mxu1 }
  0xf0   : > { %v999_v1 = vadd.f32 %v998_v35, %v5672_v9  ;;  %v1196_v9 = vsel %vm5530_vm7, %v1194_v48, %v1195_v47  ;;  %v2028_v35 = vrot.slane %v2027_v15, 4  ;;  %v4726_v47 = vld [vmem:[%s5344_s30 + $0x138] sm:$0xf]  ;;  %v5060_v15 = vld [vmem:[%s5344_s30 + $0x12c] sm:$0xff] }
  0xf1   : > { %v1259_v30 = vunpack.c.l.b16 %v1196_v9  ;;  %v2038_v57 = vshll.u32 %v4726_v47, 16  ;;  %v2048_v9 = vshrl.u32 %v4727_v27, 16 }
  0xf2   : > { %v1348_v52 = vpop.f32.mrf.mxu2  ;;  %v2033_v4 = vsel %vm5356_vm3, %v2028_v35, %v2032_v42 }
  0xf3   : > { %v1428_v61 = vadd.f32 %v1348_v52, %v997_v62  ;;  %v1258_v62 = vunpack.c.l.b16 %v1193_v8  ;;  %v1199_v52 = vrot.slane %v5212_v51, 5  ;;  %v2044_v8 = vshll.u32 %v4727_v27, 16 }
  0xf4   : > { %4688 = vmatmul.msk.bf16.gmra.mxu3 %vm714_vm4, %v5059_v46  ;;  %v2050_v35 = vrot.slane %v2048_v9, 4 }
  0xf5   : > { %v1281_v48 = vpack.c.b16 %v1259_v30, %v1258_v62 }
  0xf6   : > { %v2287_v11 = vpop.f32.mrf.mxu0 }
  0xf7   : > { %v1634_v41 = vpop.f32.mrf.mxu3  ;;  %v1001_v23 = vpop.f32.mrf.mxu1 }
  0xf8   : > { %v1714_v31 = vadd.f32 %v1634_v41, %v1428_v61  ;;  %v1002_v16 = vadd.f32 %v1001_v23, %v5691_v38  ;;  %v2035_v38 = vshrl.u32 %v4726_v47, 16  ;;  %v2023_v61 = vsel %vm5356_vm3, %v2018_v21, %v2022_v60 }
  0xf9   : > { %4752 = vmatmul.msk.bf16.gmra.mxu0 %vm714_vm4, %v2219_v25  ;;  %v5213_v25 = vld [vmem:[%s5344_s30 + $0x80] sm:$0x1]  ;;  %v4562_v41 = vrot.slane %v1086_v54, 9  ;;  %v1201_v23 = vrot.slane %v1199_v52, 4  ;;  %v2197_v62 = vunpack.c.l.b16 %v2023_v61  ;;  %v2198_v60 = vunpack.c.l.b16 %v2033_v4 }
  0xfa   : > { %v1350_v33 = vpop.f32.mrf.mxu2  ;;  %4545 = vmatmul.msk.bf16.gmra.mxu1 %vm714_vm4, %v5044_v13  ;;  %v5809_v46 = vadd.f32 %v2287_v11, %v1714_v31  ;;  %v1202_v11 = vrot.slane %v5213_v25, 5  ;;  %v2037_v30 = vrot.slane %v2035_v38, 4  ;;  %v2040_v31 = vrot.slane %v2038_v57, 5  ;;  %v5045_v38 = vld [vmem:[%s5344_s30 + $0x78] sm:$0xff] }
  0xfb   : > { %v1429_v50 = vadd.f32 %v1350_v33, %v999_v1  ;;  %v2046_v21 = vrot.slane %v2044_v8, 5  ;;  %v2220_v27 = vpack.c.b16 %v2198_v60, %v2197_v62  ;;  %v4730_v62 = vld [vmem:[%s5344_s30 + $0x148] sm:$0xf] }
  0xfc   : > { %v2041_v51 = vor.u32 %v2040_v31, %v2037_v30  ;;  %v5214_v60 = vld [vmem:[%s5344_s30 + $0x88] sm:$0xf]  ;;  %v1087_v31 = vld [vmem:[%s5344_s30 + $0x84] sm:$0xe] }
  0xfd   : > { %v2051_v57 = vor.u32 %v2050_v35, %v2046_v21  ;;  %v1206_v30 = vrot.slane %v5214_v60, 5 }
  0xfe   : > { %v2289_v20 = vpop.f32.mrf.mxu0  ;;  %v2042_v25 = vrot.slane %v2041_v51, 4 }
  0xff   : > { %v1636_v1 = vpop.f32.mrf.mxu3  ;;  %4577 = vmatmul.msk.bf16.gmra.mxu2 %vm714_vm4, %v1281_v48  ;;  %v1003_v13 = vpop.f32.mrf.mxu1  ;;  %v4728_v48 = vld [vmem:[%s5344_s30 + $0x140] sm:$0x1] }
 0x100   : > { %v1715_v14 = vadd.f32 %v1636_v1, %v1429_v50  ;;  %v1004_v19 = vadd.f32 %v1003_v13, %v5709_v3  ;;  %v1200_v50 = vsel %vm5530_vm7, %v4562_v41, %v1199_v52  ;;  %v1203_v3 = vsel %vm5530_vm7, %v1201_v23, %v1202_v11 }
 0x101   : > { %v2054_v61 = vshll.u32 %v4728_v48, 16  ;;  %v1261_v8 = vunpack.c.l.b16 %v1203_v3  ;;  %v2052_v1 = vrot.slane %v2051_v57, 4  ;;  %v2072_v3 = vshrl.u32 %v4730_v62, 16  ;;  %v5061_v57 = vld [vmem:[%s5344_s30 + $0x138] sm:$0xff] }
 0x102   : > { %v1353_v33 = vpop.f32.mrf.mxu2  ;;  %v5822_v42 = vadd.f32 %v2289_v20, %v1715_v14  ;;  %v4729_v14 = vld [vmem:[%s5344_s30 + $0x144] sm:$0xf] }
 0x103   : > { %v1430_v47 = vadd.f32 %v1353_v33, %v1002_v16  ;;  %v1260_v16 = vunpack.c.l.b16 %v1200_v50  ;;  %v2056_v13 = vrot.slane %v2054_v61, 5  ;;  %v2059_v33 = vshrl.u32 %v4729_v14, 16 }
 0x104   : > { %4689 = vmatmul.msk.bf16.gmra.mxu3 %vm714_vm4, %v5060_v15  ;;  %v2062_v48 = vshll.u32 %v4729_v14, 16  ;;  %v2068_v50 = vshll.u32 %v4730_v62, 16  ;;  %v4563_v61 = vrot.slane %v1087_v31, 9 }
 0x105   : > { %v1282_v23 = vpack.c.b16 %v1261_v8, %v1260_v16  ;;  %v2061_v8 = vrot.slane %v2059_v33, 4 }
 0x106   : > { %v2292_v54 = vpop.f32.mrf.mxu0 }
 0x107   : > { %v1639_v4 = vpop.f32.mrf.mxu3  ;;  %v1006_v20 = vpop.f32.mrf.mxu1 }
 0x108   : > { %v1716_v9 = vadd.f32 %v1639_v4, %v1430_v47  ;;  %v1007_v52 = vadd.f32 %v1006_v20, %v5731_v44  ;;  %v2047_v44 = vsel %vm5356_vm3, %v2042_v25, %v2046_v21  ;;  %v2057_v47 = vsel %vm5356_vm3, %v2052_v1, %v2056_v13 }
 0x109   : > { %4753 = vmatmul.msk.bf16.gmra.mxu0 %vm714_vm4, %v2220_v27  ;;  %v5215_v27 = vld [vmem:[%s5344_s30 + $0x8c] sm:$0x1]  ;;  %v1208_v4 = vrot.slane %v1206_v30, 4  ;;  %v2199_v20 = vunpack.c.l.b16 %v2047_v44  ;;  %v2200_v16 = vunpack.c.l.b16 %v2057_v47  ;;  %v2064_v25 = vrot.slane %v2062_v48, 5  ;;  %v5046_v44 = vld [vmem:[%s5344_s30 + $0x84] sm:$0xff] }
 0x10a   : > { %v1355_v11 = vpop.f32.mrf.mxu2  ;;  %4546 = vmatmul.msk.bf16.gmra.mxu1 %vm714_vm4, %v5045_v38  ;;  %v5835_v15 = vadd.f32 %v2292_v54, %v1716_v9  ;;  %v1209_v51 = vrot.slane %v5215_v27, 5  ;;  %v2074_v1 = vrot.slane %v2072_v3, 4 }
 0x10b   : > { %v1431_v41 = vadd.f32 %v1355_v11, %v1004_v19  ;;  %v2070_v11 = vrot.slane %v2068_v50, 5  ;;  %v2221_v62 = vpack.c.b16 %v2200_v16, %v2199_v20  ;;  %v2065_v31 = vor.u32 %v2064_v25, %v2061_v8  ;;  %v4733_v20 = vld [vmem:[%s5344_s30 + $0x154] sm:$0xf]  ;;  %v1088_v25 = vld [vmem:[%s5344_s30 + $0x90] sm:$0xe] }
 0x10d   : > { %v2075_v33 = vor.u32 %v2074_v1, %v2070_v11 }
 0x10e   : > { %v2294_v35 = vpop.f32.mrf.mxu0 }
 0x10f   : > { %v1641_v19 = vpop.f32.mrf.mxu3  ;;  %4578 = vmatmul.msk.bf16.gmra.mxu2 %vm714_vm4, %v1282_v23  ;;  %v1008_v54 = vpop.f32.mrf.mxu1  ;;  %v4731_v23 = vld [vmem:[%s5344_s30 + $0x14c] sm:$0x1] }
 0x110   : > { %v1717_v38 = vadd.f32 %v1641_v19, %v1431_v41  ;;  %v1009_v21 = vadd.f32 %v1008_v54, %v5749_v5  ;;  %v1207_v5 = vsel %vm5530_vm7, %v4563_v61, %v1206_v30  ;;  %v1210_v41 = vsel %vm5530_vm7, %v1208_v4, %v1209_v51  ;;  %v4732_v30 = vld [vmem:[%s5344_s30 + $0x150] sm:$0xf] }
 0x111   : > { %v2078_v47 = vshll.u32 %v4731_v23, 16  ;;  %v1263_v50 = vunpack.c.l.b16 %v1210_v41  ;;  %v2066_v19 = vrot.slane %v2065_v31, 4  ;;  %v2076_v54 = vrot.slane %v2075_v33, 4 }
 0x112   : > { %v1358_v9 = vpop.f32.mrf.mxu2  ;;  %v5848_v13 = vadd.f32 %v2294_v35, %v1717_v38  ;;  %v2083_v16 = vshrl.u32 %v4732_v30, 16  ;;  %v2086_v8 = vshll.u32 %v4732_v30, 16  ;;  %v2096_v41 = vshrl.u32 %v4733_v20, 16 }
 0x113   : > { %v1432_v14 = vadd.f32 %v1358_v9, %v1007_v52  ;;  %v1262_v52 = vunpack.c.l.b16 %v1207_v5  ;;  %v2080_v38 = vrot.slane %v2078_v47, 5  ;;  %v5216_v9 = vld [vmem:[%s5344_s30 + $0x94] sm:$0xf]  ;;  %v2092_v5 = vshll.u32 %v4733_v20, 16 }
 0x114   : > { %4690 = vmatmul.msk.bf16.gmra.mxu3 %vm714_vm4, %v5061_v57  ;;  %v2085_v31 = vrot.slane %v2083_v16, 4  ;;  %v2088_v33 = vrot.slane %v2086_v8, 5 }
 0x115   : > { %v1283_v4 = vpack.c.b16 %v1263_v50, %v1262_v52  ;;  %v2081_v23 = vsel %vm5356_vm3, %v2076_v54, %v2080_v38  ;;  %v4564_v52 = vrot.slane %v1088_v25, 9 }
 0x116   : > { %v2297_v60 = vpop.f32.mrf.mxu0  ;;  %v2089_v20 = vor.u32 %v2088_v33, %v2085_v31  ;;  %v4736_v31 = vld [vmem:[%s5344_s30 + $0x160] sm:$0xf] }
 0x117   : > { %v1644_v48 = vpop.f32.mrf.mxu3  ;;  %v1011_v35 = vpop.f32.mrf.mxu1 }
 0x118   : > { %v1718_v3 = vadd.f32 %v1644_v48, %v1432_v14  ;;  %v1012_v27 = vadd.f32 %v1011_v35, %v5772_v56  ;;  %v1213_v56 = vrot.slane %v5216_v9, 5  ;;  %v2071_v14 = vsel %vm5356_vm3, %v2066_v19, %v2070_v11  ;;  %v5062_v48 = vld [vmem:[%s5344_s30 + $0x144] sm:$0xff]  ;;  %v5047_v9 = vld [vmem:[%s5344_s30 + $0x90] sm:$0xff] }
 0x119   : > { %4754 = vmatmul.msk.bf16.gmra.mxu0 %vm714_vm4, %v2221_v62  ;;  %v5217_v62 = vld [vmem:[%s5344_s30 + $0x98] sm:$0x1]  ;;  %v2201_v50 = vunpack.c.l.b16 %v2071_v14  ;;  %v2098_v19 = vrot.slane %v2096_v41, 4 }
 0x11a   : > { %v1360_v51 = vpop.f32.mrf.mxu2  ;;  %4547 = vmatmul.msk.bf16.gmra.mxu1 %vm714_vm4, %v5046_v44  ;;  %v5861_v57 = vadd.f32 %v2297_v60, %v1718_v3  ;;  %v1216_v60 = vrot.slane %v5217_v62, 5  ;;  %v1215_v11 = vrot.slane %v1213_v56, 4  ;;  %v2202_v3 = vunpack.c.l.b16 %v2081_v23 }
 0x11b   : > { %v1433_v61 = vadd.f32 %v1360_v51, %v1009_v21  ;;  %v2094_v51 = vrot.slane %v2092_v5, 5  ;;  %v2090_v62 = vrot.slane %v2089_v20, 4  ;;  %v5219_v20 = vld [vmem:[%s5344_s30 + $0xa4] sm:$0x1] }
 0x11c   : > { %v2222_v16 = vpack.c.b16 %v2202_v3, %v2201_v50  ;;  %v5218_v50 = vld [vmem:[%s5344_s30 + $0xa0] sm:$0xf] }
 0x11d   : > { %v2099_v25 = vor.u32 %v2098_v19, %v2094_v51  ;;  %v1220_v3 = vrot.slane %v5218_v50, 5  ;;  %v1089_v19 = vld [vmem:[%s5344_s30 + $0x9c] sm:$0xe] }
 0x11e   : > { %v2299_v1 = vpop.f32.mrf.mxu0 }
 0x11f   : > { %v1646_v21 = vpop.f32.mrf.mxu3  ;;  %4579 = vmatmul.msk.bf16.gmra.mxu2 %vm714_vm4, %v1283_v4  ;;  %v1013_v44 = vpop.f32.mrf.mxu1  ;;  %v4734_v4 = vld [vmem:[%s5344_s30 + $0x158] sm:$0x1] }
 0x120   : > { %v1719_v47 = vadd.f32 %v1646_v21, %v1433_v61  ;;  %v1014_v35 = vadd.f32 %v1013_v44, %v5790_v24  ;;  %v1214_v61 = vsel %vm5530_vm7, %v4564_v52, %v1213_v56  ;;  %v1217_v24 = vsel %vm5530_vm7, %v1215_v11, %v1216_v60  ;;  %v4735_v21 = vld [vmem:[%s5344_s30 + $0x15c] sm:$0xf] }
 0x121   : > { %v2102_v14 = vshll.u32 %v4734_v4, 16  ;;  %v1265_v5 = vunpack.c.l.b16 %v1217_v24  ;;  %v2100_v60 = vrot.slane %v2099_v25, 4  ;;  %v2107_v52 = vshrl.u32 %v4735_v21, 16 }
 0x122   : > { %v1363_v30 = vpop.f32.mrf.mxu2  ;;  %v5874_v54 = vadd.f32 %v2299_v1, %v1719_v47  ;;  %v2095_v11 = vsel %vm5356_vm3, %v2090_v62, %v2094_v51  ;;  %v2120_v4 = vshrl.u32 %v4736_v31, 16 }
 0x123   : > { %v1434_v38 = vadd.f32 %v1363_v30, %v1012_v27  ;;  %v1264_v27 = vunpack.c.l.b16 %v1214_v61  ;;  %v2104_v44 = vrot.slane %v2102_v14, 5  ;;  %v2110_v30 = vshll.u32 %v4735_v21, 16  ;;  %v5063_v14 = vld [vmem:[%s5344_s30 + $0x150] sm:$0xff] }
 0x124   : > { %4691 = vmatmul.msk.bf16.gmra.mxu3 %vm714_vm4, %v5062_v48  ;;  %v2109_v51 = vrot.slane %v2107_v52, 4 }
 0x125   : > { %v1284_v48 = vpack.c.b16 %v1265_v5, %v1264_v27  ;;  %v2105_v24 = vsel %vm5356_vm3, %v2100_v60, %v2104_v44  ;;  %v1222_v27 = vrot.slane %v1220_v3, 4  ;;  %v2112_v5 = vrot.slane %v2110_v30, 5  ;;  %v4737_v44 = vld [vmem:[%s5344_s30 + $0x164] sm:$0x1] }
 0x126   : > { %v2302_v8 = vpop.f32.mrf.mxu0  ;;  %v2204_v62 = vunpack.c.l.b16 %v2105_v24 }
 0x127   : > { %v1649_v1 = vpop.f32.mrf.mxu3  ;;  %v1016_v23 = vpop.f32.mrf.mxu1  ;;  %v2113_v52 = vor.u32 %v2112_v5, %v2109_v51 }
 0x128   : > { %v1720_v41 = vadd.f32 %v1649_v1, %v1434_v38  ;;  %v2116_v38 = vshll.u32 %v4736_v31, 16  ;;  %v4565_v1 = vrot.slane %v1089_v19, 9  ;;  %v5048_v19 = vld [vmem:[%s5344_s30 + $0x9c] sm:$0xff] }
 0x129   : > { %4755 = vmatmul.msk.bf16.gmra.mxu0 %vm714_vm4, %v2222_v16  ;;  %v1223_v16 = vrot.slane %v5219_v20, 5 }
 0x12a   : > { %v1365_v56 = vpop.f32.mrf.mxu2  ;;  %4548 = vmatmul.msk.bf16.gmra.mxu1 %vm714_vm4, %v5047_v9  ;;  %v5887_v33 = vadd.f32 %v2302_v8, %v1720_v41  ;;  %v2203_v8 = vunpack.c.l.b16 %v2095_v11  ;;  %v1017_v41 = vadd.f32 %v1016_v23, %v5625_v7  ;;  %v2118_v21 = vrot.slane %v2116_v38, 5 }
 0x12b   : > { %v1435_v47 = vadd.f32 %v1365_v56, %v1014_v35  ;;  %v2122_v56 = vrot.slane %v2120_v4, 4  ;;  %v2126_v11 = vshll.u32 %v4737_v44, 16 }
 0x12c   : > { %v2223_v7 = vpack.c.b16 %v2204_v62, %v2203_v8  ;;  %v4738_v8 = vld [vmem:[%s5344_s30 + $0x168] sm:$0xf] }
 0x12d   : > { %v2123_v23 = vor.u32 %v2122_v56, %v2118_v21  ;;  %v2128_v51 = vrot.slane %v2126_v11, 5  ;;  %v2134_v44 = vshll.u32 %v4738_v8, 16 }
 0x12e   : > { %v2304_v61 = vpop.f32.mrf.mxu0 }
 0x12f   : > { %v1651_v35 = vpop.f32.mrf.mxu3  ;;  %4580 = vmatmul.msk.bf16.gmra.mxu2 %vm714_vm4, %v1284_v48  ;;  %v1018_v9 = vpop.f32.mrf.mxu1  ;;  %v1224_v48 = vsel %vm5530_vm7, %v1222_v27, %v1223_v16  ;;  %v2124_v16 = vrot.slane %v2123_v23, 4 }
 0x130   : > { %v1721_v25 = vadd.f32 %v1651_v35, %v1435_v47  ;;  %v1221_v47 = vsel %vm5530_vm7, %v4565_v1, %v1220_v3  ;;  %v1267_v24 = vunpack.c.l.b16 %v1224_v48  ;;  %v2114_v35 = vrot.slane %v2113_v52, 4  ;;  %v5221_v52 = vld [vmem:[%s5344_s30 + $0xb0] sm:$0x1] }
 0x131   : > { %v1019_v3 = vadd.f32 %v1018_v9, %v5641_v34  ;;  %v2131_v34 = vshrl.u32 %v4738_v8, 16  ;;  %v2129_v9 = vsel %vm5356_vm3, %v2124_v16, %v2128_v51 }
 0x132   : > { %v1368_v60 = vpop.f32.mrf.mxu2  ;;  %v5900_v31 = vadd.f32 %v2304_v61, %v1721_v25  ;;  %v1266_v61 = vunpack.c.l.b16 %v1221_v47  ;;  %v2119_v56 = vsel %vm5356_vm3, %v2114_v35, %v2118_v21 }
 0x133   : > { %v1436_v50 = vadd.f32 %v1368_v60, %v1017_v41  ;;  %v5220_v41 = vld [vmem:[%s5344_s30 + $0xac] sm:$0xf]  ;;  %v1090_v60 = vld [vmem:[%s5344_s30 + $0xa8] sm:$0xe] }
 0x134   : > { %4692 = vmatmul.msk.bf16.gmra.mxu3 %vm714_vm4, %v5063_v14  ;;  %v4739_v14 = vld [vmem:[%s5344_s30 + $0x16c] sm:$0xf]  ;;  %v1285_v5 = vpack.c.b16 %v1267_v24, %v1266_v61  ;;  %v1227_v62 = vrot.slane %v5220_v41, 5  ;;  %v2205_v61 = vunpack.c.l.b16 %v2119_v56  ;;  %v2206_v24 = vunpack.c.l.b16 %v2129_v9  ;;  %v4740_v41 = vld [vmem:[%s5344_s30 + $0x170] sm:$0x1] }
 0x135   : > { %v2144_v47 = vshrl.u32 %v4739_v14, 16 }
 0x136   : > { %v2307_v30 = vpop.f32.mrf.mxu0 }
 0x137   : > { %v1654_v38 = vpop.f32.mrf.mxu3  ;;  %v1021_v4 = vpop.f32.mrf.mxu1  ;;  %v2146_v51 = vrot.slane %v2144_v47, 4 }
 0x138   : > { %v1722_v20 = vadd.f32 %v1654_v38, %v1436_v50  ;;  %v2140_v50 = vshll.u32 %v4739_v14, 16  ;;  %v5064_v38 = vld [vmem:[%s5344_s30 + $0x15c] sm:$0xff]  ;;  %v1022_v35 = vadd.f32 %v1021_v4, %v5661_v58  ;;  %v2224_v58 = vpack.c.b16 %v2206_v24, %v2205_v61 }
 0x139   : > { %4756 = vmatmul.msk.bf16.gmra.mxu0 %vm714_vm4, %v2223_v7  ;;  %v1230_v7 = vrot.slane %v5221_v52, 5 }
 0x13a   : > { %v1370_v25 = vpop.f32.mrf.mxu2  ;;  %4549 = vmatmul.msk.bf16.gmra.mxu1 %vm714_vm4, %v5048_v19  ;;  %v5913_v1 = vadd.f32 %v2307_v30, %v1722_v20  ;;  %v4566_v30 = vrot.slane %v1090_v60, 9  ;;  %v1229_v19 = vrot.slane %v1227_v62, 4  ;;  %v2133_v20 = vrot.slane %v2131_v34, 4  ;;  %v5049_v34 = vld [vmem:[%s5344_s30 + $0xa8] sm:$0xff] }
 0x13b   : > { %v1437_v27 = vadd.f32 %v1370_v25, %v1019_v3  ;;  %v2136_v3 = vrot.slane %v2134_v44, 5  ;;  %v5925_v16 = vrot.slane %v2140_v50, 5  ;;  %v2150_v50 = vshll.u32 %v4740_v41, 16 }
 0x13d   : > { %v2137_v4 = vor.u32 %v2136_v3, %v2133_v20  ;;  %v2147_v56 = vor.u32 %v2146_v51, %v5925_v16  ;;  %v2152_v20 = vrot.slane %v2150_v50, 5 }
 0x13e   : > { %v2309_v48 = vpop.f32.mrf.mxu0 }
 0x13f   : > { %v1656_v23 = vpop.f32.mrf.mxu3  ;;  %4581 = vmatmul.msk.bf16.gmra.mxu2 %vm714_vm4, %v1285_v5  ;;  %v1023_v11 = vpop.f32.mrf.mxu1  ;;  %v1228_v5 = vsel %vm5530_vm7, %v4566_v30, %v1227_v62  ;;  %v4741_v62 = vld [vmem:[%s5344_s30 + $0x174] sm:$0xf]  ;;  %v5222_v30 = vld [vmem:[%s5344_s30 + $0xc4] sm:$0xf] }
 0x140   : > { %v1723_v21 = vadd.f32 %v1656_v23, %v1437_v27  ;;  %v1231_v27 = vsel %vm5530_vm7, %v1229_v19, %v1230_v7  ;;  %v1268_v9 = vunpack.c.l.b16 %v1228_v5  ;;  %v4742_v23 = vld [vmem:[%s5344_s30 + $0x178] sm:$0xf]  ;;  %v2465_v7 = vrot.slane %v5222_v30, 5 }
 0x141   : > { %v1269_v44 = vunpack.c.l.b16 %v1231_v27  ;;  %v1024_v19 = vadd.f32 %v1023_v11, %v5678_v28  ;;  %v2158_v3 = vshll.u32 %v4741_v62, 16  ;;  %v5223_v27 = vld [vmem:[%s5344_s30 + $0xb8] sm:$0xf]  ;;  %v1091_v11 = vld [vmem:[%s5344_s30 + $0xb4] sm:$0xe] }
 0x142   : > { %v1373_v8 = vpop.f32.mrf.mxu2  ;;  %v5927_v25 = vadd.f32 %v2309_v48, %v1723_v21  ;;  %v2138_v21 = vrot.slane %v2137_v4, 4  ;;  %v1234_v41 = vrot.slane %v5223_v27, 5  ;;  %v2467_v4 = vrot.slane %v2465_v7, 4  ;;  %v5065_v27 = vld [vmem:[%s5344_s30 + $0x168] sm:$0xff] }
 0x143   : > { %v1438_v14 = vadd.f32 %v1373_v8, %v1022_v35  ;;  %v1286_v24 = vpack.c.b16 %v1269_v44, %v1268_v9  ;;  %v2155_v35 = vshrl.u32 %v4741_v62, 16  ;;  %v2164_v8 = vshll.u32 %v4742_v23, 16 }
 0x144   : > { %4693 = vmatmul.msk.bf16.gmra.mxu3 %vm714_vm4, %v5064_v38  ;;  %v2148_v38 = vrot.slane %v2147_v56, 4  ;;  %v5225_v56 = vld [vmem:[%s5344_s30 + $0xc8] sm:$0x1]  ;;  %v2143_v9 = vsel %vm5356_vm3, %v2138_v21, %v5925_v16 }
 0x145   : > { %v2157_v62 = vrot.slane %v2155_v35, 4  ;;  %v2207_v21 = vunpack.c.l.b16 %v2143_v9 }
 0x146   : > { %v2312_v60 = vpop.f32.mrf.mxu0  ;;  %v2153_v44 = vsel %vm5356_vm3, %v2148_v38, %v2152_v20 }
 0x147   : > { %v1659_v47 = vpop.f32.mrf.mxu3  ;;  %v1026_v48 = vpop.f32.mrf.mxu1  ;;  %v2208_v38 = vunpack.c.l.b16 %v2153_v44 }
 0x148   : > { %v1724_v52 = vadd.f32 %v1659_v47, %v1438_v14  ;;  %v2168_v14 = vshrl.u32 %v4742_v23, 16  ;;  %v2468_v47 = vrot.slane %v5225_v56, 5  ;;  %v5955_v23 = vrot.slane %v2164_v8, 5 }
 0x149   : > { %4757 = vmatmul.msk.bf16.gmra.mxu0 %vm714_vm4, %v2224_v58  ;;  %v5224_v58 = vld [vmem:[%s5344_s30 + $0xbc] sm:$0x1]  ;;  %v1236_v56 = vrot.slane %v1234_v41, 4  ;;  %v1027_v16 = vadd.f32 %v1026_v48, %v5698_v53 }
 0x14a   : > { %v1375_v61 = vpop.f32.mrf.mxu2  ;;  %4550 = vmatmul.msk.bf16.gmra.mxu1 %vm714_vm4, %v5049_v34  ;;  %v5943_v5 = vadd.f32 %v2312_v60, %v1724_v52  ;;  %v1237_v28 = vrot.slane %v5224_v58, 5  ;;  %v2160_v52 = vrot.slane %v2158_v3, 5  ;;  %v2170_v30 = vrot.slane %v2168_v14, 4 }
 0x14b   : > { %v1439_v51 = vadd.f32 %v1375_v61, %v1024_v19  ;;  %v4760_v19 = vld [vmem:[%s5344_s30 + $0xc0] sm:$0xe]  ;;  %v4567_v58 = vrot.slane %v1091_v11, 9  ;;  %v2469_v3 = vsel %vm5530_vm7, %v2467_v4, %v2468_v47 }
 0x14c   : > { %6902 = vst [vmem:[#allocation2_spill] sm:$0xff] %v5943_v5  ;;  %v4776_v5 = vrot.slane %v4760_v19, 9  ;;  %v2161_v8 = vor.u32 %v2160_v52, %v2157_v62  ;;  %v2577_v11 = vunpack.c.l.b16 %v2469_v3  ;;  %v1238_v48 = vsel %vm5530_vm7, %v1236_v56, %v1237_v28  ;;  %v4920_v4 = vld [vmem:[%s5344_s30 + $0x180] sm:$0xf]  ;;  %v5050_v62 = vld [vmem:[%s5344_s30 + $0xb4] sm:$0xff] }
 0x14d   : > { %v1235_v53 = vsel %vm5530_vm7, %v4567_v58, %v1234_v41  ;;  %v2171_v9 = vor.u32 %v2170_v30, %v5955_v23  ;;  %v5978_v52 = vld [vmem:[%s5344_s30 + $0x184] sm:$0xf]  ;;  %v1271_v41 = vunpack.c.l.b16 %v1238_v48  ;;  %v3131_v56 = vshrl.u32 %v4920_v4, 16 }
 0x14e   : > { %v2314_v34 = vpop.f32.mrf.mxu0  ;;  %v2466_v35 = vsel %vm5530_vm7, %v4776_v5, %v2465_v7  ;;  %v2225_v7 = vpack.c.b16 %v2208_v38, %v2207_v21  ;;  %v2162_v58 = vrot.slane %v2161_v8, 4  ;;  %v3134_v30 = vshll.u32 %v4920_v4, 16 }
 0x14f   : > { %v1661_v60 = vpop.f32.mrf.mxu3  ;;  %4582 = vmatmul.msk.bf16.gmra.mxu2 %vm714_vm4, %v1286_v24  ;;  %v1028_v50 = vpop.f32.mrf.mxu1  ;;  %v4743_v24 = vld [vmem:[%s5344_s30 + $0x17c] sm:$0x1]  ;;  %v2576_v14 = vunpack.c.l.b16 %v2466_v35  ;;  %v2172_v28 = vrot.slane %v2171_v9, 4  ;;  %v3144_v38 = vshrl.u32 %v5978_v52, 16  ;;  %v3133_v8 = vrot.slane %v3131_v56, 4 }
 0x150   : > { %v1725_v61 = vadd.f32 %v1661_v60, %v1439_v51  ;;  %v2174_v5 = vshll.u32 %v4743_v24, 16  ;;  %v1029_v21 = vadd.f32 %v1028_v50, %v5718_v17  ;;  %v2167_v17 = vsel %vm5356_vm3, %v2162_v58, %v5955_v23  ;;  %v4922_v9 = vld [vmem:[%s5344_s30 + $0x188] sm:$0x1]  ;;  %v4923_v56 = vld [vmem:[%s5344_s30 + $0x18c] sm:$0xf] }
 0x151   : > { %v5971_v44 = vpack.c.b16 %v2577_v11, %v2576_v14  ;;  %v3136_v14 = vrot.slane %v3134_v30, 5  ;;  %v3150_v58 = vshll.u32 %v4922_v9, 16  ;;  %v5998_v30 = vld [vmem:[%s5344_s30 + $0x190] sm:$0xf] }
 0x152   : > { %v1378_v20 = vpop.f32.mrf.mxu2  ;;  %v5974_v47 = vadd.f32 %v2314_v34, %v1725_v61  ;;  %v2176_v34 = vrot.slane %v2174_v5, 5  ;;  %v3140_v61 = vshll.u32 %v5978_v52, 16 }
 0x153   : > { %v1440_v51 = vadd.f32 %v1378_v20, %v1027_v16  ;;  %v1270_v16 = vunpack.c.l.b16 %v1235_v53  ;;  %v3146_v53 = vrot.slane %v3144_v38, 4  ;;  %v3152_v38 = vrot.slane %v3150_v58, 5 }
 0x154   : > { %4694 = vmatmul.msk.bf16.gmra.mxu3 %vm714_vm4, %v5065_v27  ;;  %v2177_v50 = vsel %vm5356_vm3, %v2172_v28, %v2176_v34  ;;  %v3142_v11 = vrot.slane %v3140_v61, 5 }
 0x155   : > { %v1287_v3 = vpack.c.b16 %v1271_v41, %v1270_v16  ;;  %v3137_v16 = vor.u32 %v3136_v14, %v3133_v8  ;;  %v3158_v8 = vshll.u32 %v4923_v56, 16  ;;  %v3164_v14 = vshll.u32 %v5998_v30, 16 }
 0x156   : > { %v2317_v60 = vpop.f32.mrf.mxu0  ;;  %v3147_v41 = vor.u32 %v3146_v53, %v3142_v11 }
 0x157   : > { %v1664_v19 = vpop.f32.mrf.mxu3  ;;  %v1031_v27 = vpop.f32.mrf.mxu1  ;;  %v3138_v34 = vrot.slane %v3137_v16, 4 }
 0x158   : > { %v1726_v20 = vadd.f32 %v1664_v19, %v1440_v51  ;;  %v2210_v19 = vunpack.c.l.b16 %v2177_v50  ;;  %v1032_v23 = vadd.f32 %v1031_v27, %v5741_v2  ;;  %v3148_v61 = vrot.slane %v3147_v41, 4 }
 0x159   : > { %4758 = vmatmul.msk.bf16.gmra.mxu0 %vm714_vm4, %v2225_v7 }
 0x15a   : > { %v1380_v24 = vpop.f32.mrf.mxu2  ;;  %4551 = vmatmul.msk.bf16.gmra.mxu1 %vm714_vm4, %v5050_v62  ;;  %v5985_v51 = vadd.f32 %v2317_v60, %v1726_v20  ;;  %v5066_v60 = vld [vmem:[%s5344_s30 + $0x174] sm:$0xff]  ;;  %v2209_v62 = vunpack.c.l.b16 %v2167_v17  ;;  %v3168_v17 = vshrl.u32 %v5998_v30, 16  ;;  %v3153_v41 = vsel %vm5356_vm3, %v3148_v61, %v3152_v38 }
 0x15b   : > { %v1441_v35 = vadd.f32 %v1380_v24, %v1029_v21  ;;  %v4984_v24 = vld [vmem:[%s5344_s30 + $0x180] sm:$0xe]  ;;  %v3516_v61 = vunpack.c.l.b16 %v3153_v41  ;;  %v6024_v38 = vld [vmem:[%s5344_s30 + $0x194] sm:$0x1] }
 0x15c   : > { %v2226_v21 = vpack.c.b16 %v2210_v19, %v2209_v62  ;;  %v5227_v62 = vld [vmem:[%s5344_s30 + $0xd4] sm:$0x1] }
 0x15d   : > { %v2475_v19 = vrot.slane %v5227_v62, 5 }
 0x15e   : > { %v2319_v48 = vpop.f32.mrf.mxu0 }
 0x15f   : > { %v1666_v7 = vpop.f32.mrf.mxu3  ;;  %4583 = vmatmul.msk.bf16.gmra.mxu2 %vm714_vm4, %v1287_v3  ;;  %v1033_v5 = vpop.f32.mrf.mxu1  ;;  %v3155_v3 = vshrl.u32 %v4923_v56, 16 }
 0x160   : > { %v1727_v4 = vadd.f32 %v1666_v7, %v1441_v35  ;;  %v3801_v35 = vrot.slane %v5978_v52, 5  ;;  %v5226_v7 = vld [vmem:[%s5344_s30 + $0xd0] sm:$0xf]  ;;  %v3143_v52 = vsel %vm5356_vm3, %v3138_v34, %v3142_v11  ;;  %v3170_v11 = vrot.slane %v3168_v17, 4 }
 0x162   : > { %v1383_v20 = vpop.f32.mrf.mxu2  ;;  %v6003_v2 = vadd.f32 %v2319_v48, %v1727_v4  ;;  %v5000_v48 = vrot.slane %v4984_v24, 9  ;;  %v4761_v4 = vld [vmem:[%s5344_s30 + $0xcc] sm:$0xe]  ;;  %v3803_v58 = vrot.slane %v3801_v35, 4  ;;  %v5067_v24 = vld [vmem:[%s5344_s30 + $0x180] sm:$0xff] }
 0x163   : > { %v1442_v28 = vadd.f32 %v1383_v20, %v1032_v23  ;;  %v1034_v23 = vadd.f32 %v1033_v5, %v5761_v29  ;;  %v3804_v20 = vrot.slane %v4922_v9, 5  ;;  %v3515_v5 = vunpack.c.l.b16 %v3143_v52 }
 0x164   : > { %4695 = vmatmul.msk.bf16.gmra.mxu3 %vm714_vm4, %v5066_v60  ;;  %6903 = vst [vmem:[#allocation3_spill] sm:$0xff] %v6003_v2  ;;  %v2472_v60 = vrot.slane %v5226_v7, 5  ;;  %v6018_v7 = vrot.slane %v3164_v14, 5  ;;  %v3802_v2 = vsel %vm5530_vm7, %v5000_v48, %v3801_v35  ;;  %v3174_v35 = vshll.u32 %v6024_v38, 16 }
 0x165   : > { %v3547_v48 = vpack.c.b16 %v3516_v61, %v3515_v5  ;;  %v5228_v5 = vld [vmem:[%s5344_s30 + $0xdc] sm:$0xf] }
 0x166   : > { %v2322_v27 = vpop.f32.mrf.mxu0  ;;  %v2474_v62 = vrot.slane %v2472_v60, 4  ;;  %v2479_v61 = vrot.slane %v5228_v5, 5 }
 0x167   : > { %v1669_v50 = vpop.f32.mrf.mxu3  ;;  %v1036_v53 = vpop.f32.mrf.mxu1 }
 0x168   : > { %v1728_v16 = vadd.f32 %v1669_v50, %v1442_v28  ;;  %v3157_v28 = vrot.slane %v3155_v3, 4  ;;  %v3160_v50 = vrot.slane %v3158_v8, 5  ;;  %v2476_v17 = vsel %vm5530_vm7, %v2474_v62, %v2475_v19  ;;  %v6043_v62 = vld [vmem:[%s5344_s30 + $0x19c] sm:$0xf] }
 0x169   : > { %4759 = vmatmul.msk.bf16.gmra.mxu0 %vm714_vm4, %v2226_v21  ;;  %v4777_v21 = vrot.slane %v4761_v4, 9  ;;  %v1037_v4 = vadd.f32 %v1036_v53, %v5643_v37 }
 0x16a   : > { %v1385_v56 = vpop.f32.mrf.mxu2  ;;  %4792 = vmatmul.msk.bf16.vlgmr.msra.gmra.mxu1 %vm714_vm4, %v5971_v44  ;;  %v6021_v29 = vadd.f32 %v2322_v27, %v1728_v16  ;;  %v3805_v44 = vsel %vm5530_vm7, %v3803_v58, %v3804_v20  ;;  %v3161_v3 = vor.u32 %v3160_v50, %v3157_v28  ;;  %v3171_v16 = vor.u32 %v3170_v11, %v6018_v7  ;;  %v4985_v11 = vld [vmem:[%s5344_s30 + $0x18c] sm:$0xe] }
 0x16b   : > { %v1443_v34 = vadd.f32 %v1385_v56, %v1034_v23  ;;  %v2473_v27 = vsel %vm5530_vm7, %v4777_v21, %v2472_v60  ;;  %v3912_v23 = vunpack.c.l.b16 %v3802_v2  ;;  %v3913_v41 = vunpack.c.l.b16 %v3805_v44 }
 0x16c   : > { %v2578_v20 = vunpack.c.l.b16 %v2473_v27  ;;  %v2579_v60 = vunpack.c.l.b16 %v2476_v17  ;;  %v3162_v28 = vrot.slane %v3161_v3, 4  ;;  %v3172_v19 = vrot.slane %v3171_v16, 4 }
 0x16d   : > { %v3176_v50 = vrot.slane %v3174_v35, 5  ;;  %v3808_v21 = vrot.slane %v5998_v30, 5  ;;  %v5001_v17 = vrot.slane %v4985_v11, 9  ;;  %v4762_v30 = vld [vmem:[%s5344_s30 + $0xd8] sm:$0xe] }
 0x16e   : > { %v2324_v9 = vpop.f32.mrf.mxu0  ;;  %v2609_v53 = vpack.c.b16 %v2579_v60, %v2578_v20 }
 0x16f   : > { %v1671_v8 = vpop.f32.mrf.mxu3  ;;  %4904 = vmatmul.msk.bf16.vlgmr.msra.gmra.mxu2 %vm714_vm4, %v5067_v24  ;;  %v1038_v14 = vpop.f32.mrf.mxu1  ;;  %v4926_v24 = vld [vmem:[%s5344_s30 + $0x198] sm:$0xf]  ;;  %v3177_v27 = vsel %vm5356_vm3, %v3172_v19, %v3176_v50  ;;  %v5068_v50 = vld [vmem:[%s5344_s30 + $0x18c] sm:$0xff] }
 0x170   : > { %v1729_v52 = vadd.f32 %v1671_v8, %v1443_v34  ;;  %v3944_v34 = vpack.c.b16 %v3913_v41, %v3912_v23  ;;  %v3167_v8 = vsel %vm5356_vm3, %v3162_v28, %v6018_v7  ;;  %v3179_v16 = vshrl.u32 %v4926_v24, 16  ;;  %v5229_v41 = vld [vmem:[%s5344_s30 + $0xe0] sm:$0x1] }
 0x171   : > { %v3810_v23 = vrot.slane %v3808_v21, 4  ;;  %v3811_v7 = vrot.slane %v6024_v38, 5  ;;  %v3517_v60 = vunpack.c.l.b16 %v3167_v8  ;;  %v2481_v28 = vrot.slane %v2479_v61, 4 }
 0x172   : > { %v1388_v58 = vpop.f32.mrf.mxu2  ;;  %v6045_v37 = vadd.f32 %v2324_v9, %v1729_v52  ;;  %v3182_v9 = vshll.u32 %v4926_v24, 16  ;;  %v3188_v52 = vshll.u32 %v6043_v62, 16  ;;  %v3518_v11 = vunpack.c.l.b16 %v3177_v27 }
 0x173   : > { %v1444_v56 = vadd.f32 %v1388_v58, %v1037_v4  ;;  %v1039_v4 = vadd.f32 %v1038_v14, %v5664_v63  ;;  %v2482_v58 = vrot.slane %v5229_v41, 5  ;;  %v3809_v24 = vsel %vm5530_vm7, %v5001_v17, %v3808_v21 }
 0x174   : > { %4968 = vmatmul.msk.bf16.vlgmr.msra.gmra.mxu3 %vm714_vm4, %v3547_v48  ;;  %v3192_v48 = vshrl.u32 %v6043_v62, 16  ;;  %v3181_v63 = vrot.slane %v3179_v16, 4  ;;  %v3184_v14 = vrot.slane %v3182_v9, 5  ;;  %v6066_v38 = vrot.slane %v3188_v52, 5 }
 0x175   : > { %v2483_v27 = vsel %vm5530_vm7, %v2481_v28, %v2482_v58  ;;  %v3914_v17 = vunpack.c.l.b16 %v3809_v24  ;;  %v4986_v24 = vld [vmem:[%s5344_s30 + $0x198] sm:$0xe] }
 0x176   : > { %v2327_v2 = vpop.f32.mrf.mxu0  ;;  %v3194_v5 = vrot.slane %v3192_v48, 4  ;;  %v3185_v52 = vor.u32 %v3184_v14, %v3181_v63 }
 0x177   : > { %v1674_v44 = vpop.f32.mrf.mxu3  ;;  %v1041_v3 = vpop.f32.mrf.mxu1 }
 0x178   : > { %v1730_v35 = vadd.f32 %v1674_v44, %v1444_v56  ;;  %v4778_v56 = vrot.slane %v4762_v30, 9  ;;  %v6075_v30 = vld [vmem:[%s5344_s30 + $0x1a0] sm:$0x1]  ;;  %v3195_v48 = vor.u32 %v3194_v5, %v6066_v38  ;;  %v3186_v28 = vrot.slane %v3185_v52, 4 }
 0x179   : > { %5016 = vmatmul.msk.bf16.vlgmr.msra.gmra.mxu0 %vm714_vm4, %v3944_v34 }
 0x17a   : > { %v1390_v20 = vpop.f32.mrf.mxu2  ;;  %4793 = vmatmul.msk.bf16.gmra.mxu1 %vm714_vm4, %v2609_v53  ;;  %v6064_v34 = vadd.f32 %v2327_v2, %v1730_v35  ;;  %v3812_v53 = vsel %vm5530_vm7, %v3810_v23, %v3811_v7  ;;  %v2480_v8 = vsel %vm5530_vm7, %v4778_v56, %v2479_v61  ;;  %v3548_v2 = vpack.c.b16 %v3518_v11, %v3517_v60  ;;  %v6083_v56 = vld [vmem:[%s5344_s30 + $0x1a8] sm:$0xf] }
 0x17b   : > { %v1445_v19 = vadd.f32 %v1390_v20, %v1039_v4  ;;  %v3915_v9 = vunpack.c.l.b16 %v3812_v53  ;;  %v1042_v61 = vadd.f32 %v1041_v3, %v5681_v22  ;;  %v2580_v4 = vunpack.c.l.b16 %v2480_v8  ;;  %v4929_v20 = vld [vmem:[%s5344_s30 + $0x1a4] sm:$0xf] }
 0x17c   : > { %v2581_v23 = vunpack.c.l.b16 %v2483_v27  ;;  %v3198_v7 = vshll.u32 %v6075_v30, 16  ;;  %v3815_v22 = vrot.slane %v6043_v62, 5  ;;  %v3203_v14 = vshrl.u32 %v4929_v20, 16 }
 0x17d   : > { %v3945_v60 = vpack.c.b16 %v3915_v9, %v3914_v17  ;;  %v3206_v5 = vshll.u32 %v4929_v20, 16  ;;  %v3212_v53 = vshll.u32 %v6083_v56, 16  ;;  %v3216_v8 = vshrl.u32 %v6083_v56, 16  ;;  %v5231_v9 = vld [vmem:[%s5344_s30 + $0xec] sm:$0x1] }
 0x17e   : > { %v2329_v44 = vpop.f32.mrf.mxu0  ;;  %v3200_v11 = vrot.slane %v3198_v7, 5  ;;  %v2489_v52 = vrot.slane %v5231_v9, 5  ;;  %v3818_v62 = vrot.slane %v6075_v30, 5  ;;  %v3817_v7 = vrot.slane %v3815_v22, 4  ;;  %v6110_v9 = vld [vmem:[%s5344_s30 + $0x1ac] sm:$0x1] }
 0x17f   : > { %v1676_v21 = vpop.f32.mrf.mxu3  ;;  %4905 = vmatmul.msk.bf16.gmra.mxu2 %vm714_vm4, %v5068_v50  ;;  %v1043_v16 = vpop.f32.mrf.mxu1  ;;  %v2610_v50 = vpack.c.b16 %v2581_v23, %v2580_v4  ;;  %v3191_v4 = vsel %vm5356_vm3, %v3186_v28, %v6066_v38  ;;  %v3208_v20 = vrot.slane %v3206_v5, 5  ;;  %v6104_v30 = vrot.slane %v3212_v53, 5 }
 0x180   : > { %v1731_v35 = vadd.f32 %v1676_v21, %v1445_v19  ;;  %v3196_v19 = vrot.slane %v3195_v48, 4  ;;  %v3519_v38 = vunpack.c.l.b16 %v3191_v4 }
 0x182   : > { %v1393_v41 = vpop.f32.mrf.mxu2  ;;  %v6088_v3 = vadd.f32 %v2329_v44, %v1731_v35  ;;  %v4763_v44 = vld [vmem:[%s5344_s30 + $0xe4] sm:$0xe]  ;;  %v1044_v35 = vadd.f32 %v1043_v16, %v5702_v55  ;;  %v3201_v23 = vsel %vm5356_vm3, %v3196_v19, %v3200_v11 }
 0x183   : > { %v1446_v58 = vadd.f32 %v1393_v41, %v1042_v61  ;;  %v5002_v61 = vrot.slane %v4986_v24, 9  ;;  %v3218_v24 = vrot.slane %v3216_v8, 4  ;;  %v4779_v55 = vrot.slane %v4763_v44, 9 }
 0x184   : > { %4969 = vmatmul.msk.bf16.gmra.mxu3 %vm714_vm4, %v3548_v2  ;;  %v5230_v2 = vld [vmem:[%s5344_s30 + $0xe8] sm:$0xf]  ;;  %v3520_v28 = vunpack.c.l.b16 %v3201_v23 }
 0x185   : > { %v2486_v17 = vrot.slane %v5230_v2, 5  ;;  %v3816_v11 = vsel %vm5530_vm7, %v5002_v61, %v3815_v22  ;;  %v3222_v22 = vshll.u32 %v6110_v9, 16 }
 0x186   : > { %v2332_v63 = vpop.f32.mrf.mxu0  ;;  %v3549_v44 = vpack.c.b16 %v3520_v28, %v3519_v38  ;;  %v5232_v28 = vld [vmem:[%s5344_s30 + $0xf4] sm:$0xf] }
 0x187   : > { %v1679_v27 = vpop.f32.mrf.mxu3  ;;  %v1046_v21 = vpop.f32.mrf.mxu1  ;;  %v2488_v16 = vrot.slane %v2486_v17, 4 }
 0x188   : > { %v1732_v48 = vadd.f32 %v1679_v27, %v1446_v58  ;;  %v3205_v58 = vrot.slane %v3203_v14, 4  ;;  %v5069_v27 = vld [vmem:[%s5344_s30 + $0x198] sm:$0xff] }
 0x189   : > { %5017 = vmatmul.msk.bf16.gmra.mxu0 %vm714_vm4, %v3945_v60  ;;  %v2490_v8 = vsel %vm5530_vm7, %v2488_v16, %v2489_v52  ;;  %v6129_v16 = vld [vmem:[%s5344_s30 + $0x1b4] sm:$0xf] }
 0x18a   : > { %v1395_v41 = vpop.f32.mrf.mxu2  ;;  %4794 = vmatmul.msk.bf16.gmra.mxu1 %vm714_vm4, %v2610_v50  ;;  %v6107_v2 = vadd.f32 %v2332_v63, %v1732_v48  ;;  %v3819_v50 = vsel %vm5530_vm7, %v3817_v7, %v3818_v62  ;;  %v3209_v14 = vor.u32 %v3208_v20, %v3205_v58  ;;  %v2487_v63 = vsel %vm5530_vm7, %v4779_v55, %v2486_v17 }
 0x18b   : > { %v1447_v60 = vadd.f32 %v1395_v41, %v1044_v35  ;;  %v3219_v48 = vor.u32 %v3218_v24, %v6104_v30  ;;  %v1047_v62 = vadd.f32 %v1046_v21, %v5725_v26  ;;  %v3916_v35 = vunpack.c.l.b16 %v3816_v11  ;;  %v4987_v24 = vld [vmem:[%s5344_s30 + $0x1a4] sm:$0xe] }
 0x18c   : > { %v3917_v4 = vunpack.c.l.b16 %v3819_v50  ;;  %v2582_v7 = vunpack.c.l.b16 %v2487_v63  ;;  %v2583_v17 = vunpack.c.l.b16 %v2490_v8  ;;  %v3210_v58 = vrot.slane %v3209_v14, 4 }
 0x18d   : > { %v3220_v52 = vrot.slane %v3219_v48, 4  ;;  %v3224_v20 = vrot.slane %v3222_v22, 5  ;;  %v3822_v55 = vrot.slane %v6083_v56, 5  ;;  %v2493_v11 = vrot.slane %v5232_v28, 5  ;;  %v4764_v56 = vld [vmem:[%s5344_s30 + $0xf0] sm:$0xe] }
 0x18e   : > { %v2334_v19 = vpop.f32.mrf.mxu0  ;;  %v2611_v38 = vpack.c.b16 %v2583_v17, %v2582_v7  ;;  %v5003_v8 = vrot.slane %v4987_v24, 9 }
 0x18f   : > { %v1681_v5 = vpop.f32.mrf.mxu3  ;;  %4906 = vmatmul.msk.bf16.gmra.mxu2 %vm714_vm4, %v5069_v27  ;;  %v1048_v53 = vpop.f32.mrf.mxu1  ;;  %v4932_v27 = vld [vmem:[%s5344_s30 + $0x1b0] sm:$0xf]  ;;  %v3225_v63 = vsel %vm5356_vm3, %v3220_v52, %v3224_v20  ;;  %v5070_v20 = vld [vmem:[%s5344_s30 + $0x1a4] sm:$0xff] }
 0x190   : > { %v1733_v61 = vadd.f32 %v1681_v5, %v1447_v60  ;;  %v3946_v60 = vpack.c.b16 %v3917_v4, %v3916_v35  ;;  %v3215_v5 = vsel %vm5356_vm3, %v3210_v58, %v6104_v30  ;;  %v3227_v48 = vshrl.u32 %v4932_v27, 16  ;;  %v5233_v4 = vld [vmem:[%s5344_s30 + $0xf8] sm:$0x1] }
 0x191   : > { %v3824_v35 = vrot.slane %v3822_v55, 4  ;;  %v3825_v30 = vrot.slane %v6110_v9, 5  ;;  %v3521_v17 = vunpack.c.l.b16 %v3215_v5  ;;  %v2495_v58 = vrot.slane %v2493_v11, 4 }
 0x192   : > { %v1398_v23 = vpop.f32.mrf.mxu2  ;;  %v6131_v26 = vadd.f32 %v2334_v19, %v1733_v61  ;;  %v3230_v19 = vshll.u32 %v4932_v27, 16  ;;  %v3236_v61 = vshll.u32 %v6129_v16, 16  ;;  %v3522_v24 = vunpack.c.l.b16 %v3225_v63 }
 0x193   : > { %v1448_v41 = vadd.f32 %v1398_v23, %v1047_v62  ;;  %v1049_v62 = vadd.f32 %v1048_v53, %v5743_v43  ;;  %v2496_v23 = vrot.slane %v5233_v4, 5  ;;  %v3823_v27 = vsel %vm5530_vm7, %v5003_v8, %v3822_v55 }
 0x194   : > { %4970 = vmatmul.msk.bf16.gmra.mxu3 %vm714_vm4, %v3549_v44  ;;  %v3240_v44 = vshrl.u32 %v6129_v16, 16  ;;  %v3229_v43 = vrot.slane %v3227_v48, 4  ;;  %v3232_v53 = vrot.slane %v3230_v19, 5  ;;  %v6152_v9 = vrot.slane %v3236_v61, 5 }
 0x195   : > { %v2497_v63 = vsel %vm5530_vm7, %v2495_v58, %v2496_v23  ;;  %v3918_v8 = vunpack.c.l.b16 %v3823_v27  ;;  %v4988_v27 = vld [vmem:[%s5344_s30 + $0x1b0] sm:$0xe] }
 0x196   : > { %v2337_v21 = vpop.f32.mrf.mxu0  ;;  %v3242_v28 = vrot.slane %v3240_v44, 4  ;;  %v3233_v61 = vor.u32 %v3232_v53, %v3229_v43 }
 0x197   : > { %v1684_v50 = vpop.f32.mrf.mxu3  ;;  %v1051_v14 = vpop.f32.mrf.mxu1 }
 0x198   : > { %v1734_v22 = vadd.f32 %v1684_v50, %v1448_v41  ;;  %v4780_v41 = vrot.slane %v4764_v56, 9  ;;  %v6161_v56 = vld [vmem:[%s5344_s30 + $0x1b8] sm:$0x1]  ;;  %v3243_v44 = vor.u32 %v3242_v28, %v6152_v9  ;;  %v3234_v58 = vrot.slane %v3233_v61, 4 }
 0x199   : > { %5018 = vmatmul.msk.bf16.gmra.mxu0 %vm714_vm4, %v3946_v60 }
 0x19a   : > { %v1400_v7 = vpop.f32.mrf.mxu2  ;;  %4795 = vmatmul.msk.bf16.gmra.mxu1 %vm714_vm4, %v2611_v38  ;;  %v6150_v60 = vadd.f32 %v2337_v21, %v1734_v22  ;;  %v3826_v38 = vsel %vm5530_vm7, %v3824_v35, %v3825_v30  ;;  %v2494_v5 = vsel %vm5530_vm7, %v4780_v41, %v2493_v11  ;;  %v3550_v21 = vpack.c.b16 %v3522_v24, %v3521_v17  ;;  %v6169_v41 = vld [vmem:[%s5344_s30 + $0x1c0] sm:$0xf] }
 0x19b   : > { %v1449_v52 = vadd.f32 %v1400_v7, %v1049_v62  ;;  %v3919_v19 = vunpack.c.l.b16 %v3826_v38  ;;  %v1052_v11 = vadd.f32 %v1051_v14, %v5764_v40  ;;  %v2584_v62 = vunpack.c.l.b16 %v2494_v5  ;;  %v4935_v7 = vld [vmem:[%s5344_s30 + $0x1bc] sm:$0xf] }
 0x19c   : > { %v2585_v35 = vunpack.c.l.b16 %v2497_v63  ;;  %v3246_v30 = vshll.u32 %v6161_v56, 16  ;;  %v3829_v40 = vrot.slane %v6129_v16, 5  ;;  %v3251_v53 = vshrl.u32 %v4935_v7, 16 }
 0x19d   : > { %v3947_v17 = vpack.c.b16 %v3919_v19, %v3918_v8  ;;  %v3254_v28 = vshll.u32 %v4935_v7, 16  ;;  %v3260_v38 = vshll.u32 %v6169_v41, 16  ;;  %v3264_v5 = vshrl.u32 %v6169_v41, 16  ;;  %v5235_v19 = vld [vmem:[%s5344_s30 + $0x104] sm:$0x1] }
 0x19e   : > { %v2339_v50 = vpop.f32.mrf.mxu0  ;;  %v3248_v24 = vrot.slane %v3246_v30, 5  ;;  %v2503_v61 = vrot.slane %v5235_v19, 5  ;;  %v3832_v16 = vrot.slane %v6161_v56, 5  ;;  %v3831_v30 = vrot.slane %v3829_v40, 4  ;;  %v6196_v19 = vld [vmem:[%s5344_s30 + $0x1c4] sm:$0x1] }
 0x19f   : > { %v1686_v55 = vpop.f32.mrf.mxu3  ;;  %4907 = vmatmul.msk.bf16.gmra.mxu2 %vm714_vm4, %v5070_v20  ;;  %v1053_v48 = vpop.f32.mrf.mxu1  ;;  %v2612_v20 = vpack.c.b16 %v2585_v35, %v2584_v62  ;;  %v3239_v62 = vsel %vm5356_vm3, %v3234_v58, %v6152_v9  ;;  %v3256_v7 = vrot.slane %v3254_v28, 5  ;;  %v6190_v56 = vrot.slane %v3260_v38, 5 }
 0x1a0   : > { %v1735_v22 = vadd.f32 %v1686_v55, %v1449_v52  ;;  %v3244_v52 = vrot.slane %v3243_v44, 4  ;;  %v3523_v9 = vunpack.c.l.b16 %v3239_v62 }
 0x1a2   : > { %v1403_v4 = vpop.f32.mrf.mxu2  ;;  %v6174_v14 = vadd.f32 %v2339_v50, %v1735_v22  ;;  %v4765_v50 = vld [vmem:[%s5344_s30 + $0xfc] sm:$0xe]  ;;  %v1054_v22 = vadd.f32 %v1053_v48, %v5779_v10  ;;  %v3249_v35 = vsel %vm5356_vm3, %v3244_v52, %v3248_v24 }
 0x1a3   : > { %v1450_v23 = vadd.f32 %v1403_v4, %v1052_v11  ;;  %v5004_v11 = vrot.slane %v4988_v27, 9  ;;  %v3266_v27 = vrot.slane %v3264_v5, 4  ;;  %v4781_v10 = vrot.slane %v4765_v50, 9 }
 0x1a4   : > { %4971 = vmatmul.msk.bf16.gmra.mxu3 %vm714_vm4, %v3550_v21  ;;  %v5234_v21 = vld [vmem:[%s5344_s30 + $0x100] sm:$0xf]  ;;  %v3524_v58 = vunpack.c.l.b16 %v3249_v35 }
 0x1a5   : > { %v2500_v8 = vrot.slane %v5234_v21, 5  ;;  %v3830_v24 = vsel %vm5530_vm7, %v5004_v11, %v3829_v40  ;;  %v3270_v40 = vshll.u32 %v6196_v19, 16 }
 0x1a6   : > { %v2342_v43 = vpop.f32.mrf.mxu0  ;;  %v3551_v50 = vpack.c.b16 %v3524_v58, %v3523_v9  ;;  %v5236_v58 = vld [vmem:[%s5344_s30 + $0x10c] sm:$0xf] }
 0x1a7   : > { %v1689_v63 = vpop.f32.mrf.mxu3  ;;  %v1056_v55 = vpop.f32.mrf.mxu1  ;;  %v2502_v48 = vrot.slane %v2500_v8, 4 }
 0x1a8   : > { %v1736_v44 = vadd.f32 %v1689_v63, %v1450_v23  ;;  %v3253_v23 = vrot.slane %v3251_v53, 4  ;;  %v5071_v63 = vld [vmem:[%s5344_s30 + $0x1b0] sm:$0xff] }
 0x1a9   : > { %5019 = vmatmul.msk.bf16.gmra.mxu0 %vm714_vm4, %v3947_v17  ;;  %v2504_v5 = vsel %vm5530_vm7, %v2502_v48, %v2503_v61  ;;  %v6215_v48 = vld [vmem:[%s5344_s30 + $0x1cc] sm:$0xf] }
 0x1aa   : > { %v1405_v4 = vpop.f32.mrf.mxu2  ;;  %4796 = vmatmul.msk.bf16.gmra.mxu1 %vm714_vm4, %v2612_v20  ;;  %v6193_v21 = vadd.f32 %v2342_v43, %v1736_v44  ;;  %v3833_v20 = vsel %vm5530_vm7, %v3831_v30, %v3832_v16  ;;  %v3257_v53 = vor.u32 %v3256_v7, %v3253_v23  ;;  %v2501_v43 = vsel %vm5530_vm7, %v4781_v10, %v2500_v8 }
 0x1ab   : > { %v1451_v17 = vadd.f32 %v1405_v4, %v1054_v22  ;;  %v3267_v44 = vor.u32 %v3266_v27, %v6190_v56  ;;  %v1057_v16 = vadd.f32 %v1056_v55, %v5655_v49  ;;  %v3920_v22 = vunpack.c.l.b16 %v3830_v24  ;;  %v4989_v27 = vld [vmem:[%s5344_s30 + $0x1bc] sm:$0xe] }
 0x1ac   : > { %v3921_v62 = vunpack.c.l.b16 %v3833_v20  ;;  %v2586_v30 = vunpack.c.l.b16 %v2501_v43  ;;  %v2587_v8 = vunpack.c.l.b16 %v2504_v5  ;;  %v3258_v23 = vrot.slane %v3257_v53, 4 }
 0x1ad   : > { %v3268_v61 = vrot.slane %v3267_v44, 4  ;;  %v3272_v7 = vrot.slane %v3270_v40, 5  ;;  %v3836_v10 = vrot.slane %v6169_v41, 5  ;;  %v2507_v24 = vrot.slane %v5236_v58, 5  ;;  %v4766_v41 = vld [vmem:[%s5344_s30 + $0x108] sm:$0xe] }
 0x1ae   : > { %v2344_v52 = vpop.f32.mrf.mxu0  ;;  %v2613_v9 = vpack.c.b16 %v2587_v8, %v2586_v30  ;;  %v5005_v5 = vrot.slane %v4989_v27, 9 }
 0x1af   : > { %v1691_v28 = vpop.f32.mrf.mxu3  ;;  %4908 = vmatmul.msk.bf16.gmra.mxu2 %vm714_vm4, %v5071_v63  ;;  %v1058_v38 = vpop.f32.mrf.mxu1  ;;  %v4938_v63 = vld [vmem:[%s5344_s30 + $0x1c8] sm:$0xf]  ;;  %v3273_v43 = vsel %vm5356_vm3, %v3268_v61, %v3272_v7  ;;  %v5072_v7 = vld [vmem:[%s5344_s30 + $0x1bc] sm:$0xff] }
 0x1b0   : > { %v1737_v11 = vadd.f32 %v1691_v28, %v1451_v17  ;;  %v3948_v17 = vpack.c.b16 %v3921_v62, %v3920_v22  ;;  %v3263_v28 = vsel %vm5356_vm3, %v3258_v23, %v6190_v56  ;;  %v3275_v44 = vshrl.u32 %v4938_v63, 16  ;;  %v5237_v62 = vld [vmem:[%s5344_s30 + $0x110] sm:$0x1] }
 0x1b1   : > { %v3838_v22 = vrot.slane %v3836_v10, 4  ;;  %v3839_v56 = vrot.slane %v6196_v19, 5  ;;  %v3525_v8 = vunpack.c.l.b16 %v3263_v28  ;;  %v2509_v23 = vrot.slane %v2507_v24, 4 }
 0x1b2   : > { %v1408_v35 = vpop.f32.mrf.mxu2  ;;  %v6217_v49 = vadd.f32 %v2344_v52, %v1737_v11  ;;  %v3278_v52 = vshll.u32 %v4938_v63, 16  ;;  %v3284_v11 = vshll.u32 %v6215_v48, 16  ;;  %v3526_v27 = vunpack.c.l.b16 %v3273_v43 }
 0x1b3   : > { %v1452_v4 = vadd.f32 %v1408_v35, %v1057_v16  ;;  %v1059_v16 = vadd.f32 %v1058_v38, %v5674_v0  ;;  %v2510_v35 = vrot.slane %v5237_v62, 5  ;;  %v3837_v63 = vsel %vm5530_vm7, %v5005_v5, %v3836_v10 }
 0x1b4   : > { %4972 = vmatmul.msk.bf16.gmra.mxu3 %vm714_vm4, %v3551_v50  ;;  %v3288_v50 = vshrl.u32 %v6215_v48, 16  ;;  %v3277_v0 = vrot.slane %v3275_v44, 4  ;;  %v3280_v38 = vrot.slane %v3278_v52, 5  ;;  %v6238_v19 = vrot.slane %v3284_v11, 5 }
 0x1b5   : > { %v2511_v43 = vsel %vm5530_vm7, %v2509_v23, %v2510_v35  ;;  %v3922_v5 = vunpack.c.l.b16 %v3837_v63  ;;  %v4990_v63 = vld [vmem:[%s5344_s30 + $0x1c8] sm:$0xe] }
 0x1b6   : > { %v2347_v55 = vpop.f32.mrf.mxu0  ;;  %v3290_v58 = vrot.slane %v3288_v50, 4  ;;  %v3281_v11 = vor.u32 %v3280_v38, %v3277_v0 }
 0x1b7   : > { %v1694_v20 = vpop.f32.mrf.mxu3  ;;  %v1061_v53 = vpop.f32.mrf.mxu1 }
 0x1b8   : > { %v1738_v40 = vadd.f32 %v1694_v20, %v1452_v4  ;;  %v4782_v4 = vrot.slane %v4766_v41, 9  ;;  %v6247_v41 = vld [vmem:[%s5344_s30 + $0x1d0] sm:$0x1]  ;;  %v3291_v50 = vor.u32 %v3290_v58, %v6238_v19  ;;  %v3282_v23 = vrot.slane %v3281_v11, 4 }
 0x1b9   : > { %5020 = vmatmul.msk.bf16.gmra.mxu0 %vm714_vm4, %v3948_v17 }
 0x1ba   : > { %v1410_v30 = vpop.f32.mrf.mxu2  ;;  %4797 = vmatmul.msk.bf16.gmra.mxu1 %vm714_vm4, %v2613_v9  ;;  %v6236_v17 = vadd.f32 %v2347_v55, %v1738_v40  ;;  %v3840_v9 = vsel %vm5530_vm7, %v3838_v22, %v3839_v56  ;;  %v2508_v28 = vsel %vm5530_vm7, %v4782_v4, %v2507_v24  ;;  %v3552_v55 = vpack.c.b16 %v3526_v27, %v3525_v8  ;;  %v6255_v4 = vld [vmem:[%s5344_s30 + $0x1d8] sm:$0xf] }
 0x1bb   : > { %v1453_v61 = vadd.f32 %v1410_v30, %v1059_v16  ;;  %v3923_v52 = vunpack.c.l.b16 %v3840_v9  ;;  %v1062_v24 = vadd.f32 %v1061_v53, %v5695_v39  ;;  %v2588_v16 = vunpack.c.l.b16 %v2508_v28  ;;  %v4941_v30 = vld [vmem:[%s5344_s30 + $0x1d4] sm:$0xf] }
 0x1bc   : > { %v2589_v22 = vunpack.c.l.b16 %v2511_v43  ;;  %v3294_v56 = vshll.u32 %v6247_v41, 16  ;;  %v3843_v39 = vrot.slane %v6215_v48, 5  ;;  %v3299_v38 = vshrl.u32 %v4941_v30, 16 }
 0x1bd   : > { %v3949_v8 = vpack.c.b16 %v3923_v52, %v3922_v5  ;;  %v3302_v58 = vshll.u32 %v4941_v30, 16  ;;  %v3308_v9 = vshll.u32 %v6255_v4, 16  ;;  %v3312_v28 = vshrl.u32 %v6255_v4, 16  ;;  %v5239_v52 = vld [vmem:[%s5344_s30 + $0x11c] sm:$0x1] }
 0x1be   : > { %v2349_v20 = vpop.f32.mrf.mxu0  ;;  %v3296_v27 = vrot.slane %v3294_v56, 5  ;;  %v2517_v11 = vrot.slane %v5239_v52, 5  ;;  %v3846_v48 = vrot.slane %v6247_v41, 5  ;;  %v3845_v56 = vrot.slane %v3843_v39, 4 }
 0x1bf   : > { %v1696_v10 = vpop.f32.mrf.mxu3  ;;  %4909 = vmatmul.msk.bf16.gmra.mxu2 %vm714_vm4, %v5072_v7  ;;  %v1063_v44 = vpop.f32.mrf.mxu1  ;;  %v2614_v7 = vpack.c.b16 %v2589_v22, %v2588_v16  ;;  %v3287_v16 = vsel %vm5356_vm3, %v3282_v23, %v6238_v19  ;;  %v3304_v30 = vrot.slane %v3302_v58, 5  ;;  %v3310_v41 = vrot.slane %v3308_v9, 5  ;;  %v6280_v23 = vld [vmem:[%s5344_s30 + $0x1dc] sm:$0x1] }
 0x1c0   : > { %v1739_v40 = vadd.f32 %v1696_v10, %v1453_v61  ;;  %v3292_v61 = vrot.slane %v3291_v50, 4  ;;  %v3527_v52 = vunpack.c.l.b16 %v3287_v16 }
 0x1c2   : > { %v1413_v62 = vpop.f32.mrf.mxu2  ;;  %v6260_v53 = vadd.f32 %v2349_v20, %v1739_v40  ;;  %v4767_v20 = vld [vmem:[%s5344_s30 + $0x114] sm:$0xe]  ;;  %v1064_v40 = vadd.f32 %v1063_v44, %v5714_v6  ;;  %v3297_v22 = vsel %vm5356_vm3, %v3292_v61, %v3296_v27 }
 0x1c3   : > { %v1454_v35 = vadd.f32 %v1413_v62, %v1062_v24  ;;  %v5006_v24 = vrot.slane %v4990_v63, 9  ;;  %v3314_v63 = vrot.slane %v3312_v28, 4  ;;  %v3528_v19 = vunpack.c.l.b16 %v3297_v22 }
 0x1c4   : > { %4973 = vmatmul.msk.bf16.gmra.mxu3 %vm714_vm4, %v3552_v55  ;;  %6904 = vst [vmem:[#allocation4_spill] sm:$0xff] %v6260_v53  ;;  %v5238_v55 = vld [vmem:[%s5344_s30 + $0x118] sm:$0xf] }
 0x1c5   : > { %v2514_v5 = vrot.slane %v5238_v55, 5  ;;  %v4783_v55 = vrot.slane %v4767_v20, 9  ;;  %v3844_v61 = vsel %vm5530_vm7, %v5006_v24, %v3843_v39  ;;  %v3315_v28 = vor.u32 %v3314_v63, %v3310_v41  ;;  %v4944_v63 = vld [vmem:[%s5344_s30 + $0x1e0] sm:$0xf] }
 0x1c6   : > { %v2352_v0 = vpop.f32.mrf.mxu0  ;;  %v3553_v24 = vpack.c.b16 %v3528_v19, %v3527_v52  ;;  %v3924_v20 = vunpack.c.l.b16 %v3844_v61 }
 0x1c7   : > { %v1699_v43 = vpop.f32.mrf.mxu3  ;;  %v1066_v10 = vpop.f32.mrf.mxu1  ;;  %v2516_v6 = vrot.slane %v2514_v5, 4 }
 0x1c8   : > { %v1740_v50 = vadd.f32 %v1699_v43, %v1454_v35  ;;  %v3301_v35 = vrot.slane %v3299_v38, 4 }
 0x1c9   : > { %5021 = vmatmul.msk.bf16.gmra.mxu0 %vm714_vm4, %v3949_v8  ;;  %v5073_v8 = vld [vmem:[%s5344_s30 + $0x1c8] sm:$0xff]  ;;  %v2518_v9 = vsel %vm5530_vm7, %v2516_v6, %v2517_v11  ;;  %v4991_v11 = vld [vmem:[%s5344_s30 + $0x1d4] sm:$0xe] }
 0x1ca   : > { %v1415_v62 = vpop.f32.mrf.mxu2  ;;  %4798 = vmatmul.msk.bf16.gmra.mxu1 %vm714_vm4, %v2614_v7  ;;  %v6277_v44 = vadd.f32 %v2352_v0, %v1740_v50  ;;  %v3847_v7 = vsel %vm5530_vm7, %v3845_v56, %v3846_v48  ;;  %v3305_v27 = vor.u32 %v3304_v30, %v3301_v35  ;;  %v2515_v0 = vsel %vm5530_vm7, %v4783_v55, %v2514_v5  ;;  %v6298_v55 = vld [vmem:[%s5344_s30 + $0x1e4] sm:$0xf] }
 0x1cb   : > { %v1455_v43 = vadd.f32 %v1415_v62, %v1064_v40  ;;  %v3318_v50 = vshll.u32 %v6280_v23, 16  ;;  %v1067_v48 = vadd.f32 %v1066_v10, %v5733_v45  ;;  %v3925_v40 = vunpack.c.l.b16 %v3847_v7 }
 0x1cc   : > { %v2590_v22 = vunpack.c.l.b16 %v2515_v0  ;;  %v2591_v56 = vunpack.c.l.b16 %v2518_v9  ;;  %v3306_v5 = vrot.slane %v3305_v27, 4  ;;  %v3316_v35 = vrot.slane %v3315_v28, 4  ;;  %v5240_v0 = vld [vmem:[%s5344_s30 + $0x124] sm:$0xf] }
 0x1cd   : > { %v3320_v30 = vrot.slane %v3318_v50, 5  ;;  %v5007_v52 = vrot.slane %v4991_v11, 9  ;;  %v2521_v9 = vrot.slane %v5240_v0, 5  ;;  %v3323_v28 = vshrl.u32 %v4944_v63, 16 }
 0x1ce   : > { %v2354_v53 = vpop.f32.mrf.mxu0  ;;  %v2615_v6 = vpack.c.b16 %v2591_v56, %v2590_v22  ;;  %v3311_v7 = vsel %vm5356_vm3, %v3306_v5, %v3310_v41  ;;  %v3326_v50 = vshll.u32 %v4944_v63, 16  ;;  %v5074_v5 = vld [vmem:[%s5344_s30 + $0x1d4] sm:$0xff] }
 0x1cf   : > { %v1701_v38 = vpop.f32.mrf.mxu3  ;;  %4910 = vmatmul.msk.bf16.gmra.mxu2 %vm714_vm4, %v5073_v8  ;;  %v1068_v58 = vpop.f32.mrf.mxu1  ;;  %v3850_v8 = vrot.slane %v6255_v4, 5  ;;  %v3321_v27 = vsel %vm5356_vm3, %v3316_v35, %v3320_v30  ;;  %v2523_v35 = vrot.slane %v2521_v9, 4  ;;  %v5241_v30 = vld [vmem:[%s5344_s30 + $0x128] sm:$0x1] }
 0x1d0   : > { %v1741_v39 = vadd.f32 %v1701_v38, %v1455_v43  ;;  %v3950_v43 = vpack.c.b16 %v3925_v40, %v3924_v20  ;;  %v4768_v38 = vld [vmem:[%s5344_s30 + $0x120] sm:$0xe]  ;;  %v3529_v40 = vunpack.c.l.b16 %v3311_v7  ;;  %v2524_v11 = vrot.slane %v5241_v30, 5  ;;  %v6325_v7 = vld [vmem:[%s5344_s30 + $0x1e8] sm:$0x1] }
 0x1d1   : > { %v3852_v41 = vrot.slane %v3850_v8, 4  ;;  %v3851_v22 = vsel %vm5530_vm7, %v5007_v52, %v3850_v8  ;;  %v4784_v56 = vrot.slane %v4768_v38, 9 }
 0x1d2   : > { %v1418_v16 = vpop.f32.mrf.mxu2  ;;  %v6300_v45 = vadd.f32 %v2354_v53, %v1741_v39  ;;  %v3332_v53 = vshll.u32 %v6298_v55, 16  ;;  %v3336_v39 = vshrl.u32 %v6298_v55, 16  ;;  %v2525_v0 = vsel %vm5530_vm7, %v2523_v35, %v2524_v11  ;;  %v4992_v35 = vld [vmem:[%s5344_s30 + $0x1e0] sm:$0xe] }
 0x1d3   : > { %v1456_v62 = vadd.f32 %v1418_v16, %v1067_v48  ;;  %v3853_v48 = vrot.slane %v6280_v23, 5  ;;  %v3530_v16 = vunpack.c.l.b16 %v3321_v27  ;;  %v3926_v27 = vunpack.c.l.b16 %v3851_v22  ;;  %v6337_v22 = vld [vmem:[%s5344_s30 + $0x1f0] sm:$0xf] }
 0x1d4   : > { %4974 = vmatmul.msk.bf16.gmra.mxu3 %vm714_vm4, %v3553_v24  ;;  %v1069_v24 = vadd.f32 %v1068_v58, %v5756_v12  ;;  %v3325_v12 = vrot.slane %v3323_v28, 4  ;;  %v3328_v58 = vrot.slane %v3326_v50, 5  ;;  %v6320_v23 = vrot.slane %v3332_v53, 5 }
 0x1d5   : > { %v3554_v52 = vpack.c.b16 %v3530_v16, %v3529_v40  ;;  %v2522_v38 = vsel %vm5530_vm7, %v4784_v56, %v2521_v9  ;;  %v4947_v40 = vld [vmem:[%s5344_s30 + $0x1ec] sm:$0xf] }
 0x1d6   : > { %v2357_v10 = vpop.f32.mrf.mxu0  ;;  %v3329_v50 = vor.u32 %v3328_v58, %v3325_v12  ;;  %v3350_v58 = vshll.u32 %v4947_v40, 16 }
 0x1d7   : > { %v1704_v19 = vpop.f32.mrf.mxu3  ;;  %v1071_v61 = vpop.f32.mrf.mxu1 }
 0x1d8   : > { %v1742_v4 = vadd.f32 %v1704_v19, %v1456_v62  ;;  %v3330_v56 = vrot.slane %v3329_v50, 4 }
 0x1d9   : > { %5022 = vmatmul.msk.bf16.gmra.mxu0 %vm714_vm4, %v3950_v43  ;;  %v3338_v43 = vrot.slane %v3336_v39, 4  ;;  %v1072_v39 = vadd.f32 %v1071_v61, %v5775_v59  ;;  %v3857_v59 = vrot.slane %v6298_v55, 5  ;;  %v3347_v61 = vshrl.u32 %v4947_v40, 16 }
 0x1da   : > { %v1420_v20 = vpop.f32.mrf.mxu2  ;;  %4799 = vmatmul.msk.bf16.gmra.mxu1 %vm714_vm4, %v2615_v6  ;;  %v6318_v63 = vadd.f32 %v2357_v10, %v1742_v4  ;;  %v3854_v6 = vsel %vm5530_vm7, %v3852_v41, %v3853_v48  ;;  %v2592_v48 = vunpack.c.l.b16 %v2522_v38  ;;  %v5242_v38 = vld [vmem:[%s5344_s30 + $0x130] sm:$0xf]  ;;  %v3335_v55 = vsel %vm5356_vm3, %v3330_v56, %v6320_v23  ;;  %v5075_v56 = vld [vmem:[%s5344_s30 + $0x1e0] sm:$0xff] }
 0x1db   : > { %v1457_v62 = vadd.f32 %v1420_v20, %v1069_v24  ;;  %v3927_v4 = vunpack.c.l.b16 %v3854_v6  ;;  %v3339_v53 = vor.u32 %v3338_v43, %v6320_v23  ;;  %v3342_v24 = vshll.u32 %v6325_v7, 16 }
 0x1dc   : > { %v2593_v20 = vunpack.c.l.b16 %v2525_v0  ;;  %v3356_v43 = vshll.u32 %v6337_v22, 16  ;;  %v3360_v6 = vshrl.u32 %v6337_v22, 16  ;;  %v2528_v0 = vrot.slane %v5242_v38, 5 }
 0x1dd   : > { %v3951_v9 = vpack.c.b16 %v3927_v4, %v3926_v27  ;;  %v4769_v27 = vld [vmem:[%s5344_s30 + $0x12c] sm:$0xe] }
 0x1de   : > { %v2359_v19 = vpop.f32.mrf.mxu0  ;;  %v2616_v12 = vpack.c.b16 %v2593_v20, %v2592_v48  ;;  %v4785_v48 = vrot.slane %v4769_v27, 9  ;;  %v3352_v20 = vrot.slane %v3350_v58, 5  ;;  %v3358_v23 = vrot.slane %v3356_v43, 5 }
 0x1df   : > { %v1706_v8 = vpop.f32.mrf.mxu3  ;;  %4911 = vmatmul.msk.bf16.gmra.mxu2 %vm714_vm4, %v5074_v5  ;;  %v1073_v10 = vpop.f32.mrf.mxu1  ;;  %v3344_v5 = vrot.slane %v3342_v24, 5  ;;  %v3349_v24 = vrot.slane %v3347_v61, 4  ;;  %v3362_v40 = vrot.slane %v3360_v6, 4 }
 0x1e0   : > { %v1743_v28 = vadd.f32 %v1706_v8, %v1457_v62  ;;  %v3340_v62 = vrot.slane %v3339_v53, 4  ;;  %v1074_v50 = vadd.f32 %v1073_v10, %v5792_v32  ;;  %v3531_v32 = vunpack.c.l.b16 %v3335_v55 }
 0x1e1   : > { %v3353_v58 = vor.u32 %v3352_v20, %v3349_v24  ;;  %v3363_v38 = vor.u32 %v3362_v40, %v3358_v23 }
 0x1e2   : > { %v1423_v41 = vpop.f32.mrf.mxu2  ;;  %v6342_v30 = vadd.f32 %v2359_v19, %v1743_v28  ;;  %v5008_v19 = vrot.slane %v4992_v35, 9  ;;  %v3860_v28 = vrot.slane %v6325_v7, 5  ;;  %v3345_v53 = vsel %vm5356_vm3, %v3340_v62, %v3344_v5  ;;  %v5243_v35 = vld [vmem:[%s5344_s30 + $0x134] sm:$0x1] }
 0x1e3   : > { %v1458_v16 = vadd.f32 %v1423_v41, %v1072_v39  ;;  %v3859_v39 = vrot.slane %v3857_v59, 4  ;;  %v2530_v7 = vrot.slane %v2528_v0, 4  ;;  %v3532_v10 = vunpack.c.l.b16 %v3345_v53  ;;  %v6364_v62 = vld [vmem:[%s5344_s30 + $0x1f4] sm:$0x1] }
 0x1e4   : > { %4975 = vmatmul.msk.bf16.gmra.mxu3 %vm714_vm4, %v3554_v52  ;;  %v3858_v61 = vsel %vm5530_vm7, %v5008_v19, %v3857_v59  ;;  %v3354_v24 = vrot.slane %v3353_v58, 4  ;;  %v3364_v20 = vrot.slane %v3363_v38, 4 }
 0x1e5   : > { %v3555_v55 = vpack.c.b16 %v3532_v10, %v3531_v32  ;;  %v3928_v19 = vunpack.c.l.b16 %v3858_v61 }
 0x1e6   : > { %v2362_v11 = vpop.f32.mrf.mxu0  ;;  %v3359_v10 = vsel %vm5356_vm3, %v3354_v24, %v3358_v23  ;;  %v4770_v23 = vld [vmem:[%s5344_s30 + $0x138] sm:$0xe]  ;;  %v5076_v24 = vld [vmem:[%s5344_s30 + $0x1ec] sm:$0xff] }
 0x1e7   : > { %v1709_v8 = vpop.f32.mrf.mxu3  ;;  %v6346_v52 = vpop.f32.mrf.mxu1 }
 0x1e8   : > { %v1744_v4 = vadd.f32 %v1709_v8, %v1458_v16 }
 0x1e9   : > { %5023 = vmatmul.msk.bf16.gmra.mxu0 %vm714_vm4, %v3951_v9  ;;  %v2531_v9 = vrot.slane %v5243_v35, 5 }
 0x1ea   : > { %v1425_v41 = vpop.f32.mrf.mxu2  ;;  %4800 = vmatmul.msk.bf16.gmra.mxu1 %vm714_vm4, %v2616_v12  ;;  %v6361_v8 = vadd.f32 %v2362_v11, %v1744_v4  ;;  %v3861_v12 = vsel %vm5530_vm7, %v3859_v39, %v3860_v28  ;;  %v2529_v11 = vsel %vm5530_vm7, %v4785_v48, %v2528_v0  ;;  %v3366_v4 = vshll.u32 %v6364_v62, 16  ;;  %v4950_v0 = vld [vmem:[%s5344_s30 + $0x1f8] sm:$0xf] }
 0x1eb   : > { %v1459_v16 = vadd.f32 %v1425_v41, %v1074_v50  ;;  %v2532_v27 = vsel %vm5530_vm7, %v2530_v7, %v2531_v9  ;;  %v3929_v28 = vunpack.c.l.b16 %v3861_v12  ;;  %v2594_v53 = vunpack.c.l.b16 %v2529_v11  ;;  %v4993_v41 = vld [vmem:[%s5344_s30 + $0x1ec] sm:$0xe]  ;;  %v6381_v7 = vld [vmem:[%s5344_s30 + $0x1fc] sm:$0xf] }
 0x1ec   : > { %6905 = vst [vmem:[#allocation5_spill] sm:$0xff] %v6361_v8  ;;  %v2595_v39 = vunpack.c.l.b16 %v2532_v27  ;;  %v3864_v48 = vrot.slane %v6337_v22, 5  ;;  %v3371_v61 = vshrl.u32 %v4950_v0, 16  ;;  %v5244_v11 = vld [vmem:[%s5344_s30 + $0x13c] sm:$0xf]  ;;  %v3374_v38 = vshll.u32 %v4950_v0, 16 }
 0x1ed   : > { %v3952_v40 = vpack.c.b16 %v3929_v28, %v3928_v19  ;;  %v2535_v27 = vrot.slane %v5244_v11, 5  ;;  %v4967_v8 = vld [vmem:[%s5344_s30 + $0x23c] sm:$0x1] }
 0x1ee   : > { %v2364_v5 = vpop.f32.mrf.mxu0  ;;  %v2617_v32 = vpack.c.b16 %v2595_v39, %v2594_v53  ;;  %v3373_v39 = vrot.slane %v3371_v61, 4 }
 0x1ef   : > { %v1711_v43 = vpop.f32.mrf.mxu3  ;;  %4912 = vmatmul.msk.bf16.gmra.mxu2 %vm714_vm4, %v5075_v56  ;;  %v2686_v6 = vpop.f32.mrf.mxu1  ;;  %v3368_v56 = vrot.slane %v3366_v4, 5  ;;  %v3866_v4 = vrot.slane %v3864_v48, 4 }
 0x1f0   : > { %v1745_v59 = vadd.f32 %v1711_v43, %v1459_v16  ;;  %v5009_v16 = vrot.slane %v4993_v41, 9  ;;  %v3867_v43 = vrot.slane %v6364_v62, 5  ;;  %v3533_v62 = vunpack.c.l.b16 %v3359_v10 }
 0x1f1   : > { %v3369_v22 = vsel %vm5356_vm3, %v3364_v20, %v3368_v56  ;;  %v2765_v53 = vadd.f32 %v2686_v6, %v5822_v42  ;;  %v4786_v41 = vrot.slane %v4770_v23, 9  ;;  %v2537_v20 = vrot.slane %v2535_v27, 4  ;;  %v5245_v56 = vld [vmem:[%s5344_s30 + $0x140] sm:$0x1] }
 0x1f2   : > { %v2970_v50 = vpop.f32.mrf.mxu2  ;;  %v6383_v35 = vadd.f32 %v2364_v5, %v1745_v59  ;;  %v2764_v5 = vadd.f32 %v6346_v52, %v5809_v46  ;;  %v3380_v59 = vshll.u32 %v6381_v7, 16  ;;  %v3865_v19 = vsel %vm5530_vm7, %v5009_v16, %v3864_v48  ;;  %v6416_v48 = vld [vmem:[%s5344_s30 + $0x200] sm:$0x1] }
 0x1f3   : > { %v3534_v52 = vunpack.c.l.b16 %v3369_v22  ;;  %v2538_v0 = vrot.slane %v5245_v56, 5  ;;  %v3868_v42 = vsel %vm5530_vm7, %v3866_v4, %v3867_v43  ;;  %v3930_v10 = vunpack.c.l.b16 %v3865_v19  ;;  %v4994_v56 = vld [vmem:[%s5344_s30 + $0x1f8] sm:$0xe] }
 0x1f4   : > { %4976 = vmatmul.msk.bf16.gmra.mxu3 %vm714_vm4, %v3555_v55  ;;  %6906 = vst [vmem:[#allocation6_spill] sm:$0xff] %v6383_v35  ;;  %v3384_v55 = vshrl.u32 %v6381_v7, 16  ;;  %v3050_v28 = vadd.f32 %v2970_v50, %v2764_v5  ;;  %v6413_v6 = vrot.slane %v3380_v59, 5  ;;  %v3931_v22 = vunpack.c.l.b16 %v3868_v42 }
 0x1f5   : > { %v2536_v5 = vsel %vm5530_vm7, %v4786_v41, %v2535_v27  ;;  %v2539_v43 = vsel %vm5530_vm7, %v2537_v20, %v2538_v0  ;;  %v3556_v59 = vpack.c.b16 %v3534_v52, %v3533_v62  ;;  %v4953_v27 = vld [vmem:[%s5344_s30 + $0x204] sm:$0xf]  ;;  %v6432_v41 = vld [vmem:[%s5344_s30 + $0x208] sm:$0xf]  ;;  %v3871_v0 = vrot.slane %v6381_v7, 5 }
 0x1f6   : > { %v4020_v9 = vpop.f32.mrf.mxu0  ;;  %v3386_v50 = vrot.slane %v3384_v55, 4  ;;  %v3390_v55 = vshll.u32 %v6416_v48, 16  ;;  %v3953_v62 = vpack.c.b16 %v3931_v22, %v3930_v10  ;;  %v3404_v42 = vshll.u32 %v6432_v41, 16 }
 0x1f7   : > { %v3623_v12 = vpop.f32.mrf.mxu3  ;;  %v6387_v58 = vpop.f32.mrf.mxu1  ;;  %v5010_v22 = vrot.slane %v4994_v56, 9  ;;  %v5247_v56 = vld [vmem:[%s5344_s30 + $0x14c] sm:$0x1] }
 0x1f8   : > { %v3703_v16 = vadd.f32 %v3623_v12, %v3050_v28  ;;  %v3387_v12 = vor.u32 %v3386_v50, %v6413_v6  ;;  %v3392_v20 = vrot.slane %v3390_v55, 5  ;;  %v3408_v50 = vshrl.u32 %v6432_v41, 16  ;;  %v4771_v55 = vld [vmem:[%s5344_s30 + $0x144] sm:$0xe] }
 0x1f9   : > { %5024 = vmatmul.msk.bf16.gmra.mxu0 %vm714_vm4, %v3952_v40  ;;  %v3376_v40 = vrot.slane %v3374_v38, 5  ;;  %v2766_v7 = vadd.f32 %v6387_v58, %v5835_v15 }
 0x1fa   : > { %v2972_v46 = vpop.f32.mrf.mxu2  ;;  %4801 = vmatmul.msk.bf16.gmra.mxu1 %vm714_vm4, %v2617_v32  ;;  %v6426_v19 = vadd.f32 %v4020_v9, %v3703_v16 }
 0x1fb   : > { %v3051_v11 = vadd.f32 %v2972_v46, %v2765_v53  ;;  %v3377_v4 = vor.u32 %v3376_v40, %v3373_v39  ;;  %v2596_v46 = vunpack.c.l.b16 %v2536_v5  ;;  %v3388_v39 = vrot.slane %v3387_v12, 4 }
 0x1fc   : > { %v3395_v40 = vshrl.u32 %v4953_v27, 16  ;;  %v3874_v5 = vrot.slane %v6416_v48, 5  ;;  %v3873_v12 = vrot.slane %v3871_v0, 4 }
 0x1fd   : > { %v3378_v52 = vrot.slane %v3377_v4, 4 }
 0x1fe   : > { %v4022_v32 = vpop.f32.mrf.mxu0  ;;  %v3397_v48 = vrot.slane %v3395_v40, 4 }
 0x1ff   : > { %v3625_v61 = vpop.f32.mrf.mxu3  ;;  %4913 = vmatmul.msk.bf16.gmra.mxu2 %vm714_vm4, %v5076_v24  ;;  %v2691_v38 = vpop.f32.mrf.mxu1  ;;  %v2597_v24 = vunpack.c.l.b16 %v2539_v43  ;;  %v5246_v43 = vld [vmem:[%s5344_s30 + $0x148] sm:$0xf] }
 0x200   : > { %v3704_v23 = vadd.f32 %v3625_v61, %v3051_v11  ;;  %v3398_v11 = vshll.u32 %v4953_v27, 16  ;;  %v2542_v4 = vrot.slane %v5246_v43, 5  ;;  %v3410_v27 = vrot.slane %v3408_v50, 4 }
 0x201   : > { %v2767_v15 = vadd.f32 %v2691_v38, %v5848_v13  ;;  %v2545_v43 = vrot.slane %v5247_v56, 5 }
 0x202   : > { %v6428_v28 = vadd.f32 %v4022_v32, %v3704_v23  ;;  %v2975_v53 = vpop.f32.mrf.mxu2  ;;  %v2618_v32 = vpack.c.b16 %v2597_v24, %v2596_v46  ;;  %v3383_v23 = vsel %vm5356_vm3, %v3378_v52, %v6413_v6  ;;  %v3400_v46 = vrot.slane %v3398_v11, 5  ;;  %v6465_v6 = vld [vmem:[%s5344_s30 + $0x20c] sm:$0x1]  ;;  %v5077_v52 = vld [vmem:[%s5344_s30 + $0x1f8] sm:$0xff] }
 0x203   : > { %v6460_v24 = vrot.slane %v3404_v42, 5  ;;  %v3872_v11 = vsel %vm5530_vm7, %v5010_v22, %v3871_v0  ;;  %v3414_v42 = vshll.u32 %v6465_v6, 16 }
 0x204   : > { %v5086_v9 = vpack.c.bf16 %v6428_v28, %v6426_v19  ;;  %4977 = vmatmul.msk.bf16.gmra.mxu3 %vm714_vm4, %v3556_v59  ;;  %v3393_v59 = vsel %vm5356_vm3, %v3388_v39, %v3392_v20  ;;  %v4787_v39 = vrot.slane %v4771_v55, 9  ;;  %v2544_v20 = vrot.slane %v2542_v4, 4 }
 0x205   : > { %v3536_v40 = vunpack.c.l.b16 %v3393_v59  ;;  %v3401_v13 = vor.u32 %v3400_v46, %v3397_v48  ;;  %v3411_v38 = vor.u32 %v3410_v27, %v6460_v24  ;;  %v3932_v59 = vunpack.c.l.b16 %v3872_v11 }
 0x206   : > { %5087 = vst [vmem:[%s6437_s19] sm:$0xff] %v5086_v9   ;;  %v4025_v16 = vpop.f32.mrf.mxu0  ;;  %v3052_v9 = vadd.f32 %v2975_v53, %v2766_v7  ;;  %v3875_v53 = vsel %vm5530_vm7, %v3873_v12, %v3874_v5  ;;  %v2546_v0 = vsel %vm5530_vm7, %v2544_v20, %v2545_v43  ;;  %v3416_v46 = vrot.slane %v3414_v42, 5  ;;  %v4956_v20 = vld [vmem:[%s5344_s30 + $0x210] sm:$0xf]  ;;  %v6494_v43 = vld [vmem:[%s5344_s30 + $0x214] sm:$0xf] }
 0x207   : > { %v3628_v10 = vpop.f32.mrf.mxu3  ;;  %v6447_v61 = vpop.f32.mrf.mxu1  ;;  %v3933_v12 = vunpack.c.l.b16 %v3875_v53  ;;  %v3402_v48 = vrot.slane %v3401_v13, 4  ;;  %v3878_v27 = vrot.slane %v6432_v41, 5  ;;  %v3881_v13 = vrot.slane %v6465_v6, 5 }
 0x208   : > { %v3705_v50 = vadd.f32 %v3628_v10, %v3052_v9  ;;  %v3412_v10 = vrot.slane %v3411_v38, 4 }
 0x209   : > { %5025 = vmatmul.msk.bf16.gmra.mxu0 %vm714_vm4, %v3953_v62  ;;  %v3535_v62 = vunpack.c.l.b16 %v3383_v23  ;;  %v2543_v23 = vsel %vm5530_vm7, %v4787_v39, %v2542_v4  ;;  %v4995_v39 = vld [vmem:[%s5344_s30 + $0x204] sm:$0xe]  ;;  %v3954_v56 = vpack.c.b16 %v3933_v12, %v3932_v59  ;;  %v3407_v41 = vsel %vm5356_vm3, %v3402_v48, %v6460_v24 }
 0x20a   : > { %v2977_v58 = vpop.f32.mrf.mxu2  ;;  %4802 = vmatmul.msk.bf16.gmra.mxu1 %vm714_vm4, %v2618_v32  ;;  %v6481_v9 = vadd.f32 %v4025_v16, %v3705_v50  ;;  %v5011_v16 = vrot.slane %v4995_v39, 9  ;;  %v3417_v11 = vsel %vm5356_vm3, %v3412_v10, %v3416_v46  ;;  %v3880_v53 = vrot.slane %v3878_v27, 4  ;;  %v5248_v50 = vld [vmem:[%s5344_s30 + $0x154] sm:$0xf]  ;;  %v5078_v46 = vld [vmem:[%s5344_s30 + $0x204] sm:$0xff] }
 0x20b   : > { %v3053_v35 = vadd.f32 %v2977_v58, %v2767_v15  ;;  %v3557_v5 = vpack.c.b16 %v3536_v40, %v3535_v62  ;;  %v2598_v58 = vunpack.c.l.b16 %v2543_v23  ;;  %v2768_v24 = vadd.f32 %v6447_v61, %v5861_v57  ;;  %v4772_v23 = vld [vmem:[%s5344_s30 + $0x150] sm:$0xe]  ;;  %v5249_v39 = vld [vmem:[%s5344_s30 + $0x158] sm:$0x1] }
 0x20c   : > { %v3537_v6 = vunpack.c.l.b16 %v3407_v41  ;;  %v3538_v59 = vunpack.c.l.b16 %v3417_v11  ;;  %v3879_v57 = vsel %vm5530_vm7, %v5011_v16, %v3878_v27  ;;  %v3882_v61 = vsel %vm5530_vm7, %v3880_v53, %v3881_v13 }
 0x20d   : > { %v3935_v53 = vunpack.c.l.b16 %v3882_v61 }
 0x20e   : > { %v4027_v32 = vpop.f32.mrf.mxu0  ;;  %v3558_v16 = vpack.c.b16 %v3538_v59, %v3537_v6 }
 0x20f   : > { %v3630_v7 = vpop.f32.mrf.mxu3  ;;  %4914 = vmatmul.msk.bf16.gmra.mxu2 %vm714_vm4, %v5077_v52  ;;  %v2696_v55 = vpop.f32.mrf.mxu1  ;;  %v2599_v52 = vunpack.c.l.b16 %v2546_v0  ;;  %v3422_v0 = vshll.u32 %v4956_v20, 16 }
 0x210   : > { %v3706_v22 = vadd.f32 %v3630_v7, %v3053_v35  ;;  %v3419_v7 = vshrl.u32 %v4956_v20, 16  ;;  %v2769_v48 = vadd.f32 %v2696_v55, %v5874_v54  ;;  %v6520_v55 = vld [vmem:[%s5344_s30 + $0x218] sm:$0x1] }
 0x211   : > { %v2619_v40 = vpack.c.b16 %v2599_v52, %v2598_v58  ;;  %v4788_v58 = vrot.slane %v4772_v23, 9 }
 0x212   : > { %v6483_v15 = vadd.f32 %v4027_v32, %v3706_v22  ;;  %v2980_v4 = vpop.f32.mrf.mxu2  ;;  %v2549_v32 = vrot.slane %v5248_v50, 5  ;;  %v3428_v22 = vshll.u32 %v6494_v43, 16  ;;  %v3421_v20 = vrot.slane %v3419_v7, 4 }
 0x213   : > { %v3054_v12 = vadd.f32 %v2980_v4, %v2768_v24  ;;  %v3424_v4 = vrot.slane %v3422_v0, 5  ;;  %v3934_v50 = vunpack.c.l.b16 %v3879_v57 }
 0x214   : > { %v5091_v35 = vpack.c.bf16 %v6483_v15, %v6481_v9  ;;  %4978 = vmatmul.msk.bf16.gmra.mxu3 %vm714_vm4, %v3557_v5  ;;  %v3432_v5 = vshrl.u32 %v6494_v43, 16  ;;  %v2551_v52 = vrot.slane %v2549_v32, 4  ;;  %v6517_v41 = vrot.slane %v3428_v22, 5 }
 0x215   : > { %v2550_v7 = vsel %vm5530_vm7, %v4788_v58, %v2549_v32  ;;  %v3425_v0 = vor.u32 %v3424_v4, %v3421_v20  ;;  %v3438_v22 = vshll.u32 %v6520_v55, 16  ;;  %v6535_v32 = vld [vmem:[%s5344_s30 + $0x220] sm:$0xf]  ;;  %v3955_v57 = vpack.c.b16 %v3935_v53, %v3934_v50 }
 0x216   : > { %5163 = vst [vmem:[%s6437_s19 + $0x8] sm:$0xff] %v5091_v35   ;;  %v4030_v62 = vpop.f32.mrf.mxu0  ;;  %v2552_v35 = vrot.slane %v5249_v39, 5  ;;  %v3434_v54 = vrot.slane %v3432_v5, 4  ;;  %v2600_v59 = vunpack.c.l.b16 %v2550_v7  ;;  %v3452_v20 = vshll.u32 %v6535_v32, 16 }
 0x217   : > { %v3633_v38 = vpop.f32.mrf.mxu3  ;;  %v6500_v42 = vpop.f32.mrf.mxu1 }
 0x218   : > { %v2553_v24 = vsel %vm5530_vm7, %v2551_v52, %v2552_v35  ;;  %v4996_v52 = vld [vmem:[%s5344_s30 + $0x210] sm:$0xe]  ;;  %v2770_v53 = vadd.f32 %v6500_v42, %v5887_v33 }
 0x219   : > { %5026 = vmatmul.msk.bf16.gmra.mxu0 %vm714_vm4, %v3954_v56 }
 0x21a   : > { %v2982_v10 = vpop.f32.mrf.mxu2  ;;  %4803 = vmatmul.msk.bf16.gmra.mxu1 %vm714_vm4, %v2619_v40  ;;  %v3707_v40 = vadd.f32 %v3633_v38, %v3054_v12  ;;  %v3435_v38 = vor.u32 %v3434_v54, %v6517_v41 }
 0x21b   : > { %v3055_v56 = vadd.f32 %v2982_v10, %v2769_v48  ;;  %v2601_v48 = vunpack.c.l.b16 %v2553_v24  ;;  %v4959_v10 = vld [vmem:[%s5344_s30 + $0x21c] sm:$0xf] }
 0x21c   : > { %v6529_v5 = vadd.f32 %v4030_v62, %v3707_v40  ;;  %v3436_v58 = vrot.slane %v3435_v38, 4  ;;  %v3440_v62 = vrot.slane %v3438_v22, 5  ;;  %v3443_v39 = vshrl.u32 %v4959_v10, 16 }
 0x21d   : > { %v3446_v35 = vshll.u32 %v4959_v10, 16  ;;  %v2620_v54 = vpack.c.b16 %v2601_v48, %v2600_v59  ;;  %v3885_v40 = vrot.slane %v6494_v43, 5  ;;  %v6557_v22 = vrot.slane %v3452_v20, 5 }
 0x21e   : > { %v4032_v11 = vpop.f32.mrf.mxu0  ;;  %v3441_v24 = vsel %vm5356_vm3, %v3436_v58, %v3440_v62  ;;  %v3445_v43 = vrot.slane %v3443_v39, 4  ;;  %v3888_v10 = vrot.slane %v6520_v55, 5 }
 0x21f   : > { %v3635_v27 = vpop.f32.mrf.mxu3  ;;  %4915 = vmatmul.msk.bf16.gmra.mxu2 %vm714_vm4, %v5078_v46  ;;  %v2701_v13 = vpop.f32.mrf.mxu1  ;;  %v3426_v46 = vrot.slane %v3425_v0, 4  ;;  %v4773_v0 = vld [vmem:[%s5344_s30 + $0x15c] sm:$0xe]  ;;  %v3448_v38 = vrot.slane %v3446_v35, 5  ;;  %v3540_v20 = vunpack.c.l.b16 %v3441_v24 }
 0x220   : > { %v3708_v23 = vadd.f32 %v3635_v27, %v3055_v56  ;;  %v3456_v56 = vshrl.u32 %v6535_v32, 16  ;;  %v5250_v27 = vld [vmem:[%s5344_s30 + $0x160] sm:$0xf]  ;;  %v2771_v42 = vadd.f32 %v2701_v13, %v5900_v31  ;;  %v4789_v58 = vrot.slane %v4773_v0, 9 }
 0x221   : > { %v3431_v7 = vsel %vm5356_vm3, %v3426_v46, %v6517_v41  ;;  %v3887_v41 = vrot.slane %v3885_v40, 4  ;;  %v5079_v46 = vld [vmem:[%s5344_s30 + $0x210] sm:$0xff]  ;;  %v3449_v31 = vor.u32 %v3448_v38, %v3445_v43 }
 0x222   : > { %v6531_v12 = vadd.f32 %v4032_v11, %v3708_v23  ;;  %v2985_v6 = vpop.f32.mrf.mxu2  ;;  %v5012_v23 = vrot.slane %v4996_v52, 9  ;;  %v3458_v59 = vrot.slane %v3456_v56, 4  ;;  %v3539_v35 = vunpack.c.l.b16 %v3431_v7 }
 0x223   : > { %v3056_v33 = vadd.f32 %v2985_v6, %v2770_v53  ;;  %v3450_v38 = vrot.slane %v3449_v31, 4 }
 0x224   : > { %v5096_v61 = vpack.c.bf16 %v6531_v12, %v6529_v5  ;;  %4979 = vmatmul.msk.bf16.gmra.mxu3 %vm714_vm4, %v3558_v16  ;;  %v2556_v16 = vrot.slane %v5250_v27, 5  ;;  %v3886_v6 = vsel %vm5530_vm7, %v5012_v23, %v3885_v40  ;;  %v3459_v13 = vor.u32 %v3458_v59, %v6557_v22 }
 0x225   : > { %v3889_v27 = vsel %vm5530_vm7, %v3887_v41, %v3888_v10  ;;  %v3559_v23 = vpack.c.b16 %v3540_v20, %v3539_v35  ;;  %v4997_v20 = vld [vmem:[%s5344_s30 + $0x21c] sm:$0xe] }
 0x226   : > { %5164 = vst [vmem:[%s6437_s19 + $0x10] sm:$0xff] %v5096_v61   ;;  %v4035_v4 = vpop.f32.mrf.mxu0  ;;  %v6563_v61 = vld [vmem:[%s5344_s30 + $0x224] sm:$0x1]  ;;  %v2558_v62 = vrot.slane %v2556_v16, 4  ;;  %v2557_v7 = vsel %vm5530_vm7, %v4789_v58, %v2556_v16  ;;  %v3937_v43 = vunpack.c.l.b16 %v3889_v27  ;;  %v3460_v59 = vrot.slane %v3459_v13, 4 }
 0x227   : > { %v3638_v11 = vpop.f32.mrf.mxu3  ;;  %v6545_v50 = vpop.f32.mrf.mxu1  ;;  %v3462_v56 = vshll.u32 %v6563_v61, 16  ;;  %v2602_v16 = vunpack.c.l.b16 %v2557_v7  ;;  %v4962_v58 = vld [vmem:[%s5344_s30 + $0x228] sm:$0xf] }
 0x228   : > { %v2772_v27 = vadd.f32 %v6545_v50, %v5913_v1  ;;  %v3470_v7 = vshll.u32 %v4962_v58, 16  ;;  %v3895_v50 = vrot.slane %v6563_v61, 5 }
 0x229   : > { %5027 = vmatmul.msk.bf16.gmra.mxu0 %vm714_vm4, %v3955_v57  ;;  %v5251_v57 = vld [vmem:[%s5344_s30 + $0x164] sm:$0x1] }
 0x22a   : > { %v2987_v48 = vpop.f32.mrf.mxu2  ;;  %4804 = vmatmul.msk.bf16.gmra.mxu1 %vm714_vm4, %v2620_v54  ;;  %v2559_v52 = vrot.slane %v5251_v57, 5  ;;  %v3709_v54 = vadd.f32 %v3638_v11, %v3056_v33  ;;  %v3936_v11 = vunpack.c.l.b16 %v3886_v6  ;;  %v3464_v33 = vrot.slane %v3462_v56, 5  ;;  %v6587_v57 = vld [vmem:[%s5344_s30 + $0x22c] sm:$0xf] }
 0x22b   : > { %v3057_v39 = vadd.f32 %v2987_v48, %v2771_v42  ;;  %v3892_v6 = vrot.slane %v6535_v32, 5  ;;  %v5252_v56 = vld [vmem:[%s5344_s30 + $0x16c] sm:$0xf] }
 0x22c   : > { %v2560_v40 = vsel %vm5530_vm7, %v2558_v62, %v2559_v52  ;;  %v6578_v42 = vadd.f32 %v4035_v4, %v3709_v54  ;;  %v3956_v62 = vpack.c.b16 %v3937_v43, %v3936_v11  ;;  %v3465_v35 = vsel %vm5356_vm3, %v3460_v59, %v3464_v33  ;;  %v5080_v59 = vld [vmem:[%s5344_s30 + $0x21c] sm:$0xff] }
 0x22d   : > { %v2603_v10 = vunpack.c.l.b16 %v2560_v40  ;;  %v2563_v54 = vrot.slane %v5252_v56, 5  ;;  %v3480_v40 = vshrl.u32 %v6587_v57, 16  ;;  %v3894_v1 = vrot.slane %v3892_v6, 4 }
 0x22e   : > { %v4037_v55 = vpop.f32.mrf.mxu0 }
 0x22f   : > { %v3640_v53 = vpop.f32.mrf.mxu3  ;;  %4916 = vmatmul.msk.bf16.gmra.mxu2 %vm714_vm4, %v5079_v46  ;;  %v2706_v0 = vpop.f32.mrf.mxu1  ;;  %v2621_v4 = vpack.c.b16 %v2603_v10, %v2602_v16  ;;  %v2565_v16 = vrot.slane %v2563_v54, 4  ;;  %v5253_v10 = vld [vmem:[%s5344_s30 + $0x170] sm:$0x1]  ;;  %v3896_v61 = vsel %vm5530_vm7, %v3894_v1, %v3895_v50 }
 0x230   : > { %v3710_v24 = vadd.f32 %v3640_v53, %v3057_v39  ;;  %v3455_v39 = vsel %vm5356_vm3, %v3450_v38, %v6557_v22  ;;  %v4774_v53 = vld [vmem:[%s5344_s30 + $0x168] sm:$0xe]  ;;  %v3476_v22 = vshll.u32 %v6587_v57, 16  ;;  %v2773_v43 = vadd.f32 %v2706_v0, %v5927_v25 }
 0x231   : > { %v3541_v32 = vunpack.c.l.b16 %v3455_v39  ;;  %v4790_v33 = vrot.slane %v4774_v53, 9  ;;  %v3472_v39 = vrot.slane %v3470_v7, 5 }
 0x232   : > { %v6580_v48 = vadd.f32 %v4037_v55, %v3710_v24  ;;  %v2990_v41 = vpop.f32.mrf.mxu2  ;;  %v3467_v55 = vshrl.u32 %v4962_v58, 16  ;;  %v3542_v24 = vunpack.c.l.b16 %v3465_v35  ;;  %v6611_v35 = vrot.slane %v3476_v22, 5 }
 0x233   : > { %v3058_v11 = vadd.f32 %v2990_v41, %v2772_v27  ;;  %v3482_v41 = vrot.slane %v3480_v40, 4  ;;  %v2564_v53 = vsel %vm5530_vm7, %v4790_v33, %v2563_v54 }
 0x234   : > { %v5101_v46 = vpack.c.bf16 %v6580_v48, %v6578_v42  ;;  %4980 = vmatmul.msk.bf16.gmra.mxu3 %vm714_vm4, %v3559_v23  ;;  %v5013_v23 = vrot.slane %v4997_v20, 9  ;;  %v3469_v58 = vrot.slane %v3467_v55, 4  ;;  %v6614_v20 = vld [vmem:[%s5344_s30 + $0x230] sm:$0x1]  ;;  %v3560_v27 = vpack.c.b16 %v3542_v24, %v3541_v32 }
 0x235   : > { %v3483_v40 = vor.u32 %v3482_v41, %v6611_v35  ;;  %v2604_v24 = vunpack.c.l.b16 %v2564_v53 }
 0x236   : > { %5165 = vst [vmem:[%s6437_s19 + $0x18] sm:$0xff] %v5101_v46   ;;  %v4040_v52 = vpop.f32.mrf.mxu0  ;;  %v2566_v46 = vrot.slane %v5253_v10, 5 }
 0x237   : > { %v3643_v31 = vpop.f32.mrf.mxu3  ;;  %v6597_v13 = vpop.f32.mrf.mxu1 }
 0x238   : > { %v3711_v25 = vadd.f32 %v3643_v31, %v3058_v11  ;;  %v2567_v7 = vsel %vm5530_vm7, %v2565_v16, %v2566_v46  ;;  %v3473_v31 = vor.u32 %v3472_v39, %v3469_v58  ;;  %v3939_v11 = vunpack.c.l.b16 %v3896_v61  ;;  %v6639_v39 = vld [vmem:[%s5344_s30 + $0x238] sm:$0xf]  ;;  %v6907_v61 = vld [vmem:[#allocation2_spill] sm:$0xff] }
 0x239   : > { %5028 = vmatmul.msk.bf16.gmra.mxu0 %vm714_vm4, %v3956_v62  ;;  %v3899_v58 = vrot.slane %v6587_v57, 5 }
 0x23a   : > { %v2992_v38 = vpop.f32.mrf.mxu2  ;;  %4805 = vmatmul.msk.bf16.gmra.mxu1 %vm714_vm4, %v2621_v4  ;;  %v3893_v4 = vsel %vm5530_vm7, %v5013_v23, %v3892_v6  ;;  %v3486_v6 = vshll.u32 %v6614_v20, 16  ;;  %v3474_v50 = vrot.slane %v3473_v31, 4 }
 0x23b   : > { %v3059_v62 = vadd.f32 %v2992_v38, %v2773_v43  ;;  %v3938_v23 = vunpack.c.l.b16 %v3893_v4  ;;  %v6627_v43 = vadd.f32 %v4040_v52, %v3711_v25  ;;  %v2605_v38 = vunpack.c.l.b16 %v2567_v7  ;;  %v4998_v52 = vld [vmem:[%s5344_s30 + $0x228] sm:$0xe]  ;;  %v4775_v7 = vld [vmem:[%s5344_s30 + $0x174] sm:$0xe] }
 0x23c   : > { %v3488_v33 = vrot.slane %v3486_v6, 5  ;;  %v5014_v57 = vrot.slane %v4998_v52, 9  ;;  %v3504_v6 = vshrl.u32 %v6639_v39, 16 }
 0x23d   : > { %v3957_v16 = vpack.c.b16 %v3939_v11, %v3938_v23  ;;  %v2622_v46 = vpack.c.b16 %v2605_v38, %v2604_v24  ;;  %v3902_v24 = vrot.slane %v6614_v20, 5  ;;  %v5081_v38 = vld [vmem:[%s5344_s30 + $0x228] sm:$0xff] }
 0x23e   : > { %v4042_v0 = vpop.f32.mrf.mxu0 }
 0x23f   : > { %v3645_v56 = vpop.f32.mrf.mxu3  ;;  %4917 = vmatmul.msk.bf16.gmra.mxu2 %vm714_vm4, %v5080_v59  ;;  %v2711_v55 = vpop.f32.mrf.mxu1  ;;  %v3484_v59 = vrot.slane %v3483_v40, 4  ;;  %v3500_v40 = vshll.u32 %v6639_v39, 16 }
 0x240   : > { %v3712_v22 = vadd.f32 %v3645_v56, %v3059_v62  ;;  %v4965_v62 = vld [vmem:[%s5344_s30 + $0x234] sm:$0xf]  ;;  %v2774_v56 = vadd.f32 %v6597_v13, %v6907_v61  ;;  %v2775_v23 = vadd.f32 %v2711_v55, %v5974_v47  ;;  %v3506_v61 = vrot.slane %v3504_v6, 4 }
 0x241   : > { %v3489_v53 = vsel %vm5356_vm3, %v3484_v59, %v3488_v33  ;;  %v3494_v31 = vshll.u32 %v4965_v62, 16  ;;  %v5255_v59 = vld [vmem:[%s5344_s30 + $0x17c] sm:$0x1]  ;;  %v3502_v55 = vrot.slane %v3500_v40, 5  ;;  %v3510_v6 = vshll.u32 %v4967_v8, 16 }
 0x242   : > { %v6629_v32 = vadd.f32 %v4042_v0, %v3712_v22  ;;  %v2995_v54 = vpop.f32.mrf.mxu2  ;;  %v5254_v0 = vld [vmem:[%s5344_s30 + $0x178] sm:$0xf]  ;;  %v3491_v22 = vshrl.u32 %v4965_v62, 16  ;;  %v2573_v33 = vrot.slane %v5255_v59, 5  ;;  %v3544_v62 = vunpack.c.l.b16 %v3489_v53 }
 0x243   : > { %v2570_v4 = vrot.slane %v5254_v0, 5  ;;  %v3060_v13 = vadd.f32 %v2995_v54, %v2774_v56  ;;  %v3900_v54 = vsel %vm5530_vm7, %v5014_v57, %v3899_v58  ;;  %v3496_v47 = vrot.slane %v3494_v31, 5 }
 0x244   : > { %v5106_v1 = vpack.c.bf16 %v6629_v32, %v6627_v43  ;;  %4981 = vmatmul.msk.bf16.gmra.mxu3 %vm714_vm4, %v3560_v27  ;;  %v3479_v27 = vsel %vm5356_vm3, %v3474_v50, %v6611_v35  ;;  %v3901_v35 = vrot.slane %v3899_v58, 4  ;;  %v3493_v0 = vrot.slane %v3491_v22, 4 }
 0x245   : > { %v2572_v50 = vrot.slane %v2570_v4, 4  ;;  %v3543_v52 = vunpack.c.l.b16 %v3479_v27  ;;  %v3940_v22 = vunpack.c.l.b16 %v3900_v54  ;;  %v3507_v40 = vor.u32 %v3506_v61, %v3502_v55 }
 0x246   : > { %5166 = vst [vmem:[%s6437_s19 + $0x20] sm:$0xff] %v5106_v1   ;;  %v4045_v10 = vpop.f32.mrf.mxu0  ;;  %v4791_v1 = vrot.slane %v4775_v7, 9  ;;  %v3903_v20 = vsel %vm5530_vm7, %v3901_v35, %v3902_v24  ;;  %v3497_v31 = vor.u32 %v3496_v47, %v3493_v0 }
 0x247   : > { %v3648_v41 = vpop.f32.mrf.mxu3  ;;  %v6641_v25 = vpop.f32.mrf.mxu1  ;;  %v2574_v58 = vsel %vm5530_vm7, %v2572_v50, %v2573_v33  ;;  %v3561_v57 = vpack.c.b16 %v3544_v62, %v3543_v52  ;;  %v3508_v50 = vrot.slane %v3507_v40, 4  ;;  %v3512_v33 = vrot.slane %v3510_v6, 5 }
 0x248   : > { %v2571_v27 = vsel %vm5530_vm7, %v4791_v1, %v2570_v4  ;;  %v2607_v24 = vunpack.c.l.b16 %v2574_v58  ;;  %v3498_v1 = vrot.slane %v3497_v31, 4  ;;  %v3906_v62 = vrot.slane %v6639_v39, 5 }
 0x249   : > { %5029 = vmatmul.msk.bf16.gmra.mxu0 %vm714_vm4, %v3957_v16  ;;  %v2606_v35 = vunpack.c.l.b16 %v2571_v27  ;;  %v2776_v47 = vadd.f32 %v6641_v25, %v5985_v51 }
 0x24a   : > { %v2997_v11 = vpop.f32.mrf.mxu2  ;;  %4806 = vmatmul.msk.bf16.gmra.mxu1 %vm714_vm4, %v2622_v46  ;;  %v3713_v46 = vadd.f32 %v3648_v41, %v3060_v13  ;;  %v3941_v41 = vunpack.c.l.b16 %v3903_v20  ;;  %v3503_v61 = vsel %vm5356_vm3, %v3498_v1, %v3502_v55  ;;  %v3908_v39 = vrot.slane %v3906_v62, 4 }
 0x24b   : > { %v3061_v16 = vadd.f32 %v2997_v11, %v2775_v23  ;;  %v2623_v52 = vpack.c.b16 %v2607_v24, %v2606_v35  ;;  %v3545_v51 = vunpack.c.l.b16 %v3503_v61 }
 0x24c   : > { %v6670_v13 = vadd.f32 %v4045_v10, %v3713_v46  ;;  %v4999_v10 = vld [vmem:[%s5344_s30 + $0x234] sm:$0xe]  ;;  %v3513_v46 = vsel %vm5356_vm3, %v3508_v50, %v3512_v33 }
 0x24d   : > { %v3546_v25 = vunpack.c.l.b16 %v3513_v46 }
 0x24e   : > { %v4047_v56 = vpop.f32.mrf.mxu0 }
 0x24f   : > { %v3650_v7 = vpop.f32.mrf.mxu3  ;;  %4918 = vmatmul.msk.bf16.gmra.mxu2 %vm714_vm4, %v5081_v38  ;;  %v2716_v59 = vpop.f32.mrf.mxu1  ;;  %v3958_v38 = vpack.c.b16 %v3941_v41, %v3940_v22 }
 0x250   : > { %v3714_v53 = vadd.f32 %v3650_v7, %v3061_v16  ;;  %v6908_v7 = vld [vmem:[#allocation3_spill] sm:$0xff] }
 0x251   : > { %v2777_v27 = vadd.f32 %v2716_v59, %v6908_v7 }
 0x252   : > { %v6672_v23 = vadd.f32 %v4047_v56, %v3714_v53  ;;  %v3000_v11 = vpop.f32.mrf.mxu2  ;;  %v5015_v56 = vrot.slane %v4999_v10, 9  ;;  %v3909_v53 = vrot.slane %v4967_v8, 5 }
 0x253   : > { %v3062_v20 = vadd.f32 %v3000_v11, %v2776_v47  ;;  %v3562_v11 = vpack.c.b16 %v3546_v25, %v3545_v51 }
 0x254   : > { %v5111_v4 = vpack.c.bf16 %v6672_v23, %v6670_v13  ;;  %4982 = vmatmul.msk.bf16.gmra.mxu3 %vm714_vm4, %v3561_v57  ;;  %v5082_v57 = vld [vmem:[%s5344_s30 + $0x234] sm:$0xff]  ;;  %v3907_v36 = vsel %vm5530_vm7, %v5015_v56, %v3906_v62  ;;  %v3910_v55 = vsel %vm5530_vm7, %v3908_v39, %v3909_v53 }
 0x255   : > { %v3942_v8 = vunpack.c.l.b16 %v3907_v36  ;;  %v3943_v35 = vunpack.c.l.b16 %v3910_v55 }
 0x256   : > { %5167 = vst [vmem:[%s6437_s19 + $0x28] sm:$0xff] %v5111_v4   ;;  %v4050_v16 = vpop.f32.mrf.mxu0 }
 0x257   : > { %v3653_v54 = vpop.f32.mrf.mxu3  ;;  %v2719_v0 = vpop.f32.mrf.mxu1  ;;  %v3959_v18 = vpack.c.b16 %v3943_v35, %v3942_v8 }
 0x258   : > { %v3715_v41 = vadd.f32 %v3653_v54, %v3062_v20  ;;  %v2778_v10 = vadd.f32 %v2719_v0, %v6021_v29 }
 0x259   : > { %5030 = vmatmul.msk.bf16.gmra.mxu0 %vm714_vm4, %v3958_v38 }
 0x25a   : > { %v3002_v58 = vpop.f32.mrf.mxu2  ;;  %4807 = vmatmul.msk.bf16.gmra.mxu1 %vm714_vm4, %v2623_v52  ;;  %v6695_v24 = vadd.f32 %v4050_v16, %v3715_v41 }
 0x25b   : > { %v3063_v22 = vadd.f32 %v3002_v58, %v2777_v27 }
 0x25e   : > { %v4052_v31 = vpop.f32.mrf.mxu0 }
 0x25f   : > { %v3655_v40 = vpop.f32.mrf.mxu3  ;;  %4919 = vmatmul.msk.bf16.gmra.mxu2 %vm714_vm4, %v5082_v57  ;;  %v2721_v59 = vpop.f32.mrf.mxu1 }
 0x260   : > { %v3716_v6 = vadd.f32 %v3655_v40, %v3063_v22  ;;  %v2779_v62 = vadd.f32 %v2721_v59, %v6045_v37 }
 0x262   : > { %v6697_v4 = vadd.f32 %v4052_v31, %v3716_v6  ;;  %v3005_v38 = vpop.f32.mrf.mxu2 }
 0x263   : > { %v3064_v16 = vadd.f32 %v3005_v38, %v2778_v10 }
 0x264   : > { %v5116_v1 = vpack.c.bf16 %v6697_v4, %v6695_v24  ;;  %4983 = vmatmul.msk.bf16.gmra.mxu3 %vm714_vm4, %v3562_v11 }
 0x266   : > { %5168 = vst [vmem:[%s6437_s19 + $0x30] sm:$0xff] %v5116_v1   ;;  %v4055_v50 = vpop.f32.mrf.mxu0 }
 0x267   : > { %v3658_v33 = vpop.f32.mrf.mxu3  ;;  %v2724_v52 = vpop.f32.mrf.mxu1 }
 0x268   : > { %v3717_v61 = vadd.f32 %v3658_v33, %v3064_v16  ;;  %v2780_v57 = vadd.f32 %v2724_v52, %v6064_v34 }
 0x269   : > { %5031 = vmatmul.msk.bf16.gmra.mxu0 %vm714_vm4, %v3959_v18 }
 0x26a   : > { %v3007_v54 = vpop.f32.mrf.mxu2  ;;  %v6706_v27 = vadd.f32 %v4055_v50, %v3717_v61 }
 0x26b   : > { %v3065_v47 = vadd.f32 %v3007_v54, %v2779_v62 }
 0x26e   : > { %v4057_v46 = vpop.f32.mrf.mxu0 }
 0x26f   : > { %v3660_v56 = vpop.f32.mrf.mxu3  ;;  %v2726_v20 = vpop.f32.mrf.mxu1 }
 0x270   : > { %v3718_v7 = vadd.f32 %v3660_v56, %v3065_v47  ;;  %v2781_v51 = vadd.f32 %v2726_v20, %v6088_v3 }
 0x272   : > { %v6708_v58 = vadd.f32 %v4057_v46, %v3718_v7  ;;  %v3010_v39 = vpop.f32.mrf.mxu2 }
 0x273   : > { %v3066_v22 = vadd.f32 %v3010_v39, %v2780_v57 }
 0x274   : > { %v5121_v29 = vpack.c.bf16 %v6708_v58, %v6706_v27 }
 0x276   : > { %5169 = vst [vmem:[%s6437_s19 + $0x38] sm:$0xff] %v5121_v29   ;;  %v4060_v0 = vpop.f32.mrf.mxu0 }
 0x277   : > { %v3663_v53 = vpop.f32.mrf.mxu3  ;;  %v2729_v37 = vpop.f32.mrf.mxu1 }
 0x278   : > { %v3719_v31 = vadd.f32 %v3663_v53, %v3066_v22  ;;  %v2782_v1 = vadd.f32 %v2729_v37, %v6107_v2 }
 0x27a   : > { %v3012_v25 = vpop.f32.mrf.mxu2  ;;  %v6715_v6 = vadd.f32 %v4060_v0, %v3719_v31 }
 0x27b   : > { %v3067_v41 = vadd.f32 %v3012_v25, %v2781_v51 }
 0x27e   : > { %v4062_v36 = vpop.f32.mrf.mxu0 }
 0x27f   : > { %v3665_v55 = vpop.f32.mrf.mxu3  ;;  %v2731_v40 = vpop.f32.mrf.mxu1 }
 0x280   : > { %v3720_v59 = vadd.f32 %v3665_v55, %v3067_v41  ;;  %v2783_v50 = vadd.f32 %v2731_v40, %v6131_v26  ;;  %v4196_v41 = vadd.f32 %v6428_v28, %v6426_v19 }
 0x282   : > { %v6717_v11 = vadd.f32 %v4062_v36, %v3720_v59  ;;  %v3015_v8 = vpop.f32.mrf.mxu2  ;;  %v4197_v36 = vadd.f32 %v4196_v41, %v6481_v9 }
 0x283   : > { %v3068_v18 = vadd.f32 %v3015_v8, %v2782_v1 }
 0x284   : > { %v5126_v35 = vpack.c.bf16 %v6717_v11, %v6715_v6 }
 0x286   : > { %5170 = vst [vmem:[%s6437_s19 + $0x40] sm:$0xff] %v5126_v35   ;;  %v4065_v34 = vpop.f32.mrf.mxu0 }
 0x287   : > { %v3668_v38 = vpop.f32.mrf.mxu3  ;;  %v2734_v3 = vpop.f32.mrf.mxu1 }
 0x288   : > { %v3721_v10 = vadd.f32 %v3668_v38, %v3068_v18  ;;  %v2784_v26 = vadd.f32 %v2734_v3, %v6150_v60 }
 0x28a   : > { %v3017_v33 = vpop.f32.mrf.mxu2  ;;  %v6724_v61 = vadd.f32 %v4065_v34, %v3721_v10 }
 0x28b   : > { %v3069_v52 = vadd.f32 %v3017_v33, %v2783_v50 }
 0x28e   : > { %v4067_v16 = vpop.f32.mrf.mxu0 }
 0x28f   : > { %v3670_v62 = vpop.f32.mrf.mxu3  ;;  %v2736_v54 = vpop.f32.mrf.mxu1 }
 0x290   : > { %v3722_v47 = vadd.f32 %v3670_v62, %v3069_v52  ;;  %v2785_v0 = vadd.f32 %v2736_v54, %v6174_v14  ;;  %v4198_v14 = vadd.f32 %v4197_v36, %v6483_v15  ;;  %v6909_v36 = vld [vmem:[#allocation4_spill] sm:$0xff] }
 0x292   : > { %v6726_v46 = vadd.f32 %v4067_v16, %v3722_v47  ;;  %v3020_v56 = vpop.f32.mrf.mxu2  ;;  %v4199_v8 = vadd.f32 %v4198_v14, %v6529_v5 }
 0x293   : > { %v3070_v29 = vadd.f32 %v3020_v56, %v2784_v26 }
 0x294   : > { %v5131_v20 = vpack.c.bf16 %v6726_v46, %v6724_v61  ;;  %v4200_v3 = vadd.f32 %v4199_v8, %v6531_v12 }
 0x296   : > { %5171 = vst [vmem:[%s6437_s19 + $0x48] sm:$0xff] %v5131_v20   ;;  %v4070_v2 = vpop.f32.mrf.mxu0  ;;  %v4201_v18 = vadd.f32 %v4200_v3, %v6578_v42 }
 0x297   : > { %v3673_v7 = vpop.f32.mrf.mxu3  ;;  %v2739_v39 = vpop.f32.mrf.mxu1 }
 0x298   : > { %v3723_v57 = vadd.f32 %v3673_v7, %v3070_v29  ;;  %v2786_v1 = vadd.f32 %v2739_v39, %v6193_v21  ;;  %v4202_v10 = vadd.f32 %v4201_v18, %v6580_v48 }
 0x29a   : > { %v3022_v53 = vpop.f32.mrf.mxu2  ;;  %v6736_v55 = vadd.f32 %v4070_v2, %v3723_v57  ;;  %v4203_v62 = vadd.f32 %v4202_v10, %v6627_v43 }
 0x29b   : > { %v3071_v37 = vadd.f32 %v3022_v53, %v2785_v0 }
 0x29c   : > { %v4204_v2 = vadd.f32 %v4203_v62, %v6629_v32 }
 0x29e   : > { %v4072_v22 = vpop.f32.mrf.mxu0  ;;  %v4205_v21 = vadd.f32 %v4204_v2, %v6670_v13 }
 0x29f   : > { %v3675_v51 = vpop.f32.mrf.mxu3  ;;  %v2741_v25 = vpop.f32.mrf.mxu1 }
 0x2a0   : > { %v3724_v31 = vadd.f32 %v3675_v51, %v3071_v37  ;;  %v2787_v33 = vadd.f32 %v2741_v25, %v6217_v49  ;;  %v4206_v29 = vadd.f32 %v4205_v21, %v6672_v23 }
 0x2a2   : > { %v6738_v40 = vadd.f32 %v4072_v22, %v3724_v31  ;;  %v3025_v60 = vpop.f32.mrf.mxu2  ;;  %v4207_v53 = vadd.f32 %v4206_v29, %v6695_v24 }
 0x2a3   : > { %v3072_v50 = vadd.f32 %v3025_v60, %v2786_v1 }
 0x2a4   : > { %v5136_v59 = vpack.c.bf16 %v6738_v40, %v6736_v55  ;;  %v4208_v51 = vadd.f32 %v4207_v53, %v6697_v4 }
 0x2a6   : > { %5172 = vst [vmem:[%s6437_s19 + $0x50] sm:$0xff] %v5136_v59   ;;  %v4075_v35 = vpop.f32.mrf.mxu0  ;;  %v4209_v41 = vadd.f32 %v4208_v51, %v6706_v27 }
 0x2a7   : > { %v3678_v34 = vpop.f32.mrf.mxu3  ;;  %v2744_v38 = vpop.f32.mrf.mxu1 }
 0x2a8   : > { %v3725_v54 = vadd.f32 %v3678_v34, %v3072_v50  ;;  %v2788_v25 = vadd.f32 %v2744_v38, %v6236_v17  ;;  %v4210_v59 = vadd.f32 %v4209_v41, %v6708_v58 }
 0x2aa   : > { %v3027_v52 = vpop.f32.mrf.mxu2  ;;  %v6753_v39 = vadd.f32 %v4075_v35, %v3725_v54  ;;  %v4211_v35 = vadd.f32 %v4210_v59, %v6715_v6 }
 0x2ab   : > { %v3073_v16 = vadd.f32 %v3027_v52, %v2787_v33 }
 0x2ac   : > { %v4212_v50 = vadd.f32 %v4211_v35, %v6717_v11 }
 0x2ae   : > { %v4077_v47 = vpop.f32.mrf.mxu0  ;;  %v4213_v17 = vadd.f32 %v4212_v50, %v6724_v61 }
 0x2af   : > { %v3680_v56 = vpop.f32.mrf.mxu3  ;;  %v2746_v20 = vpop.f32.mrf.mxu1 }
 0x2b0   : > { %v3726_v7 = vadd.f32 %v3680_v56, %v3073_v16  ;;  %v2789_v60 = vadd.f32 %v2746_v20, %v6909_v36  ;;  %v4214_v16 = vadd.f32 %v4213_v17, %v6726_v46 }
 0x2b2   : > { %v6755_v26 = vadd.f32 %v4077_v47, %v3726_v7  ;;  %v3030_v49 = vpop.f32.mrf.mxu2  ;;  %v4215_v47 = vadd.f32 %v4214_v16, %v6736_v55 }
 0x2b3   : > { %v3074_v31 = vadd.f32 %v3030_v49, %v2788_v25 }
 0x2b4   : > { %v5141_v0 = vpack.c.bf16 %v6755_v26, %v6753_v39  ;;  %v4216_v7 = vadd.f32 %v4215_v47, %v6738_v40 }
 0x2b6   : > { %5173 = vst [vmem:[%s6437_s19 + $0x58] sm:$0xff] %v5141_v0   ;;  %v4080_v37 = vpop.f32.mrf.mxu0  ;;  %v4217_v49 = vadd.f32 %v4216_v7, %v6753_v39 }
 0x2b7   : > { %v3683_v57 = vpop.f32.mrf.mxu3  ;;  %v2749_v22 = vpop.f32.mrf.mxu1 }
 0x2b8   : > { %v3727_v34 = vadd.f32 %v3683_v57, %v3074_v31  ;;  %v2790_v54 = vadd.f32 %v2749_v22, %v6277_v44 }
 0x2ba   : > { %v3032_v14 = vpop.f32.mrf.mxu2  ;;  %v6770_v38 = vadd.f32 %v4080_v37, %v3727_v34  ;;  %v4218_v37 = vadd.f32 %v4217_v49, %v6755_v26 }
 0x2bb   : > { %v3075_v8 = vadd.f32 %v3032_v14, %v2789_v60 }
 0x2bc   : > { %v4219_v44 = vadd.f32 %v4218_v37, %v6770_v38 }
 0x2be   : > { %v4082_v3 = vpop.f32.mrf.mxu0 }
 0x2bf   : > { %v3685_v1 = vpop.f32.mrf.mxu3  ;;  %v2751_v18 = vpop.f32.mrf.mxu1 }
 0x2c0   : > { %v3728_v33 = vadd.f32 %v3685_v1, %v3075_v8  ;;  %v2791_v0 = vadd.f32 %v2751_v18, %v6300_v45 }
 0x2c2   : > { %v6772_v52 = vadd.f32 %v4082_v3, %v3728_v33  ;;  %v3035_v10 = vpop.f32.mrf.mxu2 }
 0x2c3   : > { %v3076_v20 = vadd.f32 %v3035_v10, %v2790_v54 }
 0x2c4   : > { %v5146_v62 = vpack.c.bf16 %v6772_v52, %v6770_v38  ;;  %v4220_v41 = vadd.f32 %v4219_v44, %v6772_v52  ;;  %v6911_v44 = vld [vmem:[#allocation6_spill] sm:$0xff] }
 0x2c6   : > { %5174 = vst [vmem:[%s6437_s19 + $0x60] sm:$0xff] %v5146_v62   ;;  %v4085_v56 = vpop.f32.mrf.mxu0 }
 0x2c7   : > { %v3688_v2 = vpop.f32.mrf.mxu3  ;;  %v2754_v21 = vpop.f32.mrf.mxu1 }
 0x2c8   : > { %v3729_v29 = vadd.f32 %v3688_v2, %v3076_v20  ;;  %v2792_v14 = vadd.f32 %v2754_v21, %v6318_v63  ;;  %v6910_v20 = vld [vmem:[#allocation5_spill] sm:$0xff] }
 0x2ca   : > { %v3037_v53 = vpop.f32.mrf.mxu2  ;;  %v4126_v22 = vadd.f32 %v4085_v56, %v3729_v29 }
 0x2cb   : > { %v3077_v57 = vadd.f32 %v3037_v53, %v2791_v0 }
 0x2cc   : > { %v4221_v36 = vadd.f32 %v4220_v41, %v4126_v22 }
 0x2ce   : > { %v4087_v51 = vpop.f32.mrf.mxu0 }
 0x2cf   : > { %v3690_v25 = vpop.f32.mrf.mxu3  ;;  %v2756_v8 = vpop.f32.mrf.mxu1 }
 0x2d0   : > { %v3730_v31 = vadd.f32 %v3690_v25, %v3077_v57  ;;  %v2793_v33 = vadd.f32 %v2756_v8, %v6342_v30 }
 0x2d2   : > { %v4127_v60 = vadd.f32 %v4087_v51, %v3730_v31  ;;  %v3040_v59 = vpop.f32.mrf.mxu2 }
 0x2d3   : > { %v3078_v34 = vadd.f32 %v3040_v59, %v2792_v14 }
 0x2d4   : > { %v5151_v45 = vpack.c.bf16 %v4127_v60, %v4126_v22  ;;  %v4222_v35 = vadd.f32 %v4221_v36, %v4127_v60 }
 0x2d6   : > { %5175 = vst [vmem:[%s6437_s19 + $0x68] sm:$0xff] %v5151_v45   ;;  %v4090_v3 = vpop.f32.mrf.mxu0 }
 0x2d7   : > { %v3693_v1 = vpop.f32.mrf.mxu3  ;;  %v2759_v62 = vpop.f32.mrf.mxu1 }
 0x2d8   : > { %v3731_v18 = vadd.f32 %v3693_v1, %v3078_v34  ;;  %v2794_v2 = vadd.f32 %v2759_v62, %v6910_v20 }
 0x2da   : > { %v4128_v50 = vadd.f32 %v4090_v3, %v3731_v18  ;;  %v3042_v17 = vpop.f32.mrf.mxu2 }
 0x2db   : > { %v3079_v16 = vadd.f32 %v3042_v17, %v2793_v33 }
 0x2dc   : > { %v4223_v10 = vadd.f32 %v4222_v35, %v4128_v50 }
 0x2de   : > { %v4092_v54 = vpop.f32.mrf.mxu0 }
 0x2df   : > { %v3695_v47 = vpop.f32.mrf.mxu3  ;;  %v2761_v0 = vpop.f32.mrf.mxu1 }
 0x2e0   : > { %v3732_v63 = vadd.f32 %v3695_v47, %v3079_v16  ;;  %v2795_v51 = vadd.f32 %v2761_v0, %v6911_v44 }
 0x2e2   : > { %v4129_v56 = vadd.f32 %v4092_v54, %v3732_v63  ;;  %v3045_v7 = vpop.f32.mrf.mxu2 }
 0x2e3   : > { %v3080_v29 = vadd.f32 %v3045_v7, %v2794_v2 }
 0x2e4   : > { %v5156_v21 = vpack.c.bf16 %v4129_v56, %v4128_v50  ;;  %v4224_v49 = vadd.f32 %v4223_v10, %v4129_v56 }
 0x2e6   : > { %5176 = vst [vmem:[%s6437_s19 + $0x70] sm:$0xff] %v5156_v21   ;;  %v4095_v53 = vpop.f32.mrf.mxu0 }
 0x2e7   : > { %v3698_v37 = vpop.f32.mrf.mxu3 }
 0x2e8   : > { %v3733_v30 = vadd.f32 %v3698_v37, %v3080_v29 }
 0x2ea   : > { %v4130_v57 = vadd.f32 %v4095_v53, %v3733_v30  ;;  %v3047_v25 = vpop.f32.mrf.mxu2 }
 0x2eb   : > { %v3081_v31 = vadd.f32 %v3047_v25, %v2795_v51 }
 0x2ec   : > { %v4225_v41 = vadd.f32 %v4224_v49, %v4130_v57 }
 0x2ee   : > { %v4097_v59 = vpop.f32.mrf.mxu0 }
 0x2ef   : > { %v3700_v36 = vpop.f32.mrf.mxu3 }
 0x2f0   : > { %v3734_v14 = vadd.f32 %v3700_v36, %v3081_v31 }
 0x2f2   : > { %v4131_v8 = vadd.f32 %v4097_v59, %v3734_v14 }
 0x2f4   : > { %v5161_v45 = vpack.c.bf16 %v4131_v8, %v4130_v57  ;;  %v4226_v35 = vadd.f32 %v4225_v41, %v4131_v8 }
 0x2f6   : > { %5177 = vst [vmem:[%s6437_s19 + $0x78] sm:$0xff] %v5161_v45   ;;  %v4227_v34 = vrot.slane %v4226_v35, 4 }
 0x2f8   : > { %v4228_v3 = vadd.f32 %v4227_v34, %v4226_v35 }
 0x2fa   : > { %v4229_v1 = vrot.slane %v4228_v3, 2 }
 0x2fc   : > { %v4230_v18 = vadd.f32 %v4229_v1, %v4228_v3 }
 0x2fe   : > { %v4231_v33 = vrot.slane %v4230_v18, 1 }
 0x300   : > { %v4232_v17 = vadd.f32 %v4231_v33, %v4230_v18 }
 0x302   : > { %4335 = vst [vmem:[%s6797_s23] sm:$0x1] %v4232_v17  ;;  %v6800_v10 = vmul.f32 0.00390625, %v4232_v17 }
 0x304   : > { %v6803_v16 = vsub.f32 %v4126_v22, %v6800_v10  ;;  %v6806_v62 = vsub.f32 %v4127_v60, %v6800_v10  ;;  %v6809_v54 = vsub.f32 %v4128_v50, %v6800_v10  ;;  %v6812_v47 = vsub.f32 %v4129_v56, %v6800_v10 }
 0x305   : > { %v6815_v63 = vsub.f32 %v4130_v57, %v6800_v10  ;;  %v6818_v20 = vsub.f32 %v4131_v8, %v6800_v10  ;;  %v4234_v2 = vsub.f32 %v6426_v19, %v6800_v10  ;;  %v4235_v22 = vsub.f32 %v6428_v28, %v6800_v10 }
 0x306   : > { %v4236_v60 = vsub.f32 %v6481_v9, %v6800_v10  ;;  %v4237_v56 = vsub.f32 %v6483_v15, %v6800_v10  ;;  %v4238_v21 = vsub.f32 %v6529_v5, %v6800_v10  ;;  %v4239_v0 = vsub.f32 %v6531_v12, %v6800_v10 }
 0x307   : > { %v4266_v50 = vmul.f32 %v4234_v2, %v4234_v2  ;;  %v4267_v7 = vmul.f32 %v4235_v22, %v4235_v22  ;;  %v4240_v28 = vsub.f32 %v6578_v42, %v6800_v10  ;;  %v4241_v30 = vsub.f32 %v6580_v48, %v6800_v10 }
 0x308   : > { %v4268_v49 = vmul.f32 %v4236_v60, %v4236_v60  ;;  %v4269_v19 = vmul.f32 %v4237_v56, %v4237_v56  ;;  %v4270_v37 = vmul.f32 %v4238_v21, %v4238_v21  ;;  %v4271_v57 = vmul.f32 %v4239_v0, %v4239_v0 }
 0x309   : > { %v4298_v29 = vadd.f32 %v4267_v7, %v4266_v50  ;;  %v4242_v5 = vsub.f32 %v6627_v43, %v6800_v10  ;;  %v4272_v44 = vmul.f32 %v4240_v28, %v4240_v28  ;;  %v4243_v12 = vsub.f32 %v6629_v32, %v6800_v10 }
 0x30a   : > { %v4273_v25 = vmul.f32 %v4241_v30, %v4241_v30  ;;  %v4244_v42 = vsub.f32 %v6670_v13, %v6800_v10  ;;  %v4245_v48 = vsub.f32 %v6672_v23, %v6800_v10  ;;  %v4246_v43 = vsub.f32 %v6695_v24, %v6800_v10 }
 0x30b   : > { %v4299_v53 = vadd.f32 %v4298_v29, %v4268_v49  ;;  %v4274_v31 = vmul.f32 %v4242_v5, %v4242_v5  ;;  %v4275_v14 = vmul.f32 %v4243_v12, %v4243_v12  ;;  %v4247_v32 = vsub.f32 %v6697_v4, %v6800_v10 }
 0x30c   : > { %v4276_v8 = vmul.f32 %v4244_v42, %v4244_v42  ;;  %v4277_v35 = vmul.f32 %v4245_v48, %v4245_v48  ;;  %v4248_v13 = vsub.f32 %v6706_v27, %v6800_v10  ;;  %v4278_v3 = vmul.f32 %v4246_v43, %v4246_v43 }
 0x30d   : > { %v4300_v9 = vadd.f32 %v4299_v53, %v4269_v19  ;;  %v4249_v23 = vsub.f32 %v6708_v58, %v6800_v10  ;;  %v4279_v18 = vmul.f32 %v4247_v32, %v4247_v32  ;;  %v4250_v24 = vsub.f32 %v6715_v6, %v6800_v10 }
 0x30e   : > { %v4280_v17 = vmul.f32 %v4248_v13, %v4248_v13  ;;  %v4251_v4 = vsub.f32 %v6717_v11, %v6800_v10  ;;  %v4252_v27 = vsub.f32 %v6724_v61, %v6800_v10  ;;  %v4253_v58 = vsub.f32 %v6726_v46, %v6800_v10 }
 0x30f   : > { %v4301_v15 = vadd.f32 %v4300_v9, %v4270_v37  ;;  %v4281_v22 = vmul.f32 %v4249_v23, %v4249_v23  ;;  %v4282_v50 = vmul.f32 %v4250_v24, %v4250_v24  ;;  %v4254_v6 = vsub.f32 %v6736_v55, %v6800_v10 }
 0x310   : > { %v4283_v56 = vmul.f32 %v4251_v4, %v4251_v4  ;;  %v4284_v49 = vmul.f32 %v4252_v27, %v4252_v27  ;;  %v4255_v11 = vsub.f32 %v6738_v40, %v6800_v10  ;;  %v4285_v0 = vmul.f32 %v4253_v58, %v4253_v58 }
 0x311   : > { %v4302_v51 = vadd.f32 %v4301_v15, %v4271_v57  ;;  %v4256_v61 = vsub.f32 %v6753_v39, %v6800_v10  ;;  %v4286_v53 = vmul.f32 %v4254_v6, %v4254_v6  ;;  %v4257_v46 = vsub.f32 %v6755_v26, %v6800_v10 }
 0x312   : > { %v4287_v37 = vmul.f32 %v4255_v11, %v4255_v11  ;;  %v4258_v55 = vsub.f32 %v6770_v38, %v6800_v10  ;;  %v4259_v40 = vsub.f32 %v6772_v52, %v6800_v10  ;;  %v4294_v38 = vmul.f32 %v6809_v54, %v6809_v54 }
 0x313   : > { %v4303_v41 = vadd.f32 %v4302_v51, %v4272_v44  ;;  %v4288_v30 = vmul.f32 %v4256_v61, %v4256_v61  ;;  %v4289_v15 = vmul.f32 %v4257_v46, %v4257_v46  ;;  %v4295_v52 = vmul.f32 %v6812_v47, %v6812_v47 }
 0x314   : > { %v4290_v44 = vmul.f32 %v4258_v55, %v4258_v55  ;;  %v4291_v39 = vmul.f32 %v4259_v40, %v4259_v40 }
 0x315   : > { %v4304_v36 = vadd.f32 %v4303_v41, %v4273_v25  ;;  %v4292_v25 = vmul.f32 %v6803_v16, %v6803_v16  ;;  %v4293_v41 = vmul.f32 %v6806_v62, %v6806_v62  ;;  %v4297_v16 = vmul.f32 %v6818_v20, %v6818_v20 }
 0x317   : > { %v4305_v59 = vadd.f32 %v4304_v36, %v4274_v31  ;;  %v4296_v36 = vmul.f32 %v6815_v63, %v6815_v63 }
 0x319   : > { %v4306_v45 = vadd.f32 %v4305_v59, %v4275_v14 }
 0x31b   : > { %v4307_v34 = vadd.f32 %v4306_v45, %v4276_v8 }
 0x31d   : > { %v4308_v1 = vadd.f32 %v4307_v34, %v4277_v35 }
 0x31f   : > { %v4309_v33 = vadd.f32 %v4308_v1, %v4278_v3 }
 0x321   : > { %v4310_v2 = vadd.f32 %v4309_v33, %v4279_v18 }
 0x323   : > { %v4311_v60 = vadd.f32 %v4310_v2, %v4280_v17 }
 0x325   : > { %v4312_v7 = vadd.f32 %v4311_v60, %v4281_v22 }
 0x327   : > { %v4313_v21 = vadd.f32 %v4312_v7, %v4282_v50 }
 0x329   : > { %v4314_v29 = vadd.f32 %v4313_v21, %v4283_v56 }
 0x32b   : > { %v4315_v19 = vadd.f32 %v4314_v29, %v4284_v49 }
 0x32d   : > { %v4316_v28 = vadd.f32 %v4315_v19, %v4285_v0 }
 0x32f   : > { %v4317_v9 = vadd.f32 %v4316_v28, %v4286_v53 }
 0x331   : > { %v4318_v57 = vadd.f32 %v4317_v9, %v4287_v37 }
 0x333   : > { %v4319_v5 = vadd.f32 %v4318_v57, %v4288_v30 }
 0x335   : > { %v4320_v51 = vadd.f32 %v4319_v5, %v4289_v15 }
 0x337   : > { %v4321_v12 = vadd.f32 %v4320_v51, %v4290_v44 }
 0x339   : > { %v4322_v26 = vadd.f32 %v4321_v12, %v4291_v39 }
 0x33b   : > { %v4323_v42 = vadd.f32 %v4322_v26, %v4292_v25 }
 0x33d   : > { %v4324_v31 = vadd.f32 %v4323_v42, %v4293_v41 }
 0x33f   : > { %v4325_v10 = vadd.f32 %v4324_v31, %v4294_v38 }
 0x341   : > { %v4326_v48 = vadd.f32 %v4325_v10, %v4295_v52 }
 0x343   : > { %v4327_v14 = vadd.f32 %v4326_v48, %v4296_v36 }
 0x345   : > { %v4328_v59 = vadd.f32 %v4327_v14, %v4297_v16 }
 0x347   : > { %v4329_v62 = vrot.slane %v4328_v59, 4 }
 0x349   : > { %v4330_v43 = vadd.f32 %v4329_v62, %v4328_v59 }
 0x34b   : > { %v4331_v8 = vrot.slane %v4330_v43, 2 }
 0x34d   : > { %v4332_v45 = vadd.f32 %v4331_v8, %v4330_v43 }
 0x34f   : > { %v4333_v32 = vrot.slane %v4332_v45, 1 }
 0x351   : > { %v4334_v54 = vadd.f32 %v4333_v32, %v4332_v45 }
 0x353   : > { %4336 = vst [vmem:[%s6797_s23 + $0x1] sm:$0x1] %v4334_v54 }
 0x354 PF: > { %s14_s14 = sadd.s32 1, %s5278_s14   ;;  %s6912_s12 = smov %s5274_s13 }
 0x355   : > { %p11_p6 = scmp.ge.s32.totalorder %s14_s14, 4   ;;  %s6913_s13 = smov %s6915_s15 }
 0x357   :  { %13 = sbr.rel (!%p11_p6) target bundleno = 2 (0x2), region = 72 }

</bundles_post_ra>
